<compile_context>
chip_gen: v7x
topology: tpu7x:2x2x1
jax: 0.10.0
libtpu: 0.0.40
codegen_flags: <defaults>
</compile_context>

<pallas_src>
import functools

import jax
import jax.numpy as jnp
from jax.experimental import pallas as pl
from jax.experimental.pallas import tpu as pltpu


# ----------------------------------------------------------------------------
# Tile-size helpers (respect the (8, 128) BlockSpec constraint)
# ----------------------------------------------------------------------------

def _row_tile(m, target=256):
    """Largest multiple of 8 that divides m and is <= target, else full m."""
    if m % 8 != 0:
        return m
    t = min(target, m)
    t -= t % 8
    while t >= 8:
        if m % t == 0:
            return t
        t -= 8
    return m


def _col_tile(n, target=512):
    """Largest multiple of 128 that divides n and is <= target, else full n."""
    if n % 128 != 0:
        return n
    t = min(target, n)
    t -= t % 128
    while t >= 128:
        if n % t == 0:
            return t
        t -= 128
    return n


# ----------------------------------------------------------------------------
# Pallas kernels
# ----------------------------------------------------------------------------

def _fused_linear_kernel(*refs, ln, ln_eps, activation, residual):
    """o = act(LN(x) @ w + b) (+ residual).

    Ref order: x, [ln_g, ln_b,] w, b, [res,] o.
    x tile: [tm, K] (full K so LN statistics are exact), w tile: [K, tn].
    """
    it = iter(refs)
    x_ref = next(it)
    if ln:
        g_ref = next(it)
        bl_ref = next(it)
    w_ref = next(it)
    b_ref = next(it)
    if residual:
        r_ref = next(it)
    o_ref = next(it)

    x = x_ref[...].astype(jnp.float32)
    if ln:
        mu = jnp.mean(x, axis=-1, keepdims=True)
        xc = x - mu
        var = jnp.mean(xc * xc, axis=-1, keepdims=True)
        x = xc * jax.lax.rsqrt(var + ln_eps)
        x = x * g_ref[...].astype(jnp.float32) + bl_ref[...].astype(jnp.float32)

    y = jnp.dot(x, w_ref[...].astype(jnp.float32),
                preferred_element_type=jnp.float32)
    y = y + b_ref[...].astype(jnp.float32)

    if activation == "gelu":
        # tanh-approx GELU (guaranteed Mosaic lowering).
        # TODO(synk): PyTorch nn.GELU default is the exact erf-based GELU.
        y = 0.5 * y * (1.0 + jnp.tanh(0.7978845608028654 *
                                      (y + 0.044715 * y * y * y)))
    if residual:
        y = y + r_ref[...].astype(jnp.float32)

    o_ref[...] = y.astype(o_ref.dtype)


def _patch_embed_kernel(x_ref, w_ref, b_ref, pos_ref, o_ref):
    """o = x @ w + b + pos  (pos streamed per token tile, no HBM broadcast)."""
    y = jnp.dot(x_ref[...].astype(jnp.float32),
                w_ref[...].astype(jnp.float32),
                preferred_element_type=jnp.float32)
    y = y + b_ref[...].astype(jnp.float32) + pos_ref[...].astype(jnp.float32)
    o_ref[...] = y.astype(o_ref.dtype)


def _layernorm_kernel(x_ref, g_ref, b_ref, o_ref, *, eps):
    x = x_ref[...].astype(jnp.float32)
    mu = jnp.mean(x, axis=-1, keepdims=True)
    xc = x - mu
    var = jnp.mean(xc * xc, axis=-1, keepdims=True)
    y = xc * jax.lax.rsqrt(var + eps)
    o_ref[...] = (y * g_ref[...] + b_ref[...]).astype(o_ref.dtype)


def _attention_kernel(qkv_ref, o_ref, *, heads, dh, scale):
    """qkv_ref: [1, N, 3E] (per batch element), o_ref: [1, N, E].

    Heads are contiguous lane chunks of the QKV slab, so no head-split
    transposes are needed in HBM; the output is written as one lane-dense
    [N, E] store.
    TODO(synk): pack several heads per MXU pass for >=256-wide contractions.
    """
    E = heads * dh
    outs = []
    for h in range(heads):
        q = qkv_ref[0, :, h * dh:(h + 1) * dh].astype(jnp.float32) * scale
        k = qkv_ref[0, :, E + h * dh:E + (h + 1) * dh].astype(jnp.float32)
        v = qkv_ref[0, :, 2 * E + h * dh:2 * E + (h + 1) * dh].astype(jnp.float32)
        # s = q @ k^T  (contract on head_dim, no explicit transpose op)
        s = jax.lax.dot_general(q, k, (((1,), (1,)), ((), ())),
                                preferred_element_type=jnp.float32)
        s = s - jnp.max(s, axis=-1, keepdims=True)
        p = jnp.exp(s)
        p = p * pl.reciprocal(jnp.sum(p, axis=-1, keepdims=True), approx=True)
        outs.append(jnp.dot(p, v, preferred_element_type=jnp.float32))
    o_ref[...] = jnp.concatenate(outs, axis=-1)[None, :, :].astype(o_ref.dtype)


# ----------------------------------------------------------------------------
# Pallas wrappers
# ----------------------------------------------------------------------------

def fused_linear(x, w, b, *, ln_gamma=None, ln_beta=None, ln_eps=1e-6,
                 activation=None, residual=None,
                 tm_target=256, tn_target=512):
    """act(LN(x) @ w + b) (+ residual); x: [M, K], w: [K, N], b: [N]."""
    M, K = x.shape
    N = w.shape[1]
    tm = _row_tile(M, tm_target)
    tn = _col_tile(N, tn_target)
    grid = (M // tm, N // tn)

    in_specs = [pl.BlockSpec((tm, K), lambda i, j: (i, 0))]
    args = [x]
    if ln_gamma is not None:
        in_specs += [pl.BlockSpec((1, K), lambda i, j: (0, 0)),
                     pl.BlockSpec((1, K), lambda i, j: (0, 0))]
        args += [ln_gamma.reshape(1, K), ln_beta.reshape(1, K)]
    in_specs += [pl.BlockSpec((K, tn), lambda i, j: (0, j)),
                 pl.BlockSpec((1, tn), lambda i, j: (0, j))]
    args += [w, b.reshape(1, N)]
    if residual is not None:
        in_specs.append(pl.BlockSpec((tm, tn), lambda i, j: (i, j)))
        args.append(residual)

    kern = functools.partial(
        _fused_linear_kernel,
        ln=ln_gamma is not None, ln_eps=ln_eps,
        activation=activation, residual=residual is not None)

    return pl.pallas_call(
        kern,
        out_shape=jax.ShapeDtypeStruct((M, N), x.dtype),
        grid=grid,
        in_specs=in_specs,
        out_specs=pl.BlockSpec((tm, tn), lambda i, j: (i, j)),
        compiler_params=pltpu.CompilerParams(
            dimension_semantics=("parallel", "parallel")),
    )(*args)


def pallas_patch_embed(flat, w, b, pos, batch, n_tok):
    """flat: [B*Ntok, K] patch pixels, pos: [Ntok, E] -> [B*Ntok, E]."""
    M, K = flat.shape
    E = w.shape[1]
    tmt = _row_tile(n_tok, 256)
    tn = _col_tile(E, 512)
    t_tiles = n_tok // tmt
    grid = (batch, t_tiles, E // tn)

    return pl.pallas_call(
        _patch_embed_kernel,
        out_shape=jax.ShapeDtypeStruct((M, E), flat.dtype),
        grid=grid,
        in_specs=[
            pl.BlockSpec((tmt, K), lambda bi, t, j: (bi * t_tiles + t, 0)),
            pl.BlockSpec((K, tn), lambda bi, t, j: (0, j)),
            pl.BlockSpec((1, tn), lambda bi, t, j: (0, j)),
            pl.BlockSpec((tmt, tn), lambda bi, t, j: (t, j)),   # pos streamed
        ],
        out_specs=pl.BlockSpec((tmt, tn), lambda bi, t, j: (bi * t_tiles + t, j)),
        compiler_params=pltpu.CompilerParams(
            dimension_semantics=("parallel", "parallel", "parallel")),
    )(flat, w, b.reshape(1, E), pos)


def pallas_layernorm(x, gamma, beta, eps=1e-6):
    """Row-tiled LayerNorm.  x: [M, E]."""
    M, E = x.shape
    tm = _row_tile(M, 512)
    return pl.pallas_call(
        functools.partial(_layernorm_kernel, eps=eps),
        out_shape=jax.ShapeDtypeStruct((M, E), x.dtype),
        grid=(M // tm,),
        in_specs=[pl.BlockSpec((tm, E), lambda i: (i, 0)),
                  pl.BlockSpec((1, E), lambda i: (0, 0)),
                  pl.BlockSpec((1, E), lambda i: (0, 0))],
        out_specs=pl.BlockSpec((tm, E), lambda i: (i, 0)),
        compiler_params=pltpu.CompilerParams(
            dimension_semantics=("parallel",)),
    )(x, gamma.reshape(1, E), beta.reshape(1, E))


def pallas_attention(qkv, heads, dh, scale):
    """qkv: [B, N, 3E] -> [B, N, E] (per-batch grid, parallel on v7x)."""
    B, N, threeE = qkv.shape
    E = heads * dh
    kern = functools.partial(_attention_kernel, heads=heads, dh=dh, scale=scale)
    return pl.pallas_call(
        kern,
        out_shape=jax.ShapeDtypeStruct((B, N, E), qkv.dtype),
        grid=(B,),
        in_specs=[pl.BlockSpec((1, N, threeE), lambda b: (b, 0, 0))],
        out_specs=pl.BlockSpec((1, N, E), lambda b: (b, 0, 0)),
        compiler_params=pltpu.CompilerParams(
            dimension_semantics=("parallel",)),
    )(qkv)


# ----------------------------------------------------------------------------
# Model glue (plain JAX): patch extraction, token concat, block wiring
# ----------------------------------------------------------------------------

def _extract_patches(img_nchw, patch):
    """NCHW image -> [B*num_patches, C*p*p], rows ordered (b, gh, gw) like timm
    PatchEmbed (conv -> flatten(2) -> transpose(1, 2))."""
    B, C, H, W = img_nchw.shape
    gh, gw = H // patch, W // patch
    x = img_nchw.reshape(B, C, gh, patch, gw, patch)
    x = x.transpose(0, 2, 4, 1, 3, 5)          # [B, gh, gw, C, p, p]
    return x.reshape(B * gh * gw, C * patch * patch), gh * gw


def _patch_embed(params, img_nchw, pos_embed, patch):
    """Conv2d(stride=kernel=patch) == patch-flatten + matmul, fused with bias
    and positional-embedding add inside the Pallas kernel."""
    B = img_nchw.shape[0]
    flat, n_tok = _extract_patches(img_nchw, patch)        # [B*N, C*p*p]
    E = params["w_patch"].shape[1]
    pos2d = pos_embed.reshape(n_tok, E)                    # streamed by BlockSpec
    tok = pallas_patch_embed(flat, params["w_patch"], params["b_patch"],
                             pos2d, B, n_tok)
    return tok.reshape(B, n_tok, E)


def _block(bp, x2d, B, N, E, heads):
    """Pre-norm ViT block.  x2d: [B*N, E]."""
    dh = E // heads
    scale = dh ** -0.5

    # --- attention branch: LN1 fused into QKV GEMM ---
    qkv = fused_linear(x2d, bp["w_qkv"], bp["b_qkv"],
                       ln_gamma=bp["ln1_g"], ln_beta=bp["ln1_b"])   # [B*N, 3E]
    attn = pallas_attention(qkv.reshape(B, N, 3 * E), heads, dh, scale)
    x2d = fused_linear(attn.reshape(B * N, E), bp["w_proj"], bp["b_proj"],
                       residual=x2d)                                 # + residual

    # --- MLP branch: LN2 + GELU fused into fc1, residual fused into fc2 ---
    h = fused_linear(x2d, bp["w_fc1"], bp["b_fc1"],
                     ln_gamma=bp["ln2_g"], ln_beta=bp["ln2_b"],
                     activation="gelu")
    x2d = fused_linear(h, bp["w_fc2"], bp["b_fc2"], residual=x2d)
    return x2d


def base_backbone_forward(params, z, x, *, patch, heads):
    """Equivalent of BaseBackbone.forward -> first_feedforward
    (cat_mode='direct', add_cls_token=False, add_sep_seg=False,
     pos_drop is identity at inference).

    z: [B, C, H_z, W_z], x: [B, C, H_x, W_x]   (NCHW, PyTorch convention)
    returns ([B, L_z + L_x, E], aux_dict)
    """
    B = x.shape[0]
    E = params["w_patch"].shape[1]

    z_tok = _patch_embed(params, z, params["pos_embed_z"], patch)  # [B, Nz, E]
    x_tok = _patch_embed(params, x, params["pos_embed_x"], patch)  # [B, Nx, E]

    tokens = jnp.concatenate([z_tok, x_tok], axis=1)   # combine_tokens 'direct'
    N = tokens.shape[1]
    x2d = tokens.reshape(B * N, E)

    mid_output = None  # reuse_layer=0 in the default forward path -> never set
    for bp in params["blocks"]:
        x2d = _block(bp, x2d, B, N, E, heads)

    # recover_tokens 'direct' == identity
    x2d = pallas_layernorm(x2d, params["norm_g"], params["norm_b"])
    out = x2d.reshape(B, N, E)
    aux_dict = {"attn": None, "mid_output": mid_output}
    return out, aux_dict


# ----------------------------------------------------------------------------
# Deterministic parameter init (synthetic, no checkpoint)
# ----------------------------------------------------------------------------

def init_params(key, *, in_chans, patch, embed_dim, depth, heads,
                n_tok_z, n_tok_x, mlp_ratio=4):
    hidden = embed_dim * mlp_ratio
    kdim = in_chans * patch * patch
    keys = iter(jax.random.split(key, 4 + depth * 4))

    def nrm(k, shape):
        return 0.02 * jax.random.normal(k, shape, jnp.float32)

    params = {
        "w_patch": nrm(next(keys), (kdim, embed_dim)),
        "b_patch": jnp.zeros((embed_dim,), jnp.float32),
        "pos_embed_z": nrm(next(keys), (1, n_tok_z, embed_dim)),
        "pos_embed_x": nrm(next(keys), (1, n_tok_x, embed_dim)),
        "norm_g": jnp.ones((embed_dim,), jnp.float32),
        "norm_b": jnp.zeros((embed_dim,), jnp.float32),
        "blocks": [],
    }
    for _ in range(depth):
        params["blocks"].append({
            "ln1_g": jnp.ones((embed_dim,), jnp.float32),
            "ln1_b": jnp.zeros((embed_dim,), jnp.float32),
            "w_qkv": nrm(next(keys), (embed_dim, 3 * embed_dim)),
            "b_qkv": jnp.zeros((3 * embed_dim,), jnp.float32),
            "w_proj": nrm(next(keys), (embed_dim, embed_dim)),
            "b_proj": jnp.zeros((embed_dim,), jnp.float32),
            "ln2_g": jnp.ones((embed_dim,), jnp.float32),
            "ln2_b": jnp.zeros((embed_dim,), jnp.float32),
            "w_fc1": nrm(next(keys), (embed_dim, hidden)),
            "b_fc1": jnp.zeros((hidden,), jnp.float32),
            "w_fc2": nrm(next(keys), (hidden, embed_dim)),
            "b_fc2": jnp.zeros((embed_dim,), jnp.float32),
        })
    return params


# ----------------------------------------------------------------------------
# Main
# ----------------------------------------------------------------------------

if __name__ == "__main__":
    # Small, TPU-friendly shapes consistent with the module's forward contract:
    #   z: [B, C, H_z, W_z] template, x: [B, C, H_x, W_x] search region.
    B, C = 2, 3
    PATCH = 4
    HZ = WZ = 16       # -> 4x4 = 16 template tokens
    HX = WX = 32       # -> 8x8 = 64 search tokens
    EMBED = 128        # lane-dense feature dim
    DEPTH = 2
    HEADS = 2          # head_dim = 64

    key = jax.random.PRNGKey(0)
    kz, kx, kp = jax.random.split(key, 3)
    z = jax.random.normal(kz, (B, C, HZ, WZ), jnp.float32)
    x = jax.random.normal(kx, (B, C, HX, WX), jnp.float32)

    params = init_params(
        kp, in_chans=C, patch=PATCH, embed_dim=EMBED, depth=DEPTH,
        heads=HEADS, n_tok_z=(HZ // PATCH) * (WZ // PATCH),
        n_tok_x=(HX // PATCH) * (WX // PATCH),
    )

    fwd = jax.jit(functools.partial(base_backbone_forward,
                                    patch=PATCH, heads=HEADS))
    out, aux = fwd(params, z, x)
    jax.block_until_ready(out)

    expected = (B, (HZ // PATCH) * (WZ // PATCH) + (HX // PATCH) * (WX // PATCH),
                EMBED)
    assert out.shape == expected, (out.shape, expected)
    assert aux["attn"] is None and aux["mid_output"] is None
    print("KERNEL_OK")
</pallas_src>

<mosaic_0001>
module attributes {stable_mosaic.version = 11 : i64} {
  func.func @_patch_embed_kernel(%arg0: i32, %arg1: i32, %arg2: i32, %arg3: memref<64x48xf32, #tpu.memory_space<vmem>>, %arg4: memref<48x128xf32, #tpu.memory_space<vmem>>, %arg5: memref<1x128xf32, #tpu.memory_space<vmem>>, %arg6: memref<64x128xf32, #tpu.memory_space<vmem>>, %arg7: memref<64x128xf32, #tpu.memory_space<vmem>>) attributes {dimension_semantics = [#tpu.dimension_semantics<parallel>, #tpu.dimension_semantics<parallel>, #tpu.dimension_semantics<parallel>], iteration_bounds = array<i64: 2, 1, 1>, scalar_prefetch = 0 : i64, scratch_operands = 0 : i64, tpu.core_type = #tpu.core_type<tc>, window_params = [{transform_indices = @transform_0, window_bounds = array<i64: 64, 48>}, {transform_indices = @transform_1, window_bounds = array<i64: 48, 128>}, {transform_indices = @transform_2, window_bounds = array<i64: 1, 128>}, {transform_indices = @transform_3, window_bounds = array<i64: 64, 128>}, {transform_indices = @transform_4, window_bounds = array<i64: 64, 128>}]} {
    %c0 = arith.constant 0 : index
    %c0_0 = arith.constant 0 : index
    %0 = vector.load %arg3[%c0, %c0_0] : memref<64x48xf32, #tpu.memory_space<vmem>>, vector<64x48xf32>
    %c0_1 = arith.constant 0 : index
    %c0_2 = arith.constant 0 : index
    %1 = vector.load %arg4[%c0_1, %c0_2] : memref<48x128xf32, #tpu.memory_space<vmem>>, vector<48x128xf32>
    %cst = arith.constant dense<0.000000e+00> : vector<64x128xf32>
    %2 = tpu.matmul %0, %1, %cst {dimension_numbers = #tpu.dot_dimension_numbers<[1], [0], [0], [1], [0, 0, 1, 1], [], []>} : vector<64x48xf32>, vector<48x128xf32>, vector<64x128xf32> -> vector<64x128xf32>
    %c0_3 = arith.constant 0 : index
    %c0_4 = arith.constant 0 : index
    %3 = vector.load %arg5[%c0_3, %c0_4] : memref<1x128xf32, #tpu.memory_space<vmem>>, vector<1x128xf32>
    %4 = vector.broadcast %3 : vector<1x128xf32> to vector<64x128xf32>
    %5 = arith.addf %2, %4 : vector<64x128xf32>
    %c0_5 = arith.constant 0 : index
    %c0_6 = arith.constant 0 : index
    %6 = vector.load %arg6[%c0_5, %c0_6] : memref<64x128xf32, #tpu.memory_space<vmem>>, vector<64x128xf32>
    %7 = arith.addf %5, %6 : vector<64x128xf32>
    %c0_7 = arith.constant 0 : index
    %c0_8 = arith.constant 0 : index
    %8 = vector.load %arg7[%c0_7, %c0_8] : memref<64x128xf32, #tpu.memory_space<vmem>>, vector<64x128xf32>
    tpu.vector_store %arg7[%c0_7, %c0_8], %7 {strides = array<i32>} : memref<64x128xf32, #tpu.memory_space<vmem>>, vector<64x128xf32>,
    return
  }
  func.func @transform_0(%arg0: i32, %arg1: i32, %arg2: i32) -> (i32, i32) {
    %c1_i32 = arith.constant 1 : i32
    %0 = arith.muli %arg0, %c1_i32 : i32
    %1 = arith.addi %0, %arg1 : i32
    %c0_i32 = arith.constant 0 : i32
    %c0_i32_0 = arith.constant 0 : i32
    return %1, %c0_i32 : i32, i32
  }
  func.func @transform_1(%arg0: i32, %arg1: i32, %arg2: i32) -> (i32, i32) {
    %c0_i32 = arith.constant 0 : i32
    %c0_i32_0 = arith.constant 0 : i32
    return %c0_i32, %arg2 : i32, i32
  }
  func.func @transform_2(%arg0: i32, %arg1: i32, %arg2: i32) -> (i32, i32) {
    %c0_i32 = arith.constant 0 : i32
    %c0_i32_0 = arith.constant 0 : i32
    return %c0_i32, %arg2 : i32, i32
  }
  func.func @transform_3(%arg0: i32, %arg1: i32, %arg2: i32) -> (i32, i32) {
    %c0_i32 = arith.constant 0 : i32
    return %arg1, %arg2 : i32, i32
  }
  func.func @transform_4(%arg0: i32, %arg1: i32, %arg2: i32) -> (i32, i32) {
    %c1_i32 = arith.constant 1 : i32
    %0 = arith.muli %arg0, %c1_i32 : i32
    %1 = arith.addi %0, %arg1 : i32
    %c0_i32 = arith.constant 0 : i32
    return %1, %arg2 : i32, i32
  }
}

module attributes {stable_mosaic.version = 11 : i64} {
  func.func @_patch_embed_kernel(%arg0: i32, %arg1: i32, %arg2: i32, %arg3: memref<16x48xf32, #tpu.memory_space<vmem>>, %arg4: memref<48x128xf32, #tpu.memory_space<vmem>>, %arg5: memref<1x128xf32, #tpu.memory_space<vmem>>, %arg6: memref<16x128xf32, #tpu.memory_space<vmem>>, %arg7: memref<16x128xf32, #tpu.memory_space<vmem>>) attributes {dimension_semantics = [#tpu.dimension_semantics<parallel>, #tpu.dimension_semantics<parallel>, #tpu.dimension_semantics<parallel>], iteration_bounds = array<i64: 2, 1, 1>, scalar_prefetch = 0 : i64, scratch_operands = 0 : i64, tpu.core_type = #tpu.core_type<tc>, window_params = [{transform_indices = @transform_0, window_bounds = array<i64: 16, 48>}, {transform_indices = @transform_1, window_bounds = array<i64: 48, 128>}, {transform_indices = @transform_2, window_bounds = array<i64: 1, 128>}, {transform_indices = @transform_3, window_bounds = array<i64: 16, 128>}, {transform_indices = @transform_4, window_bounds = array<i64: 16, 128>}]} {
    %c0 = arith.constant 0 : index
    %c0_0 = arith.constant 0 : index
    %0 = vector.load %arg3[%c0, %c0_0] : memref<16x48xf32, #tpu.memory_space<vmem>>, vector<16x48xf32>
    %c0_1 = arith.constant 0 : index
    %c0_2 = arith.constant 0 : index
    %1 = vector.load %arg4[%c0_1, %c0_2] : memref<48x128xf32, #tpu.memory_space<vmem>>, vector<48x128xf32>
    %cst = arith.constant dense<0.000000e+00> : vector<16x128xf32>
    %2 = tpu.matmul %0, %1, %cst {dimension_numbers = #tpu.dot_dimension_numbers<[1], [0], [0], [1], [0, 0, 1, 1], [], []>} : vector<16x48xf32>, vector<48x128xf32>, vector<16x128xf32> -> vector<16x128xf32>
    %c0_3 = arith.constant 0 : index
    %c0_4 = arith.constant 0 : index
    %3 = vector.load %arg5[%c0_3, %c0_4] : memref<1x128xf32, #tpu.memory_space<vmem>>, vector<1x128xf32>
    %4 = vector.broadcast %3 : vector<1x128xf32> to vector<16x128xf32>
    %5 = arith.addf %2, %4 : vector<16x128xf32>
    %c0_5 = arith.constant 0 : index
    %c0_6 = arith.constant 0 : index
    %6 = vector.load %arg6[%c0_5, %c0_6] : memref<16x128xf32, #tpu.memory_space<vmem>>, vector<16x128xf32>
    %7 = arith.addf %5, %6 : vector<16x128xf32>
    %c0_7 = arith.constant 0 : index
    %c0_8 = arith.constant 0 : index
    %8 = vector.load %arg7[%c0_7, %c0_8] : memref<16x128xf32, #tpu.memory_space<vmem>>, vector<16x128xf32>
    tpu.vector_store %arg7[%c0_7, %c0_8], %7 {strides = array<i32>} : memref<16x128xf32, #tpu.memory_space<vmem>>, vector<16x128xf32>,
    return
  }
  func.func @transform_0(%arg0: i32, %arg1: i32, %arg2: i32) -> (i32, i32) {
    %c1_i32 = arith.constant 1 : i32
    %0 = arith.muli %arg0, %c1_i32 : i32
    %1 = arith.addi %0, %arg1 : i32
    %c0_i32 = arith.constant 0 : i32
    %c0_i32_0 = arith.constant 0 : i32
    return %1, %c0_i32 : i32, i32
  }
  func.func @transform_1(%arg0: i32, %arg1: i32, %arg2: i32) -> (i32, i32) {
    %c0_i32 = arith.constant 0 : i32
    %c0_i32_0 = arith.constant 0 : i32
    return %c0_i32, %arg2 : i32, i32
  }
  func.func @transform_2(%arg0: i32, %arg1: i32, %arg2: i32) -> (i32, i32) {
    %c0_i32 = arith.constant 0 : i32
    %c0_i32_0 = arith.constant 0 : i32
    return %c0_i32, %arg2 : i32, i32
  }
  func.func @transform_3(%arg0: i32, %arg1: i32, %arg2: i32) -> (i32, i32) {
    %c0_i32 = arith.constant 0 : i32
    return %arg1, %arg2 : i32, i32
  }
  func.func @transform_4(%arg0: i32, %arg1: i32, %arg2: i32) -> (i32, i32) {
    %c1_i32 = arith.constant 1 : i32
    %0 = arith.muli %arg0, %c1_i32 : i32
    %1 = arith.addi %0, %arg1 : i32
    %c0_i32 = arith.constant 0 : i32
    return %1, %arg2 : i32, i32
  }
}

module attributes {stable_mosaic.version = 11 : i64} {
  func.func @_attention_kernel(%arg0: i32, %arg1: memref<1x80x384xf32, #tpu.memory_space<vmem>>, %arg2: memref<1x80x128xf32, #tpu.memory_space<vmem>>) attributes {dimension_semantics = [#tpu.dimension_semantics<parallel>], iteration_bounds = array<i64: 2>, scalar_prefetch = 0 : i64, scratch_operands = 0 : i64, tpu.core_type = #tpu.core_type<tc>, window_params = [{transform_indices = @transform_0, window_bounds = array<i64: 1, 80, 384>}, {transform_indices = @transform_1, window_bounds = array<i64: 1, 80, 128>}]} {
    %c0 = arith.constant 0 : index
    %c0_0 = arith.constant 0 : index
    %c0_1 = arith.constant 0 : index
    %0 = vector.load %arg1[%c0, %c0_0, %c0_1] : memref<1x80x384xf32, #tpu.memory_space<vmem>>, vector<1x80x64xf32>
    %1 = vector.shape_cast %0 : vector<1x80x64xf32> to vector<80x64xf32>
    %cst = arith.constant 1.250000e-01 : f32
    %2 = vector.broadcast %cst : f32 to vector<80x64xf32>
    %3 = arith.mulf %1, %2 : vector<80x64xf32>
    %c0_2 = arith.constant 0 : index
    %c0_3 = arith.constant 0 : index
    %c128 = arith.constant 128 : index
    %4 = vector.load %arg1[%c0_2, %c0_3, %c128] : memref<1x80x384xf32, #tpu.memory_space<vmem>>, vector<1x80x64xf32>
    %5 = vector.shape_cast %4 : vector<1x80x64xf32> to vector<80x64xf32>
    %c0_4 = arith.constant 0 : index
    %c0_5 = arith.constant 0 : index
    %c256 = arith.constant 256 : index
    %6 = vector.load %arg1[%c0_4, %c0_5, %c256] : memref<1x80x384xf32, #tpu.memory_space<vmem>>, vector<1x80x64xf32>
    %7 = vector.shape_cast %6 : vector<1x80x64xf32> to vector<80x64xf32>
    %cst_6 = arith.constant dense<0.000000e+00> : vector<80x80xf32>
    %8 = tpu.matmul %3, %5, %cst_6 {dimension_numbers = #tpu.dot_dimension_numbers<[1], [1], [0], [0], [0, 0, 1, 0], [], []>} : vector<80x64xf32>, vector<80x64xf32>, vector<80x80xf32> -> vector<80x80xf32>
    %cst_7 = arith.constant dense<0xFF800000> : vector<80xf32>
    %9 = vector.multi_reduction <maximumf>, %8, %cst_7 [1] : vector<80x80xf32> to vector<80xf32>
    %10 = vector.shape_cast %9 : vector<80xf32> to vector<80x1xf32>
    %11 = vector.broadcast %10 : vector<80x1xf32> to vector<80x80xf32>
    %12 = arith.subf %8, %11 : vector<80x80xf32>
    %13 = math.exp %12 : vector<80x80xf32>
    %cst_8 = arith.constant dense<0.000000e+00> : vector<80xf32>
    %14 = vector.multi_reduction <add>, %13, %cst_8 [1] : vector<80x80xf32> to vector<80xf32>
    %15 = vector.shape_cast %14 : vector<80xf32> to vector<80x1xf32>
    %16 = tpu.reciprocal %15 {approx = true} : vector<80x1xf32> -> vector<80x1xf32>
    %17 = vector.broadcast %16 : vector<80x1xf32> to vector<80x80xf32>
    %18 = arith.mulf %13, %17 : vector<80x80xf32>
    %cst_9 = arith.constant dense<0.000000e+00> : vector<80x64xf32>
    %19 = tpu.matmul %18, %7, %cst_9 {dimension_numbers = #tpu.dot_dimension_numbers<[1], [0], [0], [1], [0, 0, 1, 1], [], []>} : vector<80x80xf32>, vector<80x64xf32>, vector<80x64xf32> -> vector<80x64xf32>
    %c0_10 = arith.constant 0 : index
    %c0_11 = arith.constant 0 : index
    %c64 = arith.constant 64 : index
    %20 = vector.load %arg1[%c0_10, %c0_11, %c64] : memref<1x80x384xf32, #tpu.memory_space<vmem>>, vector<1x80x64xf32>
    %21 = vector.shape_cast %20 : vector<1x80x64xf32> to vector<80x64xf32>
    %cst_12 = arith.constant 1.250000e-01 : f32
    %22 = vector.broadcast %cst_12 : f32 to vector<80x64xf32>
    %23 = arith.mulf %21, %22 : vector<80x64xf32>
    %c0_13 = arith.constant 0 : index
    %c0_14 = arith.constant 0 : index
    %c192 = arith.constant 192 : index
    %24 = vector.load %arg1[%c0_13, %c0_14, %c192] : memref<1x80x384xf32, #tpu.memory_space<vmem>>, vector<1x80x64xf32>
    %25 = vector.shape_cast %24 : vector<1x80x64xf32> to vector<80x64xf32>
    %c0_15 = arith.constant 0 : index
    %c0_16 = arith.constant 0 : index
    %c320 = arith.constant 320 : index
    %26 = vector.load %arg1[%c0_15, %c0_16, %c320] : memref<1x80x384xf32, #tpu.memory_space<vmem>>, vector<1x80x64xf32>
    %27 = vector.shape_cast %26 : vector<1x80x64xf32> to vector<80x64xf32>
    %cst_17 = arith.constant dense<0.000000e+00> : vector<80x80xf32>
    %28 = tpu.matmul %23, %25, %cst_17 {dimension_numbers = #tpu.dot_dimension_numbers<[1], [1], [0], [0], [0, 0, 1, 0], [], []>} : vector<80x64xf32>, vector<80x64xf32>, vector<80x80xf32> -> vector<80x80xf32>
    %cst_18 = arith.constant dense<0xFF800000> : vector<80xf32>
    %29 = vector.multi_reduction <maximumf>, %28, %cst_18 [1] : vector<80x80xf32> to vector<80xf32>
    %30 = vector.shape_cast %29 : vector<80xf32> to vector<80x1xf32>
    %31 = vector.broadcast %30 : vector<80x1xf32> to vector<80x80xf32>
    %32 = arith.subf %28, %31 : vector<80x80xf32>
    %33 = math.exp %32 : vector<80x80xf32>
    %cst_19 = arith.constant dense<0.000000e+00> : vector<80xf32>
    %34 = vector.multi_reduction <add>, %33, %cst_19 [1] : vector<80x80xf32> to vector<80xf32>
    %35 = vector.shape_cast %34 : vector<80xf32> to vector<80x1xf32>
    %36 = tpu.reciprocal %35 {approx = true} : vector<80x1xf32> -> vector<80x1xf32>
    %37 = vector.broadcast %36 : vector<80x1xf32> to vector<80x80xf32>
    %38 = arith.mulf %33, %37 : vector<80x80xf32>
    %cst_20 = arith.constant dense<0.000000e+00> : vector<80x64xf32>
    %39 = tpu.matmul %38, %27, %cst_20 {dimension_numbers = #tpu.dot_dimension_numbers<[1], [0], [0], [1], [0, 0, 1, 1], [], []>} : vector<80x80xf32>, vector<80x64xf32>, vector<80x64xf32> -> vector<80x64xf32>
    %40 = tpu.concatenate %19, %39 in 1 : vector<80x64xf32>, vector<80x64xf32> -> vector<80x128xf32>
    %41 = vector.shape_cast %40 : vector<80x128xf32> to vector<1x80x128xf32>
    %c0_21 = arith.constant 0 : index
    %c0_22 = arith.constant 0 : index
    %c0_23 = arith.constant 0 : index
    %42 = vector.load %arg2[%c0_21, %c0_22, %c0_23] : memref<1x80x128xf32, #tpu.memory_space<vmem>>, vector<1x80x128xf32>
    tpu.vector_store %arg2[%c0_21, %c0_22, %c0_23], %41 {strides = array<i32>} : memref<1x80x128xf32, #tpu.memory_space<vmem>>, vector<1x80x128xf32>,
    return
  }
  func.func @transform_0(%arg0: i32) -> (i32, i32, i32) {
    %c0_i32 = arith.constant 0 : i32
    %c0_i32_0 = arith.constant 0 : i32
    %c0_i32_1 = arith.constant 0 : i32
    return %arg0, %c0_i32, %c0_i32_0 : i32, i32, i32
  }
  func.func @transform_1(%arg0: i32) -> (i32, i32, i32) {
    %c0_i32 = arith.constant 0 : i32
    %c0_i32_0 = arith.constant 0 : i32
    %c0_i32_1 = arith.constant 0 : i32
    return %arg0, %c0_i32, %c0_i32_0 : i32, i32, i32
  }
}

module attributes {stable_mosaic.version = 11 : i64} {
  func.func @_fused_linear_kernel(%arg0: i32, %arg1: i32, %arg2: memref<160x128xf32, #tpu.memory_space<vmem>>, %arg3: memref<1x128xf32, #tpu.memory_space<vmem>>, %arg4: memref<1x128xf32, #tpu.memory_space<vmem>>, %arg5: memref<128x384xf32, #tpu.memory_space<vmem>>, %arg6: memref<1x384xf32, #tpu.memory_space<vmem>>, %arg7: memref<160x384xf32, #tpu.memory_space<vmem>>) attributes {dimension_semantics = [#tpu.dimension_semantics<parallel>, #tpu.dimension_semantics<parallel>], iteration_bounds = array<i64: 1, 1>, scalar_prefetch = 0 : i64, scratch_operands = 0 : i64, tpu.core_type = #tpu.core_type<tc>, window_params = [{transform_indices = @transform_0, window_bounds = array<i64: 160, 128>}, {pipeline_mode = #tpu.pipeline_mode<synchronous>, transform_indices = @transform_1, window_bounds = array<i64: 1, 128>}, {pipeline_mode = #tpu.pipeline_mode<synchronous>, transform_indices = @transform_2, window_bounds = array<i64: 1, 128>}, {transform_indices = @transform_3, window_bounds = array<i64: 128, 384>}, {transform_indices = @transform_4, window_bounds = array<i64: 1, 384>}, {transform_indices = @transform_5, window_bounds = array<i64: 160, 384>}]} {
    %c0 = arith.constant 0 : index
    %c0_0 = arith.constant 0 : index
    %0 = vector.load %arg2[%c0, %c0_0] : memref<160x128xf32, #tpu.memory_space<vmem>>, vector<160x128xf32>
    %cst = arith.constant dense<0.000000e+00> : vector<160xf32>
    %1 = vector.multi_reduction <add>, %0, %cst [1] : vector<160x128xf32> to vector<160xf32>
    %2 = vector.shape_cast %1 : vector<160xf32> to vector<160x1xf32>
    %cst_1 = arith.constant 1.280000e+02 : f32
    %3 = vector.broadcast %cst_1 : f32 to vector<160x1xf32>
    %4 = arith.divf %2, %3 : vector<160x1xf32>
    %5 = vector.broadcast %4 : vector<160x1xf32> to vector<160x128xf32>
    %6 = arith.subf %0, %5 : vector<160x128xf32>
    %7 = arith.mulf %6, %6 : vector<160x128xf32>
    %cst_2 = arith.constant dense<0.000000e+00> : vector<160xf32>
    %8 = vector.multi_reduction <add>, %7, %cst_2 [1] : vector<160x128xf32> to vector<160xf32>
    %9 = vector.shape_cast %8 : vector<160xf32> to vector<160x1xf32>
    %cst_3 = arith.constant 1.280000e+02 : f32
    %10 = vector.broadcast %cst_3 : f32 to vector<160x1xf32>
    %11 = arith.divf %9, %10 : vector<160x1xf32>
    %cst_4 = arith.constant 9.99999997E-7 : f32
    %12 = vector.broadcast %cst_4 : f32 to vector<160x1xf32>
    %13 = arith.addf %11, %12 : vector<160x1xf32>
    %14 = math.rsqrt %13 : vector<160x1xf32>
    %15 = vector.broadcast %14 : vector<160x1xf32> to vector<160x128xf32>
    %16 = arith.mulf %6, %15 : vector<160x128xf32>
    %c0_5 = arith.constant 0 : index
    %c0_6 = arith.constant 0 : index
    %17 = vector.load %arg3[%c0_5, %c0_6] : memref<1x128xf32, #tpu.memory_space<vmem>>, vector<1x128xf32>
    %18 = vector.broadcast %17 : vector<1x128xf32> to vector<160x128xf32>
    %19 = arith.mulf %16, %18 : vector<160x128xf32>
    %c0_7 = arith.constant 0 : index
    %c0_8 = arith.constant 0 : index
    %20 = vector.load %arg4[%c0_7, %c0_8] : memref<1x128xf32, #tpu.memory_space<vmem>>, vector<1x128xf32>
    %21 = vector.broadcast %20 : vector<1x128xf32> to vector<160x128xf32>
    %22 = arith.addf %19, %21 : vector<160x128xf32>
    %c0_9 = arith.constant 0 : index
    %c0_10 = arith.constant 0 : index
    %23 = vector.load %arg5[%c0_9, %c0_10] : memref<128x384xf32, #tpu.memory_space<vmem>>, vector<128x384xf32>
    %cst_11 = arith.constant dense<0.000000e+00> : vector<160x384xf32>
    %24 = tpu.matmul %22, %23, %cst_11 {dimension_numbers = #tpu.dot_dimension_numbers<[1], [0], [0], [1], [0, 0, 1, 1], [], []>} : vector<160x128xf32>, vector<128x384xf32>, vector<160x384xf32> -> vector<160x384xf32>
    %c0_12 = arith.constant 0 : index
    %c0_13 = arith.constant 0 : index
    %25 = vector.load %arg6[%c0_12, %c0_13] : memref<1x384xf32, #tpu.memory_space<vmem>>, vector<1x384xf32>
    %26 = vector.broadcast %25 : vector<1x384xf32> to vector<160x384xf32>
    %27 = arith.addf %24, %26 : vector<160x384xf32>
    %c0_14 = arith.constant 0 : index
    %c0_15 = arith.constant 0 : index
    %28 = vector.load %arg7[%c0_14, %c0_15] : memref<160x384xf32, #tpu.memory_space<vmem>>, vector<160x384xf32>
    tpu.vector_store %arg7[%c0_14, %c0_15], %27 {strides = array<i32>} : memref<160x384xf32, #tpu.memory_space<vmem>>, vector<160x384xf32>,
    return
  }
  func.func @transform_0(%arg0: i32, %arg1: i32) -> (i32, i32) {
    %c0_i32 = arith.constant 0 : i32
    %c0_i32_0 = arith.constant 0 : i32
    return %arg0, %c0_i32 : i32, i32
  }
  func.func @transform_1(%arg0: i32, %arg1: i32) -> (i32, i32) {
    %c0_i32 = arith.constant 0 : i32
    %c0_i32_0 = arith.constant 0 : i32
    %c0_i32_1 = arith.constant 0 : i32
    return %c0_i32, %c0_i32_0 : i32, i32
  }
  func.func @transform_2(%arg0: i32, %arg1: i32) -> (i32, i32) {
    %c0_i32 = arith.constant 0 : i32
    %c0_i32_0 = arith.constant 0 : i32
    %c0_i32_1 = arith.constant 0 : i32
    return %c0_i32, %c0_i32_0 : i32, i32
  }
  func.func @transform_3(%arg0: i32, %arg1: i32) -> (i32, i32) {
    %c0_i32 = arith.constant 0 : i32
    %c0_i32_0 = arith.constant 0 : i32
    return %c0_i32, %arg1 : i32, i32
  }
  func.func @transform_4(%arg0: i32, %arg1: i32) -> (i32, i32) {
    %c0_i32 = arith.constant 0 : i32
    %c0_i32_0 = arith.constant 0 : i32
    return %c0_i32, %arg1 : i32, i32
  }
  func.func @transform_5(%arg0: i32, %arg1: i32) -> (i32, i32) {
    %c0_i32 = arith.constant 0 : i32
    return %arg0, %arg1 : i32, i32
  }
}

module attributes {stable_mosaic.version = 11 : i64} {
  func.func @_fused_linear_kernel(%arg0: i32, %arg1: i32, %arg2: memref<160x128xf32, #tpu.memory_space<vmem>>, %arg3: memref<128x128xf32, #tpu.memory_space<vmem>>, %arg4: memref<1x128xf32, #tpu.memory_space<vmem>>, %arg5: memref<160x128xf32, #tpu.memory_space<vmem>>, %arg6: memref<160x128xf32, #tpu.memory_space<vmem>>) attributes {dimension_semantics = [#tpu.dimension_semantics<parallel>, #tpu.dimension_semantics<parallel>], iteration_bounds = array<i64: 1, 1>, scalar_prefetch = 0 : i64, scratch_operands = 0 : i64, tpu.core_type = #tpu.core_type<tc>, window_params = [{transform_indices = @transform_0, window_bounds = array<i64: 160, 128>}, {transform_indices = @transform_1, window_bounds = array<i64: 128, 128>}, {transform_indices = @transform_2, window_bounds = array<i64: 1, 128>}, {transform_indices = @transform_3, window_bounds = array<i64: 160, 128>}, {transform_indices = @transform_4, window_bounds = array<i64: 160, 128>}]} {
    %c0 = arith.constant 0 : index
    %c0_0 = arith.constant 0 : index
    %0 = vector.load %arg2[%c0, %c0_0] : memref<160x128xf32, #tpu.memory_space<vmem>>, vector<160x128xf32>
    %c0_1 = arith.constant 0 : index
    %c0_2 = arith.constant 0 : index
    %1 = vector.load %arg3[%c0_1, %c0_2] : memref<128x128xf32, #tpu.memory_space<vmem>>, vector<128x128xf32>
    %cst = arith.constant dense<0.000000e+00> : vector<160x128xf32>
    %2 = tpu.matmul %0, %1, %cst {dimension_numbers = #tpu.dot_dimension_numbers<[1], [0], [0], [1], [0, 0, 1, 1], [], []>} : vector<160x128xf32>, vector<128x128xf32>, vector<160x128xf32> -> vector<160x128xf32>
    %c0_3 = arith.constant 0 : index
    %c0_4 = arith.constant 0 : index
    %3 = vector.load %arg4[%c0_3, %c0_4] : memref<1x128xf32, #tpu.memory_space<vmem>>, vector<1x128xf32>
    %4 = vector.broadcast %3 : vector<1x128xf32> to vector<160x128xf32>
    %5 = arith.addf %2, %4 : vector<160x128xf32>
    %c0_5 = arith.constant 0 : index
    %c0_6 = arith.constant 0 : index
    %6 = vector.load %arg5[%c0_5, %c0_6] : memref<160x128xf32, #tpu.memory_space<vmem>>, vector<160x128xf32>
    %7 = arith.addf %5, %6 : vector<160x128xf32>
    %c0_7 = arith.constant 0 : index
    %c0_8 = arith.constant 0 : index
    %8 = vector.load %arg6[%c0_7, %c0_8] : memref<160x128xf32, #tpu.memory_space<vmem>>, vector<160x128xf32>
    tpu.vector_store %arg6[%c0_7, %c0_8], %7 {strides = array<i32>} : memref<160x128xf32, #tpu.memory_space<vmem>>, vector<160x128xf32>,
    return
  }
  func.func @transform_0(%arg0: i32, %arg1: i32) -> (i32, i32) {
    %c0_i32 = arith.constant 0 : i32
    %c0_i32_0 = arith.constant 0 : i32
    return %arg0, %c0_i32 : i32, i32
  }
  func.func @transform_1(%arg0: i32, %arg1: i32) -> (i32, i32) {
    %c0_i32 = arith.constant 0 : i32
    %c0_i32_0 = arith.constant 0 : i32
    return %c0_i32, %arg1 : i32, i32
  }
  func.func @transform_2(%arg0: i32, %arg1: i32) -> (i32, i32) {
    %c0_i32 = arith.constant 0 : i32
    %c0_i32_0 = arith.constant 0 : i32
    return %c0_i32, %arg1 : i32, i32
  }
  func.func @transform_3(%arg0: i32, %arg1: i32) -> (i32, i32) {
    %c0_i32 = arith.constant 0 : i32
    return %arg0, %arg1 : i32, i32
  }
  func.func @transform_4(%arg0: i32, %arg1: i32) -> (i32, i32) {
    %c0_i32 = arith.constant 0 : i32
    return %arg0, %arg1 : i32, i32
  }
}

module attributes {stable_mosaic.version = 11 : i64} {
  func.func @_fused_linear_kernel(%arg0: i32, %arg1: i32, %arg2: memref<160x128xf32, #tpu.memory_space<vmem>>, %arg3: memref<1x128xf32, #tpu.memory_space<vmem>>, %arg4: memref<1x128xf32, #tpu.memory_space<vmem>>, %arg5: memref<128x512xf32, #tpu.memory_space<vmem>>, %arg6: memref<1x512xf32, #tpu.memory_space<vmem>>, %arg7: memref<160x512xf32, #tpu.memory_space<vmem>>) attributes {dimension_semantics = [#tpu.dimension_semantics<parallel>, #tpu.dimension_semantics<parallel>], iteration_bounds = array<i64: 1, 1>, scalar_prefetch = 0 : i64, scratch_operands = 0 : i64, tpu.core_type = #tpu.core_type<tc>, window_params = [{transform_indices = @transform_0, window_bounds = array<i64: 160, 128>}, {pipeline_mode = #tpu.pipeline_mode<synchronous>, transform_indices = @transform_1, window_bounds = array<i64: 1, 128>}, {pipeline_mode = #tpu.pipeline_mode<synchronous>, transform_indices = @transform_2, window_bounds = array<i64: 1, 128>}, {transform_indices = @transform_3, window_bounds = array<i64: 128, 512>}, {transform_indices = @transform_4, window_bounds = array<i64: 1, 512>}, {transform_indices = @transform_5, window_bounds = array<i64: 160, 512>}]} {
    %c0 = arith.constant 0 : index
    %c0_0 = arith.constant 0 : index
    %0 = vector.load %arg2[%c0, %c0_0] : memref<160x128xf32, #tpu.memory_space<vmem>>, vector<160x128xf32>
    %cst = arith.constant dense<0.000000e+00> : vector<160xf32>
    %1 = vector.multi_reduction <add>, %0, %cst [1] : vector<160x128xf32> to vector<160xf32>
    %2 = vector.shape_cast %1 : vector<160xf32> to vector<160x1xf32>
    %cst_1 = arith.constant 1.280000e+02 : f32
    %3 = vector.broadcast %cst_1 : f32 to vector<160x1xf32>
    %4 = arith.divf %2, %3 : vector<160x1xf32>
    %5 = vector.broadcast %4 : vector<160x1xf32> to vector<160x128xf32>
    %6 = arith.subf %0, %5 : vector<160x128xf32>
    %7 = arith.mulf %6, %6 : vector<160x128xf32>
    %cst_2 = arith.constant dense<0.000000e+00> : vector<160xf32>
    %8 = vector.multi_reduction <add>, %7, %cst_2 [1] : vector<160x128xf32> to vector<160xf32>
    %9 = vector.shape_cast %8 : vector<160xf32> to vector<160x1xf32>
    %cst_3 = arith.constant 1.280000e+02 : f32
    %10 = vector.broadcast %cst_3 : f32 to vector<160x1xf32>
    %11 = arith.divf %9, %10 : vector<160x1xf32>
    %cst_4 = arith.constant 9.99999997E-7 : f32
    %12 = vector.broadcast %cst_4 : f32 to vector<160x1xf32>
    %13 = arith.addf %11, %12 : vector<160x1xf32>
    %14 = math.rsqrt %13 : vector<160x1xf32>
    %15 = vector.broadcast %14 : vector<160x1xf32> to vector<160x128xf32>
    %16 = arith.mulf %6, %15 : vector<160x128xf32>
    %c0_5 = arith.constant 0 : index
    %c0_6 = arith.constant 0 : index
    %17 = vector.load %arg3[%c0_5, %c0_6] : memref<1x128xf32, #tpu.memory_space<vmem>>, vector<1x128xf32>
    %18 = vector.broadcast %17 : vector<1x128xf32> to vector<160x128xf32>
    %19 = arith.mulf %16, %18 : vector<160x128xf32>
    %c0_7 = arith.constant 0 : index
    %c0_8 = arith.constant 0 : index
    %20 = vector.load %arg4[%c0_7, %c0_8] : memref<1x128xf32, #tpu.memory_space<vmem>>, vector<1x128xf32>
    %21 = vector.broadcast %20 : vector<1x128xf32> to vector<160x128xf32>
    %22 = arith.addf %19, %21 : vector<160x128xf32>
    %c0_9 = arith.constant 0 : index
    %c0_10 = arith.constant 0 : index
    %23 = vector.load %arg5[%c0_9, %c0_10] : memref<128x512xf32, #tpu.memory_space<vmem>>, vector<128x512xf32>
    %cst_11 = arith.constant dense<0.000000e+00> : vector<160x512xf32>
    %24 = tpu.matmul %22, %23, %cst_11 {dimension_numbers = #tpu.dot_dimension_numbers<[1], [0], [0], [1], [0, 0, 1, 1], [], []>} : vector<160x128xf32>, vector<128x512xf32>, vector<160x512xf32> -> vector<160x512xf32>
    %c0_12 = arith.constant 0 : index
    %c0_13 = arith.constant 0 : index
    %25 = vector.load %arg6[%c0_12, %c0_13] : memref<1x512xf32, #tpu.memory_space<vmem>>, vector<1x512xf32>
    %26 = vector.broadcast %25 : vector<1x512xf32> to vector<160x512xf32>
    %27 = arith.addf %24, %26 : vector<160x512xf32>
    %cst_14 = arith.constant 5.000000e-01 : f32
    %28 = vector.broadcast %cst_14 : f32 to vector<160x512xf32>
    %29 = arith.mulf %28, %27 : vector<160x512xf32>
    %cst_15 = arith.constant 4.471500e-02 : f32
    %30 = vector.broadcast %cst_15 : f32 to vector<160x512xf32>
    %31 = arith.mulf %30, %27 : vector<160x512xf32>
    %32 = arith.mulf %31, %27 : vector<160x512xf32>
    %33 = arith.mulf %32, %27 : vector<160x512xf32>
    %34 = arith.addf %27, %33 : vector<160x512xf32>
    %cst_16 = arith.constant 0.797884583 : f32
    %35 = vector.broadcast %cst_16 : f32 to vector<160x512xf32>
    %36 = arith.mulf %35, %34 : vector<160x512xf32>
    %37 = math.tanh %36 : vector<160x512xf32>
    %cst_17 = arith.constant 1.000000e+00 : f32
    %38 = vector.broadcast %cst_17 : f32 to vector<160x512xf32>
    %39 = arith.addf %38, %37 : vector<160x512xf32>
    %40 = arith.mulf %29, %39 : vector<160x512xf32>
    %c0_18 = arith.constant 0 : index
    %c0_19 = arith.constant 0 : index
    %41 = vector.load %arg7[%c0_18, %c0_19] : memref<160x512xf32, #tpu.memory_space<vmem>>, vector<160x512xf32>
    tpu.vector_store %arg7[%c0_18, %c0_19], %40 {strides = array<i32>} : memref<160x512xf32, #tpu.memory_space<vmem>>, vector<160x512xf32>,
    return
  }
  func.func @transform_0(%arg0: i32, %arg1: i32) -> (i32, i32) {
    %c0_i32 = arith.constant 0 : i32
    %c0_i32_0 = arith.constant 0 : i32
    return %arg0, %c0_i32 : i32, i32
  }
  func.func @transform_1(%arg0: i32, %arg1: i32) -> (i32, i32) {
    %c0_i32 = arith.constant 0 : i32
    %c0_i32_0 = arith.constant 0 : i32
    %c0_i32_1 = arith.constant 0 : i32
    return %c0_i32, %c0_i32_0 : i32, i32
  }
  func.func @transform_2(%arg0: i32, %arg1: i32) -> (i32, i32) {
    %c0_i32 = arith.constant 0 : i32
    %c0_i32_0 = arith.constant 0 : i32
    %c0_i32_1 = arith.constant 0 : i32
    return %c0_i32, %c0_i32_0 : i32, i32
  }
  func.func @transform_3(%arg0: i32, %arg1: i32) -> (i32, i32) {
    %c0_i32 = arith.constant 0 : i32
    %c0_i32_0 = arith.constant 0 : i32
    return %c0_i32, %arg1 : i32, i32
  }
  func.func @transform_4(%arg0: i32, %arg1: i32) -> (i32, i32) {
    %c0_i32 = arith.constant 0 : i32
    %c0_i32_0 = arith.constant 0 : i32
    return %c0_i32, %arg1 : i32, i32
  }
  func.func @transform_5(%arg0: i32, %arg1: i32) -> (i32, i32) {
    %c0_i32 = arith.constant 0 : i32
    return %arg0, %arg1 : i32, i32
  }
}

module attributes {stable_mosaic.version = 11 : i64} {
  func.func @_fused_linear_kernel(%arg0: i32, %arg1: i32, %arg2: memref<160x512xf32, #tpu.memory_space<vmem>>, %arg3: memref<512x128xf32, #tpu.memory_space<vmem>>, %arg4: memref<1x128xf32, #tpu.memory_space<vmem>>, %arg5: memref<160x128xf32, #tpu.memory_space<vmem>>, %arg6: memref<160x128xf32, #tpu.memory_space<vmem>>) attributes {dimension_semantics = [#tpu.dimension_semantics<parallel>, #tpu.dimension_semantics<parallel>], iteration_bounds = array<i64: 1, 1>, scalar_prefetch = 0 : i64, scratch_operands = 0 : i64, tpu.core_type = #tpu.core_type<tc>, window_params = [{transform_indices = @transform_0, window_bounds = array<i64: 160, 512>}, {transform_indices = @transform_1, window_bounds = array<i64: 512, 128>}, {transform_indices = @transform_2, window_bounds = array<i64: 1, 128>}, {transform_indices = @transform_3, window_bounds = array<i64: 160, 128>}, {transform_indices = @transform_4, window_bounds = array<i64: 160, 128>}]} {
    %c0 = arith.constant 0 : index
    %c0_0 = arith.constant 0 : index
    %0 = vector.load %arg2[%c0, %c0_0] : memref<160x512xf32, #tpu.memory_space<vmem>>, vector<160x512xf32>
    %c0_1 = arith.constant 0 : index
    %c0_2 = arith.constant 0 : index
    %1 = vector.load %arg3[%c0_1, %c0_2] : memref<512x128xf32, #tpu.memory_space<vmem>>, vector<512x128xf32>
    %cst = arith.constant dense<0.000000e+00> : vector<160x128xf32>
    %2 = tpu.matmul %0, %1, %cst {dimension_numbers = #tpu.dot_dimension_numbers<[1], [0], [0], [1], [0, 0, 1, 1], [], []>} : vector<160x512xf32>, vector<512x128xf32>, vector<160x128xf32> -> vector<160x128xf32>
    %c0_3 = arith.constant 0 : index
    %c0_4 = arith.constant 0 : index
    %3 = vector.load %arg4[%c0_3, %c0_4] : memref<1x128xf32, #tpu.memory_space<vmem>>, vector<1x128xf32>
    %4 = vector.broadcast %3 : vector<1x128xf32> to vector<160x128xf32>
    %5 = arith.addf %2, %4 : vector<160x128xf32>
    %c0_5 = arith.constant 0 : index
    %c0_6 = arith.constant 0 : index
    %6 = vector.load %arg5[%c0_5, %c0_6] : memref<160x128xf32, #tpu.memory_space<vmem>>, vector<160x128xf32>
    %7 = arith.addf %5, %6 : vector<160x128xf32>
    %c0_7 = arith.constant 0 : index
    %c0_8 = arith.constant 0 : index
    %8 = vector.load %arg6[%c0_7, %c0_8] : memref<160x128xf32, #tpu.memory_space<vmem>>, vector<160x128xf32>
    tpu.vector_store %arg6[%c0_7, %c0_8], %7 {strides = array<i32>} : memref<160x128xf32, #tpu.memory_space<vmem>>, vector<160x128xf32>,
    return
  }
  func.func @transform_0(%arg0: i32, %arg1: i32) -> (i32, i32) {
    %c0_i32 = arith.constant 0 : i32
    %c0_i32_0 = arith.constant 0 : i32
    return %arg0, %c0_i32 : i32, i32
  }
  func.func @transform_1(%arg0: i32, %arg1: i32) -> (i32, i32) {
    %c0_i32 = arith.constant 0 : i32
    %c0_i32_0 = arith.constant 0 : i32
    return %c0_i32, %arg1 : i32, i32
  }
  func.func @transform_2(%arg0: i32, %arg1: i32) -> (i32, i32) {
    %c0_i32 = arith.constant 0 : i32
    %c0_i32_0 = arith.constant 0 : i32
    return %c0_i32, %arg1 : i32, i32
  }
  func.func @transform_3(%arg0: i32, %arg1: i32) -> (i32, i32) {
    %c0_i32 = arith.constant 0 : i32
    return %arg0, %arg1 : i32, i32
  }
  func.func @transform_4(%arg0: i32, %arg1: i32) -> (i32, i32) {
    %c0_i32 = arith.constant 0 : i32
    return %arg0, %arg1 : i32, i32
  }
}

module attributes {stable_mosaic.version = 11 : i64} {
  func.func @_layernorm_kernel(%arg0: i32, %arg1: memref<160x128xf32, #tpu.memory_space<vmem>>, %arg2: memref<1x128xf32, #tpu.memory_space<vmem>>, %arg3: memref<1x128xf32, #tpu.memory_space<vmem>>, %arg4: memref<160x128xf32, #tpu.memory_space<vmem>>) attributes {dimension_semantics = [#tpu.dimension_semantics<parallel>], iteration_bounds = array<i64: 1>, scalar_prefetch = 0 : i64, scratch_operands = 0 : i64, tpu.core_type = #tpu.core_type<tc>, window_params = [{transform_indices = @transform_0, window_bounds = array<i64: 160, 128>}, {pipeline_mode = #tpu.pipeline_mode<synchronous>, transform_indices = @transform_1, window_bounds = array<i64: 1, 128>}, {pipeline_mode = #tpu.pipeline_mode<synchronous>, transform_indices = @transform_2, window_bounds = array<i64: 1, 128>}, {transform_indices = @transform_3, window_bounds = array<i64: 160, 128>}]} {
    %c0 = arith.constant 0 : index
    %c0_0 = arith.constant 0 : index
    %0 = vector.load %arg1[%c0, %c0_0] : memref<160x128xf32, #tpu.memory_space<vmem>>, vector<160x128xf32>
    %cst = arith.constant dense<0.000000e+00> : vector<160xf32>
    %1 = vector.multi_reduction <add>, %0, %cst [1] : vector<160x128xf32> to vector<160xf32>
    %2 = vector.shape_cast %1 : vector<160xf32> to vector<160x1xf32>
    %cst_1 = arith.constant 1.280000e+02 : f32
    %3 = vector.broadcast %cst_1 : f32 to vector<160x1xf32>
    %4 = arith.divf %2, %3 : vector<160x1xf32>
    %5 = vector.broadcast %4 : vector<160x1xf32> to vector<160x128xf32>
    %6 = arith.subf %0, %5 : vector<160x128xf32>
    %7 = arith.mulf %6, %6 : vector<160x128xf32>
    %cst_2 = arith.constant dense<0.000000e+00> : vector<160xf32>
    %8 = vector.multi_reduction <add>, %7, %cst_2 [1] : vector<160x128xf32> to vector<160xf32>
    %9 = vector.shape_cast %8 : vector<160xf32> to vector<160x1xf32>
    %cst_3 = arith.constant 1.280000e+02 : f32
    %10 = vector.broadcast %cst_3 : f32 to vector<160x1xf32>
    %11 = arith.divf %9, %10 : vector<160x1xf32>
    %cst_4 = arith.constant 9.99999997E-7 : f32
    %12 = vector.broadcast %cst_4 : f32 to vector<160x1xf32>
    %13 = arith.addf %11, %12 : vector<160x1xf32>
    %14 = math.rsqrt %13 : vector<160x1xf32>
    %15 = vector.broadcast %14 : vector<160x1xf32> to vector<160x128xf32>
    %16 = arith.mulf %6, %15 : vector<160x128xf32>
    %c0_5 = arith.constant 0 : index
    %c0_6 = arith.constant 0 : index
    %17 = vector.load %arg2[%c0_5, %c0_6] : memref<1x128xf32, #tpu.memory_space<vmem>>, vector<1x128xf32>
    %18 = vector.broadcast %17 : vector<1x128xf32> to vector<160x128xf32>
    %19 = arith.mulf %16, %18 : vector<160x128xf32>
    %c0_7 = arith.constant 0 : index
    %c0_8 = arith.constant 0 : index
    %20 = vector.load %arg3[%c0_7, %c0_8] : memref<1x128xf32, #tpu.memory_space<vmem>>, vector<1x128xf32>
    %21 = vector.broadcast %20 : vector<1x128xf32> to vector<160x128xf32>
    %22 = arith.addf %19, %21 : vector<160x128xf32>
    %c0_9 = arith.constant 0 : index
    %c0_10 = arith.constant 0 : index
    %23 = vector.load %arg4[%c0_9, %c0_10] : memref<160x128xf32, #tpu.memory_space<vmem>>, vector<160x128xf32>
    tpu.vector_store %arg4[%c0_9, %c0_10], %22 {strides = array<i32>} : memref<160x128xf32, #tpu.memory_space<vmem>>, vector<160x128xf32>,
    return
  }
  func.func @transform_0(%arg0: i32) -> (i32, i32) {
    %c0_i32 = arith.constant 0 : i32
    %c0_i32_0 = arith.constant 0 : i32
    return %arg0, %c0_i32 : i32, i32
  }
  func.func @transform_1(%arg0: i32) -> (i32, i32) {
    %c0_i32 = arith.constant 0 : i32
    %c0_i32_0 = arith.constant 0 : i32
    %c0_i32_1 = arith.constant 0 : i32
    return %c0_i32, %c0_i32_0 : i32, i32
  }
  func.func @transform_2(%arg0: i32) -> (i32, i32) {
    %c0_i32 = arith.constant 0 : i32
    %c0_i32_0 = arith.constant 0 : i32
    %c0_i32_1 = arith.constant 0 : i32
    return %c0_i32, %c0_i32_0 : i32, i32
  }
  func.func @transform_3(%arg0: i32) -> (i32, i32) {
    %c0_i32 = arith.constant 0 : i32
    %c0_i32_0 = arith.constant 0 : i32
    return %arg0, %c0_i32 : i32, i32
  }
}

</mosaic_0001>

<bundles_post_ra>
// kernel: base_backbone_forward.14
= control target key start
LH: loop header
LB: loop body
LE: loop exit
PB: predicated region body
PF: predicated region fallthrough
CT: control target
= control target key end

     0   :  { %s757_s15 = smov 0   ;;  %s759_s16 = smov 0   ;;  %s850_s0 = inlined_call_operand.vmem [shape: f32[128,48], index: 0, kind: input, shape index: {}]   ;;  %s851_s1 = inlined_call_operand.vmem [shape: f32[48,128], index: 1, kind: input, shape index: {}]   ;;  %s852_s2 = inlined_call_operand.vmem [shape: f32[1,128], index: 2, kind: input, shape index: {}]   ;;  %s853_s3 = inlined_call_operand.vmem [shape: f32[64,128], index: 3, kind: input, shape index: {}]   ;;  %s854_s4 = inlined_call_operand.vmem [shape: f32[128,128], index: 4, kind: output, shape index: {}]  }
   0x1   :  { %s761_s17 = smov 0  }
   0x2 LB: > { %s33_s18 = sadd.s32 1, %s726_s16  ;;  %p612_p0 = scmp.ge.s32.totalorder %s730_s17, 1  ;;  %s730_s17 = sphi %s761_s17, %s14_s17   ;;  %s726_s16 = sphi %s759_s16, %s856_s16   ;;  %s722_s15 = sphi %s757_s15, %s855_s15  }
   0x3   : > { %p35_p1 = scmp.ge.s32.totalorder %s33_s18, 2  ;;  %p223_p2 = scmp.lt.s32.totalorder %s730_s17, 3 }
   0x5   : > { %s858_s18 = smov (%p35_p1, %s33_s18), 0  ;;  %p224_p3 = pnand %p612_p0, %p223_p2 }
   0x6   : > { %v312_v0 = vld [vmem:[%s851_s1] sm:$0xff] (!%p224_p3)  ;;  %v313_v1 = vld [vmem:[%s851_s1 + $0x8] sm:$0xff] (!%p224_p3)  ;;  %v314_v2 = vld [vmem:[%s851_s1 + $0x10] sm:$0xff] (!%p224_p3)  ;;  %s613_s25 = sshll.u32 (!%p224_p3), %s722_s15, 3  ;;  %vm325_vm0 = vcmask (!%p224_p3), 392192  }
   0x7   : > { %227 = sbr.rel (%p224_p3) target bundleno = 244 (0xf4), region = 36  ;;  %v666_v3 = vpack.c.bf16 (!%p224_p3), %v313_v1, %v312_v0  ;;  %v315_v4 = vld [vmem:[%s851_s1 + $0x18] sm:$0xff] (!%p224_p3)  ;;  %p271_p4 = scmp.lt.s32.totalorder (!%p224_p3), %s613_s25, 15  ;;  %v316_v6 = vld [vmem:[%s851_s1 + $0x20] sm:$0xff] (!%p224_p3)  ;;  %v317_v7 = vld [vmem:[%s851_s1 + $0x28] sm:$0xff] (!%p224_p3) }
   0x8   : > { %v670_v5 = vpack.c.bf16 (!%p224_p3), %v315_v4, %v314_v2  ;;  %v674_v8 = vpack.c.bf16 (!%p224_p3), %v317_v7, %v316_v6  ;;  %v617_v17 = vld [vmem:[%s852_s2] ss:$0 sm:$0xff] (!%p224_p3)  ;;  %v456_v19 = vld [vmem:[%s853_s3 + $0x8] sm:$0xff] (!%p224_p3)  ;;  %v458_v35 = vld [vmem:[%s853_s3 + $0x18] sm:$0xff] (!%p224_p3) }
   0x9   : > { %667 = vmatprep.subr.bf16.mxu0 (!%p224_p3), %v666_v3  ;;  %678 = vmatprep.subr.bf16.mxu1 (!%p224_p3), %v666_v3  ;;  %v460_v21 = vld [vmem:[%s853_s3 + $0x28] sm:$0xff] (!%p224_p3)  ;;  %v455_v25 = vld [vmem:[%s853_s3] sm:$0xff] (!%p224_p3)  ;;  %v462_v37 = vld [vmem:[%s853_s3 + $0x38] sm:$0xff] (!%p224_p3) }
   0xa   : > { %669 = vmatpush3.bf16.msra.mxu0 (!%p224_p3), %v666_v3  ;;  %681 = vmatpush3.bf16.msra.mxu1 (!%p224_p3), %v666_v3  ;;  %v459_v27 = vld [vmem:[%s853_s3 + $0x20] sm:$0xff] (!%p224_p3)  ;;  %v457_v41 = vld [vmem:[%s853_s3 + $0x10] sm:$0xff] (!%p224_p3) }
   0xb   : > { %671 = vmatprep.subr.bf16.mxu0 (!%p224_p3), %v670_v5  ;;  %679 = vmatprep.subr.bf16.mxu1 (!%p224_p3), %v670_v5  ;;  %v461_v43 = vld [vmem:[%s853_s3 + $0x30] sm:$0xff] (!%p224_p3) }
   0xe   : > { %s860_s25 = smov (!%p271_p4, %s613_s25), 15  ;;  %673 = vmatpush3.bf16.msra.mxu0 %v670_v5  ;;  %682 = vmatpush3.bf16.msra.mxu1 %v670_v5 }
   0xf   : > { %s614_s6 = sshll.u32 %s860_s25, 3  ;;  %675 = vmatprep.subr.bf16.mxu0 %v674_v8  ;;  %680 = vmatprep.subr.bf16.mxu1 %v674_v8 }
  0x10   : > { %s274_s9 = scalar_lea.vmem %s850_s0, %s614_s6  ;;  %s301_s26 = scalar_lea.vmem %s854_s4, %s614_s6 }
  0x11   : > { %v304_v9 = vld [vmem:[%s274_s9] sm:$0xff]  ;;  %v305_v11 = vld [vmem:[%s274_s9 + $0x8] sm:$0xff]  ;;  %v306_v13 = vld [vmem:[%s274_s9 + $0x10] sm:$0xff] }
  0x12   : > { %v308_v10 = vld [vmem:[%s274_s9 + $0x20] sm:$0xff]  ;;  %654 = vmatprep.mubr.msk.f32.mxu0 %vm325_vm0, %v304_v9  ;;  %677 = vmatpush3.bf16.msra.mxu0 %v674_v8  ;;  %v309_v12 = vld [vmem:[%s274_s9 + $0x28] sm:$0xff]  ;;  %v310_v14 = vld [vmem:[%s274_s9 + $0x30] sm:$0xff] }
  0x13   : > { %660 = vmatprep.mubr.msk.f32.mxu1 %vm325_vm0, %v308_v10  ;;  %683 = vmatpush3.bf16.msra.mxu1 %v674_v8  ;;  %v307_v15 = vld [vmem:[%s274_s9 + $0x18] sm:$0xff] }
  0x14   : > { %v311_v16 = vld [vmem:[%s274_s9 + $0x38] sm:$0xff] }
  0x15   : > { %655 = vmatmul.mubr.msk.f32.vlgmr.msra.gmra.mrb[0].mxu0 %vm325_vm0, %v305_v11 }
  0x16   : > { %661 = vmatmul.mubr.msk.f32.vlgmr.msra.gmra.mrb[0].mxu1 %vm325_vm0, %v309_v12  ;;  %657 = vmatprep.mubr.msk.f32.mxu0 %vm325_vm0, %v306_v13 }
  0x17   : > { %663 = vmatprep.mubr.msk.f32.mxu1 %vm325_vm0, %v310_v14 }
  0x19   : > { %658 = vmatmul.mubr.msk.f32.gmra.mrb[2].mxu0 %vm325_vm0, %v307_v15 }
  0x1a   : > { %664 = vmatmul.mubr.msk.f32.gmra.mrb[2].mxu1 %vm325_vm0, %v311_v16 }
  0xe8   : > { %v656_v18 = vpop.f32.mrb[0].mxu0 }
  0xe9   : > { %v662_v20 = vpop.f32.mrb[0].mxu1  ;;  %v422_v22 = vadd.f32 %v656_v18, %v617_v17  ;;  %v416_v24 = vpop.f32.mrb[1].mxu0 }
  0xea   : > { %v442_v23 = vadd.f32 %v662_v20, %v617_v17  ;;  %v436_v26 = vpop.f32.mrb[1].mxu1  ;;  %v417_v28 = vadd.f32 %v617_v17, %v416_v24 }
  0xeb   : > { %v437_v29 = vadd.f32 %v617_v17, %v436_v26  ;;  %v464_v30 = vadd.f32 %v456_v19, %v422_v22 }
  0xec   : > { %v468_v31 = vadd.f32 %v460_v21, %v442_v23  ;;  %v463_v32 = vadd.f32 %v455_v25, %v417_v28  ;;  %v659_v34 = vpop.f32.mrb[2].mxu0 }
  0xed   : > { %v467_v33 = vadd.f32 %v459_v27, %v437_v29  ;;  %v665_v36 = vpop.f32.mrb[2].mxu1  ;;  %472 = vst [vmem:[%s301_s26 + $0x8] sm:$0xff] %v464_v30  ;;  %v432_v38 = vadd.f32 %v659_v34, %v617_v17  ;;  %v426_v40 = vpop.f32.mrb[3].mxu0 }
  0xee   : > { %476 = vst [vmem:[%s301_s26 + $0x28] sm:$0xff] %v468_v31  ;;  %v452_v39 = vadd.f32 %v665_v36, %v617_v17  ;;  %v446_v42 = vpop.f32.mrb[3].mxu1  ;;  %471 = vst [vmem:[%s301_s26] sm:$0xff] %v463_v32  ;;  %v427_v44 = vadd.f32 %v617_v17, %v426_v40 }
  0xef   : > { %475 = vst [vmem:[%s301_s26 + $0x20] sm:$0xff] %v467_v33  ;;  %v447_v45 = vadd.f32 %v617_v17, %v446_v42  ;;  %v466_v46 = vadd.f32 %v458_v35, %v432_v38 }
  0xf0   : > { %v470_v47 = vadd.f32 %v462_v37, %v452_v39  ;;  %v465_v48 = vadd.f32 %v457_v41, %v427_v44 }
  0xf1   : > { %v469_v49 = vadd.f32 %v461_v43, %v447_v45  ;;  %474 = vst [vmem:[%s301_s26 + $0x18] sm:$0xff] %v466_v46 }
  0xf2   : > { %478 = vst [vmem:[%s301_s26 + $0x38] sm:$0xff] %v470_v47  ;;  %473 = vst [vmem:[%s301_s26 + $0x10] sm:$0xff] %v465_v48 }
  0xf3   : > { %477 = vst [vmem:[%s301_s26 + $0x30] sm:$0xff] %v469_v49 }
  0xf4 PF: > { %s14_s17 = sadd.s32 1, %s730_s17   ;;  %s855_s15 = smov %s726_s16 }
  0xf5   : > { %p11_p5 = scmp.ge.s32.totalorder %s14_s17, 4   ;;  %s856_s16 = smov %s858_s18 }
  0xf7   :  { %13 = sbr.rel (!%p11_p5) target bundleno = 2 (0x2), region = 75 }

// kernel: base_backbone_forward.13
= control target key start
LH: loop header
LB: loop body
LE: loop exit
PB: predicated region body
PF: predicated region fallthrough
CT: control target
= control target key end

     0   :  { %s658_s15 = smov 0   ;;  %s660_s16 = smov 0   ;;  %s718_s0 = inlined_call_operand.vmem [shape: f32[32,48], index: 0, kind: input, shape index: {}]   ;;  %s719_s1 = inlined_call_operand.vmem [shape: f32[48,128], index: 1, kind: input, shape index: {}]   ;;  %s720_s2 = inlined_call_operand.vmem [shape: f32[1,128], index: 2, kind: input, shape index: {}]   ;;  %s721_s3 = inlined_call_operand.vmem [shape: f32[16,128], index: 3, kind: input, shape index: {}]   ;;  %s722_s4 = inlined_call_operand.vmem [shape: f32[32,128], index: 4, kind: output, shape index: {}]  }
   0x1   :  { %s662_s17 = smov 0  }
   0x2 LB: > { %s33_s18 = sadd.s32 1, %s627_s16  ;;  %p540_p0 = scmp.ge.s32.totalorder %s631_s17, 1  ;;  %s631_s17 = sphi %s662_s17, %s14_s17   ;;  %s627_s16 = sphi %s660_s16, %s724_s16   ;;  %s623_s15 = sphi %s658_s15, %s723_s15  }
   0x3   : > { %p35_p1 = scmp.ge.s32.totalorder %s33_s18, 2  ;;  %p223_p2 = scmp.lt.s32.totalorder %s631_s17, 3 }
   0x5   : > { %s726_s18 = smov (%p35_p1, %s33_s18), 0  ;;  %p224_p3 = pnand %p540_p0, %p223_p2 }
   0x6   : > { %v306_v0 = vld [vmem:[%s719_s1] sm:$0xff] (!%p224_p3)  ;;  %v307_v1 = vld [vmem:[%s719_s1 + $0x8] sm:$0xff] (!%p224_p3)  ;;  %v308_v2 = vld [vmem:[%s719_s1 + $0x10] sm:$0xff] (!%p224_p3)  ;;  %s541_s25 = sshll.u32 (!%p224_p3), %s623_s15, 1  ;;  %vm319_vm0 = vcmask (!%p224_p3), 392192  }
   0x7   : > { %227 = sbr.rel (%p224_p3) target bundleno = 239 (0xef), region = 36  ;;  %v573_v3 = vpack.c.bf16 (!%p224_p3), %v307_v1, %v306_v0  ;;  %v309_v4 = vld [vmem:[%s719_s1 + $0x18] sm:$0xff] (!%p224_p3)  ;;  %p271_p4 = scmp.lt.s32.totalorder (!%p224_p3), %s541_s25, 3  ;;  %v310_v6 = vld [vmem:[%s719_s1 + $0x20] sm:$0xff] (!%p224_p3)  ;;  %v311_v7 = vld [vmem:[%s719_s1 + $0x28] sm:$0xff] (!%p224_p3) }
   0x8   : > { %v577_v5 = vpack.c.bf16 (!%p224_p3), %v309_v4, %v308_v2  ;;  %v581_v8 = vpack.c.bf16 (!%p224_p3), %v311_v7, %v310_v6  ;;  %v545_v11 = vld [vmem:[%s720_s2] ss:$0 sm:$0xff] (!%p224_p3)  ;;  %v402_v16 = vld [vmem:[%s721_s3 + $0x8] sm:$0xff] (!%p224_p3) }
   0x9   : > { %574 = vmatprep.subr.bf16.mxu0 (!%p224_p3), %v573_v3  ;;  %v401_v15 = vld [vmem:[%s721_s3] sm:$0xff] (!%p224_p3) }
   0xa   : > { %576 = vmatpush3.bf16.msra.mxu0 (!%p224_p3), %v573_v3 }
   0xb   : > { %578 = vmatprep.subr.bf16.mxu0 (!%p224_p3), %v577_v5 }
   0xe   : > { %s728_s25 = smov (!%p271_p4, %s541_s25), 3  ;;  %580 = vmatpush3.bf16.msra.mxu0 %v577_v5 }
   0xf   : > { %s542_s6 = sshll.u32 %s728_s25, 3  ;;  %582 = vmatprep.subr.bf16.mxu0 %v581_v8 }
  0x10   : > { %s274_s9 = scalar_lea.vmem %s718_s0, %s542_s6  ;;  %s301_s21 = scalar_lea.vmem %s722_s4, %s542_s6 }
  0x11   : > { %v304_v9 = vld [vmem:[%s274_s9] sm:$0xff]  ;;  %v305_v10 = vld [vmem:[%s274_s9 + $0x8] sm:$0xff] }
  0x12   : > { %570 = vmatprep.mubr.msk.f32.mxu0 %vm319_vm0, %v304_v9  ;;  %584 = vmatpush3.bf16.msra.mxu0 %v581_v8 }
  0x15   : > { %571 = vmatmul.mubr.msk.f32.vlgmr.msra.gmra.mrb[0].mxu0 %vm319_vm0, %v305_v10 }
  0xe8   : > { %v572_v12 = vpop.f32.mrb[0].mxu0 }
  0xe9   : > { %v398_v13 = vadd.f32 %v572_v12, %v545_v11  ;;  %v392_v14 = vpop.f32.mrb[1].mxu0 }
  0xea   : > { %v393_v17 = vadd.f32 %v545_v11, %v392_v14 }
  0xeb   : > { %v404_v19 = vadd.f32 %v402_v16, %v398_v13 }
  0xec   : > { %v403_v18 = vadd.f32 %v401_v15, %v393_v17 }
  0xed   : > { %406 = vst [vmem:[%s301_s21 + $0x8] sm:$0xff] %v404_v19 }
  0xee   : > { %405 = vst [vmem:[%s301_s21] sm:$0xff] %v403_v18 }
  0xef PF: > { %s14_s17 = sadd.s32 1, %s631_s17   ;;  %s723_s15 = smov %s627_s16 }
  0xf0   : > { %p11_p5 = scmp.ge.s32.totalorder %s14_s17, 4   ;;  %s724_s16 = smov %s726_s18 }
  0xf2   :  { %13 = sbr.rel (!%p11_p5) target bundleno = 2 (0x2), region = 75 }

// kernel: base_backbone_forward.16
= control target key start
LH: loop header
LB: loop body
LE: loop exit
PB: predicated region body
PF: predicated region fallthrough
CT: control target
= control target key end

     0   :  { %s1743_s6 = smov 0   ;;  %s2203_s0 = inlined_call_operand.vmem [shape: f32[2,80,384], index: 0, kind: input, shape index: {}]   ;;  %s2204_s1 = inlined_call_operand.vmem [shape: f32[2,80,128], index: 1, kind: output, shape index: {}]  }
   0x1 LB: > { %s1194_s7 = sadd.s32 4294967295, %s1730_s6   ;;  %p1198_p0 = scmp.ge.s32.totalorder %s1730_s6, 1  ;;  %s1730_s6 = sphi %s1743_s6, %s11_s6  }
   0x2   : > { %p87_p1 = scmp.lt.s32.totalorder %s1730_s6, 3 }
   0x4   : > { %p88_p2 = pnand %p1198_p0, %p87_p1 }
   0x5   : > { %p107_p3 = scmp.lt.s32.totalorder (!%p88_p2), %s1194_s7, 1  ;;  %vm157_vm0 = vcmask (!%p88_p2), 523264   ;;  %s1732_s12 = smov (!%p88_p2), 64   ;;  %vm333_vm2 = vcmask (!%p88_p2), 654336  }
   0x6   : > { %91 = sbr.rel (%p88_p2) target bundleno = 1574 (0x626), region = 24  ;;  %vm1761_vm1 = vmpackc.low (!%p88_p2), %vm157_vm0, %vm157_vm0 }
   0xd   : > { %s2208_s7 = smov (!%p107_p3, %s1194_s7), 1 }
   0xe   : > { %s1583_s8 = smul.u32 240, %s2208_s7 }
   0xf   : > { %s1584_s13 = smul.u32 80, %s2208_s7 }
  0x10   : > { %s1757_s11 = scalar_lea.vmem %s2203_s0, %s1583_s8 }
  0x11   : > { %v137_v1 = vld [vmem:[%s1757_s11 + $0x8] sm:$0xff]  ;;  %v138_v2 = vld [vmem:[%s1757_s11 + $0x20] sm:$0xff]  ;;  %v1768_v3 = vld [vmem:[%s1757_s11 + $0x38] sm:$0xff]  ;;  %s116_s16 = scalar_lea.vmem %s2204_s1, %s1584_s13 }
  0x12   : > { %v1483_v4 = vpack.c.bf16 %v138_v2, %v137_v1  ;;  %v1771_v5 = vld [vmem:[%s1757_s11 + $0x50] sm:$0xff]  ;;  %v1594_v6 = vpack.i.bf16 %v138_v2, %v137_v1  ;;  %v117_v8 = vld [vmem:[%s1757_s11] sm:$0xff]  ;;  %v1786_v10 = vld [vmem:[%s1757_s11 + $0x68] sm:$0xff] }
  0x13   : > { %v1489_v7 = vpack.c.bf16 %v1771_v5, %v1768_v3  ;;  %v1781_v9 = vmul.f32 0.125, %v117_v8  ;;  %v1789_v11 = vld [vmem:[%s1757_s11 + $0x80] sm:$0xff]  ;;  %v1800_v13 = vld [vmem:[%s1757_s11 + $0x98] sm:$0xff]  ;;  %v1803_v14 = vld [vmem:[%s1757_s11 + $0xb0] sm:$0xff] }
  0x14   : > { %1485 = vmatprep.subr.msk.bf16.mxu0 %vm1761_vm1, %v1483_v4  ;;  %1595 = vrot.lane.b32.xlu0 %v1594_v6, %s1732_s12  ;;  %v1495_v12 = vpack.c.bf16 %v1789_v11, %v1786_v10  ;;  %v1501_v15 = vpack.c.bf16 %v1803_v14, %v1800_v13  ;;  %v1812_v16 = vld [vmem:[%s1757_s11 + $0xc8] sm:$0xff]  ;;  %v1815_v17 = vld [vmem:[%s1757_s11 + $0xe0] sm:$0xff]  ;;  %v118_v19 = vld [vmem:[%s1757_s11 + $0x18] sm:$0xff] }
  0x15   : > { %1488 = vmatpush3.bf16.xpose.msk.msra.mxu0 %vm1761_vm1, %v1483_v4  ;;  %1363 = vmatprep.mubr.msk.f32.mxu0 %vm157_vm0, %v1781_v9  ;;  %v1507_v18 = vpack.c.bf16 %v1815_v17, %v1812_v16  ;;  %v119_v20 = vld [vmem:[%s1757_s11 + $0x30] sm:$0xff]  ;;  %v1827_v21 = vmul.f32 0.125, %v118_v19  ;;  %v120_v23 = vld [vmem:[%s1757_s11 + $0x48] sm:$0xff]  ;;  %v121_v24 = vld [vmem:[%s1757_s11 + $0x60] sm:$0xff] }
  0x16   : > { %1491 = vmatprep.subr.msk.bf16.mxu0 %vm1761_vm1, %v1489_v7  ;;  %v1829_v22 = vmul.f32 0.125, %v119_v20  ;;  %v1835_v25 = vmul.f32 0.125, %v120_v23  ;;  %v1839_v26 = vmul.f32 0.125, %v121_v24  ;;  %v122_v27 = vld [vmem:[%s1757_s11 + $0x78] sm:$0xff]  ;;  %v123_v28 = vld [vmem:[%s1757_s11 + $0x90] sm:$0xff]  ;;  %v124_v31 = vld [vmem:[%s1757_s11 + $0xa8] sm:$0xff] }
  0x17   : > { %v1845_v29 = vmul.f32 0.125, %v122_v27  ;;  %v1849_v30 = vmul.f32 0.125, %v123_v28  ;;  %v125_v32 = vld [vmem:[%s1757_s11 + $0xc0] sm:$0xff]  ;;  %v1855_v33 = vmul.f32 0.125, %v124_v31  ;;  %v126_v35 = vld [vmem:[%s1757_s11 + $0xd8] sm:$0xff]  ;;  %v1871_v37 = vld [vmem:[%s1757_s11 + $0x10] sm:$0xff]  ;;  %v1599_v27 = vpack.i.bf16 %v1771_v5, %v1768_v3 }
  0x18   : > { %v1859_v34 = vmul.f32 0.125, %v125_v32  ;;  %v1864_v36 = vmul.f32 0.125, %v126_v35  ;;  %v1874_v38 = vld [vmem:[%s1757_s11 + $0x28] sm:$0xff]  ;;  %v1877_v39 = vld [vmem:[%s1757_s11 + $0x40] sm:$0xff]  ;;  %v1884_v42 = vld [vmem:[%s1757_s11 + $0x58] sm:$0xff]  ;;  %v1604_v28 = vpack.i.bf16 %v1789_v11, %v1786_v10 }
  0x19   : > { %v1619_v40 = vpack.i.bf16 %v1874_v38, %v1871_v37  ;;  %v1513_v41 = vpack.c.bf16 %v1874_v38, %v1871_v37  ;;  %v1517_v43 = vpack.c.bf16 %v1884_v42, %v1877_v39  ;;  %v1889_v44 = vld [vmem:[%s1757_s11 + $0x70] sm:$0xff]  ;;  %v1892_v45 = vld [vmem:[%s1757_s11 + $0x88] sm:$0xff]  ;;  %v1897_v47 = vld [vmem:[%s1757_s11 + $0xa0] sm:$0xff] }
  0x1a   : > { %v1521_v46 = vpack.c.bf16 %v1892_v45, %v1889_v44  ;;  %v1900_v48 = vld [vmem:[%s1757_s11 + $0xb8] sm:$0xff]  ;;  %v1905_v51 = vld [vmem:[%s1757_s11 + $0xd0] sm:$0xff]  ;;  %v1908_v52 = vld [vmem:[%s1757_s11 + $0xe8] sm:$0xff] }
  0x1b   : > { %1514 = vmatprep.subr.bf16.mxu1 %v1513_v41  ;;  %v1525_v49 = vpack.c.bf16 %v1900_v48, %v1897_v47  ;;  %v1529_v55 = vpack.c.bf16 %v1908_v52, %v1905_v51 }
  0x1c   : > { %1516 = vmatpush3.bf16.msra.mxu1 %v1513_v41 }
  0x1d   : > { %1494 = vmatpush3.bf16.xpose.msk.msra.mxu0 %vm1761_vm1, %v1489_v7  ;;  %1518 = vmatprep.subr.bf16.mxu1 %v1517_v43 }
  0x1e   : > { %1497 = vmatprep.subr.msk.bf16.mxu0 %vm1761_vm1, %v1495_v12 }
  0x20   : > { %1520 = vmatpush3.bf16.msra.mxu1 %v1517_v43 }
  0x21   : > { %1522 = vmatprep.subr.bf16.mxu1 %v1521_v46 }
  0x24   : > { %1524 = vmatpush3.bf16.msra.mxu1 %v1521_v46 }
  0x25   : > { %1500 = vmatpush3.bf16.xpose.msk.msra.mxu0 %vm1761_vm1, %v1495_v12  ;;  %1526 = vmatprep.subr.bf16.mxu1 %v1525_v49 }
  0x26   : > { %1503 = vmatprep.subr.msk.bf16.mxu0 %vm1761_vm1, %v1501_v15 }
  0x28   : > { %1528 = vmatpush3.bf16.msra.mxu1 %v1525_v49 }
  0x29   : > { %1530 = vmatprep.subr.bf16.mxu1 %v1529_v55 }
  0x2c   : > { %1532 = vmatpush3.bf16.msra.mxu1 %v1529_v55 }
  0x2d   : > { %1506 = vmatpush3.bf16.xpose.msk.msra.mxu0 %vm1761_vm1, %v1501_v15 }
  0x2e   : > { %1509 = vmatprep.subr.msk.bf16.mxu0 %vm1761_vm1, %v1507_v18 }
  0x35   : > { %1512 = vmatpush3.bf16.xpose.msk.msra.mxu0 %vm1761_vm1, %v1507_v18 }
  0x3c   : > { %1364 = vmatmul.mubr.msk.f32.vlgmr.msra.gmra.mrb[0].mxu0 %vm157_vm0, %v1827_v21 }
  0x3d   : > { %1366 = vmatprep.mubr.msk.f32.mxu0 %vm157_vm0, %v1829_v22 }
  0x40   : > { %1367 = vmatmul.mubr.msk.f32.gmra.mrb[2].mxu0 %vm157_vm0, %v1835_v25 }
  0x41   : > { %1369 = vmatprep.mubr.msk.f32.mxu0 %vm157_vm0, %v1839_v26 }
  0x44   : > { %1370 = vmatmul.mubr.msk.f32.gmra.mrb[4].mxu0 %vm157_vm0, %v1845_v29 }
  0x45   : > { %1372 = vmatprep.mubr.msk.f32.mxu0 %vm157_vm0, %v1849_v30 }
  0x48   : > { %1373 = vmatmul.mubr.msk.f32.gmra.mrb[6].mxu0 %vm157_vm0, %v1855_v33 }
  0x49   : > { %1375 = vmatprep.mubr.msk.f32.mxu0 %vm157_vm0, %v1859_v34 }
  0x4c   : > { %1376 = vmatmul.mubr.msk.f32.gmra.mrb[8].mxu0 %vm157_vm0, %v1864_v36 }
  0x86   : > { %v1596_v50 = vpop.permute.xlu0 %1595 }
  0x87   : > { %v1598_v53 = vunpack.i.h.bf16 %v1596_v50  ;;  %v1597_v54 = vunpack.i.l.bf16 %v1596_v50 }
  0x89   : > { %v1912_v56 = vpack.c.bf16 %v1598_v53, %v1597_v54 }
  0x8b   : > { %1535 = vmatprep.subr.msk.bf16.mxu1 %vm1761_vm1, %v1912_v56 }
 0x10f   : > { %v1365_v57 = vpop.f32.mrb[0].mxu0 }
 0x110   : > { %v284_v58 = vpop.f32.mrb[1].mxu0  ;;  %v337_v59 = vsel %vm333_vm2, %v1365_v57, -inf }
 0x111   : > { %338 = vmax.xlane.f32.xlu0 %v337_v59  ;;  %v334_v61 = vsel %vm333_vm2, %v284_v58, -inf }
 0x113   : > { %v1368_v60 = vpop.f32.mrb[2].mxu0 }
 0x114   : > { %v343_v62 = vsel %vm333_vm2, %v1368_v60, -inf  ;;  %v294_v63 = vpop.f32.mrb[3].mxu0 }
 0x115   : > { %335 = vmax.xlane.f32.xlu0 %v334_v61  ;;  %344 = vmax.xlane.f32.xlu1 %v343_v62  ;;  %v340_v1 = vsel %vm333_vm2, %v294_v63, -inf  ;;  %v1614_v61 = vpack.i.bf16 %v1815_v17, %v1812_v16 }
 0x117   : > { %v1371_v2 = vpop.f32.mrb[4].mxu0 }
 0x118   : > { %v304_v4 = vpop.f32.mrb[5].mxu0  ;;  %v349_v7 = vsel %vm333_vm2, %v1371_v2, -inf }
 0x119   : > { %341 = vmax.xlane.f32.xlu1 %v340_v1  ;;  %v346_v6 = vsel %vm333_vm2, %v304_v4, -inf }
 0x11a   : > { %347 = vmax.xlane.f32.xlu0 %v346_v6 }
 0x11b   : > { %v1374_v8 = vpop.f32.mrb[6].mxu0 }
 0x11c   : > { %v1923_v12 = vpop.f32.mrb[7].mxu0  ;;  %v355_v18 = vsel %vm333_vm2, %v1374_v8, -inf }
 0x11d   : > { %350 = vmax.xlane.f32.xlu1 %v349_v7  ;;  %v352_v15 = vsel %vm333_vm2, %v1923_v12, -inf }
 0x11e   : > { %353 = vmax.xlane.f32.xlu0 %v352_v15 }
 0x11f   : > { %v1928_v19 = vpop.f32.mrb[8].mxu0 }
 0x120   : > { %v324_v20 = vpop.f32.mrb[9].mxu0  ;;  %v361_v24 = vsel %vm333_vm2, %v1928_v19, -inf }
 0x121   : > { %356 = vmax.xlane.f32.xlu1 %v355_v18  ;;  %v358_v23 = vsel %vm333_vm2, %v324_v20, -inf }
 0x122   : > { %359 = vmax.xlane.f32.xlu0 %v358_v23 }
 0x125   : > { %362 = vmax.xlane.f32.xlu1 %v361_v24 }
 0x136   : > { %1600 = vrot.lane.b32.xlu1 %v1599_v27, %s1732_s12 }
 0x138   : > { %1605 = vrot.lane.b32.xlu0 %v1604_v28, %s1732_s12 }
 0x19e   : > { %v339_v31 = vpop.xlane.xlu0 %338 }
 0x19f   : > { %v365_v32 = vsub.f32 %v1365_v57, %v339_v31 }
 0x1a1   : > { %v376_v35 = vmul.f32 1.442695, %v365_v32 }
 0x1a2   : > { %v336_v41 = vpop.xlane.xlu0 %335  ;;  %v345_v43 = vpop.xlane.xlu1 %344 }
 0x1a3   : > { %1644 = vpow2.f32 %v376_v35  ;;  %v364_v46 = vsub.f32 %v284_v58, %v336_v41  ;;  %v1609_v58 = vpack.i.bf16 %v1803_v14, %v1800_v13 }
 0x1a5   : > { %v374_v49 = vmul.f32 1.442695, %v364_v46 }
 0x1a6   : > { %v342_v50 = vpop.xlane.xlu1 %341 }
 0x1a7   : > { %1646 = vpow2.f32 %v374_v49  ;;  %v366_v53 = vsub.f32 %v294_v63, %v342_v50  ;;  %v348_v59 = vpop.xlane.xlu0 %347  ;;  %v367_v63 = vsub.f32 %v1368_v60, %v345_v43 }
 0x1a8   : > { %v368_v18 = vsub.f32 %v304_v4, %v348_v59 }
 0x1a9   : > { %v378_v54 = vmul.f32 1.442695, %v366_v53  ;;  %v380_v6 = vmul.f32 1.442695, %v367_v63 }
 0x1aa   : > { %v351_v1 = vpop.xlane.xlu1 %350  ;;  %v382_v13 = vmul.f32 1.442695, %v368_v18 }
 0x1ab   : > { %1648 = vpow2.f32 %v378_v54  ;;  %v354_v62 = vpop.xlane.xlu0 %353  ;;  %v369_v7 = vsub.f32 %v1371_v2, %v351_v1 }
 0x1ac   : > { %1650 = vpow2.f32 %v380_v6  ;;  %v370_v16 = vsub.f32 %v1923_v12, %v354_v62 }
 0x1ad   : > { %v1939_v3 = vpop.eup %1644  ;;  %v384_v23 = vmul.f32 1.442695, %v369_v7 }
 0x1ae   : > { %v397_v5 = vsel %vm333_vm2, %v1939_v3, 0.0  ;;  %v357_v27 = vpop.xlane.xlu1 %356  ;;  %v386_v32 = vmul.f32 1.442695, %v370_v16 }
 0x1af   : > { %398 = vadd.xlane.f32.xlu1 %v397_v5  ;;  %v360_v15 = vpop.xlane.xlu0 %359  ;;  %1652 = vpow2.f32 %v384_v23  ;;  %v371_v14 = vsub.f32 %v1374_v8, %v357_v27 }
 0x1b0   : > { %v372_v24 = vsub.f32 %v324_v20, %v360_v15  ;;  %1654 = vpow2.f32 %v382_v13 }
 0x1b1   : > { %v1943_v10 = vpop.eup %1646  ;;  %v388_v17 = vmul.f32 1.442695, %v371_v14 }
 0x1b2   : > { %v394_v11 = vsel %vm333_vm2, %v1943_v10, 0.0  ;;  %v390_v28 = vmul.f32 1.442695, %v372_v24  ;;  %v363_v31 = vpop.xlane.xlu1 %362 }
 0x1b3   : > { %395 = vadd.xlane.f32.xlu0 %v394_v11  ;;  %v373_v2 = vsub.f32 %v1928_v19, %v363_v31 }
 0x1b4   : > { %1656 = vpow2.f32 %v390_v28 }
 0x1b5   : > { %v1947_v55 = vpop.eup %1648  ;;  %1658 = vpow2.f32 %v388_v17  ;;  %v392_v8 = vmul.f32 1.442695, %v373_v2 }
 0x1b6   : > { %v400_v57 = vsel %vm333_vm2, %v1947_v55, 0.0  ;;  %v1958_v60 = vpop.eup %1650  ;;  %1660 = vpow2.f32 %v386_v32 }
 0x1b7   : > { %401 = vadd.xlane.f32.xlu0 %v400_v57  ;;  %v403_v4 = vsel %vm333_vm2, %v1958_v60, 0.0  ;;  %1662 = vpow2.f32 %v392_v8 }
 0x1b9   : > { %v1963_v20 = vpop.eup %1652 }
 0x1ba   : > { %v1965_v35 = vpop.eup %1654  ;;  %v409_v12 = vsel %vm333_vm2, %v1963_v20, 0.0 }
 0x1bb   : > { %v406_v19 = vsel %vm333_vm2, %v1965_v35, 0.0 }
 0x1be   : > { %v1969_v41 = vpop.eup %1656 }
 0x1bf   : > { %v418_v43 = vsel %vm333_vm2, %v1969_v41, 0.0  ;;  %v1975_v46 = vpop.eup %1658 }
 0x1c0   : > { %1610 = vrot.lane.b32.xlu1 %v1609_v58, %s1732_s12  ;;  %v415_v49 = vsel %vm333_vm2, %v1975_v46, 0.0  ;;  %v1979_v50 = vpop.eup %1660 }
 0x1c1   : > { %v412_v53 = vsel %vm333_vm2, %v1979_v50, 0.0  ;;  %v1983_v54 = vpop.eup %1662 }
 0x1c2   : > { %v421_v5 = vsel %vm333_vm2, %v1983_v54, 0.0 }
 0x1cd   : > { %1615 = vrot.lane.b32.xlu0 %v1614_v61, %s1732_s12 }
 0x1e4   : > { %404 = vadd.xlane.f32.xlu1 %v403_v4 }
 0x1e8   : > { %410 = vadd.xlane.f32.xlu1 %v409_v12 }
 0x1ec   : > { %407 = vadd.xlane.f32.xlu1 %v406_v19  ;;  %419 = vadd.xlane.f32.xlu0 %v418_v43 }
 0x1f0   : > { %416 = vadd.xlane.f32.xlu1 %v415_v49 }
 0x1f4   : > { %413 = vadd.xlane.f32.xlu1 %v412_v53 }
 0x1f8   : > { %422 = vadd.xlane.f32.xlu1 %v421_v5 }
 0x202   : > { %589 = vrot.lane.b32.xlu0 %v1781_v9, %s1732_s12  ;;  %v1601_v9 = vpop.permute.xlu1 %1600 }
 0x206   : > { %591 = vrot.lane.b32.xlu0 %v1827_v21, %s1732_s12  ;;  %v1606_v21 = vpop.permute.xlu0 %1605 }
 0x207   : > { %v1607_v57 = vunpack.i.l.bf16 %v1606_v21 }
 0x209   : > { %593 = vrot.lane.b32.xlu1 %v1829_v22, %s1732_s12 }
 0x20a   : > { %595 = vrot.lane.b32.xlu0 %v1835_v25, %s1732_s12 }
 0x20d   : > { %597 = vrot.lane.b32.xlu1 %v1839_v26, %s1732_s12 }
 0x20e   : > { %599 = vrot.lane.b32.xlu0 %v1845_v29, %s1732_s12 }
 0x211   : > { %601 = vrot.lane.b32.xlu1 %v1849_v30, %s1732_s12 }
 0x212   : > { %603 = vrot.lane.b32.xlu0 %v1855_v33, %s1732_s12  ;;  %v1603_v33 = vunpack.i.h.bf16 %v1601_v9 }
 0x215   : > { %605 = vrot.lane.b32.xlu1 %v1859_v34, %s1732_s12  ;;  %v1602_v34 = vunpack.i.l.bf16 %v1601_v9 }
 0x216   : > { %607 = vrot.lane.b32.xlu0 %v1864_v36, %s1732_s12 }
 0x217   : > { %v1539_v38 = vpack.c.bf16 %v1603_v33, %v1602_v34 }
 0x219   : > { %1620 = vrot.lane.b32.xlu1 %v1619_v40, %s1732_s12 }
 0x23c   : > { %v399_v22 = vpop.xlane.xlu1 %398 }
 0x23d   : > { %1664 = vrcp.f32 %v399_v22 }
 0x240   : > { %v396_v25 = vpop.xlane.xlu0 %395  ;;  %v1611_v58 = vpop.permute.xlu1 %1610 }
 0x241   : > { %1666 = vrcp.f32 %v396_v25  ;;  %v1613_v59 = vunpack.i.h.bf16 %v1611_v58  ;;  %v1612_v61 = vunpack.i.l.bf16 %v1611_v58 }
 0x244   : > { %v402_v26 = vpop.xlane.xlu0 %401 }
 0x245   : > { %1668 = vrcp.f32 %v402_v26 }
 0x247   : > { %v1665_v29 = vpop.eup %1664 }
 0x248   : > { %v435_v36 = vmul.f32 %v1665_v29, %v1939_v3  ;;  %v1616_v62 = vpop.permute.xlu0 %1615 }
 0x249   : > { %v1617_v63 = vunpack.i.l.bf16 %v1616_v62 }
 0x24b   : > { %v1667_v30 = vpop.eup %1666 }
 0x24c   : > { %v434_v11 = vmul.f32 %v1667_v30, %v1943_v10  ;;  %v1608_v10 = vunpack.i.h.bf16 %v1606_v21 }
 0x24e   : > { %1398 = vmatprep.mubr.msk.f32.mxu1 %vm333_vm2, %v434_v11  ;;  %v1545_v3 = vpack.c.bf16 %v1608_v10, %v1607_v57 }
 0x24f   : > { %v1669_v37 = vpop.eup %1668  ;;  %1399 = vmatmul.mubr.msk.f32.vlgmr.msra.gmra.mrb[0].mxu1 %vm333_vm2, %v435_v36 }
 0x250   : > { %1538 = vmatpush3.bf16.xpose.msk.msra.mxu1 %vm1761_vm1, %v1912_v56  ;;  %v436_v40 = vmul.f32 %v1669_v37, %v1947_v55  ;;  %v1551_v56 = vpack.c.bf16 %v1613_v59, %v1612_v61  ;;  %v1618_v55 = vunpack.i.h.bf16 %v1616_v62 }
 0x251   : > { %1541 = vmatprep.subr.msk.bf16.mxu1 %vm1761_vm1, %v1539_v38 }
 0x252   : > { %1401 = vmatprep.mubr.msk.f32.mxu1 %vm333_vm2, %v436_v40  ;;  %v1557_v1 = vpack.c.bf16 %v1618_v55, %v1617_v63 }
 0x258   : > { %1544 = vmatpush3.bf16.xpose.msk.msra.mxu1 %vm1761_vm1, %v1539_v38 }
 0x259   : > { %1547 = vmatprep.subr.msk.bf16.mxu1 %vm1761_vm1, %v1545_v3 }
 0x260   : > { %1550 = vmatpush3.bf16.xpose.msk.msra.mxu1 %vm1761_vm1, %v1545_v3 }
 0x261   : > { %1553 = vmatprep.subr.msk.bf16.mxu1 %vm1761_vm1, %v1551_v56 }
 0x268   : > { %1556 = vmatpush3.bf16.xpose.msk.msra.mxu1 %vm1761_vm1, %v1551_v56 }
 0x269   : > { %1559 = vmatprep.subr.msk.bf16.mxu1 %vm1761_vm1, %v1557_v1 }
 0x270   : > { %1562 = vmatpush3.bf16.xpose.msk.msra.mxu1 %vm1761_vm1, %v1557_v1 }
 0x271   : > { %v405_v6 = vpop.xlane.xlu1 %404 }
 0x272   : > { %1670 = vrcp.f32 %v405_v6 }
 0x275   : > { %v411_v7 = vpop.xlane.xlu1 %410 }
 0x276   : > { %1672 = vrcp.f32 %v411_v7 }
 0x279   : > { %v408_v15 = vpop.xlane.xlu1 %407  ;;  %v420_v23 = vpop.xlane.xlu0 %419 }
 0x27a   : > { %1674 = vrcp.f32 %v408_v15 }
 0x27b   : > { %1676 = vrcp.f32 %v420_v23 }
 0x27c   : > { %v1671_v18 = vpop.eup %1670 }
 0x27d   : > { %v417_v24 = vpop.xlane.xlu1 %416  ;;  %v437_v27 = vmul.f32 %v1671_v18, %v1958_v60  ;;  %v590_v31 = vpop.permute.xlu0 %589 }
 0x27e   : > { %1678 = vrcp.f32 %v417_v24 }
 0x27f   : > { %1402 = vmatmul.mubr.msk.f32.gmra.mrb[2].mxu1 %vm333_vm2, %v437_v27 }
 0x280   : > { %v1673_v14 = vpop.eup %1672 }
 0x281   : > { %v414_v13 = vpop.xlane.xlu1 %413  ;;  %v439_v17 = vmul.f32 %v1673_v14, %v1963_v20  ;;  %v592_v8 = vpop.permute.xlu0 %591 }
 0x282   : > { %1680 = vrcp.f32 %v414_v13 }
 0x284   : > { %v1675_v0 = vpop.eup %1674 }
 0x285   : > { %v423_v28 = vpop.xlane.xlu1 %422  ;;  %v438_v16 = vmul.f32 %v1675_v0, %v1965_v35  ;;  %v1677_v60 = vpop.eup %1676  ;;  %v1629_v0 = vpack.i.bf16 %v1892_v45, %v1889_v44 }
 0x286   : > { %1682 = vrcp.f32 %v423_v28  ;;  %v442_v35 = vmul.f32 %v1677_v60, %v1969_v41  ;;  %v596_v49 = vpop.permute.xlu0 %595  ;;  %v1624_v28 = vpack.i.bf16 %v1884_v42, %v1877_v39 }
 0x287   : > { %1404 = vmatprep.mubr.msk.f32.mxu1 %vm333_vm2, %v438_v16 }
 0x288   : > { %1405 = vmatmul.mubr.msk.f32.gmra.mrb[4].mxu1 %vm333_vm2, %v439_v17  ;;  %v1679_v32 = vpop.eup %1678 }
 0x289   : > { %v441_v12 = vmul.f32 %v1679_v32, %v1975_v46  ;;  %v594_v20 = vpop.permute.xlu1 %593 }
 0x28a   : > { %v600_v46 = vpop.permute.xlu0 %599 }
 0x28c   : > { %v1681_v2 = vpop.eup %1680 }
 0x28d   : > { %v440_v4 = vmul.f32 %v1681_v2, %v1979_v50  ;;  %v598_v50 = vpop.permute.xlu1 %597 }
 0x28e   : > { %v604_v53 = vpop.permute.xlu0 %603 }
 0x28f   : > { %1407 = vmatprep.mubr.msk.f32.mxu1 %vm333_vm2, %v440_v4 }
 0x290   : > { %v1683_v19 = vpop.eup %1682  ;;  %1408 = vmatmul.mubr.msk.f32.gmra.mrb[6].mxu1 %vm333_vm2, %v441_v12 }
 0x291   : > { %1410 = vmatprep.mubr.msk.f32.mxu1 %vm333_vm2, %v442_v35  ;;  %v443_v43 = vmul.f32 %v1683_v19, %v1983_v54  ;;  %v602_v41 = vpop.permute.xlu1 %601 }
 0x292   : > { %v608_v5 = vpop.permute.xlu0 %607 }
 0x294   : > { %1411 = vmatmul.mubr.msk.f32.gmra.mrb[8].mxu1 %vm333_vm2, %v443_v43 }
 0x295   : > { %1433 = vmatprep.mubr.msk.f32.mxu1 %vm157_vm0, %v590_v31  ;;  %v606_v54 = vpop.permute.xlu1 %605 }
 0x298   : > { %1434 = vmatmul.mubr.msk.f32.vlgmr.msra.gmra.mrb[10].mxu1 %vm157_vm0, %v592_v8 }
 0x299   : > { %1436 = vmatprep.mubr.msk.f32.mxu1 %vm157_vm0, %v594_v20  ;;  %v1621_v9 = vpop.permute.xlu1 %1620 }
 0x29a   : > { %v1623_v21 = vunpack.i.h.bf16 %v1621_v9  ;;  %v1622_v22 = vunpack.i.l.bf16 %v1621_v9 }
 0x29c   : > { %1437 = vmatmul.mubr.msk.f32.gmra.mrb[12].mxu1 %vm157_vm0, %v596_v49  ;;  %v1563_v25 = vpack.c.bf16 %v1623_v21, %v1622_v22 }
 0x29d   : > { %1439 = vmatprep.mubr.msk.f32.mxu1 %vm157_vm0, %v598_v50 }
 0x29e   : > { %1564 = vmatprep.subr.bf16.mxu0 %v1563_v25 }
 0x29f   : > { %1566 = vmatpush3.bf16.msra.mxu0 %v1563_v25 }
 0x2a0   : > { %1440 = vmatmul.mubr.msk.f32.gmra.mrb[14].mxu1 %vm157_vm0, %v600_v46 }
 0x2a1   : > { %1442 = vmatprep.mubr.msk.f32.mxu1 %vm157_vm0, %v602_v41 }
 0x2a4   : > { %1443 = vmatmul.mubr.msk.f32.gmra.mrb[16].mxu1 %vm157_vm0, %v604_v53 }
 0x2a5   : > { %1445 = vmatprep.mubr.msk.f32.mxu1 %vm157_vm0, %v606_v54 }
 0x2a8   : > { %1446 = vmatmul.mubr.msk.f32.gmra.mrb[18].mxu1 %vm157_vm0, %v608_v5 }
 0x322   : > { %v2060_v26 = vpop.f32.mrb[0].mxu1 }
 0x323   : > { %v2062_v29 = vpop.f32.mrb[1].mxu1 }
 0x352   : > { %v2064_v30 = vpop.f32.mrb[2].mxu1 }
 0x353   : > { %v2066_v33 = vpop.f32.mrb[3].mxu1 }
 0x35b   : > { %v2068_v34 = vpop.f32.mrb[4].mxu1 }
 0x35c   : > { %v2070_v11 = vpop.f32.mrb[5].mxu1 }
 0x363   : > { %v2072_v36 = vpop.f32.mrb[6].mxu1 }
 0x364   : > { %v2074_v37 = vpop.f32.mrb[7].mxu1 }
 0x367   : > { %v2076_v38 = vpop.f32.mrb[8].mxu1 }
 0x368   : > { %v2078_v40 = vpop.f32.mrb[9].mxu1 }
 0x36b   : > { %v1435_v10 = vpop.f32.mrb[10].mxu1 }
 0x36c   : > { %v735_v57 = vpop.f32.mrb[11].mxu1  ;;  %v787_v3 = vsel %vm333_vm2, %v1435_v10, -inf }
 0x36d   : > { %788 = vmax.xlane.f32.xlu0 %v787_v3  ;;  %v784_v58 = vsel %vm333_vm2, %v735_v57, -inf }
 0x36e   : > { %785 = vmax.xlane.f32.xlu1 %v784_v58 }
 0x36f   : > { %v1438_v59 = vpop.f32.mrb[12].mxu1 }
 0x370   : > { %v745_v61 = vpop.f32.mrb[13].mxu1  ;;  %v793_v56 = vsel %vm333_vm2, %v1438_v59, -inf }
 0x371   : > { %794 = vmax.xlane.f32.xlu0 %v793_v56  ;;  %v790_v63 = vsel %vm333_vm2, %v745_v61, -inf }
 0x373   : > { %v1441_v62 = vpop.f32.mrb[14].mxu1 }
 0x374   : > { %v755_v55 = vpop.f32.mrb[15].mxu1  ;;  %v799_v6 = vsel %vm333_vm2, %v1441_v62, -inf }
 0x375   : > { %791 = vmax.xlane.f32.xlu0 %v790_v63  ;;  %v796_v1 = vsel %vm333_vm2, %v755_v55, -inf }
 0x376   : > { %797 = vmax.xlane.f32.xlu1 %v796_v1 }
 0x377   : > { %v1444_v7 = vpop.f32.mrb[16].mxu1 }
 0x378   : > { %v765_v15 = vpop.f32.mrb[17].mxu1  ;;  %v805_v23 = vsel %vm333_vm2, %v1444_v7, -inf }
 0x379   : > { %800 = vmax.xlane.f32.xlu0 %v799_v6  ;;  %v802_v18 = vsel %vm333_vm2, %v765_v15, -inf }
 0x37a   : > { %803 = vmax.xlane.f32.xlu1 %v802_v18 }
 0x37b   : > { %v1447_v24 = vpop.f32.mrb[18].mxu1 }
 0x37c   : > { %v2088_v27 = vpop.f32.mrb[19].mxu1  ;;  %v811_v14 = vsel %vm333_vm2, %v1447_v24, -inf }
 0x37d   : > { %806 = vmax.xlane.f32.xlu0 %v805_v23  ;;  %v808_v13 = vsel %vm333_vm2, %v2088_v27, -inf }
 0x37e   : > { %809 = vmax.xlane.f32.xlu1 %v808_v13 }
 0x381   : > { %812 = vmax.xlane.f32.xlu0 %v811_v14 }
 0x38f   : > { %1630 = vrot.lane.b32.xlu1 %v1629_v0, %s1732_s12 }
 0x397   : > { %1625 = vrot.lane.b32.xlu0 %v1624_v28, %s1732_s12 }
 0x3fa   : > { %v789_v16 = vpop.xlane.xlu0 %788 }
 0x3fb   : > { %v815_v17 = vsub.f32 %v1435_v10, %v789_v16  ;;  %v786_v31 = vpop.xlane.xlu1 %785 }
 0x3fc   : > { %v814_v60 = vsub.f32 %v735_v57, %v786_v31 }
 0x3fd   : > { %v826_v32 = vmul.f32 1.442695, %v815_v17 }
 0x3fe   : > { %v824_v2 = vmul.f32 1.442695, %v814_v60  ;;  %v795_v4 = vpop.xlane.xlu0 %794 }
 0x3ff   : > { %1684 = vpow2.f32 %v826_v32  ;;  %v817_v8 = vsub.f32 %v1438_v59, %v795_v4 }
 0x400   : > { %1686 = vpow2.f32 %v824_v2 }
 0x401   : > { %v830_v12 = vmul.f32 1.442695, %v817_v8  ;;  %v1634_v8 = vpack.i.bf16 %v1900_v48, %v1897_v47 }
 0x402   : > { %v792_v35 = vpop.xlane.xlu0 %791 }
 0x403   : > { %1688 = vpow2.f32 %v830_v12  ;;  %v816_v44 = vsub.f32 %v745_v61, %v792_v35  ;;  %v798_v45 = vpop.xlane.xlu1 %797  ;;  %v1639_v35 = vpack.i.bf16 %v1908_v52, %v1905_v51 }
 0x404   : > { %v818_v20 = vsub.f32 %v755_v55, %v798_v45 }
 0x405   : > { %v828_v19 = vmul.f32 1.442695, %v816_v44 }
 0x406   : > { %v801_v39 = vpop.xlane.xlu0 %800  ;;  %v832_v46 = vmul.f32 1.442695, %v818_v20 }
 0x407   : > { %1690 = vpow2.f32 %v828_v19  ;;  %v819_v42 = vsub.f32 %v1441_v62, %v801_v39  ;;  %v804_v43 = vpop.xlane.xlu1 %803 }
 0x408   : > { %v820_v49 = vsub.f32 %v765_v15, %v804_v43 }
 0x409   : > { %v2099_v50 = vpop.eup %1684  ;;  %v834_v41 = vmul.f32 1.442695, %v819_v42 }
 0x40a   : > { %v2101_v53 = vpop.eup %1686  ;;  %v836_v54 = vmul.f32 1.442695, %v820_v49  ;;  %v807_v5 = vpop.xlane.xlu0 %806  ;;  %v847_v9 = vsel %vm333_vm2, %v2099_v50, 0.0 }
 0x40b   : > { %1692 = vpow2.f32 %v834_v41  ;;  %v821_v21 = vsub.f32 %v1444_v7, %v807_v5  ;;  %848 = vadd.xlane.f32.xlu0 %v847_v9  ;;  %v810_v22 = vpop.xlane.xlu1 %809  ;;  %v844_v25 = vsel %vm333_vm2, %v2101_v53, 0.0 }
 0x40c   : > { %1694 = vpow2.f32 %v836_v54  ;;  %845 = vadd.xlane.f32.xlu1 %v844_v25  ;;  %v822_v56 = vsub.f32 %v2088_v27, %v810_v22 }
 0x40d   : > { %v2107_v10 = vpop.eup %1688  ;;  %1696 = vpow2.f32 %v832_v46  ;;  %v838_v57 = vmul.f32 1.442695, %v821_v21 }
 0x40e   : > { %v813_v3 = vpop.xlane.xlu0 %812  ;;  %v853_v58 = vsel %vm333_vm2, %v2107_v10, 0.0 }
 0x40f   : > { %v823_v59 = vsub.f32 %v1447_v24, %v813_v3  ;;  %854 = vadd.xlane.f32.xlu0 %v853_v58  ;;  %v1631_v61 = vpop.permute.xlu1 %1630  ;;  %1698 = vpow2.f32 %v838_v57  ;;  %v840_v24 = vmul.f32 1.442695, %v822_v56 }
 0x410   : > { %v1633_v63 = vunpack.i.h.bf16 %v1631_v61  ;;  %v1632_v1 = vunpack.i.l.bf16 %v1631_v61 }
 0x411   : > { %v2112_v62 = vpop.eup %1690  ;;  %v842_v55 = vmul.f32 1.442695, %v823_v59 }
 0x412   : > { %v850_v6 = vsel %vm333_vm2, %v2112_v62, 0.0  ;;  %v1626_v7 = vpop.permute.xlu0 %1625  ;;  %v1571_v14 = vpack.c.bf16 %v1633_v63, %v1632_v1 }
 0x413   : > { %851 = vadd.xlane.f32.xlu1 %v850_v6  ;;  %v1628_v15 = vunpack.i.h.bf16 %v1626_v7  ;;  %v1627_v18 = vunpack.i.l.bf16 %v1626_v7  ;;  %1700 = vpow2.f32 %v842_v55 }
 0x414   : > { %1702 = vpow2.f32 %v840_v24 }
 0x415   : > { %v2116_v23 = vpop.eup %1692  ;;  %v1567_v13 = vpack.c.bf16 %v1628_v15, %v1627_v18 }
 0x416   : > { %v2118_v27 = vpop.eup %1694  ;;  %v859_v0 = vsel %vm333_vm2, %v2116_v23, 0.0 }
 0x417   : > { %v2122_v28 = vpop.eup %1696  ;;  %860 = vadd.xlane.f32.xlu0 %v859_v0  ;;  %v862_v16 = vsel %vm333_vm2, %v2118_v27, 0.0  ;;  %1568 = vmatprep.subr.bf16.mxu0 %v1567_v13 }
 0x418   : > { %863 = vadd.xlane.f32.xlu1 %v862_v16  ;;  %1570 = vmatpush3.bf16.msra.mxu0 %v1567_v13  ;;  %v856_v17 = vsel %vm333_vm2, %v2122_v28, 0.0 }
 0x419   : > { %1572 = vmatprep.subr.bf16.mxu0 %v1571_v14  ;;  %v2128_v31 = vpop.eup %1698 }
 0x41a   : > { %v865_v60 = vsel %vm333_vm2, %v2128_v31, 0.0 }
 0x41b   : > { %857 = vadd.xlane.f32.xlu0 %v856_v17 }
 0x41c   : > { %1574 = vmatpush3.bf16.msra.mxu0 %v1571_v14 }
 0x41d   : > { %v2132_v32 = vpop.eup %1700 }
 0x41e   : > { %v871_v2 = vsel %vm333_vm2, %v2132_v32, 0.0  ;;  %v2136_v4 = vpop.eup %1702 }
 0x41f   : > { %866 = vadd.xlane.f32.xlu0 %v865_v60  ;;  %v868_v12 = vsel %vm333_vm2, %v2136_v4, 0.0 }
 0x423   : > { %872 = vadd.xlane.f32.xlu0 %v871_v2 }
 0x427   : > { %869 = vadd.xlane.f32.xlu0 %v868_v12 }
 0x429   : > { %1635 = vrot.lane.b32.xlu1 %v1634_v8, %s1732_s12 }
 0x43d   : > { %1640 = vrot.lane.b32.xlu0 %v1639_v35, %s1732_s12 }
 0x498   : > { %v849_v45 = vpop.xlane.xlu0 %848 }
 0x499   : > { %v846_v44 = vpop.xlane.xlu1 %845 }
 0x49a   : > { %1704 = vrcp.f32 %v846_v44 }
 0x49b   : > { %1706 = vrcp.f32 %v849_v45 }
 0x49c   : > { %v855_v19 = vpop.xlane.xlu0 %854 }
 0x4a0   : > { %v852_v20 = vpop.xlane.xlu1 %851 }
 0x4a1   : > { %1708 = vrcp.f32 %v852_v20 }
 0x4a2   : > { %1710 = vrcp.f32 %v855_v19 }
 0x4a4   : > { %v1705_v39 = vpop.eup %1704  ;;  %v861_v42 = vpop.xlane.xlu0 %860 }
 0x4a5   : > { %v864_v43 = vpop.xlane.xlu1 %863  ;;  %v884_v47 = vmul.f32 %v1705_v39, %v2101_v53  ;;  %v1707_v25 = vpop.eup %1706 }
 0x4a6   : > { %v885_v3 = vmul.f32 %v1707_v25, %v2099_v50 }
 0x4a7   : > { %1468 = vmatprep.mubr.msk.f32.mxu0 %vm333_vm2, %v884_v47 }
 0x4a8   : > { %v858_v48 = vpop.xlane.xlu0 %857 }
 0x4a9   : > { %v1636_v49 = vpop.permute.xlu1 %1635  ;;  %1712 = vrcp.f32 %v858_v48 }
 0x4aa   : > { %v1638_v46 = vunpack.i.h.bf16 %v1636_v49  ;;  %v1637_v41 = vunpack.i.l.bf16 %v1636_v49  ;;  %1714 = vrcp.f32 %v861_v42 }
 0x4ab   : > { %1716 = vrcp.f32 %v864_v43  ;;  %v1709_v57 = vpop.eup %1708 }
 0x4ac   : > { %v867_v54 = vpop.xlane.xlu0 %866  ;;  %v1575_v51 = vpack.c.bf16 %v1638_v46, %v1637_v41  ;;  %v1711_v58 = vpop.eup %1710  ;;  %v886_v59 = vmul.f32 %v1709_v57, %v2112_v62 }
 0x4ad   : > { %1718 = vrcp.f32 %v867_v54  ;;  %v887_v56 = vmul.f32 %v1711_v58, %v2107_v10 }
 0x4ae   : > { %1576 = vmatprep.subr.bf16.mxu0 %v1575_v51 }
 0x4af   : > { %1578 = vmatpush3.bf16.msra.mxu0 %v1575_v51 }
 0x4b0   : > { %v873_v52 = vpop.xlane.xlu0 %872 }
 0x4b3   : > { %v1713_v61 = vpop.eup %1712 }
 0x4b4   : > { %v870_v5 = vpop.xlane.xlu0 %869  ;;  %v1715_v55 = vpop.eup %1714  ;;  %v888_v63 = vmul.f32 %v1713_v61, %v2122_v28 }
 0x4b5   : > { %1720 = vrcp.f32 %v870_v5  ;;  %v1717_v1 = vpop.eup %1716  ;;  %v889_v50 = vmul.f32 %v1715_v55, %v2116_v23 }
 0x4b6   : > { %1722 = vrcp.f32 %v873_v52  ;;  %v890_v62 = vmul.f32 %v1717_v1, %v2118_v27 }
 0x4b7   : > { %v1719_v6 = vpop.eup %1718 }
 0x4b8   : > { %v1641_v9 = vpop.permute.xlu0 %1640  ;;  %v891_v10 = vmul.f32 %v1719_v6, %v2128_v31 }
 0x4b9   : > { %v1643_v21 = vunpack.i.h.bf16 %v1641_v9  ;;  %v1642_v22 = vunpack.i.l.bf16 %v1641_v9 }
 0x4bb   : > { %v1579_v53 = vpack.c.bf16 %v1643_v21, %v1642_v22 }
 0x4bd   : > { %1580 = vmatprep.subr.bf16.mxu0 %v1579_v53 }
 0x4be   : > { %1582 = vmatpush3.bf16.msra.mxu0 %v1579_v53 }
 0x4bf   : > { %v1721_v7 = vpop.eup %1720 }
 0x4c0   : > { %v1723_v15 = vpop.eup %1722  ;;  %v892_v18 = vmul.f32 %v1721_v7, %v2136_v4 }
 0x4c1   : > { %1469 = vmatmul.mubr.msk.f32.vlgmr.msra.gmra.mrb[10].mxu0 %vm333_vm2, %v885_v3  ;;  %v893_v24 = vmul.f32 %v1723_v15, %v2132_v32 }
 0x4c2   : > { %1471 = vmatprep.mubr.msk.f32.mxu0 %vm333_vm2, %v886_v59 }
 0x4c5   : > { %1472 = vmatmul.mubr.msk.f32.gmra.mrb[12].mxu0 %vm333_vm2, %v887_v56 }
 0x4c6   : > { %1474 = vmatprep.mubr.msk.f32.mxu0 %vm333_vm2, %v888_v63 }
 0x4c9   : > { %1475 = vmatmul.mubr.msk.f32.gmra.mrb[14].mxu0 %vm333_vm2, %v889_v50 }
 0x4ca   : > { %1477 = vmatprep.mubr.msk.f32.mxu0 %vm333_vm2, %v890_v62 }
 0x4cd   : > { %1478 = vmatmul.mubr.msk.f32.gmra.mrb[16].mxu0 %vm333_vm2, %v891_v10 }
 0x4ce   : > { %1480 = vmatprep.mubr.msk.f32.mxu0 %vm333_vm2, %v892_v18 }
 0x4d1   : > { %1481 = vmatmul.mubr.msk.f32.gmra.mrb[18].mxu0 %vm333_vm2, %v893_v24 }
 0x594   : > { %v1470_v23 = vpop.f32.mrb[10].mxu0 }
 0x595   : > { %1091 = vrot.lane.b32.xlu1 %v1470_v23, %s1732_s12  ;;  %v1030_v13 = vpop.f32.mrb[11].mxu0 }
 0x598   : > { %v1473_v14 = vpop.f32.mrb[12].mxu0 }
 0x599   : > { %1089 = vrot.lane.b32.xlu1 %v1030_v13, %s1732_s12  ;;  %v1040_v27 = vpop.f32.mrb[13].mxu0 }
 0x59c   : > { %v1476_v0 = vpop.f32.mrb[14].mxu0 }
 0x59d   : > { %1095 = vrot.lane.b32.xlu1 %v1473_v14, %s1732_s12  ;;  %v1050_v28 = vpop.f32.mrb[15].mxu0 }
 0x5a0   : > { %v1479_v16 = vpop.f32.mrb[16].mxu0 }
 0x5a1   : > { %1093 = vrot.lane.b32.xlu1 %v1040_v27, %s1732_s12  ;;  %v1060_v17 = vpop.f32.mrb[17].mxu0 }
 0x5a2   : > { %1101 = vrot.lane.b32.xlu0 %v1060_v17, %s1732_s12 }
 0x5a4   : > { %v1482_v31 = vpop.f32.mrb[18].mxu0 }
 0x5a5   : > { %1099 = vrot.lane.b32.xlu1 %v1476_v0, %s1732_s12  ;;  %v1070_v60 = vpop.f32.mrb[19].mxu0 }
 0x5a6   : > { %1105 = vrot.lane.b32.xlu0 %v1070_v60, %s1732_s12 }
 0x5a9   : > { %1097 = vrot.lane.b32.xlu1 %v1050_v28, %s1732_s12 }
 0x5ad   : > { %1103 = vrot.lane.b32.xlu1 %v1479_v16, %s1732_s12 }
 0x5b1   : > { %1107 = vrot.lane.b32.xlu1 %v1482_v31, %s1732_s12 }
 0x607   : > { %v1092_v32 = vpop.permute.xlu1 %1091 }
 0x608   : > { %v1120_v2 = vsel %vm157_vm0, %v2060_v26, %v1092_v32 }
 0x609   : > { %1130 = vst [vmem:[%s116_s16 + $0x8] sm:$0xff] %v1120_v2 }
 0x60b   : > { %v1090_v4 = vpop.permute.xlu1 %1089 }
 0x60c   : > { %v1119_v8 = vsel %vm157_vm0, %v2062_v29, %v1090_v4 }
 0x60d   : > { %1129 = vst [vmem:[%s116_s16] sm:$0xff] %v1119_v8 }
 0x60f   : > { %v1096_v12 = vpop.permute.xlu1 %1095 }
 0x610   : > { %v1122_v35 = vsel %vm157_vm0, %v2064_v30, %v1096_v12 }
 0x611   : > { %1132 = vst [vmem:[%s116_s16 + $0x18] sm:$0xff] %v1122_v35 }
 0x613   : > { %v1094_v44 = vpop.permute.xlu1 %1093 }
 0x614   : > { %v1121_v45 = vsel %vm157_vm0, %v2066_v33, %v1094_v44  ;;  %v1102_v19 = vpop.permute.xlu0 %1101 }
 0x615   : > { %1131 = vst [vmem:[%s116_s16 + $0x10] sm:$0xff] %v1121_v45  ;;  %v1125_v26 = vsel %vm157_vm0, %v2074_v37, %v1102_v19 }
 0x616   : > { %1135 = vst [vmem:[%s116_s16 + $0x30] sm:$0xff] %v1125_v26 }
 0x617   : > { %v1100_v20 = vpop.permute.xlu1 %1099 }
 0x618   : > { %v1124_v29 = vsel %vm157_vm0, %v2068_v34, %v1100_v20  ;;  %v1106_v39 = vpop.permute.xlu0 %1105 }
 0x619   : > { %1134 = vst [vmem:[%s116_s16 + $0x28] sm:$0xff] %v1124_v29  ;;  %v1127_v30 = vsel %vm157_vm0, %v2078_v40, %v1106_v39 }
 0x61a   : > { %1137 = vst [vmem:[%s116_s16 + $0x40] sm:$0xff] %v1127_v30 }
 0x61b   : > { %v1098_v42 = vpop.permute.xlu1 %1097 }
 0x61c   : > { %v1123_v33 = vsel %vm157_vm0, %v2070_v11, %v1098_v42 }
 0x61d   : > { %1133 = vst [vmem:[%s116_s16 + $0x20] sm:$0xff] %v1123_v33 }
 0x61f   : > { %v1104_v43 = vpop.permute.xlu1 %1103 }
 0x620   : > { %v1126_v37 = vsel %vm157_vm0, %v2072_v36, %v1104_v43 }
 0x621   : > { %1136 = vst [vmem:[%s116_s16 + $0x38] sm:$0xff] %v1126_v37 }
 0x623   : > { %v1108_v47 = vpop.permute.xlu1 %1107 }
 0x624   : > { %v1128_v34 = vsel %vm157_vm0, %v2076_v38, %v1108_v47 }
 0x625   : > { %1138 = vst [vmem:[%s116_s16 + $0x48] sm:$0xff] %v1128_v34 }
 0x626 PF: > { %s11_s6 = sadd.s32 1, %s1730_s6  }
 0x627   : > { %p8_p4 = scmp.ge.s32.totalorder %s11_s6, 4  }
 0x629   :  { %10 = sbr.rel (!%p8_p4) target bundleno = 1 (0x1), region = 54 }

// kernel: base_backbone_forward.17
= control target key start
LH: loop header
LB: loop body
LE: loop exit
PB: predicated region body
PF: predicated region fallthrough
CT: control target
= control target key end

     0   :  { %s714_s1 = inlined_call_operand.vmem [shape: f32[128,128], index: 1, kind: input, shape index: {}]   ;;  %s715_s0 = inlined_call_operand.vmem [shape: f32[160,128], index: 0, kind: input, shape index: {}]   ;;  %s716_s2 = inlined_call_operand.vmem [shape: f32[1,128], index: 2, kind: input, shape index: {}]   ;;  %s717_s3 = inlined_call_operand.vmem [shape: f32[160,128], index: 3, kind: input, shape index: {}]   ;;  %s718_s4 = inlined_call_operand.vmem [shape: f32[160,128], index: 4, kind: output, shape index: {}]  }
   0x1   :  { %v37_v0 = vld [vmem:[%s714_s1] sm:$0xff]  ;;  %v38_v1 = vld [vmem:[%s714_s1 + $0x8] sm:$0xff]  ;;  %v39_v2 = vld [vmem:[%s714_s1 + $0x10] sm:$0xff] }
   0x2   :  { %v388_v3 = vpack.c.bf16 %v38_v1, %v37_v0  ;;  %v40_v4 = vld [vmem:[%s714_s1 + $0x18] sm:$0xff]  ;;  %v41_v6 = vld [vmem:[%s714_s1 + $0x20] sm:$0xff]  ;;  %v42_v7 = vld [vmem:[%s714_s1 + $0x28] sm:$0xff] }
   0x3   :  { %v392_v5 = vpack.c.bf16 %v40_v4, %v39_v2  ;;  %v396_v8 = vpack.c.bf16 %v42_v7, %v41_v6  ;;  %v17_v9 = vld [vmem:[%s715_s0] sm:$0xff]  ;;  %v27_v10 = vld [vmem:[%s715_s0 + $0x50] sm:$0xff]  ;;  %v44_v12 = vld [vmem:[%s714_s1 + $0x38] sm:$0xff] }
   0x4   :  { %389 = vmatprep.subr.bf16.mxu0 %v388_v3  ;;  %420 = vmatprep.subr.bf16.mxu1 %v388_v3  ;;  %v43_v11 = vld [vmem:[%s714_s1 + $0x30] sm:$0xff]  ;;  %v45_v14 = vld [vmem:[%s714_s1 + $0x40] sm:$0xff]  ;;  %v46_v15 = vld [vmem:[%s714_s1 + $0x48] sm:$0xff] }
   0x5   :  { %391 = vmatpush3.bf16.msra.mxu0 %v388_v3  ;;  %428 = vmatpush3.bf16.msra.mxu1 %v388_v3  ;;  %v400_v13 = vpack.c.bf16 %v44_v12, %v43_v11  ;;  %v404_v16 = vpack.c.bf16 %v46_v15, %v45_v14  ;;  %v47_v17 = vld [vmem:[%s714_s1 + $0x50] sm:$0xff]  ;;  %v48_v18 = vld [vmem:[%s714_s1 + $0x58] sm:$0xff]  ;;  %v49_v20 = vld [vmem:[%s714_s1 + $0x60] sm:$0xff] }
   0x6   :  { %393 = vmatprep.subr.bf16.mxu0 %v392_v5  ;;  %421 = vmatprep.subr.bf16.mxu1 %v392_v5  ;;  %v408_v19 = vpack.c.bf16 %v48_v18, %v47_v17  ;;  %v50_v21 = vld [vmem:[%s714_s1 + $0x68] sm:$0xff]  ;;  %v51_v23 = vld [vmem:[%s714_s1 + $0x70] sm:$0xff]  ;;  %v52_v24 = vld [vmem:[%s714_s1 + $0x78] sm:$0xff] }
   0x7   :  { %358 = vmatprep.mubr.f32.mxu0 %v17_v9  ;;  %373 = vmatprep.mubr.f32.mxu1 %v27_v10  ;;  %v412_v22 = vpack.c.bf16 %v50_v21, %v49_v20  ;;  %v416_v25 = vpack.c.bf16 %v52_v24, %v51_v23  ;;  %v18_v26 = vld [vmem:[%s715_s0 + $0x8] sm:$0xff]  ;;  %v28_v27 = vld [vmem:[%s715_s0 + $0x58] sm:$0xff]  ;;  %v19_v28 = vld [vmem:[%s715_s0 + $0x10] sm:$0xff] }
   0x8   :  { %v29_v29 = vld [vmem:[%s715_s0 + $0x60] sm:$0xff]  ;;  %v20_v30 = vld [vmem:[%s715_s0 + $0x18] sm:$0xff]  ;;  %v30_v31 = vld [vmem:[%s715_s0 + $0x68] sm:$0xff] }
   0x9   :  { %395 = vmatpush3.bf16.msra.mxu0 %v392_v5  ;;  %429 = vmatpush3.bf16.msra.mxu1 %v392_v5  ;;  %v21_v32 = vld [vmem:[%s715_s0 + $0x20] sm:$0xff]  ;;  %v31_v33 = vld [vmem:[%s715_s0 + $0x70] sm:$0xff]  ;;  %v22_v34 = vld [vmem:[%s715_s0 + $0x28] sm:$0xff] }
   0xa   :  { %397 = vmatprep.subr.bf16.mxu0 %v396_v8  ;;  %422 = vmatprep.subr.bf16.mxu1 %v396_v8  ;;  %v32_v35 = vld [vmem:[%s715_s0 + $0x78] sm:$0xff]  ;;  %v23_v36 = vld [vmem:[%s715_s0 + $0x30] sm:$0xff]  ;;  %v33_v37 = vld [vmem:[%s715_s0 + $0x80] sm:$0xff] }
   0xb   :  { %v24_v38 = vld [vmem:[%s715_s0 + $0x38] sm:$0xff]  ;;  %v34_v39 = vld [vmem:[%s715_s0 + $0x88] sm:$0xff]  ;;  %v25_v40 = vld [vmem:[%s715_s0 + $0x40] sm:$0xff] }
   0xc   :  { %v35_v41 = vld [vmem:[%s715_s0 + $0x90] sm:$0xff]  ;;  %v26_v42 = vld [vmem:[%s715_s0 + $0x48] sm:$0xff]  ;;  %v36_v43 = vld [vmem:[%s715_s0 + $0x98] sm:$0xff] }
   0xd   :  { %399 = vmatpush3.bf16.msra.mxu0 %v396_v8  ;;  %430 = vmatpush3.bf16.msra.mxu1 %v396_v8  ;;  %v572_v44 = vld [vmem:[%s716_s2] ss:$0 sm:$0xff]  ;;  %v226_v46 = vld [vmem:[%s717_s3 + $0x8] sm:$0xff]  ;;  %v236_v48 = vld [vmem:[%s717_s3 + $0x58] sm:$0xff] }
   0xe   :  { %401 = vmatprep.subr.bf16.mxu0 %v400_v13  ;;  %423 = vmatprep.subr.bf16.mxu1 %v400_v13  ;;  %v225_v52 = vld [vmem:[%s717_s3] sm:$0xff]  ;;  %v235_v54 = vld [vmem:[%s717_s3 + $0x50] sm:$0xff]  ;;  %v228_v62 = vld [vmem:[%s717_s3 + $0x18] sm:$0xff] }
   0xf   :  { %v238_v0 = vld [vmem:[%s717_s3 + $0x68] sm:$0xff]  ;;  %v227_v4 = vld [vmem:[%s717_s3 + $0x10] sm:$0xff]  ;;  %v237_v6 = vld [vmem:[%s717_s3 + $0x60] sm:$0xff] }
  0x10   :  { %v230_v14 = vld [vmem:[%s717_s3 + $0x28] sm:$0xff]  ;;  %v229_v20 = vld [vmem:[%s717_s3 + $0x20] sm:$0xff] }
  0x11   :  { %403 = vmatpush3.bf16.msra.mxu0 %v400_v13  ;;  %431 = vmatpush3.bf16.msra.mxu1 %v400_v13 }
  0x12   :  { %405 = vmatprep.subr.bf16.mxu0 %v404_v16  ;;  %424 = vmatprep.subr.bf16.mxu1 %v404_v16 }
  0x15   :  { %407 = vmatpush3.bf16.msra.mxu0 %v404_v16  ;;  %432 = vmatpush3.bf16.msra.mxu1 %v404_v16  ;;  %v240_v16 = vld [vmem:[%s717_s3 + $0x78] sm:$0xff] }
  0x16   :  { %409 = vmatprep.subr.bf16.mxu0 %v408_v19  ;;  %425 = vmatprep.subr.bf16.mxu1 %v408_v19 }
  0x19   :  { %411 = vmatpush3.bf16.msra.mxu0 %v408_v19  ;;  %433 = vmatpush3.bf16.msra.mxu1 %v408_v19 }
  0x1a   :  { %413 = vmatprep.subr.bf16.mxu0 %v412_v22  ;;  %426 = vmatprep.subr.bf16.mxu1 %v412_v22 }
  0x1d   :  { %415 = vmatpush3.bf16.msra.mxu0 %v412_v22  ;;  %434 = vmatpush3.bf16.msra.mxu1 %v412_v22  ;;  %v239_v22 = vld [vmem:[%s717_s3 + $0x70] sm:$0xff] }
  0x1e   :  { %417 = vmatprep.subr.bf16.mxu0 %v416_v25  ;;  %427 = vmatprep.subr.bf16.mxu1 %v416_v25 }
  0x21   :  { %419 = vmatpush3.bf16.msra.mxu0 %v416_v25  ;;  %435 = vmatpush3.bf16.msra.mxu1 %v416_v25 }
  0x24   :  { %359 = vmatmul.mubr.f32.vlgmr.msra.gmra.mrb[0].mxu0 %v18_v26  ;;  %374 = vmatmul.mubr.f32.vlgmr.msra.gmra.mrb[0].mxu1 %v28_v27 }
  0x25   :  { %361 = vmatprep.mubr.f32.mxu0 %v19_v28  ;;  %376 = vmatprep.mubr.f32.mxu1 %v29_v29 }
  0x28   :  { %362 = vmatmul.mubr.f32.gmra.mrb[2].mxu0 %v20_v30  ;;  %377 = vmatmul.mubr.f32.gmra.mrb[2].mxu1 %v30_v31  ;;  %v232_v30 = vld [vmem:[%s717_s3 + $0x38] sm:$0xff] }
  0x29   :  { %364 = vmatprep.mubr.f32.mxu0 %v21_v32  ;;  %379 = vmatprep.mubr.f32.mxu1 %v31_v33  ;;  %v242_v32 = vld [vmem:[%s717_s3 + $0x88] sm:$0xff] }
  0x2c   :  { %365 = vmatmul.mubr.f32.gmra.mrb[4].mxu0 %v22_v34  ;;  %380 = vmatmul.mubr.f32.gmra.mrb[4].mxu1 %v32_v35 }
  0x2d   :  { %367 = vmatprep.mubr.f32.mxu0 %v23_v36  ;;  %382 = vmatprep.mubr.f32.mxu1 %v33_v37  ;;  %v231_v36 = vld [vmem:[%s717_s3 + $0x30] sm:$0xff] }
  0x30   :  { %368 = vmatmul.mubr.f32.gmra.mrb[6].mxu0 %v24_v38  ;;  %383 = vmatmul.mubr.f32.gmra.mrb[6].mxu1 %v34_v39  ;;  %v241_v38 = vld [vmem:[%s717_s3 + $0x80] sm:$0xff] }
  0x31   :  { %370 = vmatprep.mubr.f32.mxu0 %v25_v40  ;;  %385 = vmatprep.mubr.f32.mxu1 %v35_v41 }
  0x34   :  { %371 = vmatmul.mubr.f32.gmra.mrb[8].mxu0 %v26_v42  ;;  %386 = vmatmul.mubr.f32.gmra.mrb[8].mxu1 %v36_v43 }
  0xf7   :  { %v360_v45 = vpop.f32.mrb[0].mxu0  ;;  %v375_v47 = vpop.f32.mrb[0].mxu1 }
  0xf8   :  { %v132_v49 = vadd.f32 %v360_v45, %v572_v44  ;;  %v182_v50 = vadd.f32 %v375_v47, %v572_v44  ;;  %v126_v51 = vpop.f32.mrb[1].mxu0  ;;  %v176_v53 = vpop.f32.mrb[1].mxu1  ;;  %v234_v47 = vld [vmem:[%s717_s3 + $0x48] sm:$0xff] }
  0xf9   :  { %v127_v55 = vadd.f32 %v572_v44, %v126_v51  ;;  %v177_v56 = vadd.f32 %v572_v44, %v176_v53  ;;  %v233_v53 = vld [vmem:[%s717_s3 + $0x40] sm:$0xff] }
  0xfa   :  { %v246_v57 = vadd.f32 %v226_v46, %v132_v49  ;;  %v256_v58 = vadd.f32 %v236_v48, %v182_v50  ;;  %v244_v49 = vld [vmem:[%s717_s3 + $0x98] sm:$0xff] }
  0xfb   :  { %v245_v59 = vadd.f32 %v225_v52, %v127_v55  ;;  %v255_v60 = vadd.f32 %v235_v54, %v177_v56  ;;  %v363_v61 = vpop.f32.mrb[2].mxu0  ;;  %v378_v63 = vpop.f32.mrb[2].mxu1  ;;  %v243_v55 = vld [vmem:[%s717_s3 + $0x90] sm:$0xff] }
  0xfc   :  { %266 = vst [vmem:[%s718_s4 + $0x8] sm:$0xff] %v246_v57  ;;  %276 = vst [vmem:[%s718_s4 + $0x58] sm:$0xff] %v256_v58  ;;  %v142_v1 = vadd.f32 %v363_v61, %v572_v44  ;;  %v192_v2 = vadd.f32 %v378_v63, %v572_v44  ;;  %v136_v3 = vpop.f32.mrb[3].mxu0  ;;  %v186_v5 = vpop.f32.mrb[3].mxu1 }
  0xfd   :  { %265 = vst [vmem:[%s718_s4] sm:$0xff] %v245_v59  ;;  %275 = vst [vmem:[%s718_s4 + $0x50] sm:$0xff] %v255_v60  ;;  %v137_v7 = vadd.f32 %v572_v44, %v136_v3  ;;  %v187_v8 = vadd.f32 %v572_v44, %v186_v5 }
  0xfe   :  { %v248_v9 = vadd.f32 %v228_v62, %v142_v1  ;;  %v258_v10 = vadd.f32 %v238_v0, %v192_v2 }
  0xff   :  { %v247_v11 = vadd.f32 %v227_v4, %v137_v7  ;;  %v257_v12 = vadd.f32 %v237_v6, %v187_v8  ;;  %v366_v13 = vpop.f32.mrb[4].mxu0  ;;  %v381_v15 = vpop.f32.mrb[4].mxu1 }
 0x100   :  { %268 = vst [vmem:[%s718_s4 + $0x18] sm:$0xff] %v248_v9  ;;  %278 = vst [vmem:[%s718_s4 + $0x68] sm:$0xff] %v258_v10  ;;  %v152_v17 = vadd.f32 %v366_v13, %v572_v44  ;;  %v202_v18 = vadd.f32 %v381_v15, %v572_v44  ;;  %v146_v19 = vpop.f32.mrb[5].mxu0  ;;  %v196_v21 = vpop.f32.mrb[5].mxu1 }
 0x101   :  { %267 = vst [vmem:[%s718_s4 + $0x10] sm:$0xff] %v247_v11  ;;  %277 = vst [vmem:[%s718_s4 + $0x60] sm:$0xff] %v257_v12  ;;  %v147_v23 = vadd.f32 %v572_v44, %v146_v19  ;;  %v197_v24 = vadd.f32 %v572_v44, %v196_v21 }
 0x102   :  { %v250_v25 = vadd.f32 %v230_v14, %v152_v17  ;;  %v260_v26 = vadd.f32 %v240_v16, %v202_v18 }
 0x103   :  { %v249_v27 = vadd.f32 %v229_v20, %v147_v23  ;;  %v259_v28 = vadd.f32 %v239_v22, %v197_v24  ;;  %v369_v29 = vpop.f32.mrb[6].mxu0  ;;  %v384_v31 = vpop.f32.mrb[6].mxu1 }
 0x104   :  { %270 = vst [vmem:[%s718_s4 + $0x28] sm:$0xff] %v250_v25  ;;  %280 = vst [vmem:[%s718_s4 + $0x78] sm:$0xff] %v260_v26  ;;  %v162_v33 = vadd.f32 %v369_v29, %v572_v44  ;;  %v212_v34 = vadd.f32 %v384_v31, %v572_v44  ;;  %v156_v35 = vpop.f32.mrb[7].mxu0  ;;  %v206_v37 = vpop.f32.mrb[7].mxu1 }
 0x105   :  { %269 = vst [vmem:[%s718_s4 + $0x20] sm:$0xff] %v249_v27  ;;  %279 = vst [vmem:[%s718_s4 + $0x70] sm:$0xff] %v259_v28  ;;  %v157_v39 = vadd.f32 %v572_v44, %v156_v35  ;;  %v207_v40 = vadd.f32 %v572_v44, %v206_v37 }
 0x106   :  { %v252_v41 = vadd.f32 %v232_v30, %v162_v33  ;;  %v262_v42 = vadd.f32 %v242_v32, %v212_v34 }
 0x107   :  { %v251_v43 = vadd.f32 %v231_v36, %v157_v39  ;;  %v261_v45 = vadd.f32 %v241_v38, %v207_v40  ;;  %v372_v46 = vpop.f32.mrb[8].mxu0  ;;  %v387_v48 = vpop.f32.mrb[8].mxu1 }
 0x108   :  { %272 = vst [vmem:[%s718_s4 + $0x38] sm:$0xff] %v252_v41  ;;  %282 = vst [vmem:[%s718_s4 + $0x88] sm:$0xff] %v262_v42  ;;  %v172_v50 = vadd.f32 %v372_v46, %v572_v44  ;;  %v222_v51 = vadd.f32 %v387_v48, %v572_v44  ;;  %v166_v52 = vpop.f32.mrb[9].mxu0  ;;  %v216_v54 = vpop.f32.mrb[9].mxu1 }
 0x109   :  { %271 = vst [vmem:[%s718_s4 + $0x30] sm:$0xff] %v251_v43  ;;  %281 = vst [vmem:[%s718_s4 + $0x80] sm:$0xff] %v261_v45  ;;  %v167_v56 = vadd.f32 %v572_v44, %v166_v52  ;;  %v217_v57 = vadd.f32 %v572_v44, %v216_v54 }
 0x10a   :  { %v254_v58 = vadd.f32 %v234_v47, %v172_v50  ;;  %v264_v59 = vadd.f32 %v244_v49, %v222_v51 }
 0x10b   :  { %v253_v60 = vadd.f32 %v233_v53, %v167_v56  ;;  %v263_v61 = vadd.f32 %v243_v55, %v217_v57 }
 0x10c   :  { %274 = vst [vmem:[%s718_s4 + $0x48] sm:$0xff] %v254_v58  ;;  %284 = vst [vmem:[%s718_s4 + $0x98] sm:$0xff] %v264_v59 }
 0x10d   :  { %273 = vst [vmem:[%s718_s4 + $0x40] sm:$0xff] %v253_v60  ;;  %283 = vst [vmem:[%s718_s4 + $0x90] sm:$0xff] %v263_v61 }

// kernel: base_backbone_forward.15
= control target key start
LH: loop header
LB: loop body
LE: loop exit
PB: predicated region body
PF: predicated region fallthrough
CT: control target
= control target key end

     0   :  { %s1733_s0 = inlined_call_operand.vmem [shape: f32[160,128], index: 0, kind: input, shape index: {}]   ;;  %s1734_s3 = inlined_call_operand.vmem [shape: f32[128,384], index: 3, kind: input, shape index: {}]   ;;  %s1735_s1 = inlined_call_operand.vmem [shape: f32[1,128], index: 1, kind: input, shape index: {}]   ;;  %s1736_s2 = inlined_call_operand.vmem [shape: f32[1,128], index: 2, kind: input, shape index: {}]   ;;  %s1737_s4 = inlined_call_operand.vmem [shape: f32[1,384], index: 4, kind: input, shape index: {}]   ;;  %s1738_s5 = inlined_call_operand.vmem [shape: f32[160,384], index: 5, kind: output, shape index: {}]  }
   0x1   :  { %v1033_v0 = vld [vmem:[%s1733_s0] sm:$0xff]  ;;  %v1038_v1 = vld [vmem:[%s1733_s0 + $0x10] sm:$0xff]  ;;  %v1045_v2 = vld [vmem:[%s1733_s0 + $0x8] sm:$0xff] }
   0x2   :  { %40 = vadd.xlane.f32.xlu0 %v1033_v0  ;;  %44 = vadd.xlane.f32.xlu1 %v1038_v1  ;;  %v1050_v3 = vld [vmem:[%s1733_s0 + $0x18] sm:$0xff]  ;;  %v1057_v4 = vld [vmem:[%s1733_s0 + $0x20] sm:$0xff]  ;;  %v1062_v5 = vld [vmem:[%s1733_s0 + $0x28] sm:$0xff] }
   0x3   :  { %v1069_v6 = vld [vmem:[%s1733_s0 + $0x30] sm:$0xff]  ;;  %v1074_v7 = vld [vmem:[%s1733_s0 + $0x38] sm:$0xff]  ;;  %v1081_v8 = vld [vmem:[%s1733_s0 + $0x40] sm:$0xff] }
   0x4   :  { %v1086_v9 = vld [vmem:[%s1733_s0 + $0x48] sm:$0xff]  ;;  %v1093_v10 = vld [vmem:[%s1733_s0 + $0x50] sm:$0xff]  ;;  %v1098_v11 = vld [vmem:[%s1733_s0 + $0x58] sm:$0xff] }
   0x5   :  { %v1105_v12 = vld [vmem:[%s1733_s0 + $0x60] sm:$0xff]  ;;  %v1110_v13 = vld [vmem:[%s1733_s0 + $0x68] sm:$0xff]  ;;  %v1117_v14 = vld [vmem:[%s1733_s0 + $0x70] sm:$0xff] }
   0x6   :  { %42 = vadd.xlane.f32.xlu0 %v1045_v2  ;;  %46 = vadd.xlane.f32.xlu1 %v1050_v3  ;;  %v1122_v15 = vld [vmem:[%s1733_s0 + $0x78] sm:$0xff]  ;;  %v1129_v16 = vld [vmem:[%s1733_s0 + $0x80] sm:$0xff]  ;;  %v1134_v17 = vld [vmem:[%s1733_s0 + $0x88] sm:$0xff] }
   0x7   :  { %v1141_v18 = vld [vmem:[%s1733_s0 + $0x90] sm:$0xff]  ;;  %v1146_v19 = vld [vmem:[%s1733_s0 + $0x98] sm:$0xff]  ;;  %v316_v20 = vld [vmem:[%s1734_s3 + $0x8] sm:$0xff] }
   0x8   :  { %v319_v21 = vld [vmem:[%s1734_s3 + $0x20] sm:$0xff]  ;;  %v318_v24 = vld [vmem:[%s1734_s3 + $0x18] sm:$0xff]  ;;  %v325_v26 = vld [vmem:[%s1734_s3 + $0x50] sm:$0xff] }
   0x9   :  { %v315_v22 = vld [vmem:[%s1734_s3] sm:$0xff]  ;;  %v894_v23 = vpack.c.bf16 %v319_v21, %v316_v20  ;;  %v322_v25 = vld [vmem:[%s1734_s3 + $0x38] sm:$0xff]  ;;  %v317_v29 = vld [vmem:[%s1734_s3 + $0x10] sm:$0xff] }
   0xa   :  { %48 = vadd.xlane.f32.xlu0 %v1057_v4  ;;  %50 = vadd.xlane.f32.xlu1 %v1062_v5  ;;  %v896_v27 = vpack.c.bf16 %v318_v24, %v315_v22  ;;  %v898_v28 = vpack.c.bf16 %v325_v26, %v322_v25  ;;  %v320_v30 = vld [vmem:[%s1734_s3 + $0x28] sm:$0xff]  ;;  %v321_v31 = vld [vmem:[%s1734_s3 + $0x30] sm:$0xff]  ;;  %v331_v35 = vld [vmem:[%s1734_s3 + $0x80] sm:$0xff] }
   0xb   :  { %895 = vmatprep.subr.bf16.mxu0 %v894_v23  ;;  %v926_v32 = vpack.c.bf16 %v320_v30, %v317_v29  ;;  %v324_v33 = vld [vmem:[%s1734_s3 + $0x48] sm:$0xff]  ;;  %v323_v37 = vld [vmem:[%s1734_s3 + $0x40] sm:$0xff]  ;;  %v326_v38 = vld [vmem:[%s1734_s3 + $0x58] sm:$0xff] }
   0xc   :  { %v328_v34 = vld [vmem:[%s1734_s3 + $0x68] sm:$0xff]  ;;  %897 = vmatpush1.bf16.msra.mxu0 %v896_v27  ;;  %v900_v36 = vpack.c.bf16 %v324_v33, %v321_v31  ;;  %v930_v40 = vpack.c.bf16 %v326_v38, %v323_v37  ;;  %v327_v41 = vld [vmem:[%s1734_s3 + $0x60] sm:$0xff]  ;;  %v330_v42 = vld [vmem:[%s1734_s3 + $0x78] sm:$0xff] }
   0xd   :  { %899 = vmatprep.subr.bf16.mxu0 %v898_v28  ;;  %927 = vmatprep.subr.bf16.mxu1 %v926_v32  ;;  %v902_v39 = vpack.c.bf16 %v331_v35, %v328_v34  ;;  %v904_v43 = vpack.c.bf16 %v330_v42, %v327_v41  ;;  %v334_v30 = vld [vmem:[%s1734_s3 + $0x98] sm:$0xff]  ;;  %v337_v31 = vld [vmem:[%s1734_s3 + $0xb0] sm:$0xff] }
   0xe   :  { %52 = vadd.xlane.f32.xlu0 %v1069_v6  ;;  %54 = vadd.xlane.f32.xlu1 %v1074_v7  ;;  %v906_v34 = vpack.c.bf16 %v337_v31, %v334_v30  ;;  %v333_v35 = vld [vmem:[%s1734_s3 + $0x90] sm:$0xff] }
   0xf   :  { %929 = vmatpush3.bf16.msra.mxu1 %v926_v32 }
  0x10   :  { %931 = vmatprep.subr.bf16.mxu1 %v930_v40  ;;  %901 = vmatpush1.bf16.msra.mxu0 %v900_v36  ;;  %v336_v36 = vld [vmem:[%s1734_s3 + $0xa8] sm:$0xff] }
  0x11   :  { %903 = vmatprep.subr.bf16.mxu0 %v902_v39  ;;  %v908_v41 = vpack.c.bf16 %v336_v36, %v333_v35 }
  0x12   :  { %56 = vadd.xlane.f32.xlu0 %v1081_v8  ;;  %58 = vadd.xlane.f32.xlu1 %v1086_v9 }
  0x13   :  { %933 = vmatpush3.bf16.msra.mxu1 %v930_v40 }
  0x14   :  { %905 = vmatpush1.bf16.msra.mxu0 %v904_v43 }
  0x15   :  { %907 = vmatprep.subr.bf16.mxu0 %v906_v34  ;;  %v352_v34 = vld [vmem:[%s1734_s3 + $0x128] sm:$0xff] }
  0x16   :  { %60 = vadd.xlane.f32.xlu0 %v1093_v10  ;;  %62 = vadd.xlane.f32.xlu1 %v1098_v11 }
  0x18   :  { %909 = vmatpush1.bf16.msra.mxu0 %v908_v41 }
  0x1a   :  { %64 = vadd.xlane.f32.xlu0 %v1105_v12  ;;  %66 = vadd.xlane.f32.xlu1 %v1110_v13 }
  0x1e   :  { %68 = vadd.xlane.f32.xlu0 %v1117_v14  ;;  %70 = vadd.xlane.f32.xlu1 %v1122_v15 }
  0x22   :  { %72 = vadd.xlane.f32.xlu0 %v1129_v16  ;;  %74 = vadd.xlane.f32.xlu1 %v1134_v17 }
  0x26   :  { %76 = vadd.xlane.f32.xlu0 %v1141_v18  ;;  %78 = vadd.xlane.f32.xlu1 %v1146_v19 }
  0x8f   :  { %v41_v44 = vpop.xlane.xlu0 %40  ;;  %v45_v45 = vpop.xlane.xlu1 %44 }
  0x90   :  { %v81_v46 = vmul.f32 0.0078125, %v41_v44  ;;  %v83_v47 = vmul.f32 0.0078125, %v45_v45 }
  0x92   :  { %v1199_v48 = vsub.f32 %v1033_v0, %v81_v46  ;;  %v1202_v49 = vsub.f32 %v1038_v1, %v83_v47  ;;  %v340_v47 = vld [vmem:[%s1734_s3 + $0xc8] sm:$0xff] }
  0x93   :  { %v43_v50 = vpop.xlane.xlu0 %42  ;;  %v47_v51 = vpop.xlane.xlu1 %46 }
  0x94   :  { %v82_v52 = vmul.f32 0.0078125, %v43_v50  ;;  %v121_v53 = vmul.f32 %v1199_v48, %v1199_v48  ;;  %v84_v54 = vmul.f32 0.0078125, %v47_v51  ;;  %v123_v57 = vmul.f32 %v1202_v49, %v1202_v49 }
  0x96   :  { %v1207_v55 = vsub.f32 %v1045_v2, %v82_v52  ;;  %141 = vadd.xlane.f32.xlu0 %v121_v53  ;;  %v1210_v56 = vsub.f32 %v1050_v3, %v84_v54  ;;  %v338_v53 = vld [vmem:[%s1734_s3 + $0xb8] sm:$0xff]  ;;  %v339_v54 = vld [vmem:[%s1734_s3 + $0xc0] sm:$0xff] }
  0x97   :  { %v49_v58 = vpop.xlane.xlu0 %48  ;;  %v51_v59 = vpop.xlane.xlu1 %50 }
  0x98   :  { %v85_v60 = vmul.f32 0.0078125, %v49_v58  ;;  %v122_v61 = vmul.f32 %v1207_v55, %v1207_v55  ;;  %v86_v62 = vmul.f32 0.0078125, %v51_v59  ;;  %v124_v1 = vmul.f32 %v1210_v56, %v1210_v56 }
  0x9a   :  { %v1217_v63 = vsub.f32 %v1057_v4, %v85_v60  ;;  %145 = vadd.xlane.f32.xlu0 %v123_v57  ;;  %143 = vadd.xlane.f32.xlu1 %v122_v61  ;;  %v1220_v0 = vsub.f32 %v1062_v5, %v86_v62  ;;  %v342_v57 = vld [vmem:[%s1734_s3 + $0xd8] sm:$0xff] }
  0x9b   :  { %v53_v2 = vpop.xlane.xlu0 %52  ;;  %v55_v3 = vpop.xlane.xlu1 %54  ;;  %v912_v60 = vpack.c.bf16 %v342_v57, %v339_v54  ;;  %v356_v54 = vld [vmem:[%s1734_s3 + $0x148] sm:$0xff]  ;;  %v357_v57 = vld [vmem:[%s1734_s3 + $0x150] sm:$0xff] }
  0x9c   :  { %v87_v20 = vmul.f32 0.0078125, %v53_v2  ;;  %v125_v21 = vmul.f32 %v1217_v63, %v1217_v63  ;;  %v88_v22 = vmul.f32 0.0078125, %v55_v3  ;;  %v126_v5 = vmul.f32 %v1220_v0, %v1220_v0 }
  0x9e   :  { %v1227_v23 = vsub.f32 %v1069_v6, %v87_v20  ;;  %147 = vadd.xlane.f32.xlu1 %v124_v1  ;;  %149 = vadd.xlane.f32.xlu0 %v125_v21  ;;  %v1230_v4 = vsub.f32 %v1074_v7, %v88_v22  ;;  %v346_v20 = vld [vmem:[%s1734_s3 + $0xf8] sm:$0xff] }
  0x9f   :  { %v57_v24 = vpop.xlane.xlu0 %56  ;;  %v59_v25 = vpop.xlane.xlu1 %58 }
  0xa0   :  { %v89_v26 = vmul.f32 0.0078125, %v57_v24  ;;  %v127_v27 = vmul.f32 %v1227_v23, %v1227_v23  ;;  %v90_v28 = vmul.f32 0.0078125, %v59_v25  ;;  %v128_v7 = vmul.f32 %v1230_v4, %v1230_v4  ;;  %v344_v24 = vld [vmem:[%s1734_s3 + $0xe8] sm:$0xff]  ;;  %v345_v25 = vld [vmem:[%s1734_s3 + $0xf0] sm:$0xff] }
  0xa2   :  { %v1237_v29 = vsub.f32 %v1081_v8, %v89_v26  ;;  %151 = vadd.xlane.f32.xlu1 %v126_v5  ;;  %153 = vadd.xlane.f32.xlu0 %v127_v27  ;;  %v1240_v6 = vsub.f32 %v1086_v9, %v90_v28  ;;  %v329_v8 = vld [vmem:[%s1734_s3 + $0x70] sm:$0xff]  ;;  %v332_v9 = vld [vmem:[%s1734_s3 + $0x88] sm:$0xff] }
  0xa3   :  { %v61_v32 = vpop.xlane.xlu0 %60  ;;  %v63_v33 = vpop.xlane.xlu1 %62  ;;  %v934_v40 = vpack.c.bf16 %v332_v9, %v329_v8  ;;  %v348_v26 = vld [vmem:[%s1734_s3 + $0x108] sm:$0xff] }
  0xa4   :  { %v91_v37 = vmul.f32 0.0078125, %v61_v32  ;;  %v129_v38 = vmul.f32 %v1237_v29, %v1237_v29  ;;  %v92_v39 = vmul.f32 0.0078125, %v63_v33  ;;  %v130_v44 = vmul.f32 %v1240_v6, %v1240_v6 }
  0xa5   :  { %935 = vmatprep.subr.bf16.mxu1 %v934_v40 }
  0xa6   :  { %v1265_v42 = vsub.f32 %v1093_v10, %v91_v37  ;;  %155 = vadd.xlane.f32.xlu1 %v128_v7  ;;  %157 = vadd.xlane.f32.xlu0 %v129_v38  ;;  %v1268_v43 = vsub.f32 %v1098_v11, %v92_v39  ;;  %v343_v10 = vld [vmem:[%s1734_s3 + $0xe0] sm:$0xff]  ;;  %v916_v7 = vpack.c.bf16 %v348_v26, %v345_v25  ;;  %v350_v37 = vld [vmem:[%s1734_s3 + $0x118] sm:$0xff] }
  0xa7   :  { %v65_v45 = vpop.xlane.xlu0 %64  ;;  %v67_v46 = vpop.xlane.xlu1 %66  ;;  %v335_v11 = vld [vmem:[%s1734_s3 + $0xa0] sm:$0xff]  ;;  %937 = vmatpush3.bf16.msra.mxu1 %v934_v40  ;;  %v910_v58 = vpack.c.bf16 %v343_v10, %v340_v47  ;;  %v354_v39 = vld [vmem:[%s1734_s3 + $0x138] sm:$0xff] }
  0xa8   :  { %v93_v50 = vmul.f32 0.0078125, %v65_v45  ;;  %v131_v51 = vmul.f32 %v1265_v42, %v1265_v42  ;;  %v94_v52 = vmul.f32 0.0078125, %v67_v46  ;;  %v938_v59 = vpack.c.bf16 %v338_v53, %v335_v11  ;;  %v351_v38 = vld [vmem:[%s1734_s3 + $0x120] sm:$0xff] }
  0xa9   :  { %v132_v1 = vmul.f32 %v1268_v43, %v1268_v43  ;;  %911 = vmatprep.subr.bf16.mxu0 %v910_v58  ;;  %v360_v58 = vld [vmem:[%s1734_s3 + $0x168] sm:$0xff] }
  0xaa   :  { %v1293_v61 = vsub.f32 %v1105_v12, %v93_v50  ;;  %159 = vadd.xlane.f32.xlu1 %v130_v44  ;;  %161 = vadd.xlane.f32.xlu0 %v131_v51  ;;  %v1296_v62 = vsub.f32 %v1110_v13, %v94_v52  ;;  %v349_v12 = vld [vmem:[%s1734_s3 + $0x110] sm:$0xff]  ;;  %v920_v44 = vpack.c.bf16 %v354_v39, %v351_v38  ;;  %v358_v50 = vld [vmem:[%s1734_s3 + $0x158] sm:$0xff] }
  0xab   :  { %v69_v2 = vpop.xlane.xlu0 %68  ;;  %v71_v3 = vpop.xlane.xlu1 %70  ;;  %939 = vmatprep.subr.bf16.mxu1 %v938_v59  ;;  %v341_v13 = vld [vmem:[%s1734_s3 + $0xd0] sm:$0xff]  ;;  %913 = vmatpush1.bf16.msra.mxu0 %v912_v60  ;;  %v914_v27 = vpack.c.bf16 %v349_v12, %v346_v20  ;;  %v359_v12 = vld [vmem:[%s1734_s3 + $0x160] sm:$0xff] }
  0xac   :  { %v95_v21 = vmul.f32 0.0078125, %v69_v2  ;;  %v133_v22 = vmul.f32 %v1293_v61, %v1293_v61  ;;  %v96_v5 = vmul.f32 0.0078125, %v71_v3  ;;  %941 = vmatpush3.bf16.msra.mxu1 %v938_v59  ;;  %v942_v28 = vpack.c.bf16 %v344_v24, %v341_v13  ;;  %v362_v13 = vld [vmem:[%s1734_s3 + $0x178] sm:$0xff] }
  0xad   :  { %v134_v8 = vmul.f32 %v1296_v62, %v1296_v62  ;;  %915 = vmatprep.subr.bf16.mxu0 %v914_v27 }
  0xae   :  { %v1321_v30 = vsub.f32 %v1117_v14, %v95_v21  ;;  %163 = vadd.xlane.f32.xlu1 %v132_v1  ;;  %165 = vadd.xlane.f32.xlu0 %v133_v22  ;;  %v1324_v31 = vsub.f32 %v1122_v15, %v96_v5  ;;  %v355_v14 = vld [vmem:[%s1734_s3 + $0x140] sm:$0xff]  ;;  %v924_v1 = vpack.c.bf16 %v360_v58, %v357_v57  ;;  %v999_v21 = vmov 0.0  }
  0xaf   :  { %v73_v32 = vpop.xlane.xlu0 %72  ;;  %v75_v33 = vpop.xlane.xlu1 %74  ;;  %943 = vmatprep.subr.bf16.mxu1 %v942_v28  ;;  %v347_v15 = vld [vmem:[%s1734_s3 + $0x100] sm:$0xff]  ;;  %917 = vmatpush1.bf16.msra.mxu0 %v916_v7  ;;  %v918_v40 = vpack.c.bf16 %v355_v14, %v352_v34 }
  0xb0   :  { %v97_v9 = vmul.f32 0.0078125, %v73_v32  ;;  %v135_v35 = vmul.f32 %v1321_v30, %v1321_v30  ;;  %v98_v36 = vmul.f32 0.0078125, %v75_v33  ;;  %945 = vmatpush3.bf16.msra.mxu1 %v942_v28  ;;  %v946_v41 = vpack.c.bf16 %v350_v37, %v347_v15  ;;  %444 = vmatprep.mubr.f32.mxu0 %v999_v21 }
  0xb1   :  { %v136_v47 = vmul.f32 %v1324_v31, %v1324_v31  ;;  %919 = vmatprep.subr.bf16.mxu0 %v918_v40 }
  0xb2   :  { %v1349_v45 = vsub.f32 %v1129_v16, %v97_v9  ;;  %167 = vadd.xlane.f32.xlu1 %v134_v8  ;;  %169 = vadd.xlane.f32.xlu0 %v135_v35  ;;  %v1352_v46 = vsub.f32 %v1134_v17, %v98_v36  ;;  %v361_v16 = vld [vmem:[%s1734_s3 + $0x170] sm:$0xff] }
  0xb3   :  { %v77_v10 = vpop.xlane.xlu0 %76  ;;  %v79_v11 = vpop.xlane.xlu1 %78  ;;  %947 = vmatprep.subr.bf16.mxu1 %v946_v41  ;;  %v353_v17 = vld [vmem:[%s1734_s3 + $0x130] sm:$0xff]  ;;  %921 = vmatpush1.bf16.msra.mxu0 %v920_v44  ;;  %v922_v59 = vpack.c.bf16 %v361_v16, %v358_v50 }
  0xb4   :  { %v99_v51 = vmul.f32 0.0078125, %v77_v10  ;;  %v137_v52 = vmul.f32 %v1349_v45, %v1349_v45  ;;  %v100_v53 = vmul.f32 0.0078125, %v79_v11  ;;  %949 = vmatpush3.bf16.msra.mxu1 %v946_v41  ;;  %v950_v60 = vpack.c.bf16 %v356_v54, %v353_v17 }
  0xb5   :  { %v138_v20 = vmul.f32 %v1352_v46, %v1352_v46  ;;  %923 = vmatprep.subr.bf16.mxu0 %v922_v59 }
  0xb6   :  { %v1377_v2 = vsub.f32 %v1141_v18, %v99_v51  ;;  %171 = vadd.xlane.f32.xlu1 %v136_v47  ;;  %173 = vadd.xlane.f32.xlu0 %v137_v52  ;;  %v1380_v3 = vsub.f32 %v1146_v19, %v100_v53  ;;  %v954_v19 = vpack.c.bf16 %v362_v13, %v359_v12  ;;  %v1398_v47 = vld [vmem:[%s1735_s1] ss:$0 sm:$0xff] }
  0xb7   :  { %951 = vmatprep.subr.bf16.mxu1 %v950_v60  ;;  %925 = vmatpush1.bf16.msra.mxu0 %v924_v1  ;;  %v1404_v51 = vld [vmem:[%s1736_s2] ss:$0 sm:$0xff] }
  0xb8   :  { %v139_v18 = vmul.f32 %v1377_v2, %v1377_v2  ;;  %953 = vmatpush3.bf16.msra.mxu1 %v950_v60  ;;  %v140_v22 = vmul.f32 %v1380_v3, %v1380_v3 }
  0xb9   :  { %955 = vmatprep.subr.bf16.mxu1 %v954_v19 }
  0xba   :  { %175 = vadd.xlane.f32.xlu1 %v138_v20  ;;  %177 = vadd.xlane.f32.xlu0 %v139_v18 }
  0xbc   :  { %957 = vmatpush3.bf16.msra.mxu1 %v954_v19 }
  0xbe   :  { %179 = vadd.xlane.f32.xlu1 %v140_v22 }
 0x123   :  { %v142_v5 = vpop.xlane.xlu0 %141 }
 0x124   :  { %v181_v24 = vmul.f32 0.0078125, %v142_v5 }
 0x126   :  { %v201_v25 = vadd.f32 1e-06, %v181_v24 }
 0x127   :  { %v144_v26 = vpop.xlane.xlu1 %143  ;;  %v146_v27 = vpop.xlane.xlu0 %145 }
 0x128   :  { %959 = vrsqrt.f32 %v201_v25  ;;  %v182_v28 = vmul.f32 0.0078125, %v144_v26  ;;  %v183_v7 = vmul.f32 0.0078125, %v146_v27 }
 0x12a   :  { %v202_v8 = vadd.f32 1e-06, %v182_v28  ;;  %v203_v32 = vadd.f32 1e-06, %v183_v7 }
 0x12b   :  { %v148_v33 = vpop.xlane.xlu1 %147  ;;  %v150_v34 = vpop.xlane.xlu0 %149 }
 0x12c   :  { %961 = vrsqrt.f32 %v202_v8  ;;  %v184_v14 = vmul.f32 0.0078125, %v148_v33  ;;  %v185_v15 = vmul.f32 0.0078125, %v150_v34 }
 0x12d   :  { %963 = vrsqrt.f32 %v203_v32 }
 0x12e   :  { %v204_v9 = vadd.f32 1e-06, %v184_v14  ;;  %v205_v35 = vadd.f32 1e-06, %v185_v15 }
 0x12f   :  { %v152_v36 = vpop.xlane.xlu1 %151  ;;  %v154_v37 = vpop.xlane.xlu0 %153 }
 0x130   :  { %965 = vrsqrt.f32 %v204_v9  ;;  %v186_v38 = vmul.f32 0.0078125, %v152_v36  ;;  %v187_v39 = vmul.f32 0.0078125, %v154_v37 }
 0x131   :  { %967 = vrsqrt.f32 %v205_v35 }
 0x132   :  { %v960_v40 = vpop.eup %959  ;;  %v206_v41 = vadd.f32 1e-06, %v186_v38  ;;  %v207_v44 = vadd.f32 1e-06, %v187_v39 }
 0x133   :  { %v156_v10 = vpop.xlane.xlu1 %155  ;;  %v158_v11 = vpop.xlane.xlu0 %157  ;;  %v241_v50 = vmul.f32 %v960_v40, %v1199_v48 }
 0x134   :  { %969 = vrsqrt.f32 %v206_v41  ;;  %v188_v16 = vmul.f32 0.0078125, %v156_v10  ;;  %v189_v17 = vmul.f32 0.0078125, %v158_v11 }
 0x135   :  { %971 = vrsqrt.f32 %v207_v44  ;;  %v268_v52 = vmul.f32 %v1398_v47, %v241_v50 }
 0x136   :  { %v962_v53 = vpop.eup %961  ;;  %v208_v54 = vadd.f32 1e-06, %v188_v16  ;;  %v209_v57 = vadd.f32 1e-06, %v189_v17 }
 0x137   :  { %v964_v58 = vpop.eup %963  ;;  %v160_v59 = vpop.xlane.xlu1 %159  ;;  %v295_v1 = vadd.f32 %v1404_v51, %v268_v52  ;;  %v242_v48 = vmul.f32 %v962_v53, %v1207_v55 }
 0x138   :  { %v162_v60 = vpop.xlane.xlu0 %161  ;;  %973 = vrsqrt.f32 %v208_v54  ;;  %v190_v20 = vmul.f32 0.0078125, %v160_v59  ;;  %v243_v13 = vmul.f32 %v964_v58, %v1202_v49 }
 0x139   :  { %v191_v12 = vmul.f32 0.0078125, %v162_v60  ;;  %975 = vrsqrt.f32 %v209_v57  ;;  %445 = vmatmul.mubr.f32.vlgmr.msra.gmra.mrb[0].mxu0 %v295_v1  ;;  %864 = vmatprep.mubr.f32.mxu1 %v295_v1  ;;  %v269_v18 = vmul.f32 %v1398_v47, %v242_v48 }
 0x13a   :  { %v966_v19 = vpop.eup %965  ;;  %v210_v22 = vadd.f32 1e-06, %v190_v20  ;;  %450 = vmatprep.mubr.f32.mxu0 %v999_v21  ;;  %v270_v24 = vmul.f32 %v1398_v47, %v243_v13 }
 0x13b   :  { %v211_v5 = vadd.f32 1e-06, %v191_v12  ;;  %v968_v25 = vpop.eup %967  ;;  %v164_v26 = vpop.xlane.xlu1 %163  ;;  %v296_v27 = vadd.f32 %v1404_v51, %v269_v18  ;;  %v244_v28 = vmul.f32 %v966_v19, %v1210_v56 }
 0x13c   :  { %v166_v55 = vpop.xlane.xlu0 %165  ;;  %977 = vrsqrt.f32 %v210_v22  ;;  %v192_v49 = vmul.f32 0.0078125, %v164_v26  ;;  %v297_v8 = vadd.f32 %v1404_v51, %v270_v24  ;;  %v245_v33 = vmul.f32 %v968_v25, %v1217_v63 }
 0x13d   :  { %v193_v7 = vmul.f32 0.0078125, %v166_v55  ;;  %979 = vrsqrt.f32 %v211_v5  ;;  %451 = vmatmul.mubr.f32.gmra.mrb[2].mxu0 %v296_v27  ;;  %865 = vmatmul.mubr.f32.vlgmr.msra.gmra.mrb[0].mxu1 %v296_v27  ;;  %v271_v32 = vmul.f32 %v1398_v47, %v244_v28 }
 0x13e   :  { %v970_v34 = vpop.eup %969  ;;  %v212_v14 = vadd.f32 1e-06, %v192_v49  ;;  %867 = vmatprep.mubr.f32.mxu1 %v297_v8  ;;  %456 = vmatprep.mubr.f32.mxu0 %v999_v21  ;;  %v272_v37 = vmul.f32 %v1398_v47, %v245_v33 }
 0x13f   :  { %v213_v15 = vadd.f32 1e-06, %v193_v7  ;;  %v972_v9 = vpop.eup %971  ;;  %v168_v56 = vpop.xlane.xlu1 %167  ;;  %v298_v36 = vadd.f32 %v1404_v51, %v271_v32  ;;  %v246_v38 = vmul.f32 %v970_v34, %v1220_v0 }
 0x140   :  { %v170_v35 = vpop.xlane.xlu0 %169  ;;  %981 = vrsqrt.f32 %v212_v14  ;;  %v194_v39 = vmul.f32 0.0078125, %v168_v56  ;;  %v247_v63 = vmul.f32 %v972_v9, %v1227_v23  ;;  %v299_v41 = vadd.f32 %v1404_v51, %v272_v37 }
 0x141   :  { %v195_v40 = vmul.f32 0.0078125, %v170_v35  ;;  %983 = vrsqrt.f32 %v213_v15  ;;  %457 = vmatmul.mubr.f32.gmra.mrb[4].mxu0 %v297_v8  ;;  %868 = vmatmul.mubr.f32.gmra.mrb[2].mxu1 %v298_v36  ;;  %v273_v44 = vmul.f32 %v1398_v47, %v246_v38 }
 0x142   :  { %v974_v10 = vpop.eup %973  ;;  %v214_v11 = vadd.f32 1e-06, %v194_v39  ;;  %462 = vmatprep.mubr.f32.mxu0 %v999_v21  ;;  %v274_v16 = vmul.f32 %v1398_v47, %v247_v63  ;;  %870 = vmatprep.mubr.f32.mxu1 %v299_v41 }
 0x143   :  { %v215_v50 = vadd.f32 1e-06, %v195_v40  ;;  %v976_v0 = vpop.eup %975  ;;  %v172_v17 = vpop.xlane.xlu1 %171  ;;  %v300_v23 = vadd.f32 %v1404_v51, %v273_v44  ;;  %v248_v53 = vmul.f32 %v974_v10, %v1230_v4 }
 0x144   :  { %v174_v52 = vpop.xlane.xlu0 %173  ;;  %985 = vrsqrt.f32 %v214_v11  ;;  %v196_v54 = vmul.f32 0.0078125, %v172_v17  ;;  %v301_v58 = vadd.f32 %v1404_v51, %v274_v16  ;;  %v249_v60 = vmul.f32 %v976_v0, %v1237_v29 }
 0x145   :  { %v197_v57 = vmul.f32 0.0078125, %v174_v52  ;;  %987 = vrsqrt.f32 %v215_v50  ;;  %463 = vmatmul.mubr.f32.gmra.mrb[6].mxu0 %v298_v36  ;;  %871 = vmatmul.mubr.f32.gmra.mrb[4].mxu1 %v300_v23  ;;  %v275_v59 = vmul.f32 %v1398_v47, %v248_v53 }
 0x146   :  { %v978_v1 = vpop.eup %977  ;;  %v216_v48 = vadd.f32 1e-06, %v196_v54  ;;  %873 = vmatprep.mubr.f32.mxu1 %v301_v58  ;;  %468 = vmatprep.mubr.f32.mxu0 %v999_v21  ;;  %v276_v19 = vmul.f32 %v1398_v47, %v249_v60 }
 0x147   :  { %v217_v20 = vadd.f32 1e-06, %v197_v57  ;;  %v980_v12 = vpop.eup %979  ;;  %v176_v4 = vpop.xlane.xlu1 %175  ;;  %v302_v18 = vadd.f32 %v1404_v51, %v275_v59  ;;  %v250_v22 = vmul.f32 %v978_v1, %v1240_v6  ;;  %v363_v59 = vld [vmem:[%s1737_s4] sm:$0x7] }
 0x148   :  { %v178_v13 = vpop.xlane.xlu0 %177  ;;  %989 = vrsqrt.f32 %v216_v48  ;;  %v198_v5 = vmul.f32 0.0078125, %v176_v4  ;;  %v251_v29 = vmul.f32 %v980_v12, %v1265_v42  ;;  %v303_v25 = vadd.f32 %v1404_v51, %v276_v19 }
 0x149   :  { %v199_v24 = vmul.f32 0.0078125, %v178_v13  ;;  %991 = vrsqrt.f32 %v217_v20  ;;  %469 = vmatmul.mubr.f32.gmra.mrb[8].mxu0 %v299_v41  ;;  %874 = vmatmul.mubr.f32.gmra.mrb[6].mxu1 %v302_v18  ;;  %v277_v26 = vmul.f32 %v1398_v47, %v250_v22 }
 0x14a   :  { %v982_v55 = vpop.eup %981  ;;  %v218_v27 = vadd.f32 1e-06, %v198_v5  ;;  %474 = vmatprep.mubr.f32.mxu0 %v999_v21  ;;  %v278_v49 = vmul.f32 %v1398_v47, %v251_v29  ;;  %876 = vmatprep.mubr.f32.mxu1 %v303_v25 }
 0x14b   :  { %v219_v28 = vadd.f32 1e-06, %v199_v24  ;;  %v984_v6 = vpop.eup %983  ;;  %v180_v7 = vpop.xlane.xlu1 %179  ;;  %v304_v8 = vadd.f32 %v1404_v51, %v277_v26  ;;  %v252_v42 = vmul.f32 %v982_v55, %v1268_v43 }
 0x14c   :  { %993 = vrsqrt.f32 %v218_v27  ;;  %v200_v32 = vmul.f32 0.0078125, %v180_v7  ;;  %v305_v33 = vadd.f32 %v1404_v51, %v278_v49  ;;  %v253_v34 = vmul.f32 %v984_v6, %v1293_v61 }
 0x14d   :  { %995 = vrsqrt.f32 %v219_v28  ;;  %475 = vmatmul.mubr.f32.gmra.mrb[10].mxu0 %v300_v23  ;;  %877 = vmatmul.mubr.f32.gmra.mrb[8].mxu1 %v304_v8  ;;  %v279_v14 = vmul.f32 %v1398_v47, %v252_v42 }
 0x14e   :  { %v986_v15 = vpop.eup %985  ;;  %v220_v9 = vadd.f32 1e-06, %v200_v32  ;;  %879 = vmatprep.mubr.f32.mxu1 %v305_v33  ;;  %480 = vmatprep.mubr.f32.mxu0 %v999_v21  ;;  %v280_v56 = vmul.f32 %v1398_v47, %v253_v34 }
 0x14f   :  { %v988_v35 = vpop.eup %987  ;;  %v306_v43 = vadd.f32 %v1404_v51, %v279_v14  ;;  %v254_v36 = vmul.f32 %v986_v15, %v1296_v62 }
 0x150   :  { %997 = vrsqrt.f32 %v220_v9  ;;  %v307_v61 = vadd.f32 %v1404_v51, %v280_v56  ;;  %v255_v37 = vmul.f32 %v988_v35, %v1321_v30 }
 0x151   :  { %481 = vmatmul.mubr.f32.gmra.mrb[12].mxu0 %v301_v58  ;;  %880 = vmatmul.mubr.f32.gmra.mrb[10].mxu1 %v306_v43  ;;  %v281_v38 = vmul.f32 %v1398_v47, %v254_v36 }
 0x152   :  { %v990_v39 = vpop.eup %989  ;;  %882 = vmatprep.mubr.f32.mxu1 %v307_v61  ;;  %486 = vmatprep.mubr.f32.mxu0 %v999_v21  ;;  %v282_v40 = vmul.f32 %v1398_v47, %v255_v37 }
 0x153   :  { %v992_v63 = vpop.eup %991  ;;  %v308_v41 = vadd.f32 %v1404_v51, %v281_v38  ;;  %v256_v62 = vmul.f32 %v990_v39, %v1324_v31 }
 0x154   :  { %v309_v44 = vadd.f32 %v1404_v51, %v282_v40  ;;  %v257_v10 = vmul.f32 %v992_v63, %v1349_v45 }
 0x155   :  { %487 = vmatmul.mubr.f32.gmra.mrb[14].mxu0 %v302_v18  ;;  %883 = vmatmul.mubr.f32.gmra.mrb[12].mxu1 %v308_v41  ;;  %v283_v30 = vmul.f32 %v1398_v47, %v256_v62 }
 0x156   :  { %v994_v11 = vpop.eup %993  ;;  %885 = vmatprep.mubr.f32.mxu1 %v309_v44  ;;  %492 = vmatprep.mubr.f32.mxu0 %v999_v21  ;;  %v284_v50 = vmul.f32 %v1398_v47, %v257_v10 }
 0x157   :  { %v996_v16 = vpop.eup %995  ;;  %v310_v0 = vadd.f32 %v1404_v51, %v283_v30  ;;  %v258_v17 = vmul.f32 %v994_v11, %v1352_v46 }
 0x158   :  { %v311_v31 = vadd.f32 %v1404_v51, %v284_v50  ;;  %v259_v52 = vmul.f32 %v996_v16, %v1377_v2 }
 0x159   :  { %493 = vmatmul.mubr.f32.gmra.mrb[16].mxu0 %v303_v25  ;;  %886 = vmatmul.mubr.f32.gmra.mrb[14].mxu1 %v310_v0  ;;  %v285_v45 = vmul.f32 %v1398_v47, %v258_v17 }
 0x15a   :  { %v998_v23 = vpop.eup %997  ;;  %888 = vmatprep.mubr.f32.mxu1 %v311_v31  ;;  %498 = vmatprep.mubr.f32.mxu0 %v999_v21  ;;  %v286_v53 = vmul.f32 %v1398_v47, %v259_v52 }
 0x15b   :  { %v312_v54 = vadd.f32 %v1404_v51, %v285_v45  ;;  %v260_v57 = vmul.f32 %v998_v23, %v1380_v3  ;;  %v365_v3 = vlaneseq }
 0x15c   :  { %v313_v46 = vadd.f32 %v1404_v51, %v286_v53 }
 0x15d   :  { %499 = vmatmul.mubr.f32.gmra.mrb[18].mxu0 %v304_v8  ;;  %889 = vmatmul.mubr.f32.gmra.mrb[16].mxu1 %v312_v54  ;;  %v287_v2 = vmul.f32 %v1398_v47, %v260_v57  ;;  %v366_v47 = vshrl.u32 %v365_v3, 7 }
 0x15e   :  { %891 = vmatprep.mubr.f32.mxu1 %v313_v46  ;;  %504 = vmatprep.mubr.f32.mxu0 %v999_v21 }
 0x15f   :  { %v314_v58 = vadd.f32 %v1404_v51, %v287_v2  ;;  %v367_v51 = vsub.s32 0, %v366_v47  ;;  %v371_v60 = vsub.s32 1, %v366_v47  ;;  %v375_v48 = vsub.s32 2, %v366_v47 }
 0x161   :  { %505 = vmatmul.mubr.f32.gmra.mrb[20].mxu0 %v305_v33  ;;  %892 = vmatmul.mubr.f32.gmra.mrb[18].mxu1 %v314_v58  ;;  %v1487_v1 = vrot.slane %v363_v59, %v367_v51  ;;  %v1489_v20 = vrot.slane %v363_v59, %v371_v60  ;;  %v1492_v18 = vrot.slane %v363_v59, %v375_v48 }
 0x162   :  { %510 = vmatprep.mubr.f32.mxu0 %v999_v21 }
 0x165   :  { %511 = vmatmul.mubr.f32.gmra.mrb[22].mxu0 %v306_v43 }
 0x166   :  { %516 = vmatprep.mubr.f32.mxu0 %v999_v21 }
 0x169   :  { %517 = vmatmul.mubr.f32.gmra.mrb[24].mxu0 %v307_v61 }
 0x16a   :  { %522 = vmatprep.mubr.f32.mxu0 %v999_v21 }
 0x16d   :  { %523 = vmatmul.mubr.f32.gmra.mrb[26].mxu0 %v308_v41 }
 0x16e   :  { %528 = vmatprep.mubr.f32.mxu0 %v999_v21 }
 0x171   :  { %529 = vmatmul.mubr.f32.gmra.mrb[28].mxu0 %v309_v44 }
 0x172   :  { %534 = vmatprep.mubr.f32.mxu0 %v999_v21 }
 0x175   :  { %535 = vmatmul.mubr.f32.gmra.mrb[30].mxu0 %v310_v0 }
 0x176   :  { %540 = vmatprep.mubr.f32.mxu0 %v999_v21 }
 0x179   :  { %541 = vmatmul.mubr.f32.gmra.mrb[32].mxu0 %v311_v31 }
 0x17a   :  { %546 = vmatprep.mubr.f32.mxu0 %v999_v21 }
 0x17d   :  { %547 = vmatmul.mubr.f32.gmra.mrb[34].mxu0 %v312_v54 }
 0x17e   :  { %552 = vmatprep.mubr.f32.mxu0 %v999_v21 }
 0x181   :  { %553 = vmatmul.mubr.f32.gmra.mrb[36].mxu0 %v313_v46 }
 0x182   :  { %558 = vmatprep.mubr.f32.mxu0 %v999_v21 }
 0x185   :  { %559 = vmatmul.mubr.f32.gmra.mrb[38].mxu0 %v314_v58 }
 0x20c   :  { %v446_v12 = vpop.f32.mrb[0].mxu0 }
 0x20d   :  { %v447_v4 = vadd.f32 %v446_v12, %v1487_v1  ;;  %v448_v13 = vpop.f32.mrb[1].mxu0 }
 0x20e   :  { %v449_v21 = vadd.f32 %v448_v13, %v1489_v20 }
 0x20f   :  { %730 = vst [vmem:[%s1738_s5] sm:$0xff] %v447_v4 }
 0x210   :  { %731 = vst [vmem:[%s1738_s5 + $0x8] sm:$0xff] %v449_v21  ;;  %v452_v19 = vpop.f32.mrb[2].mxu0  ;;  %v866_v22 = vpop.f32.mrb[0].mxu1 }
 0x211   :  { %v453_v5 = vadd.f32 %v452_v19, %v1487_v1  ;;  %v637_v24 = vadd.f32 %v866_v22, %v1492_v18  ;;  %v454_v29 = vpop.f32.mrb[3].mxu0  ;;  %v631_v25 = vpop.f32.mrb[1].mxu1 }
 0x212   :  { %v455_v26 = vadd.f32 %v454_v29, %v1489_v20  ;;  %v632_v55 = vadd.f32 %v631_v25, %v1492_v18 }
 0x213   :  { %733 = vst [vmem:[%s1738_s5 + $0x18] sm:$0xff] %v453_v5  ;;  %735 = vst [vmem:[%s1738_s5 + $0x28] sm:$0xff] %v637_v24 }
 0x214   :  { %734 = vst [vmem:[%s1738_s5 + $0x20] sm:$0xff] %v455_v26  ;;  %732 = vst [vmem:[%s1738_s5 + $0x10] sm:$0xff] %v632_v55  ;;  %v458_v27 = vpop.f32.mrb[4].mxu0  ;;  %v869_v28 = vpop.f32.mrb[2].mxu1 }
 0x215   :  { %v459_v49 = vadd.f32 %v458_v27, %v1487_v1  ;;  %v647_v6 = vadd.f32 %v869_v28, %v1492_v18  ;;  %v460_v7 = vpop.f32.mrb[5].mxu0  ;;  %v641_v8 = vpop.f32.mrb[3].mxu1 }
 0x216   :  { %v461_v42 = vadd.f32 %v460_v7, %v1489_v20  ;;  %v642_v32 = vadd.f32 %v641_v8, %v1492_v18 }
 0x217   :  { %736 = vst [vmem:[%s1738_s5 + $0x30] sm:$0xff] %v459_v49  ;;  %741 = vst [vmem:[%s1738_s5 + $0x58] sm:$0xff] %v647_v6 }
 0x218   :  { %737 = vst [vmem:[%s1738_s5 + $0x38] sm:$0xff] %v461_v42  ;;  %738 = vst [vmem:[%s1738_s5 + $0x40] sm:$0xff] %v642_v32  ;;  %v464_v33 = vpop.f32.mrb[6].mxu0  ;;  %v872_v34 = vpop.f32.mrb[4].mxu1 }
 0x219   :  { %v465_v14 = vadd.f32 %v464_v33, %v1487_v1  ;;  %v657_v15 = vadd.f32 %v872_v34, %v1492_v18  ;;  %v466_v9 = vpop.f32.mrb[7].mxu0  ;;  %v651_v56 = vpop.f32.mrb[5].mxu1 }
 0x21a   :  { %v467_v35 = vadd.f32 %v466_v9, %v1489_v20  ;;  %v652_v43 = vadd.f32 %v651_v56, %v1492_v18 }
 0x21b   :  { %739 = vst [vmem:[%s1738_s5 + $0x48] sm:$0xff] %v465_v14  ;;  %747 = vst [vmem:[%s1738_s5 + $0x88] sm:$0xff] %v657_v15 }
 0x21c   :  { %740 = vst [vmem:[%s1738_s5 + $0x50] sm:$0xff] %v467_v35  ;;  %744 = vst [vmem:[%s1738_s5 + $0x70] sm:$0xff] %v652_v43  ;;  %v470_v36 = vpop.f32.mrb[8].mxu0  ;;  %v875_v61 = vpop.f32.mrb[6].mxu1 }
 0x21d   :  { %v471_v37 = vadd.f32 %v470_v36, %v1487_v1  ;;  %v667_v38 = vadd.f32 %v875_v61, %v1492_v18  ;;  %v472_v39 = vpop.f32.mrb[9].mxu0  ;;  %v661_v40 = vpop.f32.mrb[7].mxu1 }
 0x21e   :  { %v473_v63 = vadd.f32 %v472_v39, %v1489_v20  ;;  %v662_v41 = vadd.f32 %v661_v40, %v1492_v18 }
 0x21f   :  { %742 = vst [vmem:[%s1738_s5 + $0x60] sm:$0xff] %v471_v37  ;;  %753 = vst [vmem:[%s1738_s5 + $0xb8] sm:$0xff] %v667_v38 }
 0x220   :  { %743 = vst [vmem:[%s1738_s5 + $0x68] sm:$0xff] %v473_v63  ;;  %750 = vst [vmem:[%s1738_s5 + $0xa0] sm:$0xff] %v662_v41  ;;  %v476_v62 = vpop.f32.mrb[10].mxu0  ;;  %v878_v44 = vpop.f32.mrb[8].mxu1 }
 0x221   :  { %v477_v10 = vadd.f32 %v476_v62, %v1487_v1  ;;  %v677_v30 = vadd.f32 %v878_v44, %v1492_v18  ;;  %v478_v11 = vpop.f32.mrb[11].mxu0  ;;  %v671_v50 = vpop.f32.mrb[9].mxu1 }
 0x222   :  { %v479_v16 = vadd.f32 %v478_v11, %v1489_v20  ;;  %v672_v0 = vadd.f32 %v671_v50, %v1492_v18 }
 0x223   :  { %745 = vst [vmem:[%s1738_s5 + $0x78] sm:$0xff] %v477_v10  ;;  %759 = vst [vmem:[%s1738_s5 + $0xe8] sm:$0xff] %v677_v30 }
 0x224   :  { %746 = vst [vmem:[%s1738_s5 + $0x80] sm:$0xff] %v479_v16  ;;  %756 = vst [vmem:[%s1738_s5 + $0xd0] sm:$0xff] %v672_v0  ;;  %v482_v17 = vpop.f32.mrb[12].mxu0  ;;  %v881_v31 = vpop.f32.mrb[10].mxu1 }
 0x225   :  { %v483_v52 = vadd.f32 %v482_v17, %v1487_v1  ;;  %v687_v45 = vadd.f32 %v881_v31, %v1492_v18  ;;  %v484_v23 = vpop.f32.mrb[13].mxu0  ;;  %v681_v53 = vpop.f32.mrb[11].mxu1 }
 0x226   :  { %v485_v54 = vadd.f32 %v484_v23, %v1489_v20  ;;  %v682_v57 = vadd.f32 %v681_v53, %v1492_v18 }
 0x227   :  { %748 = vst [vmem:[%s1738_s5 + $0x90] sm:$0xff] %v483_v52  ;;  %765 = vst [vmem:[%s1738_s5 + $0x118] sm:$0xff] %v687_v45 }
 0x228   :  { %749 = vst [vmem:[%s1738_s5 + $0x98] sm:$0xff] %v485_v54  ;;  %762 = vst [vmem:[%s1738_s5 + $0x100] sm:$0xff] %v682_v57  ;;  %v488_v46 = vpop.f32.mrb[14].mxu0  ;;  %v884_v2 = vpop.f32.mrb[12].mxu1 }
 0x229   :  { %v489_v58 = vadd.f32 %v488_v46, %v1487_v1  ;;  %v697_v3 = vadd.f32 %v884_v2, %v1492_v18  ;;  %v490_v47 = vpop.f32.mrb[15].mxu0  ;;  %v691_v51 = vpop.f32.mrb[13].mxu1 }
 0x22a   :  { %v491_v59 = vadd.f32 %v490_v47, %v1489_v20  ;;  %v692_v60 = vadd.f32 %v691_v51, %v1492_v18 }
 0x22b   :  { %751 = vst [vmem:[%s1738_s5 + $0xa8] sm:$0xff] %v489_v58  ;;  %771 = vst [vmem:[%s1738_s5 + $0x148] sm:$0xff] %v697_v3 }
 0x22c   :  { %752 = vst [vmem:[%s1738_s5 + $0xb0] sm:$0xff] %v491_v59  ;;  %768 = vst [vmem:[%s1738_s5 + $0x130] sm:$0xff] %v692_v60  ;;  %v494_v48 = vpop.f32.mrb[16].mxu0  ;;  %v887_v12 = vpop.f32.mrb[14].mxu1 }
 0x22d   :  { %v495_v4 = vadd.f32 %v494_v48, %v1487_v1  ;;  %v707_v13 = vadd.f32 %v887_v12, %v1492_v18  ;;  %v496_v21 = vpop.f32.mrb[17].mxu0  ;;  %v701_v19 = vpop.f32.mrb[15].mxu1 }
 0x22e   :  { %v497_v22 = vadd.f32 %v496_v21, %v1489_v20  ;;  %v702_v5 = vadd.f32 %v701_v19, %v1492_v18 }
 0x22f   :  { %754 = vst [vmem:[%s1738_s5 + $0xc0] sm:$0xff] %v495_v4  ;;  %777 = vst [vmem:[%s1738_s5 + $0x178] sm:$0xff] %v707_v13 }
 0x230   :  { %755 = vst [vmem:[%s1738_s5 + $0xc8] sm:$0xff] %v497_v22  ;;  %774 = vst [vmem:[%s1738_s5 + $0x160] sm:$0xff] %v702_v5  ;;  %v500_v24 = vpop.f32.mrb[18].mxu0  ;;  %v890_v29 = vpop.f32.mrb[16].mxu1 }
 0x231   :  { %v501_v25 = vadd.f32 %v500_v24, %v1487_v1  ;;  %v717_v26 = vadd.f32 %v890_v29, %v1492_v18  ;;  %v502_v55 = vpop.f32.mrb[19].mxu0  ;;  %v711_v27 = vpop.f32.mrb[17].mxu1 }
 0x232   :  { %v503_v28 = vadd.f32 %v502_v55, %v1489_v20  ;;  %v712_v49 = vadd.f32 %v711_v27, %v1492_v18 }
 0x233   :  { %757 = vst [vmem:[%s1738_s5 + $0xd8] sm:$0xff] %v501_v25  ;;  %783 = vst [vmem:[%s1738_s5 + $0x1a8] sm:$0xff] %v717_v26 }
 0x234   :  { %758 = vst [vmem:[%s1738_s5 + $0xe0] sm:$0xff] %v503_v28  ;;  %780 = vst [vmem:[%s1738_s5 + $0x190] sm:$0xff] %v712_v49  ;;  %v506_v6 = vpop.f32.mrb[20].mxu0  ;;  %v893_v7 = vpop.f32.mrb[18].mxu1 }
 0x235   :  { %v507_v8 = vadd.f32 %v506_v6, %v1487_v1  ;;  %v727_v42 = vadd.f32 %v893_v7, %v1492_v18  ;;  %v508_v32 = vpop.f32.mrb[21].mxu0  ;;  %v721_v33 = vpop.f32.mrb[19].mxu1 }
 0x236   :  { %v509_v34 = vadd.f32 %v508_v32, %v1489_v20  ;;  %v722_v14 = vadd.f32 %v721_v33, %v1492_v18 }
 0x237   :  { %760 = vst [vmem:[%s1738_s5 + $0xf0] sm:$0xff] %v507_v8  ;;  %789 = vst [vmem:[%s1738_s5 + $0x1d8] sm:$0xff] %v727_v42 }
 0x238   :  { %761 = vst [vmem:[%s1738_s5 + $0xf8] sm:$0xff] %v509_v34  ;;  %786 = vst [vmem:[%s1738_s5 + $0x1c0] sm:$0xff] %v722_v14  ;;  %v512_v15 = vpop.f32.mrb[22].mxu0 }
 0x239   :  { %v513_v9 = vadd.f32 %v512_v15, %v1487_v1  ;;  %v514_v18 = vpop.f32.mrb[23].mxu0 }
 0x23a   :  { %v515_v56 = vadd.f32 %v514_v18, %v1489_v20 }
 0x23b   :  { %763 = vst [vmem:[%s1738_s5 + $0x108] sm:$0xff] %v513_v9 }
 0x23c   :  { %764 = vst [vmem:[%s1738_s5 + $0x110] sm:$0xff] %v515_v56  ;;  %v518_v35 = vpop.f32.mrb[24].mxu0 }
 0x23d   :  { %v519_v43 = vadd.f32 %v518_v35, %v1487_v1  ;;  %v520_v36 = vpop.f32.mrb[25].mxu0 }
 0x23e   :  { %v521_v61 = vadd.f32 %v520_v36, %v1489_v20 }
 0x23f   :  { %766 = vst [vmem:[%s1738_s5 + $0x120] sm:$0xff] %v519_v43 }
 0x240   :  { %767 = vst [vmem:[%s1738_s5 + $0x128] sm:$0xff] %v521_v61  ;;  %v524_v37 = vpop.f32.mrb[26].mxu0 }
 0x241   :  { %v525_v38 = vadd.f32 %v524_v37, %v1487_v1  ;;  %v526_v39 = vpop.f32.mrb[27].mxu0 }
 0x242   :  { %v527_v40 = vadd.f32 %v526_v39, %v1489_v20 }
 0x243   :  { %769 = vst [vmem:[%s1738_s5 + $0x138] sm:$0xff] %v525_v38 }
 0x244   :  { %770 = vst [vmem:[%s1738_s5 + $0x140] sm:$0xff] %v527_v40  ;;  %v530_v63 = vpop.f32.mrb[28].mxu0 }
 0x245   :  { %v531_v41 = vadd.f32 %v530_v63, %v1487_v1  ;;  %v532_v62 = vpop.f32.mrb[29].mxu0 }
 0x246   :  { %v533_v44 = vadd.f32 %v532_v62, %v1489_v20 }
 0x247   :  { %772 = vst [vmem:[%s1738_s5 + $0x150] sm:$0xff] %v531_v41 }
 0x248   :  { %773 = vst [vmem:[%s1738_s5 + $0x158] sm:$0xff] %v533_v44  ;;  %v536_v10 = vpop.f32.mrb[30].mxu0 }
 0x249   :  { %v537_v30 = vadd.f32 %v536_v10, %v1487_v1  ;;  %v538_v11 = vpop.f32.mrb[31].mxu0 }
 0x24a   :  { %v539_v50 = vadd.f32 %v538_v11, %v1489_v20 }
 0x24b   :  { %775 = vst [vmem:[%s1738_s5 + $0x168] sm:$0xff] %v537_v30 }
 0x24c   :  { %776 = vst [vmem:[%s1738_s5 + $0x170] sm:$0xff] %v539_v50  ;;  %v542_v16 = vpop.f32.mrb[32].mxu0 }
 0x24d   :  { %v543_v0 = vadd.f32 %v542_v16, %v1487_v1  ;;  %v544_v17 = vpop.f32.mrb[33].mxu0 }
 0x24e   :  { %v545_v31 = vadd.f32 %v544_v17, %v1489_v20 }
 0x24f   :  { %778 = vst [vmem:[%s1738_s5 + $0x180] sm:$0xff] %v543_v0 }
 0x250   :  { %779 = vst [vmem:[%s1738_s5 + $0x188] sm:$0xff] %v545_v31  ;;  %v548_v52 = vpop.f32.mrb[34].mxu0 }
 0x251   :  { %v549_v45 = vadd.f32 %v548_v52, %v1487_v1  ;;  %v550_v23 = vpop.f32.mrb[35].mxu0 }
 0x252   :  { %v551_v53 = vadd.f32 %v550_v23, %v1489_v20 }
 0x253   :  { %781 = vst [vmem:[%s1738_s5 + $0x198] sm:$0xff] %v549_v45 }
 0x254   :  { %782 = vst [vmem:[%s1738_s5 + $0x1a0] sm:$0xff] %v551_v53  ;;  %v554_v54 = vpop.f32.mrb[36].mxu0 }
 0x255   :  { %v555_v57 = vadd.f32 %v554_v54, %v1487_v1  ;;  %v556_v46 = vpop.f32.mrb[37].mxu0 }
 0x256   :  { %v557_v2 = vadd.f32 %v556_v46, %v1489_v20 }
 0x257   :  { %784 = vst [vmem:[%s1738_s5 + $0x1b0] sm:$0xff] %v555_v57 }
 0x258   :  { %785 = vst [vmem:[%s1738_s5 + $0x1b8] sm:$0xff] %v557_v2  ;;  %v560_v58 = vpop.f32.mrb[38].mxu0 }
 0x259   :  { %v561_v3 = vadd.f32 %v560_v58, %v1487_v1  ;;  %v562_v47 = vpop.f32.mrb[39].mxu0 }
 0x25a   :  { %v563_v51 = vadd.f32 %v562_v47, %v1489_v20 }
 0x25b   :  { %787 = vst [vmem:[%s1738_s5 + $0x1c8] sm:$0xff] %v561_v3 }
 0x25c   :  { %788 = vst [vmem:[%s1738_s5 + $0x1d0] sm:$0xff] %v563_v51 }

// kernel: base_backbone_forward.19
= control target key start
LH: loop header
LB: loop body
LE: loop exit
PB: predicated region body
PF: predicated region fallthrough
CT: control target
= control target key end

     0   :  { %v660_v0 = vmov 0.0|0.0   ;;  %s1295_s1 = inlined_call_operand.vmem [shape: f32[512,128], index: 1, kind: input, shape index: {}]   ;;  %s1296_s0 = inlined_call_operand.vmem [shape: f32[160,512], index: 0, kind: input, shape index: {}]   ;;  %s1297_s2 = inlined_call_operand.vmem [shape: f32[1,128], index: 2, kind: input, shape index: {}]   ;;  %s1298_s3 = inlined_call_operand.vmem [shape: f32[160,128], index: 3, kind: input, shape index: {}]   ;;  %s1299_s4 = inlined_call_operand.vmem [shape: f32[160,128], index: 4, kind: output, shape index: {}]  }
   0x1   :  { %563 = vmatprep.subr.bf16.mxu0 %v660_v0  ;;  %v97_v1 = vld [vmem:[%s1295_s1] sm:$0xff]  ;;  %v98_v2 = vld [vmem:[%s1295_s1 + $0x8] sm:$0xff]  ;;  %611 = vmatprep.subr.bf16.mxu1 %v660_v0  ;;  %v99_v6 = vld [vmem:[%s1295_s1 + $0x10] sm:$0xff] }
   0x2   :  { %v129_v3 = vld [vmem:[%s1295_s1 + $0x100] sm:$0xff]  ;;  %v564_v4 = vpack.c.bf16 %v98_v2, %v97_v1  ;;  %v130_v5 = vld [vmem:[%s1295_s1 + $0x108] sm:$0xff]  ;;  %v100_v7 = vld [vmem:[%s1295_s1 + $0x18] sm:$0xff] }
   0x3   :  { %v612_v8 = vpack.c.bf16 %v130_v5, %v129_v3  ;;  %v131_v9 = vld [vmem:[%s1295_s1 + $0x110] sm:$0xff]  ;;  %v132_v10 = vld [vmem:[%s1295_s1 + $0x118] sm:$0xff]  ;;  %v567_v11 = vpack.c.bf16 %v100_v7, %v99_v6  ;;  %v101_v13 = vld [vmem:[%s1295_s1 + $0x20] sm:$0xff] }
   0x4   :  { %565 = vmatpush1.bf16.msra.mxu0 %v564_v4  ;;  %v615_v12 = vpack.c.bf16 %v132_v10, %v131_v9  ;;  %v102_v14 = vld [vmem:[%s1295_s1 + $0x28] sm:$0xff]  ;;  %v133_v15 = vld [vmem:[%s1295_s1 + $0x120] sm:$0xff]  ;;  %v103_v19 = vld [vmem:[%s1295_s1 + $0x30] sm:$0xff] }
   0x5   :  { %613 = vmatpush1.bf16.msra.mxu1 %v612_v8  ;;  %566 = vmatprep.subr.bf16.mxu0 %v660_v0  ;;  %v134_v16 = vld [vmem:[%s1295_s1 + $0x128] sm:$0xff]  ;;  %v570_v17 = vpack.c.bf16 %v102_v14, %v101_v13  ;;  %v104_v20 = vld [vmem:[%s1295_s1 + $0x38] sm:$0xff]  ;;  %v135_v21 = vld [vmem:[%s1295_s1 + $0x130] sm:$0xff] }
   0x6   :  { %614 = vmatprep.subr.bf16.mxu1 %v660_v0  ;;  %v618_v18 = vpack.c.bf16 %v134_v16, %v133_v15  ;;  %v136_v22 = vld [vmem:[%s1295_s1 + $0x138] sm:$0xff]  ;;  %v573_v23 = vpack.c.bf16 %v104_v20, %v103_v19  ;;  %v105_v25 = vld [vmem:[%s1295_s1 + $0x40] sm:$0xff]  ;;  %v106_v26 = vld [vmem:[%s1295_s1 + $0x48] sm:$0xff] }
   0x7   :  { %v621_v24 = vpack.c.bf16 %v136_v22, %v135_v21  ;;  %v137_v27 = vld [vmem:[%s1295_s1 + $0x140] sm:$0xff]  ;;  %v138_v28 = vld [vmem:[%s1295_s1 + $0x148] sm:$0xff]  ;;  %v576_v29 = vpack.c.bf16 %v106_v26, %v105_v25  ;;  %v107_v31 = vld [vmem:[%s1295_s1 + $0x50] sm:$0xff] }
   0x8   :  { %568 = vmatpush1.bf16.msra.mxu0 %v567_v11  ;;  %v624_v30 = vpack.c.bf16 %v138_v28, %v137_v27  ;;  %v108_v32 = vld [vmem:[%s1295_s1 + $0x58] sm:$0xff]  ;;  %v139_v33 = vld [vmem:[%s1295_s1 + $0x150] sm:$0xff]  ;;  %v109_v37 = vld [vmem:[%s1295_s1 + $0x60] sm:$0xff] }
   0x9   :  { %616 = vmatpush1.bf16.msra.mxu1 %v615_v12  ;;  %569 = vmatprep.subr.bf16.mxu0 %v660_v0  ;;  %v140_v34 = vld [vmem:[%s1295_s1 + $0x158] sm:$0xff]  ;;  %v579_v35 = vpack.c.bf16 %v108_v32, %v107_v31  ;;  %v110_v38 = vld [vmem:[%s1295_s1 + $0x68] sm:$0xff]  ;;  %v141_v39 = vld [vmem:[%s1295_s1 + $0x160] sm:$0xff] }
   0xa   :  { %617 = vmatprep.subr.bf16.mxu1 %v660_v0  ;;  %v627_v36 = vpack.c.bf16 %v140_v34, %v139_v33  ;;  %v142_v40 = vld [vmem:[%s1295_s1 + $0x168] sm:$0xff]  ;;  %v20_v42 = vld [vmem:[%s1296_s0 + $0x18] sm:$0xff]  ;;  %v582_v43 = vpack.c.bf16 %v110_v38, %v109_v37  ;;  %v111_v45 = vld [vmem:[%s1295_s1 + $0x70] sm:$0xff] }
   0xb   :  { %v18_v41 = vld [vmem:[%s1296_s0 + $0x8] sm:$0xff]  ;;  %397 = vmatprep.mubr.f32.mxu1 %v20_v42  ;;  %v630_v44 = vpack.c.bf16 %v142_v40, %v141_v39  ;;  %v112_v46 = vld [vmem:[%s1295_s1 + $0x78] sm:$0xff]  ;;  %v143_v47 = vld [vmem:[%s1295_s1 + $0x170] sm:$0xff] }
   0xc   :  { %571 = vmatpush1.bf16.msra.mxu0 %v570_v17  ;;  %232 = vmatprep.mubr.f32.mxu0 %v18_v41  ;;  %v144_v48 = vld [vmem:[%s1295_s1 + $0x178] sm:$0xff]  ;;  %v585_v49 = vpack.c.bf16 %v112_v46, %v111_v45  ;;  %v113_v51 = vld [vmem:[%s1295_s1 + $0x80] sm:$0xff]  ;;  %v114_v52 = vld [vmem:[%s1295_s1 + $0x88] sm:$0xff] }
   0xd   :  { %619 = vmatpush1.bf16.msra.mxu1 %v618_v18  ;;  %572 = vmatprep.subr.bf16.mxu0 %v660_v0  ;;  %v633_v50 = vpack.c.bf16 %v144_v48, %v143_v47  ;;  %v145_v53 = vld [vmem:[%s1295_s1 + $0x180] sm:$0xff]  ;;  %v146_v54 = vld [vmem:[%s1295_s1 + $0x188] sm:$0xff]  ;;  %v588_v55 = vpack.c.bf16 %v114_v52, %v113_v51  ;;  %v115_v57 = vld [vmem:[%s1295_s1 + $0x90] sm:$0xff] }
   0xe   :  { %620 = vmatprep.subr.bf16.mxu1 %v660_v0  ;;  %v636_v56 = vpack.c.bf16 %v146_v54, %v145_v53  ;;  %v116_v58 = vld [vmem:[%s1295_s1 + $0x98] sm:$0xff]  ;;  %v147_v59 = vld [vmem:[%s1295_s1 + $0x190] sm:$0xff]  ;;  %v117_v63 = vld [vmem:[%s1295_s1 + $0xa0] sm:$0xff] }
   0xf   :  { %v148_v60 = vld [vmem:[%s1295_s1 + $0x198] sm:$0xff]  ;;  %v591_v61 = vpack.c.bf16 %v116_v58, %v115_v57  ;;  %v118_v1 = vld [vmem:[%s1295_s1 + $0xa8] sm:$0xff]  ;;  %v149_v2 = vld [vmem:[%s1295_s1 + $0x1a0] sm:$0xff] }
  0x10   :  { %574 = vmatpush1.bf16.msra.mxu0 %v573_v23  ;;  %v639_v62 = vpack.c.bf16 %v148_v60, %v147_v59  ;;  %v150_v3 = vld [vmem:[%s1295_s1 + $0x1a8] sm:$0xff]  ;;  %v594_v4 = vpack.c.bf16 %v118_v1, %v117_v63  ;;  %v119_v6 = vld [vmem:[%s1295_s1 + $0xb0] sm:$0xff]  ;;  %v120_v7 = vld [vmem:[%s1295_s1 + $0xb8] sm:$0xff] }
  0x11   :  { %622 = vmatpush1.bf16.msra.mxu1 %v621_v24  ;;  %575 = vmatprep.subr.bf16.mxu0 %v660_v0  ;;  %v642_v5 = vpack.c.bf16 %v150_v3, %v149_v2  ;;  %v151_v8 = vld [vmem:[%s1295_s1 + $0x1b0] sm:$0xff]  ;;  %v152_v9 = vld [vmem:[%s1295_s1 + $0x1b8] sm:$0xff]  ;;  %v597_v10 = vpack.c.bf16 %v120_v7, %v119_v6  ;;  %v121_v12 = vld [vmem:[%s1295_s1 + $0xc0] sm:$0xff] }
  0x12   :  { %623 = vmatprep.subr.bf16.mxu1 %v660_v0  ;;  %v645_v11 = vpack.c.bf16 %v152_v9, %v151_v8  ;;  %v122_v13 = vld [vmem:[%s1295_s1 + $0xc8] sm:$0xff]  ;;  %v153_v14 = vld [vmem:[%s1295_s1 + $0x1c0] sm:$0xff]  ;;  %v123_v18 = vld [vmem:[%s1295_s1 + $0xd0] sm:$0xff] }
  0x13   :  { %v154_v15 = vld [vmem:[%s1295_s1 + $0x1c8] sm:$0xff]  ;;  %v600_v16 = vpack.c.bf16 %v122_v13, %v121_v12  ;;  %v124_v19 = vld [vmem:[%s1295_s1 + $0xd8] sm:$0xff]  ;;  %v155_v20 = vld [vmem:[%s1295_s1 + $0x1d0] sm:$0xff] }
  0x14   :  { %577 = vmatpush1.bf16.msra.mxu0 %v576_v29  ;;  %v648_v17 = vpack.c.bf16 %v154_v15, %v153_v14  ;;  %v156_v21 = vld [vmem:[%s1295_s1 + $0x1d8] sm:$0xff]  ;;  %v603_v22 = vpack.c.bf16 %v124_v19, %v123_v18  ;;  %v125_v24 = vld [vmem:[%s1295_s1 + $0xe0] sm:$0xff]  ;;  %v126_v25 = vld [vmem:[%s1295_s1 + $0xe8] sm:$0xff] }
  0x15   :  { %625 = vmatpush1.bf16.msra.mxu1 %v624_v30  ;;  %578 = vmatprep.subr.bf16.mxu0 %v660_v0  ;;  %v651_v23 = vpack.c.bf16 %v156_v21, %v155_v20  ;;  %v157_v26 = vld [vmem:[%s1295_s1 + $0x1e0] sm:$0xff]  ;;  %v158_v27 = vld [vmem:[%s1295_s1 + $0x1e8] sm:$0xff]  ;;  %v606_v28 = vpack.c.bf16 %v126_v25, %v125_v24  ;;  %v127_v30 = vld [vmem:[%s1295_s1 + $0xf0] sm:$0xff] }
  0x16   :  { %626 = vmatprep.subr.bf16.mxu1 %v660_v0  ;;  %v654_v29 = vpack.c.bf16 %v158_v27, %v157_v26  ;;  %v128_v31 = vld [vmem:[%s1295_s1 + $0xf8] sm:$0xff]  ;;  %v159_v32 = vld [vmem:[%s1295_s1 + $0x1f0] sm:$0xff]  ;;  %v22_v38 = vld [vmem:[%s1296_s0 + $0x28] sm:$0xff] }
  0x17   :  { %v160_v33 = vld [vmem:[%s1295_s1 + $0x1f8] sm:$0xff]  ;;  %v609_v34 = vpack.c.bf16 %v128_v31, %v127_v30  ;;  %v19_v37 = vld [vmem:[%s1296_s0 + $0x10] sm:$0xff]  ;;  %v26_v41 = vld [vmem:[%s1296_s0 + $0x48] sm:$0xff] }
  0x18   :  { %580 = vmatpush1.bf16.msra.mxu0 %v579_v35  ;;  %v657_v35 = vpack.c.bf16 %v160_v33, %v159_v32  ;;  %v24_v39 = vld [vmem:[%s1296_s0 + $0x38] sm:$0xff]  ;;  %v23_v40 = vld [vmem:[%s1296_s0 + $0x30] sm:$0xff]  ;;  %v30_v45 = vld [vmem:[%s1296_s0 + $0x68] sm:$0xff] }
  0x19   :  { %628 = vmatpush1.bf16.msra.mxu1 %v627_v36  ;;  %581 = vmatprep.subr.bf16.mxu0 %v660_v0  ;;  %v17_v36 = vld [vmem:[%s1296_s0] sm:$0xff]  ;;  %v28_v42 = vld [vmem:[%s1296_s0 + $0x58] sm:$0xff]  ;;  %v31_v48 = vld [vmem:[%s1296_s0 + $0x70] sm:$0xff] }
  0x1a   :  { %629 = vmatprep.subr.bf16.mxu1 %v660_v0  ;;  %v32_v46 = vld [vmem:[%s1296_s0 + $0x78] sm:$0xff]  ;;  %v29_v47 = vld [vmem:[%s1296_s0 + $0x60] sm:$0xff]  ;;  %v35_v52 = vld [vmem:[%s1296_s0 + $0x90] sm:$0xff] }
  0x1b   :  { %v33_v51 = vld [vmem:[%s1296_s0 + $0x80] sm:$0xff]  ;;  %v38_v53 = vld [vmem:[%s1296_s0 + $0xa8] sm:$0xff]  ;;  %v40_v54 = vld [vmem:[%s1296_s0 + $0xb8] sm:$0xff] }
  0x1c   :  { %583 = vmatpush1.bf16.msra.mxu0 %v582_v43  ;;  %v25_v43 = vld [vmem:[%s1296_s0 + $0x40] sm:$0xff]  ;;  %v42_v57 = vld [vmem:[%s1296_s0 + $0xc8] sm:$0xff]  ;;  %v44_v58 = vld [vmem:[%s1296_s0 + $0xd8] sm:$0xff] }
  0x1d   :  { %631 = vmatpush1.bf16.msra.mxu1 %v630_v44  ;;  %584 = vmatprep.subr.bf16.mxu0 %v660_v0  ;;  %v27_v44 = vld [vmem:[%s1296_s0 + $0x50] sm:$0xff]  ;;  %v41_v59 = vld [vmem:[%s1296_s0 + $0xc0] sm:$0xff]  ;;  %v50_v2 = vld [vmem:[%s1296_s0 + $0x108] sm:$0xff] }
  0x1e   :  { %632 = vmatprep.subr.bf16.mxu1 %v660_v0  ;;  %v43_v60 = vld [vmem:[%s1296_s0 + $0xd0] sm:$0xff]  ;;  %v45_v63 = vld [vmem:[%s1296_s0 + $0xe0] sm:$0xff]  ;;  %v52_v3 = vld [vmem:[%s1296_s0 + $0x118] sm:$0xff] }
  0x1f   :  { %v47_v1 = vld [vmem:[%s1296_s0 + $0xf0] sm:$0xff]  ;;  %v54_v6 = vld [vmem:[%s1296_s0 + $0x128] sm:$0xff]  ;;  %v56_v7 = vld [vmem:[%s1296_s0 + $0x138] sm:$0xff] }
  0x20   :  { %586 = vmatpush1.bf16.msra.mxu0 %v585_v49  ;;  %v34_v49 = vld [vmem:[%s1296_s0 + $0x88] sm:$0xff]  ;;  %v53_v8 = vld [vmem:[%s1296_s0 + $0x120] sm:$0xff]  ;;  %v55_v9 = vld [vmem:[%s1296_s0 + $0x130] sm:$0xff] }
  0x21   :  { %634 = vmatpush1.bf16.msra.mxu1 %v633_v50  ;;  %587 = vmatprep.subr.bf16.mxu0 %v660_v0  ;;  %v36_v50 = vld [vmem:[%s1296_s0 + $0x98] sm:$0xff]  ;;  %v57_v12 = vld [vmem:[%s1296_s0 + $0x140] sm:$0xff]  ;;  %v59_v13 = vld [vmem:[%s1296_s0 + $0x150] sm:$0xff] }
  0x22   :  { %635 = vmatprep.subr.bf16.mxu1 %v660_v0  ;;  %v62_v14 = vld [vmem:[%s1296_s0 + $0x168] sm:$0xff]  ;;  %v64_v15 = vld [vmem:[%s1296_s0 + $0x178] sm:$0xff]  ;;  %v65_v20 = vld [vmem:[%s1296_s0 + $0x180] sm:$0xff] }
  0x23   :  { %v66_v18 = vld [vmem:[%s1296_s0 + $0x188] sm:$0xff]  ;;  %v68_v19 = vld [vmem:[%s1296_s0 + $0x198] sm:$0xff]  ;;  %v67_v21 = vld [vmem:[%s1296_s0 + $0x190] sm:$0xff] }
  0x24   :  { %589 = vmatpush1.bf16.msra.mxu0 %v588_v55  ;;  %v37_v55 = vld [vmem:[%s1296_s0 + $0xa0] sm:$0xff]  ;;  %v71_v25 = vld [vmem:[%s1296_s0 + $0x1b0] sm:$0xff]  ;;  %v74_v26 = vld [vmem:[%s1296_s0 + $0x1c8] sm:$0xff] }
  0x25   :  { %637 = vmatpush1.bf16.msra.mxu1 %v636_v56  ;;  %590 = vmatprep.subr.bf16.mxu0 %v660_v0  ;;  %v39_v56 = vld [vmem:[%s1296_s0 + $0xb0] sm:$0xff]  ;;  %v69_v24 = vld [vmem:[%s1296_s0 + $0x1a0] sm:$0xff]  ;;  %v76_v27 = vld [vmem:[%s1296_s0 + $0x1d8] sm:$0xff] }
  0x26   :  { %638 = vmatprep.subr.bf16.mxu1 %v660_v0  ;;  %v78_v30 = vld [vmem:[%s1296_s0 + $0x1e8] sm:$0xff]  ;;  %v80_v31 = vld [vmem:[%s1296_s0 + $0x1f8] sm:$0xff]  ;;  %v77_v32 = vld [vmem:[%s1296_s0 + $0x1e0] sm:$0xff] }
  0x27   :  { %v79_v33 = vld [vmem:[%s1296_s0 + $0x1f0] sm:$0xff] }
  0x28   :  { %592 = vmatpush1.bf16.msra.mxu0 %v591_v61  ;;  %v46_v61 = vld [vmem:[%s1296_s0 + $0xe8] sm:$0xff] }
  0x29   :  { %640 = vmatpush1.bf16.msra.mxu1 %v639_v62  ;;  %593 = vmatprep.subr.bf16.mxu0 %v660_v0  ;;  %v48_v62 = vld [vmem:[%s1296_s0 + $0xf8] sm:$0xff] }
  0x2a   :  { %641 = vmatprep.subr.bf16.mxu1 %v660_v0 }
  0x2c   :  { %595 = vmatpush1.bf16.msra.mxu0 %v594_v4  ;;  %v49_v4 = vld [vmem:[%s1296_s0 + $0x100] sm:$0xff] }
  0x2d   :  { %643 = vmatpush1.bf16.msra.mxu1 %v642_v5  ;;  %596 = vmatprep.subr.bf16.mxu0 %v660_v0  ;;  %v51_v5 = vld [vmem:[%s1296_s0 + $0x110] sm:$0xff] }
  0x2e   :  { %644 = vmatprep.subr.bf16.mxu1 %v660_v0 }
  0x30   :  { %598 = vmatpush1.bf16.msra.mxu0 %v597_v10  ;;  %v58_v10 = vld [vmem:[%s1296_s0 + $0x148] sm:$0xff] }
  0x31   :  { %646 = vmatpush1.bf16.msra.mxu1 %v645_v11  ;;  %599 = vmatprep.subr.bf16.mxu0 %v660_v0  ;;  %v60_v11 = vld [vmem:[%s1296_s0 + $0x158] sm:$0xff] }
  0x32   :  { %647 = vmatprep.subr.bf16.mxu1 %v660_v0 }
  0x34   :  { %601 = vmatpush1.bf16.msra.mxu0 %v600_v16  ;;  %v61_v16 = vld [vmem:[%s1296_s0 + $0x160] sm:$0xff] }
  0x35   :  { %649 = vmatpush1.bf16.msra.mxu1 %v648_v17  ;;  %602 = vmatprep.subr.bf16.mxu0 %v660_v0  ;;  %v63_v17 = vld [vmem:[%s1296_s0 + $0x170] sm:$0xff] }
  0x36   :  { %650 = vmatprep.subr.bf16.mxu1 %v660_v0 }
  0x38   :  { %604 = vmatpush1.bf16.msra.mxu0 %v603_v22  ;;  %v70_v22 = vld [vmem:[%s1296_s0 + $0x1a8] sm:$0xff] }
  0x39   :  { %652 = vmatpush1.bf16.msra.mxu1 %v651_v23  ;;  %605 = vmatprep.subr.bf16.mxu0 %v660_v0  ;;  %v72_v23 = vld [vmem:[%s1296_s0 + $0x1b8] sm:$0xff] }
  0x3a   :  { %653 = vmatprep.subr.bf16.mxu1 %v660_v0 }
  0x3c   :  { %607 = vmatpush1.bf16.msra.mxu0 %v606_v28  ;;  %v73_v28 = vld [vmem:[%s1296_s0 + $0x1c0] sm:$0xff] }
  0x3d   :  { %655 = vmatpush1.bf16.msra.mxu1 %v654_v29  ;;  %608 = vmatprep.subr.bf16.mxu0 %v660_v0  ;;  %v75_v29 = vld [vmem:[%s1296_s0 + $0x1d0] sm:$0xff] }
  0x3e   :  { %656 = vmatprep.subr.bf16.mxu1 %v660_v0  ;;  %v21_v0 = vld [vmem:[%s1296_s0 + $0x20] sm:$0xff] }
  0x40   :  { %610 = vmatpush1.bf16.msra.mxu0 %v609_v34  ;;  %v82_v34 = vld [vmem:[%s1296_s0 + $0x208] sm:$0xff] }
  0x41   :  { %658 = vmatpush1.bf16.msra.mxu1 %v657_v35  ;;  %v84_v35 = vld [vmem:[%s1296_s0 + $0x218] sm:$0xff] }
  0x43   :  { %233 = vmatmul.mubr.f32.vlgmr.msra.gmra.mrb[0].mxu0 %v17_v36  ;;  %v81_v36 = vld [vmem:[%s1296_s0 + $0x200] sm:$0xff] }
  0x44   :  { %398 = vmatmul.mubr.f32.vlgmr.msra.gmra.mrb[0].mxu1 %v19_v37  ;;  %237 = vmatprep.mubr.f32.mxu0 %v22_v38  ;;  %v83_v37 = vld [vmem:[%s1296_s0 + $0x210] sm:$0xff]  ;;  %v86_v38 = vld [vmem:[%s1296_s0 + $0x228] sm:$0xff] }
  0x45   :  { %402 = vmatprep.mubr.f32.mxu1 %v24_v39  ;;  %v88_v39 = vld [vmem:[%s1296_s0 + $0x238] sm:$0xff] }
  0x47   :  { %238 = vmatmul.mubr.f32.gmra.mrb[2].mxu0 %v21_v0  ;;  %v85_v0 = vld [vmem:[%s1296_s0 + $0x220] sm:$0xff] }
  0x48   :  { %403 = vmatmul.mubr.f32.gmra.mrb[2].mxu1 %v23_v40  ;;  %242 = vmatprep.mubr.f32.mxu0 %v26_v41  ;;  %v87_v40 = vld [vmem:[%s1296_s0 + $0x230] sm:$0xff]  ;;  %v90_v41 = vld [vmem:[%s1296_s0 + $0x248] sm:$0xff] }
  0x49   :  { %407 = vmatprep.mubr.f32.mxu1 %v28_v42  ;;  %v92_v42 = vld [vmem:[%s1296_s0 + $0x258] sm:$0xff] }
  0x4b   :  { %243 = vmatmul.mubr.f32.gmra.mrb[4].mxu0 %v25_v43  ;;  %v89_v43 = vld [vmem:[%s1296_s0 + $0x240] sm:$0xff] }
  0x4c   :  { %408 = vmatmul.mubr.f32.gmra.mrb[4].mxu1 %v27_v44  ;;  %247 = vmatprep.mubr.f32.mxu0 %v30_v45  ;;  %v91_v44 = vld [vmem:[%s1296_s0 + $0x250] sm:$0xff]  ;;  %v94_v45 = vld [vmem:[%s1296_s0 + $0x268] sm:$0xff] }
  0x4d   :  { %412 = vmatprep.mubr.f32.mxu1 %v32_v46  ;;  %v96_v46 = vld [vmem:[%s1296_s0 + $0x278] sm:$0xff] }
  0x4f   :  { %248 = vmatmul.mubr.f32.gmra.mrb[6].mxu0 %v29_v47  ;;  %v93_v47 = vld [vmem:[%s1296_s0 + $0x260] sm:$0xff] }
  0x50   :  { %413 = vmatmul.mubr.f32.gmra.mrb[6].mxu1 %v31_v48  ;;  %252 = vmatprep.mubr.f32.mxu0 %v34_v49  ;;  %v95_v48 = vld [vmem:[%s1296_s0 + $0x270] sm:$0xff]  ;;  %v1153_v49 = vld [vmem:[%s1297_s2] ss:$0 sm:$0xff] }
  0x51   :  { %417 = vmatprep.mubr.f32.mxu1 %v36_v50 }
  0x53   :  { %253 = vmatmul.mubr.f32.gmra.mrb[8].mxu0 %v33_v51 }
  0x54   :  { %418 = vmatmul.mubr.f32.gmra.mrb[8].mxu1 %v35_v52  ;;  %257 = vmatprep.mubr.f32.mxu0 %v38_v53 }
  0x55   :  { %422 = vmatprep.mubr.f32.mxu1 %v40_v54  ;;  %v498_v54 = vld [vmem:[%s1298_s3] sm:$0xff] }
  0x57   :  { %258 = vmatmul.mubr.f32.gmra.mrb[10].mxu0 %v37_v55 }
  0x58   :  { %423 = vmatmul.mubr.f32.gmra.mrb[10].mxu1 %v39_v56  ;;  %262 = vmatprep.mubr.f32.mxu0 %v42_v57 }
  0x59   :  { %427 = vmatprep.mubr.f32.mxu1 %v44_v58 }
  0x5b   :  { %263 = vmatmul.mubr.f32.gmra.mrb[12].mxu0 %v41_v59 }
  0x5c   :  { %428 = vmatmul.mubr.f32.gmra.mrb[12].mxu1 %v43_v60  ;;  %267 = vmatprep.mubr.f32.mxu0 %v46_v61 }
  0x5d   :  { %432 = vmatprep.mubr.f32.mxu1 %v48_v62  ;;  %v499_v62 = vld [vmem:[%s1298_s3 + $0x8] sm:$0xff] }
  0x5f   :  { %268 = vmatmul.mubr.f32.gmra.mrb[14].mxu0 %v45_v63 }
  0x60   :  { %433 = vmatmul.mubr.f32.gmra.mrb[14].mxu1 %v47_v1  ;;  %272 = vmatprep.mubr.f32.mxu0 %v50_v2 }
  0x61   :  { %437 = vmatprep.mubr.f32.mxu1 %v52_v3 }
  0x63   :  { %273 = vmatmul.mubr.f32.gmra.mrb[16].mxu0 %v49_v4 }
  0x64   :  { %438 = vmatmul.mubr.f32.gmra.mrb[16].mxu1 %v51_v5  ;;  %277 = vmatprep.mubr.f32.mxu0 %v54_v6 }
  0x65   :  { %442 = vmatprep.mubr.f32.mxu1 %v56_v7  ;;  %v500_v7 = vld [vmem:[%s1298_s3 + $0x10] sm:$0xff] }
  0x67   :  { %278 = vmatmul.mubr.f32.gmra.mrb[18].mxu0 %v53_v8 }
  0x68   :  { %443 = vmatmul.mubr.f32.gmra.mrb[18].mxu1 %v55_v9  ;;  %282 = vmatprep.mubr.f32.mxu0 %v58_v10 }
  0x69   :  { %447 = vmatprep.mubr.f32.mxu1 %v60_v11 }
  0x6b   :  { %283 = vmatmul.mubr.f32.gmra.mrb[20].mxu0 %v57_v12 }
  0x6c   :  { %448 = vmatmul.mubr.f32.gmra.mrb[20].mxu1 %v59_v13  ;;  %287 = vmatprep.mubr.f32.mxu0 %v62_v14 }
  0x6d   :  { %452 = vmatprep.mubr.f32.mxu1 %v64_v15  ;;  %v501_v15 = vld [vmem:[%s1298_s3 + $0x18] sm:$0xff] }
  0x6f   :  { %288 = vmatmul.mubr.f32.gmra.mrb[22].mxu0 %v61_v16 }
  0x70   :  { %453 = vmatmul.mubr.f32.gmra.mrb[22].mxu1 %v63_v17  ;;  %292 = vmatprep.mubr.f32.mxu0 %v66_v18 }
  0x71   :  { %457 = vmatprep.mubr.f32.mxu1 %v68_v19 }
  0x73   :  { %293 = vmatmul.mubr.f32.gmra.mrb[24].mxu0 %v65_v20 }
  0x74   :  { %458 = vmatmul.mubr.f32.gmra.mrb[24].mxu1 %v67_v21  ;;  %297 = vmatprep.mubr.f32.mxu0 %v70_v22 }
  0x75   :  { %462 = vmatprep.mubr.f32.mxu1 %v72_v23  ;;  %v502_v23 = vld [vmem:[%s1298_s3 + $0x20] sm:$0xff] }
  0x77   :  { %298 = vmatmul.mubr.f32.gmra.mrb[26].mxu0 %v69_v24 }
  0x78   :  { %463 = vmatmul.mubr.f32.gmra.mrb[26].mxu1 %v71_v25  ;;  %302 = vmatprep.mubr.f32.mxu0 %v74_v26 }
  0x79   :  { %467 = vmatprep.mubr.f32.mxu1 %v76_v27 }
  0x7b   :  { %303 = vmatmul.mubr.f32.gmra.mrb[28].mxu0 %v73_v28 }
  0x7c   :  { %468 = vmatmul.mubr.f32.gmra.mrb[28].mxu1 %v75_v29  ;;  %307 = vmatprep.mubr.f32.mxu0 %v78_v30 }
  0x7d   :  { %472 = vmatprep.mubr.f32.mxu1 %v80_v31  ;;  %v503_v31 = vld [vmem:[%s1298_s3 + $0x28] sm:$0xff] }
  0x7f   :  { %308 = vmatmul.mubr.f32.gmra.mrb[30].mxu0 %v77_v32 }
  0x80   :  { %473 = vmatmul.mubr.f32.gmra.mrb[30].mxu1 %v79_v33  ;;  %312 = vmatprep.mubr.f32.mxu0 %v82_v34 }
  0x81   :  { %477 = vmatprep.mubr.f32.mxu1 %v84_v35 }
  0x83   :  { %313 = vmatmul.mubr.f32.gmra.mrb[32].mxu0 %v81_v36 }
  0x84   :  { %478 = vmatmul.mubr.f32.gmra.mrb[32].mxu1 %v83_v37  ;;  %317 = vmatprep.mubr.f32.mxu0 %v86_v38 }
  0x85   :  { %482 = vmatprep.mubr.f32.mxu1 %v88_v39  ;;  %v504_v39 = vld [vmem:[%s1298_s3 + $0x30] sm:$0xff] }
  0x87   :  { %318 = vmatmul.mubr.f32.gmra.mrb[34].mxu0 %v85_v0 }
  0x88   :  { %483 = vmatmul.mubr.f32.gmra.mrb[34].mxu1 %v87_v40  ;;  %322 = vmatprep.mubr.f32.mxu0 %v90_v41 }
  0x89   :  { %487 = vmatprep.mubr.f32.mxu1 %v92_v42 }
  0x8b   :  { %323 = vmatmul.mubr.f32.gmra.mrb[36].mxu0 %v89_v43 }
  0x8c   :  { %488 = vmatmul.mubr.f32.gmra.mrb[36].mxu1 %v91_v44  ;;  %327 = vmatprep.mubr.f32.mxu0 %v94_v45 }
  0x8d   :  { %492 = vmatprep.mubr.f32.mxu1 %v96_v46  ;;  %v505_v46 = vld [vmem:[%s1298_s3 + $0x38] sm:$0xff] }
  0x8f   :  { %328 = vmatmul.mubr.f32.gmra.mrb[38].mxu0 %v93_v47 }
  0x90   :  { %493 = vmatmul.mubr.f32.gmra.mrb[38].mxu1 %v95_v48 }
 0x116   :  { %v234_v50 = vpop.f32.mrb[0].mxu0 }
 0x117   :  { %v235_v51 = vadd.f32 %v1153_v49, %v234_v50  ;;  %v236_v52 = vpop.f32.mrb[1].mxu0  ;;  %v399_v53 = vpop.f32.mrb[0].mxu1 }
 0x118   :  { %v401_v55 = vpop.f32.mrb[1].mxu1 }
 0x119   :  { %v400_v56 = vadd.f32 %v399_v53, %v235_v51  ;;  %v506_v55 = vld [vmem:[%s1298_s3 + $0x40] sm:$0xff] }
 0x11a   :  { %v239_v57 = vpop.f32.mrb[2].mxu0 }
 0x11b   :  { %v518_v58 = vadd.f32 %v498_v54, %v400_v56  ;;  %v240_v59 = vadd.f32 %v1153_v49, %v239_v57  ;;  %v241_v60 = vpop.f32.mrb[3].mxu0  ;;  %v404_v61 = vpop.f32.mrb[2].mxu1 }
 0x11c   :  { %v406_v63 = vpop.f32.mrb[3].mxu1 }
 0x11d   :  { %538 = vst [vmem:[%s1299_s4] sm:$0xff] %v518_v58  ;;  %v405_v1 = vadd.f32 %v404_v61, %v240_v59  ;;  %v507_v63 = vld [vmem:[%s1298_s3 + $0x48] sm:$0xff] }
 0x11e   :  { %v244_v2 = vpop.f32.mrb[4].mxu0 }
 0x11f   :  { %v519_v3 = vadd.f32 %v499_v62, %v405_v1  ;;  %v245_v4 = vadd.f32 %v1153_v49, %v244_v2  ;;  %v246_v5 = vpop.f32.mrb[5].mxu0  ;;  %v409_v6 = vpop.f32.mrb[4].mxu1 }
 0x120   :  { %v411_v8 = vpop.f32.mrb[5].mxu1 }
 0x121   :  { %539 = vst [vmem:[%s1299_s4 + $0x8] sm:$0xff] %v519_v3  ;;  %v410_v9 = vadd.f32 %v409_v6, %v245_v4  ;;  %v508_v8 = vld [vmem:[%s1298_s3 + $0x50] sm:$0xff] }
 0x122   :  { %v249_v10 = vpop.f32.mrb[6].mxu0 }
 0x123   :  { %v520_v11 = vadd.f32 %v500_v7, %v410_v9  ;;  %v250_v12 = vadd.f32 %v1153_v49, %v249_v10  ;;  %v251_v13 = vpop.f32.mrb[7].mxu0  ;;  %v414_v14 = vpop.f32.mrb[6].mxu1 }
 0x124   :  { %v416_v16 = vpop.f32.mrb[7].mxu1 }
 0x125   :  { %540 = vst [vmem:[%s1299_s4 + $0x10] sm:$0xff] %v520_v11  ;;  %v415_v17 = vadd.f32 %v414_v14, %v250_v12  ;;  %v509_v16 = vld [vmem:[%s1298_s3 + $0x58] sm:$0xff] }
 0x126   :  { %v254_v18 = vpop.f32.mrb[8].mxu0 }
 0x127   :  { %v521_v19 = vadd.f32 %v501_v15, %v415_v17  ;;  %v255_v20 = vadd.f32 %v1153_v49, %v254_v18  ;;  %v256_v21 = vpop.f32.mrb[9].mxu0  ;;  %v419_v22 = vpop.f32.mrb[8].mxu1 }
 0x128   :  { %v421_v24 = vpop.f32.mrb[9].mxu1 }
 0x129   :  { %541 = vst [vmem:[%s1299_s4 + $0x18] sm:$0xff] %v521_v19  ;;  %v420_v25 = vadd.f32 %v419_v22, %v255_v20  ;;  %v510_v24 = vld [vmem:[%s1298_s3 + $0x60] sm:$0xff] }
 0x12a   :  { %v259_v26 = vpop.f32.mrb[10].mxu0 }
 0x12b   :  { %v522_v27 = vadd.f32 %v502_v23, %v420_v25  ;;  %v260_v28 = vadd.f32 %v1153_v49, %v259_v26  ;;  %v261_v29 = vpop.f32.mrb[11].mxu0  ;;  %v424_v30 = vpop.f32.mrb[10].mxu1 }
 0x12c   :  { %v426_v32 = vpop.f32.mrb[11].mxu1 }
 0x12d   :  { %542 = vst [vmem:[%s1299_s4 + $0x20] sm:$0xff] %v522_v27  ;;  %v425_v33 = vadd.f32 %v424_v30, %v260_v28  ;;  %v511_v32 = vld [vmem:[%s1298_s3 + $0x68] sm:$0xff] }
 0x12e   :  { %v264_v34 = vpop.f32.mrb[12].mxu0 }
 0x12f   :  { %v523_v35 = vadd.f32 %v503_v31, %v425_v33  ;;  %v265_v36 = vadd.f32 %v1153_v49, %v264_v34  ;;  %v266_v37 = vpop.f32.mrb[13].mxu0  ;;  %v429_v38 = vpop.f32.mrb[12].mxu1 }
 0x130   :  { %v431_v0 = vpop.f32.mrb[13].mxu1 }
 0x131   :  { %543 = vst [vmem:[%s1299_s4 + $0x28] sm:$0xff] %v523_v35  ;;  %v430_v40 = vadd.f32 %v429_v38, %v265_v36  ;;  %v512_v0 = vld [vmem:[%s1298_s3 + $0x70] sm:$0xff] }
 0x132   :  { %v269_v41 = vpop.f32.mrb[14].mxu0 }
 0x133   :  { %v524_v42 = vadd.f32 %v504_v39, %v430_v40  ;;  %v270_v43 = vadd.f32 %v1153_v49, %v269_v41  ;;  %v271_v44 = vpop.f32.mrb[15].mxu0  ;;  %v434_v45 = vpop.f32.mrb[14].mxu1 }
 0x134   :  { %v436_v47 = vpop.f32.mrb[15].mxu1 }
 0x135   :  { %544 = vst [vmem:[%s1299_s4 + $0x30] sm:$0xff] %v524_v42  ;;  %v435_v48 = vadd.f32 %v434_v45, %v270_v43  ;;  %v513_v47 = vld [vmem:[%s1298_s3 + $0x78] sm:$0xff] }
 0x136   :  { %v274_v50 = vpop.f32.mrb[16].mxu0 }
 0x137   :  { %v525_v51 = vadd.f32 %v505_v46, %v435_v48  ;;  %v275_v52 = vadd.f32 %v1153_v49, %v274_v50  ;;  %v276_v53 = vpop.f32.mrb[17].mxu0  ;;  %v439_v54 = vpop.f32.mrb[16].mxu1 }
 0x138   :  { %v441_v56 = vpop.f32.mrb[17].mxu1 }
 0x139   :  { %545 = vst [vmem:[%s1299_s4 + $0x38] sm:$0xff] %v525_v51  ;;  %v440_v57 = vadd.f32 %v439_v54, %v275_v52  ;;  %v514_v56 = vld [vmem:[%s1298_s3 + $0x80] sm:$0xff] }
 0x13a   :  { %v279_v58 = vpop.f32.mrb[18].mxu0 }
 0x13b   :  { %v526_v59 = vadd.f32 %v506_v55, %v440_v57  ;;  %v280_v60 = vadd.f32 %v1153_v49, %v279_v58  ;;  %v281_v61 = vpop.f32.mrb[19].mxu0  ;;  %v444_v62 = vpop.f32.mrb[18].mxu1 }
 0x13c   :  { %v446_v1 = vpop.f32.mrb[19].mxu1 }
 0x13d   :  { %546 = vst [vmem:[%s1299_s4 + $0x40] sm:$0xff] %v526_v59  ;;  %v445_v2 = vadd.f32 %v444_v62, %v280_v60  ;;  %v515_v1 = vld [vmem:[%s1298_s3 + $0x88] sm:$0xff] }
 0x13e   :  { %v284_v3 = vpop.f32.mrb[20].mxu0 }
 0x13f   :  { %v527_v4 = vadd.f32 %v507_v63, %v445_v2  ;;  %v285_v5 = vadd.f32 %v1153_v49, %v284_v3  ;;  %v286_v6 = vpop.f32.mrb[21].mxu0  ;;  %v449_v7 = vpop.f32.mrb[20].mxu1 }
 0x140   :  { %v451_v9 = vpop.f32.mrb[21].mxu1 }
 0x141   :  { %547 = vst [vmem:[%s1299_s4 + $0x48] sm:$0xff] %v527_v4  ;;  %v450_v10 = vadd.f32 %v449_v7, %v285_v5  ;;  %v516_v9 = vld [vmem:[%s1298_s3 + $0x90] sm:$0xff] }
 0x142   :  { %v289_v11 = vpop.f32.mrb[22].mxu0 }
 0x143   :  { %v528_v12 = vadd.f32 %v508_v8, %v450_v10  ;;  %v290_v13 = vadd.f32 %v1153_v49, %v289_v11  ;;  %v291_v14 = vpop.f32.mrb[23].mxu0  ;;  %v454_v15 = vpop.f32.mrb[22].mxu1 }
 0x144   :  { %v456_v17 = vpop.f32.mrb[23].mxu1 }
 0x145   :  { %548 = vst [vmem:[%s1299_s4 + $0x50] sm:$0xff] %v528_v12  ;;  %v455_v18 = vadd.f32 %v454_v15, %v290_v13  ;;  %v517_v17 = vld [vmem:[%s1298_s3 + $0x98] sm:$0xff] }
 0x146   :  { %v294_v19 = vpop.f32.mrb[24].mxu0 }
 0x147   :  { %v529_v20 = vadd.f32 %v509_v16, %v455_v18  ;;  %v295_v21 = vadd.f32 %v1153_v49, %v294_v19  ;;  %v296_v22 = vpop.f32.mrb[25].mxu0  ;;  %v459_v23 = vpop.f32.mrb[24].mxu1 }
 0x148   :  { %v461_v25 = vpop.f32.mrb[25].mxu1 }
 0x149   :  { %549 = vst [vmem:[%s1299_s4 + $0x58] sm:$0xff] %v529_v20  ;;  %v460_v26 = vadd.f32 %v459_v23, %v295_v21 }
 0x14a   :  { %v299_v27 = vpop.f32.mrb[26].mxu0 }
 0x14b   :  { %v530_v28 = vadd.f32 %v510_v24, %v460_v26  ;;  %v300_v29 = vadd.f32 %v1153_v49, %v299_v27  ;;  %v301_v30 = vpop.f32.mrb[27].mxu0  ;;  %v464_v31 = vpop.f32.mrb[26].mxu1 }
 0x14c   :  { %v466_v33 = vpop.f32.mrb[27].mxu1 }
 0x14d   :  { %550 = vst [vmem:[%s1299_s4 + $0x60] sm:$0xff] %v530_v28  ;;  %v465_v34 = vadd.f32 %v464_v31, %v300_v29 }
 0x14e   :  { %v304_v35 = vpop.f32.mrb[28].mxu0 }
 0x14f   :  { %v531_v36 = vadd.f32 %v511_v32, %v465_v34  ;;  %v305_v37 = vadd.f32 %v1153_v49, %v304_v35  ;;  %v306_v38 = vpop.f32.mrb[29].mxu0  ;;  %v469_v39 = vpop.f32.mrb[28].mxu1 }
 0x150   :  { %v471_v40 = vpop.f32.mrb[29].mxu1 }
 0x151   :  { %551 = vst [vmem:[%s1299_s4 + $0x68] sm:$0xff] %v531_v36  ;;  %v470_v41 = vadd.f32 %v469_v39, %v305_v37 }
 0x152   :  { %v309_v42 = vpop.f32.mrb[30].mxu0 }
 0x153   :  { %v532_v43 = vadd.f32 %v512_v0, %v470_v41  ;;  %v310_v44 = vadd.f32 %v1153_v49, %v309_v42  ;;  %v311_v45 = vpop.f32.mrb[31].mxu0  ;;  %v474_v46 = vpop.f32.mrb[30].mxu1 }
 0x154   :  { %v476_v48 = vpop.f32.mrb[31].mxu1 }
 0x155   :  { %552 = vst [vmem:[%s1299_s4 + $0x70] sm:$0xff] %v532_v43  ;;  %v475_v50 = vadd.f32 %v474_v46, %v310_v44 }
 0x156   :  { %v314_v51 = vpop.f32.mrb[32].mxu0 }
 0x157   :  { %v533_v52 = vadd.f32 %v513_v47, %v475_v50  ;;  %v315_v53 = vadd.f32 %v1153_v49, %v314_v51  ;;  %v316_v54 = vpop.f32.mrb[33].mxu0  ;;  %v479_v55 = vpop.f32.mrb[32].mxu1 }
 0x158   :  { %v481_v57 = vpop.f32.mrb[33].mxu1 }
 0x159   :  { %553 = vst [vmem:[%s1299_s4 + $0x78] sm:$0xff] %v533_v52  ;;  %v480_v58 = vadd.f32 %v479_v55, %v315_v53 }
 0x15a   :  { %v319_v59 = vpop.f32.mrb[34].mxu0 }
 0x15b   :  { %v534_v60 = vadd.f32 %v514_v56, %v480_v58  ;;  %v320_v61 = vadd.f32 %v1153_v49, %v319_v59  ;;  %v321_v62 = vpop.f32.mrb[35].mxu0  ;;  %v484_v63 = vpop.f32.mrb[34].mxu1 }
 0x15c   :  { %v486_v2 = vpop.f32.mrb[35].mxu1 }
 0x15d   :  { %554 = vst [vmem:[%s1299_s4 + $0x80] sm:$0xff] %v534_v60  ;;  %v485_v3 = vadd.f32 %v484_v63, %v320_v61 }
 0x15e   :  { %v324_v4 = vpop.f32.mrb[36].mxu0 }
 0x15f   :  { %v535_v5 = vadd.f32 %v515_v1, %v485_v3  ;;  %v325_v6 = vadd.f32 %v1153_v49, %v324_v4  ;;  %v326_v7 = vpop.f32.mrb[37].mxu0  ;;  %v489_v8 = vpop.f32.mrb[36].mxu1 }
 0x160   :  { %v491_v10 = vpop.f32.mrb[37].mxu1 }
 0x161   :  { %555 = vst [vmem:[%s1299_s4 + $0x88] sm:$0xff] %v535_v5  ;;  %v490_v11 = vadd.f32 %v489_v8, %v325_v6 }
 0x162   :  { %v329_v12 = vpop.f32.mrb[38].mxu0 }
 0x163   :  { %v536_v13 = vadd.f32 %v516_v9, %v490_v11  ;;  %v330_v14 = vadd.f32 %v1153_v49, %v329_v12  ;;  %v331_v15 = vpop.f32.mrb[39].mxu0  ;;  %v494_v16 = vpop.f32.mrb[38].mxu1 }
 0x164   :  { %v496_v18 = vpop.f32.mrb[39].mxu1 }
 0x165   :  { %556 = vst [vmem:[%s1299_s4 + $0x90] sm:$0xff] %v536_v13  ;;  %v495_v19 = vadd.f32 %v494_v16, %v330_v14 }
 0x167   :  { %v537_v20 = vadd.f32 %v517_v17, %v495_v19 }
 0x169   :  { %557 = vst [vmem:[%s1299_s4 + $0x98] sm:$0xff] %v537_v20 }

// kernel: base_backbone_forward.25
= control target key start
LH: loop header
LB: loop body
LE: loop exit
PB: predicated region body
PF: predicated region fallthrough
CT: control target
= control target key end

     0   :  { %s708_s0 = inlined_call_operand.vmem [shape: f32[160,128], index: 0, kind: input, shape index: {}]   ;;  %s709_s1 = inlined_call_operand.vmem [shape: f32[1,128], index: 1, kind: input, shape index: {}]   ;;  %s710_s2 = inlined_call_operand.vmem [shape: f32[1,128], index: 2, kind: input, shape index: {}]   ;;  %s711_s3 = inlined_call_operand.hbm [shape: f32[160,128], index: 3, kind: output, shape index: {}]  }
   0x1   :  { %v15_v0 = vld [vmem:[%s708_s0] sm:$0xff]  ;;  %v17_v1 = vld [vmem:[%s708_s0 + $0x10] sm:$0xff]  ;;  %v16_v2 = vld [vmem:[%s708_s0 + $0x8] sm:$0xff] }
   0x2   :  { %35 = vadd.xlane.f32.xlu0 %v15_v0  ;;  %39 = vadd.xlane.f32.xlu1 %v17_v1  ;;  %v18_v3 = vld [vmem:[%s708_s0 + $0x18] sm:$0xff]  ;;  %v19_v4 = vld [vmem:[%s708_s0 + $0x20] sm:$0xff]  ;;  %v20_v5 = vld [vmem:[%s708_s0 + $0x28] sm:$0xff] }
   0x6   :  { %37 = vadd.xlane.f32.xlu0 %v16_v2  ;;  %41 = vadd.xlane.f32.xlu1 %v18_v3 }
   0x7   :  { %8 = vsyncpa [#allocation3], 0  ;;  %v21_v6 = vld [vmem:[%s708_s0 + $0x30] sm:$0xff]  ;;  %v22_v7 = vld [vmem:[%s708_s0 + $0x38] sm:$0xff] }
   0x8   :  { %v465_v8 = vld [vmem:[%s708_s0 + $0x40] sm:$0xff]  ;;  %v470_v9 = vld [vmem:[%s708_s0 + $0x48] sm:$0xff]  ;;  %v477_v10 = vld [vmem:[%s708_s0 + $0x50] sm:$0xff] }
   0x9   :  { %v482_v11 = vld [vmem:[%s708_s0 + $0x58] sm:$0xff]  ;;  %v489_v12 = vld [vmem:[%s708_s0 + $0x60] sm:$0xff]  ;;  %v494_v13 = vld [vmem:[%s708_s0 + $0x68] sm:$0xff] }
   0xa   :  { %43 = vadd.xlane.f32.xlu0 %v19_v4  ;;  %45 = vadd.xlane.f32.xlu1 %v20_v5  ;;  %v501_v14 = vld [vmem:[%s708_s0 + $0x70] sm:$0xff]  ;;  %v506_v15 = vld [vmem:[%s708_s0 + $0x78] sm:$0xff]  ;;  %v513_v16 = vld [vmem:[%s708_s0 + $0x80] sm:$0xff] }
   0xb   :  { %v518_v17 = vld [vmem:[%s708_s0 + $0x88] sm:$0xff]  ;;  %v525_v18 = vld [vmem:[%s708_s0 + $0x90] sm:$0xff]  ;;  %v530_v19 = vld [vmem:[%s708_s0 + $0x98] sm:$0xff] }
   0xe   :  { %47 = vadd.xlane.f32.xlu0 %v21_v6  ;;  %49 = vadd.xlane.f32.xlu1 %v22_v7 }
  0x12   :  { %51 = vadd.xlane.f32.xlu0 %v465_v8  ;;  %53 = vadd.xlane.f32.xlu1 %v470_v9 }
  0x16   :  { %55 = vadd.xlane.f32.xlu0 %v477_v10  ;;  %57 = vadd.xlane.f32.xlu1 %v482_v11 }
  0x1a   :  { %59 = vadd.xlane.f32.xlu0 %v489_v12  ;;  %61 = vadd.xlane.f32.xlu1 %v494_v13 }
  0x1e   :  { %63 = vadd.xlane.f32.xlu0 %v501_v14  ;;  %65 = vadd.xlane.f32.xlu1 %v506_v15 }
  0x22   :  { %67 = vadd.xlane.f32.xlu0 %v513_v16  ;;  %69 = vadd.xlane.f32.xlu1 %v518_v17 }
  0x26   :  { %71 = vadd.xlane.f32.xlu0 %v525_v18  ;;  %73 = vadd.xlane.f32.xlu1 %v530_v19 }
  0x8f   :  { %v36_v20 = vpop.xlane.xlu0 %35  ;;  %v40_v21 = vpop.xlane.xlu1 %39 }
  0x90   :  { %v76_v22 = vmul.f32 0.0078125, %v36_v20  ;;  %v78_v23 = vmul.f32 0.0078125, %v40_v21 }
  0x92   :  { %v534_v24 = vsub.f32 %v15_v0, %v76_v22  ;;  %v536_v25 = vsub.f32 %v17_v1, %v78_v23 }
  0x93   :  { %v38_v26 = vpop.xlane.xlu0 %37  ;;  %v42_v27 = vpop.xlane.xlu1 %41 }
  0x94   :  { %v77_v28 = vmul.f32 0.0078125, %v38_v26  ;;  %v116_v29 = vmul.f32 %v534_v24, %v534_v24  ;;  %v79_v30 = vmul.f32 0.0078125, %v42_v27  ;;  %v118_v33 = vmul.f32 %v536_v25, %v536_v25 }
  0x96   :  { %v540_v31 = vsub.f32 %v16_v2, %v77_v28  ;;  %136 = vadd.xlane.f32.xlu0 %v116_v29  ;;  %v542_v32 = vsub.f32 %v18_v3, %v79_v30 }
  0x97   :  { %v44_v34 = vpop.xlane.xlu0 %43  ;;  %v46_v35 = vpop.xlane.xlu1 %45 }
  0x98   :  { %v80_v36 = vmul.f32 0.0078125, %v44_v34  ;;  %v117_v37 = vmul.f32 %v540_v31, %v540_v31  ;;  %v81_v38 = vmul.f32 0.0078125, %v46_v35  ;;  %v119_v41 = vmul.f32 %v542_v32, %v542_v32 }
  0x9a   :  { %v548_v39 = vsub.f32 %v19_v4, %v80_v36  ;;  %140 = vadd.xlane.f32.xlu0 %v118_v33  ;;  %138 = vadd.xlane.f32.xlu1 %v117_v37  ;;  %v550_v40 = vsub.f32 %v20_v5, %v81_v38 }
  0x9b   :  { %v48_v42 = vpop.xlane.xlu0 %47  ;;  %v50_v43 = vpop.xlane.xlu1 %49 }
  0x9c   :  { %v82_v44 = vmul.f32 0.0078125, %v48_v42  ;;  %v120_v45 = vmul.f32 %v548_v39, %v548_v39  ;;  %v83_v46 = vmul.f32 0.0078125, %v50_v43  ;;  %v121_v49 = vmul.f32 %v550_v40, %v550_v40 }
  0x9e   :  { %v556_v47 = vsub.f32 %v21_v6, %v82_v44  ;;  %142 = vadd.xlane.f32.xlu1 %v119_v41  ;;  %144 = vadd.xlane.f32.xlu0 %v120_v45  ;;  %v558_v48 = vsub.f32 %v22_v7, %v83_v46 }
  0x9f   :  { %v52_v50 = vpop.xlane.xlu0 %51  ;;  %v54_v51 = vpop.xlane.xlu1 %53 }
  0xa0   :  { %v84_v52 = vmul.f32 0.0078125, %v52_v50  ;;  %v122_v53 = vmul.f32 %v556_v47, %v556_v47  ;;  %v85_v54 = vmul.f32 0.0078125, %v54_v51  ;;  %v123_v57 = vmul.f32 %v558_v48, %v558_v48 }
  0xa2   :  { %v565_v55 = vsub.f32 %v465_v8, %v84_v52  ;;  %146 = vadd.xlane.f32.xlu1 %v121_v49  ;;  %148 = vadd.xlane.f32.xlu0 %v122_v53  ;;  %v568_v56 = vsub.f32 %v470_v9, %v85_v54 }
  0xa3   :  { %v56_v58 = vpop.xlane.xlu0 %55  ;;  %v58_v59 = vpop.xlane.xlu1 %57 }
  0xa4   :  { %v86_v60 = vmul.f32 0.0078125, %v56_v58  ;;  %v124_v61 = vmul.f32 %v565_v55, %v565_v55  ;;  %v87_v62 = vmul.f32 0.0078125, %v58_v59  ;;  %v125_v1 = vmul.f32 %v568_v56, %v568_v56 }
  0xa6   :  { %v575_v63 = vsub.f32 %v477_v10, %v86_v60  ;;  %150 = vadd.xlane.f32.xlu1 %v123_v57  ;;  %152 = vadd.xlane.f32.xlu0 %v124_v61  ;;  %v578_v0 = vsub.f32 %v482_v11, %v87_v62 }
  0xa7   :  { %v60_v2 = vpop.xlane.xlu0 %59  ;;  %v62_v3 = vpop.xlane.xlu1 %61 }
  0xa8   :  { %v88_v4 = vmul.f32 0.0078125, %v60_v2  ;;  %v126_v5 = vmul.f32 %v575_v63, %v575_v63  ;;  %v89_v6 = vmul.f32 0.0078125, %v62_v3  ;;  %v127_v9 = vmul.f32 %v578_v0, %v578_v0 }
  0xaa   :  { %v585_v7 = vsub.f32 %v489_v12, %v88_v4  ;;  %154 = vadd.xlane.f32.xlu1 %v125_v1  ;;  %156 = vadd.xlane.f32.xlu0 %v126_v5  ;;  %v588_v8 = vsub.f32 %v494_v13, %v89_v6  ;;  %v629_v4 = vld [vmem:[%s709_s1] ss:$0 sm:$0xff]  ;;  %s415_s1 = smov [#allocation2]  }
  0xab   :  { %v64_v10 = vpop.xlane.xlu0 %63  ;;  %v66_v11 = vpop.xlane.xlu1 %65 }
  0xac   :  { %v90_v20 = vmul.f32 0.0078125, %v64_v10  ;;  %v128_v21 = vmul.f32 %v585_v7, %v585_v7  ;;  %v91_v22 = vmul.f32 0.0078125, %v66_v11  ;;  %v129_v13 = vmul.f32 %v588_v8, %v588_v8 }
  0xae   :  { %v595_v23 = vsub.f32 %v501_v14, %v90_v20  ;;  %158 = vadd.xlane.f32.xlu1 %v127_v9  ;;  %160 = vadd.xlane.f32.xlu0 %v128_v21  ;;  %v598_v12 = vsub.f32 %v506_v15, %v91_v22  ;;  %v635_v20 = vld [vmem:[%s710_s2] ss:$0 sm:$0xff]  ;;  %s335_s2 = sshll.u32 %s415_s1, 4  ;;  %s336_s2 = int_to_ptr.vmem [resolvable:$true] %s335_s2 }
  0xaf   :  { %v68_v26 = vpop.xlane.xlu0 %67  ;;  %v70_v27 = vpop.xlane.xlu1 %69  ;;  %s391_s28 = scalar_lea.vmem %s336_s2, 2560  ;;  %p396_p1 = scmp.lt.s32.totalorder %s336_s2, %s336_s2 }
  0xb0   :  { %v92_v28 = vmul.f32 0.0078125, %v68_v26  ;;  %v130_v29 = vmul.f32 %v595_v23, %v595_v23  ;;  %v93_v30 = vmul.f32 0.0078125, %v70_v27  ;;  %v131_v15 = vmul.f32 %v598_v12, %v598_v12  ;;  %p392_p0 = scmp.ne.s32.totalorder %s336_s2, %s391_s28  ;;  %p397_p2 = scmp.lt.s32.totalorder %s391_s28, %s391_s28 }
  0xb2   :  { %v605_v33 = vsub.f32 %v513_v16, %v92_v28  ;;  %162 = vadd.xlane.f32.xlu1 %v129_v13  ;;  %164 = vadd.xlane.f32.xlu0 %v130_v29  ;;  %v608_v14 = vsub.f32 %v518_v17, %v93_v30  ;;  %p398_p3 = por %p397_p2, %p396_p1 }
  0xb3   :  { %v72_v34 = vpop.xlane.xlu0 %71  ;;  %v74_v35 = vpop.xlane.xlu1 %73 }
  0xb4   :  { %v94_v36 = vmul.f32 0.0078125, %v72_v34  ;;  %v132_v37 = vmul.f32 %v605_v33, %v605_v33  ;;  %v95_v38 = vmul.f32 0.0078125, %v74_v35  ;;  %v133_v17 = vmul.f32 %v608_v14, %v608_v14  ;;  %p399_p4 = pnand %p398_p3, %p392_p0 }
  0xb6   :  { %v615_v41 = vsub.f32 %v525_v18, %v94_v36  ;;  %166 = vadd.xlane.f32.xlu1 %v131_v15  ;;  %168 = vadd.xlane.f32.xlu0 %v132_v37  ;;  %v618_v16 = vsub.f32 %v530_v19, %v95_v38 }
  0xb8   :  { %v134_v42 = vmul.f32 %v615_v41, %v615_v41  ;;  %v135_v43 = vmul.f32 %v618_v16, %v618_v16 }
  0xba   :  { %170 = vadd.xlane.f32.xlu1 %v133_v17  ;;  %172 = vadd.xlane.f32.xlu0 %v134_v42 }
  0xbe   :  { %174 = vadd.xlane.f32.xlu1 %v135_v43 }
 0x123   :  { %v137_v44 = vpop.xlane.xlu0 %136 }
 0x124   :  { %v176_v18 = vmul.f32 0.0078125, %v137_v44 }
 0x126   :  { %v196_v45 = vadd.f32 1e-06, %v176_v18 }
 0x127   :  { %v139_v46 = vpop.xlane.xlu1 %138  ;;  %v141_v49 = vpop.xlane.xlu0 %140 }
 0x128   :  { %351 = vrsqrt.f32 %v196_v45  ;;  %v177_v19 = vmul.f32 0.0078125, %v139_v46  ;;  %v178_v50 = vmul.f32 0.0078125, %v141_v49 }
 0x12a   :  { %v197_v51 = vadd.f32 1e-06, %v177_v19  ;;  %v198_v52 = vadd.f32 1e-06, %v178_v50 }
 0x12b   :  { %v143_v53 = vpop.xlane.xlu1 %142  ;;  %v145_v54 = vpop.xlane.xlu0 %144 }
 0x12c   :  { %353 = vrsqrt.f32 %v197_v51  ;;  %v179_v57 = vmul.f32 0.0078125, %v143_v53  ;;  %v180_v58 = vmul.f32 0.0078125, %v145_v54 }
 0x12d   :  { %355 = vrsqrt.f32 %v198_v52 }
 0x12e   :  { %v199_v59 = vadd.f32 1e-06, %v179_v57  ;;  %v200_v60 = vadd.f32 1e-06, %v180_v58 }
 0x12f   :  { %v147_v61 = vpop.xlane.xlu1 %146  ;;  %v149_v62 = vpop.xlane.xlu0 %148 }
 0x130   :  { %357 = vrsqrt.f32 %v199_v59  ;;  %v181_v1 = vmul.f32 0.0078125, %v147_v61  ;;  %v182_v2 = vmul.f32 0.0078125, %v149_v62 }
 0x131   :  { %359 = vrsqrt.f32 %v200_v60 }
 0x132   :  { %v352_v3 = vpop.eup %351  ;;  %v201_v5 = vadd.f32 1e-06, %v181_v1  ;;  %v202_v6 = vadd.f32 1e-06, %v182_v2 }
 0x133   :  { %v236_v9 = vmul.f32 %v352_v3, %v534_v24  ;;  %v151_v10 = vpop.xlane.xlu1 %150  ;;  %v153_v11 = vpop.xlane.xlu0 %152 }
 0x134   :  { %361 = vrsqrt.f32 %v201_v5  ;;  %v183_v21 = vmul.f32 0.0078125, %v151_v10  ;;  %v184_v22 = vmul.f32 0.0078125, %v153_v11 }
 0x135   :  { %v263_v13 = vmul.f32 %v629_v4, %v236_v9  ;;  %363 = vrsqrt.f32 %v202_v6 }
 0x136   :  { %v354_v26 = vpop.eup %353  ;;  %v203_v27 = vadd.f32 1e-06, %v183_v21  ;;  %v204_v28 = vadd.f32 1e-06, %v184_v22 }
 0x137   :  { %v356_v29 = vpop.eup %355  ;;  %v290_v30 = vadd.f32 %v635_v20, %v263_v13  ;;  %v237_v24 = vmul.f32 %v354_v26, %v540_v31  ;;  %v155_v15 = vpop.xlane.xlu1 %154 }
 0x138   :  { %v157_v34 = vpop.xlane.xlu0 %156  ;;  %v238_v35 = vmul.f32 %v356_v29, %v536_v25  ;;  %365 = vrsqrt.f32 %v203_v27  ;;  %v185_v36 = vmul.f32 0.0078125, %v155_v15 }
 0x139   :  { %v186_v37 = vmul.f32 0.0078125, %v157_v34  ;;  %310 = vst [vmem:[#allocation2] sm:$0xff] %v290_v30  ;;  %v264_v38 = vmul.f32 %v629_v4, %v237_v24  ;;  %367 = vrsqrt.f32 %v204_v28 }
 0x13a   :  { %v358_v17 = vpop.eup %357  ;;  %v265_v42 = vmul.f32 %v629_v4, %v238_v35  ;;  %v205_v43 = vadd.f32 1e-06, %v185_v36 }
 0x13b   :  { %v206_v44 = vadd.f32 1e-06, %v186_v37  ;;  %v360_v18 = vpop.eup %359  ;;  %v291_v45 = vadd.f32 %v635_v20, %v264_v38  ;;  %v239_v31 = vmul.f32 %v358_v17, %v542_v32  ;;  %v159_v46 = vpop.xlane.xlu1 %158 }
 0x13c   :  { %v161_v49 = vpop.xlane.xlu0 %160  ;;  %v292_v25 = vadd.f32 %v635_v20, %v265_v42  ;;  %v240_v19 = vmul.f32 %v360_v18, %v548_v39  ;;  %369 = vrsqrt.f32 %v205_v43  ;;  %v187_v50 = vmul.f32 0.0078125, %v159_v46 }
 0x13d   :  { %311 = vst [vmem:[#allocation2 + $0x8] sm:$0xff] %v291_v45  ;;  %v266_v51 = vmul.f32 %v629_v4, %v239_v31  ;;  %371 = vrsqrt.f32 %v206_v44  ;;  %v188_v52 = vmul.f32 0.0078125, %v161_v49 }
 0x13e   :  { %v362_v53 = vpop.eup %361  ;;  %312 = vst [vmem:[#allocation2 + $0x10] sm:$0xff] %v292_v25  ;;  %v267_v54 = vmul.f32 %v629_v4, %v240_v19  ;;  %v207_v57 = vadd.f32 1e-06, %v187_v50 }
 0x13f   :  { %v364_v58 = vpop.eup %363  ;;  %v293_v32 = vadd.f32 %v635_v20, %v266_v51  ;;  %v241_v59 = vmul.f32 %v362_v53, %v550_v40  ;;  %v208_v60 = vadd.f32 1e-06, %v188_v52  ;;  %v163_v61 = vpop.xlane.xlu1 %162 }
 0x140   :  { %v165_v39 = vpop.xlane.xlu0 %164  ;;  %v294_v62 = vadd.f32 %v635_v20, %v267_v54  ;;  %v242_v1 = vmul.f32 %v364_v58, %v556_v47  ;;  %373 = vrsqrt.f32 %v207_v57  ;;  %v189_v2 = vmul.f32 0.0078125, %v163_v61 }
 0x141   :  { %313 = vst [vmem:[#allocation2 + $0x18] sm:$0xff] %v293_v32  ;;  %v268_v3 = vmul.f32 %v629_v4, %v241_v59  ;;  %375 = vrsqrt.f32 %v208_v60  ;;  %v190_v5 = vmul.f32 0.0078125, %v165_v39 }
 0x142   :  { %v366_v6 = vpop.eup %365  ;;  %314 = vst [vmem:[#allocation2 + $0x20] sm:$0xff] %v294_v62  ;;  %v269_v9 = vmul.f32 %v629_v4, %v242_v1  ;;  %v209_v10 = vadd.f32 1e-06, %v189_v2 }
 0x143   :  { %v368_v40 = vpop.eup %367  ;;  %v295_v11 = vadd.f32 %v635_v20, %v268_v3  ;;  %v243_v21 = vmul.f32 %v366_v6, %v558_v48  ;;  %v210_v22 = vadd.f32 1e-06, %v190_v5  ;;  %v167_v13 = vpop.xlane.xlu1 %166 }
 0x144   :  { %v169_v47 = vpop.xlane.xlu0 %168  ;;  %v296_v26 = vadd.f32 %v635_v20, %v269_v9  ;;  %v244_v27 = vmul.f32 %v368_v40, %v565_v55  ;;  %377 = vrsqrt.f32 %v209_v10  ;;  %v191_v28 = vmul.f32 0.0078125, %v167_v13 }
 0x145   :  { %315 = vst [vmem:[#allocation2 + $0x28] sm:$0xff] %v295_v11  ;;  %v270_v29 = vmul.f32 %v629_v4, %v243_v21  ;;  %379 = vrsqrt.f32 %v210_v22  ;;  %v192_v30 = vmul.f32 0.0078125, %v169_v47 }
 0x146   :  { %v370_v24 = vpop.eup %369  ;;  %316 = vst [vmem:[#allocation2 + $0x30] sm:$0xff] %v296_v26  ;;  %v271_v15 = vmul.f32 %v629_v4, %v244_v27  ;;  %v211_v34 = vadd.f32 1e-06, %v191_v28 }
 0x147   :  { %v372_v48 = vpop.eup %371  ;;  %v297_v35 = vadd.f32 %v635_v20, %v270_v29  ;;  %v245_v36 = vmul.f32 %v370_v24, %v568_v56  ;;  %v212_v37 = vadd.f32 1e-06, %v192_v30  ;;  %v171_v38 = vpop.xlane.xlu1 %170 }
 0x148   :  { %v173_v55 = vpop.xlane.xlu0 %172  ;;  %v298_v17 = vadd.f32 %v635_v20, %v271_v15  ;;  %v246_v42 = vmul.f32 %v372_v48, %v575_v63  ;;  %381 = vrsqrt.f32 %v211_v34  ;;  %v193_v43 = vmul.f32 0.0078125, %v171_v38 }
 0x149   :  { %317 = vst [vmem:[#allocation2 + $0x38] sm:$0xff] %v297_v35  ;;  %v272_v44 = vmul.f32 %v629_v4, %v245_v36  ;;  %383 = vrsqrt.f32 %v212_v37  ;;  %v194_v18 = vmul.f32 0.0078125, %v173_v55 }
 0x14a   :  { %v374_v45 = vpop.eup %373  ;;  %318 = vst [vmem:[#allocation2 + $0x40] sm:$0xff] %v298_v17  ;;  %v273_v31 = vmul.f32 %v629_v4, %v246_v42  ;;  %v213_v46 = vadd.f32 1e-06, %v193_v43 }
 0x14b   :  { %v376_v56 = vpop.eup %375  ;;  %v299_v49 = vadd.f32 %v635_v20, %v272_v44  ;;  %v247_v25 = vmul.f32 %v374_v45, %v578_v0  ;;  %v214_v19 = vadd.f32 1e-06, %v194_v18  ;;  %v175_v50 = vpop.xlane.xlu1 %174 }
 0x14c   :  { %v300_v63 = vadd.f32 %v635_v20, %v273_v31  ;;  %v248_v51 = vmul.f32 %v376_v56, %v585_v7  ;;  %385 = vrsqrt.f32 %v213_v46  ;;  %v195_v52 = vmul.f32 0.0078125, %v175_v50 }
 0x14d   :  { %319 = vst [vmem:[#allocation2 + $0x48] sm:$0xff] %v299_v49  ;;  %v274_v53 = vmul.f32 %v629_v4, %v247_v25  ;;  %387 = vrsqrt.f32 %v214_v19 }
 0x14e   :  { %v378_v54 = vpop.eup %377  ;;  %320 = vst [vmem:[#allocation2 + $0x50] sm:$0xff] %v300_v63  ;;  %v275_v57 = vmul.f32 %v629_v4, %v248_v51  ;;  %v215_v58 = vadd.f32 1e-06, %v195_v52 }
 0x14f   :  { %v380_v32 = vpop.eup %379  ;;  %v301_v0 = vadd.f32 %v635_v20, %v274_v53  ;;  %v249_v59 = vmul.f32 %v378_v54, %v588_v8 }
 0x150   :  { %v302_v60 = vadd.f32 %v635_v20, %v275_v57  ;;  %v250_v7 = vmul.f32 %v380_v32, %v595_v23  ;;  %389 = vrsqrt.f32 %v215_v58 }
 0x151   :  { %321 = vst [vmem:[#allocation2 + $0x58] sm:$0xff] %v301_v0  ;;  %v276_v61 = vmul.f32 %v629_v4, %v249_v59 }
 0x152   :  { %v382_v39 = vpop.eup %381  ;;  %322 = vst [vmem:[#allocation2 + $0x60] sm:$0xff] %v302_v60  ;;  %v277_v62 = vmul.f32 %v629_v4, %v250_v7 }
 0x153   :  { %v384_v1 = vpop.eup %383  ;;  %v303_v2 = vadd.f32 %v635_v20, %v276_v61  ;;  %v251_v3 = vmul.f32 %v382_v39, %v598_v12 }
 0x154   :  { %v304_v5 = vadd.f32 %v635_v20, %v277_v62  ;;  %v252_v8 = vmul.f32 %v384_v1, %v605_v33 }
 0x155   :  { %323 = vst [vmem:[#allocation2 + $0x68] sm:$0xff] %v303_v2  ;;  %v278_v23 = vmul.f32 %v629_v4, %v251_v3 }
 0x156   :  { %v386_v6 = vpop.eup %385  ;;  %324 = vst [vmem:[#allocation2 + $0x70] sm:$0xff] %v304_v5  ;;  %v279_v9 = vmul.f32 %v629_v4, %v252_v8 }
 0x157   :  { %v388_v10 = vpop.eup %387  ;;  %v305_v40 = vadd.f32 %v635_v20, %v278_v23  ;;  %v253_v11 = vmul.f32 %v386_v6, %v608_v14 }
 0x158   :  { %v306_v21 = vadd.f32 %v635_v20, %v279_v9  ;;  %v254_v12 = vmul.f32 %v388_v10, %v615_v41 }
 0x159   :  { %325 = vst [vmem:[#allocation2 + $0x78] sm:$0xff] %v305_v40  ;;  %v280_v22 = vmul.f32 %v629_v4, %v253_v11 }
 0x15a   :  { %v390_v33 = vpop.eup %389  ;;  %326 = vst [vmem:[#allocation2 + $0x80] sm:$0xff] %v306_v21  ;;  %v281_v13 = vmul.f32 %v629_v4, %v254_v12 }
 0x15b   :  { %v307_v47 = vadd.f32 %v635_v20, %v280_v22  ;;  %v255_v26 = vmul.f32 %v390_v33, %v618_v16 }
 0x15c   :  { %v308_v27 = vadd.f32 %v635_v20, %v281_v13 }
 0x15d   :  { %327 = vst [vmem:[#allocation2 + $0x88] sm:$0xff] %v307_v47  ;;  %v282_v14 = vmul.f32 %v629_v4, %v255_v26 }
 0x15e   :  { %328 = vst [vmem:[#allocation2 + $0x90] sm:$0xff] %v308_v27 }
 0x15f   :  { %v309_v41 = vadd.f32 %v635_v20, %v282_v14 }
 0x161   :  { %329 = vst [vmem:[#allocation2 + $0x98] sm:$0xff] %v309_v41 }
 0x162   :  { %402 = shalt.err (!%p399_p4)
}
 0x163   :  { %s403_s4 = scalar_lea.hbm %s711_s3, 2560 }
 0x164   :  { %p404_p5 = scmp.ne.s32.totalorder %s711_s3, %s403_s4  ;;  %p407_p6 = scmp.lt.u32.totalorder %s403_s4, %s711_s3 }
 0x166   :  { %p409_p7 = pnand %p407_p6, %p404_p5 }
 0x168   :  { %412 = shalt.err (!%p409_p7)
}
 0x169   :  { %s416_s9 = smov 128   ;;  %s417_s10 = smov 8  }
 0x16a   :  { %341 = dma.vmem_to_hbm [thread:$0]  %s336_s2, 2560, %s711_s3, [#allocation3], %s416_s9, %s416_s9, %s417_s10  }
 0x16b   :  { %413 = dma.done.wait [#allocation3], 2560  }
 0x16c   :  { %414 = vsyncadd [#allocation3], 4294964736 }
 0x16d   :  { %345 = vsyncpa [#allocation3], 1 }

// kernel: base_backbone_forward.18
= control target key start
LH: loop header
LB: loop body
LE: loop exit
PB: predicated region body
PF: predicated region fallthrough
CT: control target
= control target key end

     0   :  { %s3487_s0 = inlined_call_operand.vmem [shape: f32[160,128], index: 0, kind: input, shape index: {}]   ;;  %s3488_s3 = inlined_call_operand.vmem [shape: f32[128,512], index: 3, kind: input, shape index: {}]   ;;  %s3489_s1 = inlined_call_operand.vmem [shape: f32[1,128], index: 1, kind: input, shape index: {}]   ;;  %s3490_s2 = inlined_call_operand.vmem [shape: f32[1,128], index: 2, kind: input, shape index: {}]   ;;  %s3491_s4 = inlined_call_operand.vmem [shape: f32[1,512], index: 4, kind: input, shape index: {}]   ;;  %s3492_s5 = inlined_call_operand.vmem [shape: f32[160,512], index: 5, kind: output, shape index: {}]  }
   0x1   :  { %v1876_v0 = vld [vmem:[%s3487_s0] sm:$0xff]  ;;  %v1881_v1 = vld [vmem:[%s3487_s0 + $0x10] sm:$0xff]  ;;  %v1888_v2 = vld [vmem:[%s3487_s0 + $0x8] sm:$0xff] }
   0x2   :  { %40 = vadd.xlane.f32.xlu0 %v1876_v0  ;;  %44 = vadd.xlane.f32.xlu1 %v1881_v1  ;;  %v1893_v3 = vld [vmem:[%s3487_s0 + $0x18] sm:$0xff]  ;;  %v1900_v4 = vld [vmem:[%s3487_s0 + $0x20] sm:$0xff]  ;;  %v1905_v5 = vld [vmem:[%s3487_s0 + $0x28] sm:$0xff] }
   0x3   :  { %v1912_v6 = vld [vmem:[%s3487_s0 + $0x30] sm:$0xff]  ;;  %v1917_v7 = vld [vmem:[%s3487_s0 + $0x38] sm:$0xff]  ;;  %v1924_v8 = vld [vmem:[%s3487_s0 + $0x40] sm:$0xff] }
   0x4   :  { %v1929_v9 = vld [vmem:[%s3487_s0 + $0x48] sm:$0xff]  ;;  %v1936_v10 = vld [vmem:[%s3487_s0 + $0x50] sm:$0xff]  ;;  %v1941_v11 = vld [vmem:[%s3487_s0 + $0x58] sm:$0xff] }
   0x5   :  { %v1948_v12 = vld [vmem:[%s3487_s0 + $0x60] sm:$0xff]  ;;  %v1953_v13 = vld [vmem:[%s3487_s0 + $0x68] sm:$0xff]  ;;  %v1960_v14 = vld [vmem:[%s3487_s0 + $0x70] sm:$0xff] }
   0x6   :  { %42 = vadd.xlane.f32.xlu0 %v1888_v2  ;;  %46 = vadd.xlane.f32.xlu1 %v1893_v3  ;;  %v1965_v15 = vld [vmem:[%s3487_s0 + $0x78] sm:$0xff]  ;;  %v1972_v16 = vld [vmem:[%s3487_s0 + $0x80] sm:$0xff]  ;;  %v1977_v17 = vld [vmem:[%s3487_s0 + $0x88] sm:$0xff] }
   0x7   :  { %v1984_v18 = vld [vmem:[%s3487_s0 + $0x90] sm:$0xff]  ;;  %v1989_v19 = vld [vmem:[%s3487_s0 + $0x98] sm:$0xff]  ;;  %v316_v20 = vld [vmem:[%s3488_s3 + $0x8] sm:$0xff] }
   0x8   :  { %v320_v21 = vld [vmem:[%s3488_s3 + $0x28] sm:$0xff]  ;;  %v318_v22 = vld [vmem:[%s3488_s3 + $0x18] sm:$0xff]  ;;  %v315_v25 = vld [vmem:[%s3488_s3] sm:$0xff] }
   0x9   :  { %v1577_v23 = vpack.c.bf16 %v320_v21, %v316_v20  ;;  %v322_v24 = vld [vmem:[%s3488_s3 + $0x38] sm:$0xff]  ;;  %v319_v26 = vld [vmem:[%s3488_s3 + $0x20] sm:$0xff]  ;;  %v317_v29 = vld [vmem:[%s3488_s3 + $0x10] sm:$0xff] }
   0xa   :  { %48 = vadd.xlane.f32.xlu0 %v1900_v4  ;;  %50 = vadd.xlane.f32.xlu1 %v1905_v5  ;;  %v1609_v27 = vpack.c.bf16 %v322_v24, %v318_v22  ;;  %v1579_v28 = vpack.c.bf16 %v319_v26, %v315_v25  ;;  %v321_v30 = vld [vmem:[%s3488_s3 + $0x30] sm:$0xff]  ;;  %v324_v31 = vld [vmem:[%s3488_s3 + $0x48] sm:$0xff]  ;;  %v326_v34 = vld [vmem:[%s3488_s3 + $0x58] sm:$0xff] }
   0xb   :  { %1578 = vmatprep.subr.bf16.mxu0 %v1577_v23  ;;  %v1611_v32 = vpack.c.bf16 %v321_v30, %v317_v29  ;;  %v328_v33 = vld [vmem:[%s3488_s3 + $0x68] sm:$0xff]  ;;  %v330_v35 = vld [vmem:[%s3488_s3 + $0x78] sm:$0xff]  ;;  %v323_v38 = vld [vmem:[%s3488_s3 + $0x40] sm:$0xff] }
   0xc   :  { %1610 = vmatprep.subr.bf16.mxu1 %v1609_v27  ;;  %1580 = vmatpush1.bf16.msra.mxu0 %v1579_v28  ;;  %v1581_v36 = vpack.c.bf16 %v328_v33, %v324_v31  ;;  %v1613_v37 = vpack.c.bf16 %v330_v35, %v326_v34  ;;  %v327_v39 = vld [vmem:[%s3488_s3 + $0x60] sm:$0xff]  ;;  %v325_v40 = vld [vmem:[%s3488_s3 + $0x50] sm:$0xff]  ;;  %v332_v43 = vld [vmem:[%s3488_s3 + $0x88] sm:$0xff] }
   0xd   :  { %1612 = vmatpush1.bf16.msra.mxu1 %v1611_v32  ;;  %v1583_v41 = vpack.c.bf16 %v327_v39, %v323_v38  ;;  %v329_v42 = vld [vmem:[%s3488_s3 + $0x70] sm:$0xff]  ;;  %v336_v44 = vld [vmem:[%s3488_s3 + $0xa8] sm:$0xff]  ;;  %v334_v47 = vld [vmem:[%s3488_s3 + $0x98] sm:$0xff] }
   0xe   :  { %52 = vadd.xlane.f32.xlu0 %v1912_v6  ;;  %54 = vadd.xlane.f32.xlu1 %v1917_v7  ;;  %v1615_v45 = vpack.c.bf16 %v329_v42, %v325_v40  ;;  %v1585_v46 = vpack.c.bf16 %v336_v44, %v332_v43  ;;  %v338_v48 = vld [vmem:[%s3488_s3 + $0xb8] sm:$0xff]  ;;  %v331_v49 = vld [vmem:[%s3488_s3 + $0x80] sm:$0xff]  ;;  %v333_v52 = vld [vmem:[%s3488_s3 + $0x90] sm:$0xff] }
   0xf   :  { %1582 = vmatprep.subr.bf16.mxu0 %v1581_v36  ;;  %1614 = vmatprep.subr.bf16.mxu1 %v1613_v37  ;;  %v1617_v50 = vpack.c.bf16 %v338_v48, %v334_v47  ;;  %v335_v51 = vld [vmem:[%s3488_s3 + $0xa0] sm:$0xff]  ;;  %v337_v53 = vld [vmem:[%s3488_s3 + $0xb0] sm:$0xff]  ;;  %v340_v42 = vld [vmem:[%s3488_s3 + $0xc8] sm:$0xff] }
  0x10   :  { %1584 = vmatpush1.bf16.msra.mxu0 %v1583_v41  ;;  %v1587_v54 = vpack.c.bf16 %v335_v51, %v331_v49  ;;  %v1619_v55 = vpack.c.bf16 %v337_v53, %v333_v52  ;;  %v344_v43 = vld [vmem:[%s3488_s3 + $0xe8] sm:$0xff]  ;;  %v339_v47 = vld [vmem:[%s3488_s3 + $0xc0] sm:$0xff]  ;;  %v341_v52 = vld [vmem:[%s3488_s3 + $0xd0] sm:$0xff] }
  0x11   :  { %1616 = vmatpush1.bf16.msra.mxu1 %v1615_v45  ;;  %1586 = vmatprep.subr.bf16.mxu0 %v1585_v46  ;;  %v1589_v46 = vpack.c.bf16 %v344_v43, %v340_v42  ;;  %v343_v48 = vld [vmem:[%s3488_s3 + $0xe0] sm:$0xff]  ;;  %v345_v53 = vld [vmem:[%s3488_s3 + $0xf0] sm:$0xff]  ;;  %v362_v42 = vld [vmem:[%s3488_s3 + $0x178] sm:$0xff] }
  0x12   :  { %56 = vadd.xlane.f32.xlu0 %v1924_v8  ;;  %58 = vadd.xlane.f32.xlu1 %v1929_v9  ;;  %v355_v43 = vld [vmem:[%s3488_s3 + $0x140] sm:$0xff] }
  0x13   :  { %1618 = vmatprep.subr.bf16.mxu1 %v1617_v50 }
  0x14   :  { %1588 = vmatpush1.bf16.msra.mxu0 %v1587_v54 }
  0x15   :  { %1620 = vmatpush1.bf16.msra.mxu1 %v1619_v55  ;;  %1590 = vmatprep.subr.bf16.mxu0 %v1589_v46  ;;  %v1591_v55 = vpack.c.bf16 %v343_v48, %v339_v47  ;;  %v357_v47 = vld [vmem:[%s3488_s3 + $0x150] sm:$0xff] }
  0x16   :  { %60 = vadd.xlane.f32.xlu0 %v1936_v10  ;;  %62 = vadd.xlane.f32.xlu1 %v1941_v11  ;;  %v361_v48 = vld [vmem:[%s3488_s3 + $0x170] sm:$0xff] }
  0x18   :  { %1592 = vmatpush1.bf16.msra.mxu0 %v1591_v55  ;;  %v368_v55 = vld [vmem:[%s3488_s3 + $0x1a8] sm:$0xff] }
  0x1a   :  { %64 = vadd.xlane.f32.xlu0 %v1948_v12  ;;  %66 = vadd.xlane.f32.xlu1 %v1953_v13 }
  0x1e   :  { %68 = vadd.xlane.f32.xlu0 %v1960_v14  ;;  %70 = vadd.xlane.f32.xlu1 %v1965_v15 }
  0x22   :  { %72 = vadd.xlane.f32.xlu0 %v1972_v16  ;;  %74 = vadd.xlane.f32.xlu1 %v1977_v17 }
  0x26   :  { %76 = vadd.xlane.f32.xlu0 %v1984_v18  ;;  %78 = vadd.xlane.f32.xlu1 %v1989_v19 }
  0x8f   :  { %v41_v56 = vpop.xlane.xlu0 %40  ;;  %v45_v57 = vpop.xlane.xlu1 %44 }
  0x90   :  { %v81_v58 = vmul.f32 0.0078125, %v41_v56  ;;  %v83_v59 = vmul.f32 0.0078125, %v45_v57  ;;  %v1623_v56 = vpack.c.bf16 %v345_v53, %v341_v52 }
  0x92   :  { %v2066_v60 = vsub.f32 %v1876_v0, %v81_v58  ;;  %v2069_v61 = vsub.f32 %v1881_v1, %v83_v59 }
  0x93   :  { %v43_v62 = vpop.xlane.xlu0 %42  ;;  %v47_v63 = vpop.xlane.xlu1 %46 }
  0x94   :  { %v82_v20 = vmul.f32 0.0078125, %v43_v62  ;;  %v121_v21 = vmul.f32 %v2066_v60, %v2066_v60  ;;  %v84_v22 = vmul.f32 0.0078125, %v47_v63  ;;  %v123_v0 = vmul.f32 %v2069_v61, %v2069_v61 }
  0x96   :  { %v2074_v23 = vsub.f32 %v1888_v2, %v82_v20  ;;  %141 = vadd.xlane.f32.xlu0 %v121_v21  ;;  %v2077_v24 = vsub.f32 %v1893_v3, %v84_v22  ;;  %v348_v20 = vld [vmem:[%s3488_s3 + $0x108] sm:$0xff] }
  0x97   :  { %v49_v25 = vpop.xlane.xlu0 %48  ;;  %v51_v1 = vpop.xlane.xlu1 %50 }
  0x98   :  { %v85_v26 = vmul.f32 0.0078125, %v49_v25  ;;  %v122_v27 = vmul.f32 %v2074_v23, %v2074_v23  ;;  %v86_v28 = vmul.f32 0.0078125, %v51_v1  ;;  %v124_v3 = vmul.f32 %v2077_v24, %v2077_v24  ;;  %v354_v25 = vld [vmem:[%s3488_s3 + $0x138] sm:$0xff]  ;;  %v347_v1 = vld [vmem:[%s3488_s3 + $0x100] sm:$0xff] }
  0x9a   :  { %v2084_v29 = vsub.f32 %v1900_v4, %v85_v26  ;;  %145 = vadd.xlane.f32.xlu0 %v123_v0  ;;  %143 = vadd.xlane.f32.xlu1 %v122_v27  ;;  %v2087_v2 = vsub.f32 %v1905_v5, %v86_v28  ;;  %v351_v26 = vld [vmem:[%s3488_s3 + $0x120] sm:$0xff] }
  0x9b   :  { %v53_v30 = vpop.xlane.xlu0 %52  ;;  %v55_v31 = vpop.xlane.xlu1 %54 }
  0x9c   :  { %v87_v32 = vmul.f32 0.0078125, %v53_v30  ;;  %v125_v33 = vmul.f32 %v2084_v29, %v2084_v29  ;;  %v88_v34 = vmul.f32 0.0078125, %v55_v31  ;;  %v126_v5 = vmul.f32 %v2087_v2, %v2087_v2  ;;  %v349_v31 = vld [vmem:[%s3488_s3 + $0x110] sm:$0xff] }
  0x9d   :  { %v1595_v30 = vpack.c.bf16 %v351_v26, %v347_v1 }
  0x9e   :  { %v2094_v35 = vsub.f32 %v1912_v6, %v87_v32  ;;  %147 = vadd.xlane.f32.xlu1 %v124_v3  ;;  %149 = vadd.xlane.f32.xlu0 %v125_v33  ;;  %v2097_v4 = vsub.f32 %v1917_v7, %v88_v34  ;;  %v353_v32 = vld [vmem:[%s3488_s3 + $0x130] sm:$0xff] }
  0x9f   :  { %v57_v36 = vpop.xlane.xlu0 %56  ;;  %v59_v37 = vpop.xlane.xlu1 %58 }
  0xa0   :  { %v89_v38 = vmul.f32 0.0078125, %v57_v36  ;;  %v127_v39 = vmul.f32 %v2094_v35, %v2094_v35  ;;  %v90_v40 = vmul.f32 0.0078125, %v59_v37  ;;  %v128_v7 = vmul.f32 %v2097_v4, %v2097_v4 }
  0xa2   :  { %v2104_v41 = vsub.f32 %v1924_v8, %v89_v38  ;;  %151 = vadd.xlane.f32.xlu1 %v126_v5  ;;  %153 = vadd.xlane.f32.xlu0 %v127_v39  ;;  %v2107_v6 = vsub.f32 %v1929_v9, %v90_v40  ;;  %v342_v8 = vld [vmem:[%s3488_s3 + $0xd8] sm:$0xff]  ;;  %v1627_v5 = vpack.c.bf16 %v353_v32, %v349_v31  ;;  %v356_v38 = vld [vmem:[%s3488_s3 + $0x148] sm:$0xff] }
  0xa3   :  { %v61_v44 = vpop.xlane.xlu0 %60  ;;  %v63_v45 = vpop.xlane.xlu1 %62  ;;  %v346_v9 = vld [vmem:[%s3488_s3 + $0xf8] sm:$0xff]  ;;  %v360_v39 = vld [vmem:[%s3488_s3 + $0x168] sm:$0xff] }
  0xa4   :  { %v91_v49 = vmul.f32 0.0078125, %v61_v44  ;;  %v129_v50 = vmul.f32 %v2104_v41, %v2104_v41  ;;  %v92_v51 = vmul.f32 0.0078125, %v63_v45  ;;  %v1621_v54 = vpack.c.bf16 %v346_v9, %v342_v8  ;;  %v359_v8 = vld [vmem:[%s3488_s3 + $0x160] sm:$0xff]  ;;  %v376_v31 = vld [vmem:[%s3488_s3 + $0x1e8] sm:$0xff] }
  0xa5   :  { %v130_v59 = vmul.f32 %v2107_v6, %v2107_v6  ;;  %v1597_v45 = vpack.c.bf16 %v360_v39, %v356_v38  ;;  %v1599_v9 = vpack.c.bf16 %v359_v8, %v355_v43  ;;  %v375_v38 = vld [vmem:[%s3488_s3 + $0x1e0] sm:$0xff] }
  0xa6   :  { %v2138_v57 = vsub.f32 %v1936_v10, %v91_v49  ;;  %155 = vadd.xlane.f32.xlu1 %v128_v7  ;;  %157 = vadd.xlane.f32.xlu0 %v129_v50  ;;  %v2141_v58 = vsub.f32 %v1941_v11, %v92_v51  ;;  %v352_v10 = vld [vmem:[%s3488_s3 + $0x128] sm:$0xff]  ;;  %v350_v11 = vld [vmem:[%s3488_s3 + $0x118] sm:$0xff]  ;;  %v1631_v51 = vpack.c.bf16 %v361_v48, %v357_v47 }
  0xa7   :  { %v65_v62 = vpop.xlane.xlu0 %64  ;;  %v67_v63 = vpop.xlane.xlu1 %66  ;;  %1622 = vmatprep.subr.bf16.mxu1 %v1621_v54  ;;  %v1593_v28 = vpack.c.bf16 %v352_v10, %v348_v20  ;;  %v1625_v3 = vpack.c.bf16 %v354_v25, %v350_v11  ;;  %v364_v54 = vld [vmem:[%s3488_s3 + $0x188] sm:$0xff]  ;;  %v367_v20 = vld [vmem:[%s3488_s3 + $0x1a0] sm:$0xff]  ;;  %v369_v25 = vld [vmem:[%s3488_s3 + $0x1b0] sm:$0xff] }
  0xa8   :  { %v93_v21 = vmul.f32 0.0078125, %v65_v62  ;;  %v131_v22 = vmul.f32 %v2138_v57, %v2138_v57  ;;  %v94_v0 = vmul.f32 0.0078125, %v67_v63  ;;  %1624 = vmatpush1.bf16.msra.mxu1 %v1623_v56  ;;  %v132_v27 = vmul.f32 %v2141_v58, %v2141_v58  ;;  %v370_v62 = vld [vmem:[%s3488_s3 + $0x1b8] sm:$0xff]  ;;  %v363_v63 = vld [vmem:[%s3488_s3 + $0x180] sm:$0xff] }
  0xa9   :  { %1594 = vmatprep.subr.bf16.mxu0 %v1593_v28  ;;  %1626 = vmatprep.subr.bf16.mxu1 %v1625_v3  ;;  %v1601_v11 = vpack.c.bf16 %v368_v55, %v364_v54 }
  0xaa   :  { %v2174_v33 = vsub.f32 %v1948_v12, %v93_v21  ;;  %159 = vadd.xlane.f32.xlu1 %v130_v59  ;;  %161 = vadd.xlane.f32.xlu0 %v131_v22  ;;  %v2177_v34 = vsub.f32 %v1953_v13, %v94_v0  ;;  %v358_v12 = vld [vmem:[%s3488_s3 + $0x158] sm:$0xff]  ;;  %v1603_v22 = vpack.c.bf16 %v367_v20, %v363_v63  ;;  %v365_v0 = vld [vmem:[%s3488_s3 + $0x190] sm:$0xff] }
  0xab   :  { %v69_v36 = vpop.xlane.xlu0 %68  ;;  %v71_v37 = vpop.xlane.xlu1 %70  ;;  %1596 = vmatpush1.bf16.msra.mxu0 %v1595_v30  ;;  %v1629_v46 = vpack.c.bf16 %v362_v42, %v358_v12  ;;  %v372_v30 = vld [vmem:[%s3488_s3 + $0x1c8] sm:$0xff]  ;;  %v377_v42 = vld [vmem:[%s3488_s3 + $0x1f0] sm:$0xff] }
  0xac   :  { %v95_v40 = vmul.f32 0.0078125, %v69_v36  ;;  %v133_v13 = vmul.f32 %v2174_v33, %v2174_v33  ;;  %v96_v7 = vmul.f32 0.0078125, %v71_v37  ;;  %1628 = vmatpush1.bf16.msra.mxu1 %v1627_v5  ;;  %v134_v44 = vmul.f32 %v2177_v34, %v2177_v34  ;;  %1598 = vmatprep.subr.bf16.mxu0 %v1597_v45  ;;  %v378_v36 = vld [vmem:[%s3488_s3 + $0x1f8] sm:$0xff]  ;;  %v371_v37 = vld [vmem:[%s3488_s3 + $0x1c0] sm:$0xff] }
  0xad   :  { %1630 = vmatprep.subr.bf16.mxu1 %v1629_v46  ;;  %v1605_v12 = vpack.c.bf16 %v376_v31, %v372_v30  ;;  %v1842_v46 = vmov 0.0   ;;  %v2296_v30 = vld [vmem:[%s3490_s2] ss:$0 sm:$0xff] }
  0xae   :  { %v2208_v49 = vsub.f32 %v1960_v14, %v95_v40  ;;  %163 = vadd.xlane.f32.xlu1 %v132_v27  ;;  %165 = vadd.xlane.f32.xlu0 %v133_v13  ;;  %v2211_v50 = vsub.f32 %v1965_v15, %v96_v7  ;;  %v366_v14 = vld [vmem:[%s3488_s3 + $0x198] sm:$0xff]  ;;  %v1635_v27 = vpack.c.bf16 %v369_v25, %v365_v0  ;;  %v373_v7 = vld [vmem:[%s3488_s3 + $0x1d0] sm:$0xff]  ;;  %v2290_v25 = vld [vmem:[%s3489_s1] ss:$0 sm:$0xff] }
  0xaf   :  { %v73_v52 = vpop.xlane.xlu0 %72  ;;  %v75_v53 = vpop.xlane.xlu1 %74  ;;  %1600 = vmatpush1.bf16.msra.mxu0 %v1599_v9  ;;  %v1633_v21 = vpack.c.bf16 %v370_v62, %v366_v14  ;;  %v1607_v13 = vpack.c.bf16 %v375_v38, %v371_v37  ;;  %465 = vmatprep.mubr.f32.mxu0 %v1842_v46 }
  0xb0   :  { %v97_v56 = vmul.f32 0.0078125, %v73_v52  ;;  %v135_v15 = vmul.f32 %v2208_v49, %v2208_v49  ;;  %v98_v59 = vmul.f32 0.0078125, %v75_v53  ;;  %1632 = vmatpush1.bf16.msra.mxu1 %v1631_v51  ;;  %v136_v10 = vmul.f32 %v2211_v50, %v2211_v50  ;;  %1602 = vmatprep.subr.bf16.mxu0 %v1601_v11 }
  0xb1   :  { %1634 = vmatprep.subr.bf16.mxu1 %v1633_v21  ;;  %650 = vmatprep.mubr.f32.mxu1 %v1842_v46 }
  0xb2   :  { %v2242_v1 = vsub.f32 %v1972_v16, %v97_v56  ;;  %167 = vadd.xlane.f32.xlu1 %v134_v44  ;;  %169 = vadd.xlane.f32.xlu0 %v135_v15  ;;  %v2245_v26 = vsub.f32 %v1977_v17, %v98_v59  ;;  %v374_v16 = vld [vmem:[%s3488_s3 + $0x1d8] sm:$0xff]  ;;  %v1639_v44 = vpack.c.bf16 %v377_v42, %v373_v7 }
  0xb3   :  { %v77_v28 = vpop.xlane.xlu0 %76  ;;  %v79_v3 = vpop.xlane.xlu1 %78  ;;  %1604 = vmatpush1.bf16.msra.mxu0 %v1603_v22  ;;  %v1637_v40 = vpack.c.bf16 %v378_v36, %v374_v16 }
  0xb4   :  { %v99_v32 = vmul.f32 0.0078125, %v77_v28  ;;  %v137_v17 = vmul.f32 %v2242_v1, %v2242_v1  ;;  %v100_v5 = vmul.f32 0.0078125, %v79_v3  ;;  %1636 = vmatpush1.bf16.msra.mxu1 %v1635_v27  ;;  %v138_v39 = vmul.f32 %v2245_v26, %v2245_v26  ;;  %1606 = vmatprep.subr.bf16.mxu0 %v1605_v12 }
  0xb5   :  { %1638 = vmatprep.subr.bf16.mxu1 %v1637_v40 }
  0xb6   :  { %v2276_v43 = vsub.f32 %v1984_v18, %v99_v32  ;;  %171 = vadd.xlane.f32.xlu1 %v136_v10  ;;  %173 = vadd.xlane.f32.xlu0 %v137_v17  ;;  %v2279_v8 = vsub.f32 %v1989_v19, %v100_v5 }
  0xb7   :  { %1608 = vmatpush1.bf16.msra.mxu0 %v1607_v13 }
  0xb8   :  { %v139_v45 = vmul.f32 %v2276_v43, %v2276_v43  ;;  %1640 = vmatpush1.bf16.msra.mxu1 %v1639_v44  ;;  %v140_v18 = vmul.f32 %v2279_v8, %v2279_v8 }
  0xba   :  { %175 = vadd.xlane.f32.xlu1 %v138_v39  ;;  %177 = vadd.xlane.f32.xlu0 %v139_v45 }
  0xbe   :  { %179 = vadd.xlane.f32.xlu1 %v140_v18 }
 0x123   :  { %v142_v19 = vpop.xlane.xlu0 %141 }
 0x124   :  { %v181_v9 = vmul.f32 0.0078125, %v142_v19 }
 0x126   :  { %v201_v47 = vadd.f32 1e-06, %v181_v9 }
 0x127   :  { %v144_v48 = vpop.xlane.xlu1 %143  ;;  %v146_v51 = vpop.xlane.xlu0 %145 }
 0x128   :  { %1642 = vrsqrt.f32 %v201_v47  ;;  %v182_v52 = vmul.f32 0.0078125, %v144_v48  ;;  %v183_v53 = vmul.f32 0.0078125, %v146_v51 }
 0x12a   :  { %v202_v54 = vadd.f32 1e-06, %v182_v52  ;;  %v203_v55 = vadd.f32 1e-06, %v183_v53 }
 0x12b   :  { %v148_v14 = vpop.xlane.xlu1 %147  ;;  %v150_v56 = vpop.xlane.xlu0 %149 }
 0x12c   :  { %1644 = vrsqrt.f32 %v202_v54  ;;  %v184_v15 = vmul.f32 0.0078125, %v148_v14  ;;  %v185_v59 = vmul.f32 0.0078125, %v150_v56 }
 0x12d   :  { %1646 = vrsqrt.f32 %v203_v55 }
 0x12e   :  { %v204_v62 = vadd.f32 1e-06, %v184_v15  ;;  %v205_v63 = vadd.f32 1e-06, %v185_v59 }
 0x12f   :  { %v152_v20 = vpop.xlane.xlu1 %151  ;;  %v154_v10 = vpop.xlane.xlu0 %153 }
 0x130   :  { %1648 = vrsqrt.f32 %v204_v62  ;;  %v186_v11 = vmul.f32 0.0078125, %v152_v20  ;;  %v187_v0 = vmul.f32 0.0078125, %v154_v10 }
 0x131   :  { %1650 = vrsqrt.f32 %v205_v63 }
 0x132   :  { %v1643_v21 = vpop.eup %1642  ;;  %v206_v22 = vadd.f32 1e-06, %v186_v11  ;;  %v207_v32 = vadd.f32 1e-06, %v187_v0 }
 0x133   :  { %v156_v27 = vpop.xlane.xlu1 %155  ;;  %v158_v28 = vpop.xlane.xlu0 %157  ;;  %v241_v3 = vmul.f32 %v1643_v21, %v2066_v60 }
 0x134   :  { %1652 = vrsqrt.f32 %v206_v22  ;;  %v188_v17 = vmul.f32 0.0078125, %v156_v27  ;;  %v189_v7 = vmul.f32 0.0078125, %v158_v28 }
 0x135   :  { %v268_v31 = vmul.f32 %v2290_v25, %v241_v3  ;;  %1654 = vrsqrt.f32 %v207_v32 }
 0x136   :  { %v1645_v16 = vpop.eup %1644  ;;  %v208_v13 = vadd.f32 1e-06, %v188_v17  ;;  %v209_v19 = vadd.f32 1e-06, %v189_v7 }
 0x137   :  { %v1647_v5 = vpop.eup %1646  ;;  %v160_v36 = vpop.xlane.xlu1 %159  ;;  %v295_v38 = vadd.f32 %v2296_v30, %v268_v31  ;;  %v242_v39 = vmul.f32 %v1645_v16, %v2074_v23 }
 0x138   :  { %v162_v37 = vpop.xlane.xlu0 %161  ;;  %v243_v60 = vmul.f32 %v1647_v5, %v2069_v61  ;;  %1656 = vrsqrt.f32 %v208_v13  ;;  %v190_v9 = vmul.f32 0.0078125, %v160_v36 }
 0x139   :  { %466 = vmatmul.mubr.f32.vlgmr.msra.gmra.mrb[0].mxu0 %v295_v38  ;;  %651 = vmatmul.mubr.f32.vlgmr.msra.gmra.mrb[0].mxu1 %v295_v38  ;;  %v269_v12 = vmul.f32 %v2290_v25, %v242_v39  ;;  %v191_v54 = vmul.f32 0.0078125, %v162_v37  ;;  %1658 = vrsqrt.f32 %v209_v19 }
 0x13a   :  { %v1649_v40 = vpop.eup %1648  ;;  %471 = vmatprep.mubr.f32.mxu0 %v1842_v46  ;;  %656 = vmatprep.mubr.f32.mxu1 %v1842_v46  ;;  %v270_v23 = vmul.f32 %v2290_v25, %v243_v60  ;;  %v210_v55 = vadd.f32 1e-06, %v190_v9 }
 0x13b   :  { %v164_v42 = vpop.xlane.xlu1 %163  ;;  %v296_v45 = vadd.f32 %v2296_v30, %v269_v12  ;;  %v244_v61 = vmul.f32 %v1649_v40, %v2077_v24  ;;  %v1651_v18 = vpop.eup %1650  ;;  %v211_v63 = vadd.f32 1e-06, %v191_v54 }
 0x13c   :  { %v166_v44 = vpop.xlane.xlu0 %165  ;;  %v297_v51 = vadd.f32 %v2296_v30, %v270_v23  ;;  %v245_v53 = vmul.f32 %v1651_v18, %v2084_v29  ;;  %1660 = vrsqrt.f32 %v210_v55  ;;  %v192_v10 = vmul.f32 0.0078125, %v164_v42 }
 0x13d   :  { %472 = vmatmul.mubr.f32.gmra.mrb[2].mxu0 %v296_v45  ;;  %657 = vmatmul.mubr.f32.gmra.mrb[2].mxu1 %v296_v45  ;;  %v271_v52 = vmul.f32 %v2290_v25, %v244_v61  ;;  %1662 = vrsqrt.f32 %v211_v63  ;;  %v193_v16 = vmul.f32 0.0078125, %v166_v44 }
 0x13e   :  { %477 = vmatprep.mubr.f32.mxu0 %v1842_v46  ;;  %662 = vmatprep.mubr.f32.mxu1 %v1842_v46  ;;  %v1653_v24 = vpop.eup %1652  ;;  %v272_v59 = vmul.f32 %v2290_v25, %v245_v53  ;;  %v212_v32 = vadd.f32 1e-06, %v192_v10 }
 0x13f   :  { %v168_v47 = vpop.xlane.xlu1 %167  ;;  %v298_v15 = vadd.f32 %v2296_v30, %v271_v52  ;;  %v246_v62 = vmul.f32 %v1653_v24, %v2087_v2  ;;  %v1655_v29 = vpop.eup %1654  ;;  %v213_v12 = vadd.f32 1e-06, %v193_v16 }
 0x140   :  { %v2310_v48 = vpop.xlane.xlu0 %169  ;;  %v299_v0 = vadd.f32 %v2296_v30, %v272_v59  ;;  %v247_v2 = vmul.f32 %v1655_v29, %v2094_v35  ;;  %v194_v40 = vmul.f32 0.0078125, %v168_v47 }
 0x141   :  { %478 = vmatmul.mubr.f32.gmra.mrb[4].mxu0 %v297_v51  ;;  %663 = vmatmul.mubr.f32.gmra.mrb[4].mxu1 %v297_v51  ;;  %v273_v27 = vmul.f32 %v2290_v25, %v246_v62  ;;  %v195_v45 = vmul.f32 0.0078125, %v2310_v48 }
 0x142   :  { %483 = vmatprep.mubr.f32.mxu0 %v1842_v46  ;;  %668 = vmatprep.mubr.f32.mxu1 %v1842_v46  ;;  %v1657_v28 = vpop.eup %1656  ;;  %v274_v35 = vmul.f32 %v2290_v25, %v247_v2  ;;  %v214_v61 = vadd.f32 1e-06, %v194_v40 }
 0x143   :  { %v2317_v14 = vpop.xlane.xlu1 %171  ;;  %v300_v37 = vadd.f32 %v2296_v30, %v273_v27  ;;  %v248_v38 = vmul.f32 %v1657_v28, %v2097_v4  ;;  %v1659_v39 = vpop.eup %1658  ;;  %v215_v51 = vadd.f32 1e-06, %v195_v45 }
 0x144   :  { %v174_v56 = vpop.xlane.xlu0 %173  ;;  %v301_v7 = vadd.f32 %v2296_v30, %v274_v35  ;;  %v249_v4 = vmul.f32 %v1659_v39, %v2104_v41  ;;  %v196_v52 = vmul.f32 0.0078125, %v2317_v14 }
 0x145   :  { %v197_v20 = vmul.f32 0.0078125, %v174_v56  ;;  %484 = vmatmul.mubr.f32.gmra.mrb[6].mxu0 %v298_v15  ;;  %669 = vmatmul.mubr.f32.gmra.mrb[6].mxu1 %v298_v15  ;;  %v275_v42 = vmul.f32 %v2290_v25, %v248_v38 }
 0x146   :  { %489 = vmatprep.mubr.f32.mxu0 %v1842_v46  ;;  %674 = vmatprep.mubr.f32.mxu1 %v1842_v46  ;;  %v1661_v44 = vpop.eup %1660  ;;  %v276_v9 = vmul.f32 %v2290_v25, %v249_v4  ;;  %v216_v62 = vadd.f32 1e-06, %v196_v52 }
 0x147   :  { %v217_v11 = vadd.f32 1e-06, %v197_v20  ;;  %v176_v21 = vpop.xlane.xlu1 %175  ;;  %v1663_v23 = vpop.eup %1662  ;;  %v302_v19 = vadd.f32 %v2296_v30, %v275_v42  ;;  %v250_v41 = vmul.f32 %v1661_v44, %v2107_v6 }
 0x148   :  { %v178_v22 = vpop.xlane.xlu0 %177  ;;  %v198_v3 = vmul.f32 0.0078125, %v176_v21  ;;  %v251_v53 = vmul.f32 %v1663_v23, %v2138_v57  ;;  %v303_v6 = vadd.f32 %v2296_v30, %v276_v9 }
 0x149   :  { %v199_v31 = vmul.f32 0.0078125, %v178_v22  ;;  %1664 = vrsqrt.f32 %v217_v11  ;;  %490 = vmatmul.mubr.f32.gmra.mrb[8].mxu0 %v299_v0  ;;  %675 = vmatmul.mubr.f32.gmra.mrb[8].mxu1 %v299_v0 }
 0x14a   :  { %v218_v17 = vadd.f32 1e-06, %v198_v3  ;;  %495 = vmatprep.mubr.f32.mxu0 %v1842_v46  ;;  %680 = vmatprep.mubr.f32.mxu1 %v1842_v46  ;;  %v278_v29 = vmul.f32 %v2290_v25, %v251_v53 }
 0x14b   :  { %v219_v5 = vadd.f32 1e-06, %v199_v31  ;;  %v180_v36 = vpop.xlane.xlu1 %179 }
 0x14c   :  { %1666 = vrsqrt.f32 %v218_v17  ;;  %v200_v60 = vmul.f32 0.0078125, %v180_v36  ;;  %v305_v0 = vadd.f32 %v2296_v30, %v278_v29 }
 0x14d   :  { %1668 = vrsqrt.f32 %v219_v5  ;;  %496 = vmatmul.mubr.f32.gmra.mrb[10].mxu0 %v300_v37  ;;  %681 = vmatmul.mubr.f32.gmra.mrb[10].mxu1 %v300_v37 }
 0x14e   :  { %1670 = vrsqrt.f32 %v212_v32  ;;  %v220_v13 = vadd.f32 1e-06, %v200_v60  ;;  %501 = vmatprep.mubr.f32.mxu0 %v1842_v46  ;;  %686 = vmatprep.mubr.f32.mxu1 %v1842_v46  ;;  %v379_v60 = vld [vmem:[%s3491_s4] sm:$0xf] }
 0x150   :  { %1672 = vrsqrt.f32 %v220_v13 }
 0x151   :  { %502 = vmatmul.mubr.f32.gmra.mrb[12].mxu0 %v301_v7  ;;  %687 = vmatmul.mubr.f32.gmra.mrb[12].mxu1 %v301_v7  ;;  %1674 = vrsqrt.f32 %v213_v12 }
 0x152   :  { %507 = vmatprep.mubr.f32.mxu0 %v1842_v46  ;;  %692 = vmatprep.mubr.f32.mxu1 %v1842_v46  ;;  %1676 = vrsqrt.f32 %v214_v61 }
 0x153   :  { %v1665_v18 = vpop.eup %1664  ;;  %1678 = vrsqrt.f32 %v215_v51 }
 0x154   :  { %v257_v47 = vmul.f32 %v1665_v18, %v2242_v1  ;;  %v277_v1 = vmul.f32 %v2290_v25, %v250_v41  ;;  %1680 = vrsqrt.f32 %v216_v62 }
 0x155   :  { %508 = vmatmul.mubr.f32.gmra.mrb[14].mxu0 %v302_v19  ;;  %693 = vmatmul.mubr.f32.gmra.mrb[14].mxu1 %v302_v19 }
 0x156   :  { %v1667_v48 = vpop.eup %1666  ;;  %513 = vmatprep.mubr.f32.mxu0 %v1842_v46  ;;  %698 = vmatprep.mubr.f32.mxu1 %v1842_v46  ;;  %v284_v24 = vmul.f32 %v2290_v25, %v257_v47  ;;  %v304_v63 = vadd.f32 %v2296_v30, %v277_v1 }
 0x157   :  { %v1669_v54 = vpop.eup %1668  ;;  %v258_v55 = vmul.f32 %v1667_v48, %v2245_v26 }
 0x158   :  { %v1671_v56 = vpop.eup %1670  ;;  %v2353_v15 = vadd.f32 %v2296_v30, %v284_v24  ;;  %v259_v14 = vmul.f32 %v1669_v54, %v2276_v43 }
 0x159   :  { %514 = vmatmul.mubr.f32.gmra.mrb[16].mxu0 %v303_v6  ;;  %699 = vmatmul.mubr.f32.gmra.mrb[16].mxu1 %v303_v6  ;;  %v285_v59 = vmul.f32 %v2290_v25, %v258_v55  ;;  %v252_v20 = vmul.f32 %v1671_v56, %v2141_v58 }
 0x15a   :  { %v1673_v57 = vpop.eup %1672  ;;  %519 = vmatprep.mubr.f32.mxu0 %v1842_v46  ;;  %704 = vmatprep.mubr.f32.mxu1 %v1842_v46  ;;  %v286_v26 = vmul.f32 %v2290_v25, %v259_v14 }
 0x15b   :  { %v312_v43 = vadd.f32 %v2296_v30, %v285_v59  ;;  %v260_v10 = vmul.f32 %v1673_v57, %v2279_v8  ;;  %v1675_v11 = vpop.eup %1674  ;;  %v279_v58 = vmul.f32 %v2290_v25, %v252_v20 }
 0x15c   :  { %v313_v21 = vadd.f32 %v2296_v30, %v286_v26  ;;  %v253_v27 = vmul.f32 %v1675_v11, %v2174_v33  ;;  %v1677_v2 = vpop.eup %1676 }
 0x15d   :  { %520 = vmatmul.mubr.f32.gmra.mrb[18].mxu0 %v304_v63  ;;  %705 = vmatmul.mubr.f32.gmra.mrb[18].mxu1 %v304_v63  ;;  %v287_v22 = vmul.f32 %v2290_v25, %v260_v10  ;;  %v306_v28 = vadd.f32 %v2296_v30, %v279_v58  ;;  %v254_v31 = vmul.f32 %v1677_v2, %v2177_v34  ;;  %v1679_v16 = vpop.eup %1678 }
 0x15e   :  { %525 = vmatprep.mubr.f32.mxu0 %v1842_v46  ;;  %710 = vmatprep.mubr.f32.mxu1 %v1842_v46  ;;  %v280_v3 = vmul.f32 %v2290_v25, %v253_v27  ;;  %v255_v17 = vmul.f32 %v1679_v16, %v2208_v49  ;;  %v1681_v5 = vpop.eup %1680 }
 0x15f   :  { %v314_v8 = vadd.f32 %v2296_v30, %v287_v22  ;;  %v281_v32 = vmul.f32 %v2290_v25, %v254_v31  ;;  %v256_v37 = vmul.f32 %v1681_v5, %v2211_v50  ;;  %v381_v50 = vlaneseq }
 0x160   :  { %v307_v33 = vadd.f32 %v2296_v30, %v280_v3  ;;  %v282_v36 = vmul.f32 %v2290_v25, %v255_v17 }
 0x161   :  { %526 = vmatmul.mubr.f32.gmra.mrb[20].mxu0 %v305_v0  ;;  %711 = vmatmul.mubr.f32.gmra.mrb[20].mxu1 %v305_v0  ;;  %v308_v34 = vadd.f32 %v2296_v30, %v281_v32  ;;  %v283_v35 = vmul.f32 %v2290_v25, %v256_v37  ;;  %v382_v25 = vshrl.u32 %v381_v50, 7 }
 0x162   :  { %531 = vmatprep.mubr.f32.mxu0 %v1842_v46  ;;  %716 = vmatprep.mubr.f32.mxu1 %v1842_v46  ;;  %v309_v49 = vadd.f32 %v2296_v30, %v282_v36 }
 0x163   :  { %v310_v38 = vadd.f32 %v2296_v30, %v283_v35  ;;  %v383_v30 = vsub.s32 0, %v382_v25  ;;  %v391_v39 = vsub.s32 2, %v382_v25  ;;  %v387_v12 = vsub.s32 1, %v382_v25 }
 0x164   :  { %v395_v40 = vsub.s32 3, %v382_v25 }
 0x165   :  { %532 = vmatmul.mubr.f32.gmra.mrb[22].mxu0 %v306_v28  ;;  %717 = vmatmul.mubr.f32.gmra.mrb[22].mxu1 %v306_v28  ;;  %v2408_v13 = vrot.slane %v379_v60, %v383_v30  ;;  %v2410_v7 = vrot.slane %v379_v60, %v391_v39  ;;  %v2412_v42 = vrot.slane %v379_v60, %v387_v12 }
 0x166   :  { %537 = vmatprep.mubr.f32.mxu0 %v1842_v46  ;;  %722 = vmatprep.mubr.f32.mxu1 %v1842_v46  ;;  %v2414_v4 = vrot.slane %v379_v60, %v395_v40 }
 0x169   :  { %538 = vmatmul.mubr.f32.gmra.mrb[24].mxu0 %v307_v33  ;;  %723 = vmatmul.mubr.f32.gmra.mrb[24].mxu1 %v307_v33 }
 0x16a   :  { %543 = vmatprep.mubr.f32.mxu0 %v1842_v46  ;;  %728 = vmatprep.mubr.f32.mxu1 %v1842_v46 }
 0x16d   :  { %544 = vmatmul.mubr.f32.gmra.mrb[26].mxu0 %v308_v34  ;;  %729 = vmatmul.mubr.f32.gmra.mrb[26].mxu1 %v308_v34 }
 0x16e   :  { %549 = vmatprep.mubr.f32.mxu0 %v1842_v46  ;;  %734 = vmatprep.mubr.f32.mxu1 %v1842_v46 }
 0x171   :  { %550 = vmatmul.mubr.f32.gmra.mrb[28].mxu0 %v309_v49  ;;  %735 = vmatmul.mubr.f32.gmra.mrb[28].mxu1 %v309_v49 }
 0x172   :  { %555 = vmatprep.mubr.f32.mxu0 %v1842_v46  ;;  %740 = vmatprep.mubr.f32.mxu1 %v1842_v46 }
 0x175   :  { %556 = vmatmul.mubr.f32.gmra.mrb[30].mxu0 %v310_v38  ;;  %741 = vmatmul.mubr.f32.gmra.mrb[30].mxu1 %v310_v38 }
 0x176   :  { %561 = vmatprep.mubr.f32.mxu0 %v1842_v46  ;;  %746 = vmatprep.mubr.f32.mxu1 %v1842_v46 }
 0x179   :  { %562 = vmatmul.mubr.f32.gmra.mrb[32].mxu0 %v2353_v15  ;;  %747 = vmatmul.mubr.f32.gmra.mrb[32].mxu1 %v2353_v15 }
 0x17a   :  { %567 = vmatprep.mubr.f32.mxu0 %v1842_v46  ;;  %752 = vmatprep.mubr.f32.mxu1 %v1842_v46 }
 0x17d   :  { %568 = vmatmul.mubr.f32.gmra.mrb[34].mxu0 %v312_v43  ;;  %753 = vmatmul.mubr.f32.gmra.mrb[34].mxu1 %v312_v43 }
 0x17e   :  { %573 = vmatprep.mubr.f32.mxu0 %v1842_v46  ;;  %758 = vmatprep.mubr.f32.mxu1 %v1842_v46 }
 0x181   :  { %574 = vmatmul.mubr.f32.gmra.mrb[36].mxu0 %v313_v21  ;;  %759 = vmatmul.mubr.f32.gmra.mrb[36].mxu1 %v313_v21 }
 0x182   :  { %579 = vmatprep.mubr.f32.mxu0 %v1842_v46  ;;  %764 = vmatprep.mubr.f32.mxu1 %v1842_v46 }
 0x185   :  { %580 = vmatmul.mubr.f32.gmra.mrb[38].mxu0 %v314_v8  ;;  %765 = vmatmul.mubr.f32.gmra.mrb[38].mxu1 %v314_v8 }
 0x20c   :  { %v467_v46 = vpop.f32.mrb[0].mxu0  ;;  %v652_v44 = vpop.f32.mrb[0].mxu1 }
 0x20d   :  { %v468_v45 = vadd.f32 %v467_v46, %v2408_v13  ;;  %v2418_v23 = vadd.f32 %v652_v44, %v2410_v7  ;;  %v469_v61 = vpop.f32.mrb[1].mxu0  ;;  %v654_v18 = vpop.f32.mrb[1].mxu1 }
 0x20e   :  { %v2421_v19 = vadd.f32 %v469_v61, %v2412_v42  ;;  %v2424_v9 = vadd.f32 %v654_v18, %v2414_v4 }
 0x20f   :  { %v851_v41 = vmul.f32 0.044715, %v468_v45  ;;  %v853_v47 = vmul.f32 0.044715, %v2418_v23  ;;  %v771_v40 = vmul.f32 0.5, %v468_v45  ;;  %v773_v18 = vmul.f32 0.5, %v2418_v23 }
 0x210   :  { %v852_v51 = vmul.f32 0.044715, %v2421_v19  ;;  %v854_v48 = vmul.f32 0.044715, %v2424_v9  ;;  %v473_v24 = vpop.f32.mrb[2].mxu0  ;;  %v658_v54 = vpop.f32.mrb[2].mxu1 }
 0x211   :  { %v931_v52 = vmul.f32 %v851_v41, %v468_v45  ;;  %v933_v53 = vmul.f32 %v853_v47, %v2418_v23  ;;  %v2433_v55 = vadd.f32 %v473_v24, %v2408_v13  ;;  %v2436_v56 = vadd.f32 %v658_v54, %v2410_v7  ;;  %v475_v15 = vpop.f32.mrb[3].mxu0  ;;  %v660_v14 = vpop.f32.mrb[3].mxu1 }
 0x212   :  { %v932_v6 = vmul.f32 %v852_v51, %v2421_v19  ;;  %v934_v1 = vmul.f32 %v854_v48, %v2424_v9  ;;  %v2440_v62 = vadd.f32 %v475_v15, %v2412_v42  ;;  %v2448_v22 = vadd.f32 %v660_v14, %v2414_v4 }
 0x213   :  { %v1011_v59 = vmul.f32 %v931_v52, %v468_v45  ;;  %v1013_v57 = vmul.f32 %v933_v53, %v2418_v23  ;;  %v855_v63 = vmul.f32 0.044715, %v2433_v55  ;;  %v857_v21 = vmul.f32 0.044715, %v2436_v56 }
 0x214   :  { %v1012_v29 = vmul.f32 %v932_v6, %v2421_v19  ;;  %v1014_v26 = vmul.f32 %v934_v1, %v2424_v9  ;;  %v479_v20 = vpop.f32.mrb[4].mxu0  ;;  %v664_v43 = vpop.f32.mrb[4].mxu1  ;;  %v856_v16 = vmul.f32 0.044715, %v2440_v62  ;;  %v858_v37 = vmul.f32 0.044715, %v2448_v22 }
 0x215   :  { %v1091_v10 = vadd.f32 %v1011_v59, %v468_v45  ;;  %v1093_v11 = vadd.f32 %v1013_v57, %v2418_v23  ;;  %v481_v0 = vpop.f32.mrb[5].mxu0  ;;  %v666_v58 = vpop.f32.mrb[5].mxu1  ;;  %v935_v2 = vmul.f32 %v855_v63, %v2433_v55  ;;  %v937_v31 = vmul.f32 %v857_v21, %v2436_v56 }
 0x216   :  { %v1092_v27 = vadd.f32 %v1012_v29, %v2421_v19  ;;  %v1094_v8 = vadd.f32 %v1014_v26, %v2424_v9  ;;  %v936_v36 = vmul.f32 %v856_v16, %v2440_v62  ;;  %v2463_v50 = vadd.f32 %v479_v20, %v2408_v13 }
 0x217   :  { %v1171_v28 = vmul.f32 0.7978846, %v1091_v10  ;;  %v1173_v3 = vmul.f32 0.7978846, %v1093_v11  ;;  %v1015_v17 = vmul.f32 %v935_v2, %v2433_v55  ;;  %v1017_v34 = vmul.f32 %v937_v31, %v2436_v56 }
 0x218   :  { %v1172_v33 = vmul.f32 0.7978846, %v1092_v27  ;;  %v1174_v32 = vmul.f32 0.7978846, %v1094_v8  ;;  %v485_v5 = vpop.f32.mrb[6].mxu0  ;;  %v670_v49 = vpop.f32.mrb[6].mxu1  ;;  %v2466_v25 = vadd.f32 %v664_v43, %v2410_v7  ;;  %v1016_v60 = vmul.f32 %v936_v36, %v2440_v62 }
 0x219   :  { %1682 = vtanh.f32 %v1171_v28  ;;  %v2459_v35 = vpop.f32.mrb[7].mxu0  ;;  %v1095_v38 = vadd.f32 %v1015_v17, %v2433_v55  ;;  %v2468_v30 = vpop.f32.mrb[7].mxu1  ;;  %v1097_v39 = vadd.f32 %v1017_v34, %v2436_v56  ;;  %v938_v12 = vmul.f32 %v858_v37, %v2448_v22 }
 0x21a   :  { %1684 = vtanh.f32 %v1173_v3  ;;  %v859_v44 = vmul.f32 0.044715, %v2463_v50  ;;  %v1096_v47 = vadd.f32 %v1016_v60, %v2440_v62  ;;  %v861_v53 = vmul.f32 0.044715, %v2466_v25 }
 0x21b   :  { %1686 = vtanh.f32 %v1172_v33  ;;  %v1175_v46 = vmul.f32 0.7978846, %v1095_v38  ;;  %v1177_v41 = vmul.f32 0.7978846, %v1097_v39  ;;  %v1018_v51 = vmul.f32 %v938_v12, %v2448_v22 }
 0x21c   :  { %1688 = vtanh.f32 %v1174_v32  ;;  %v2474_v61 = vpop.f32.mrb[8].mxu0  ;;  %v2479_v48 = vpop.f32.mrb[8].mxu1  ;;  %v939_v45 = vmul.f32 %v859_v44, %v2463_v50  ;;  %v2486_v24 = vadd.f32 %v481_v0, %v2412_v42  ;;  %v1176_v23 = vmul.f32 0.7978846, %v1096_v47 }
 0x21d   :  { %v2481_v52 = vpop.f32.mrb[9].mxu0  ;;  %1690 = vtanh.f32 %v1175_v46  ;;  %v2488_v54 = vpop.f32.mrb[9].mxu1  ;;  %v1098_v6 = vadd.f32 %v1018_v51, %v2448_v22  ;;  %v2492_v1 = vadd.f32 %v666_v58, %v2414_v4  ;;  %v772_v15 = vmul.f32 0.5, %v2421_v19 }
 0x21e   :  { %1692 = vtanh.f32 %v1177_v41  ;;  %v1019_v14 = vmul.f32 %v939_v45, %v2463_v50  ;;  %v941_v59 = vmul.f32 %v861_v53, %v2466_v25  ;;  %v860_v57 = vmul.f32 0.044715, %v2486_v24 }
 0x21f   :  { %v774_v63 = vmul.f32 0.5, %v2424_v9  ;;  %1694 = vtanh.f32 %v1176_v23  ;;  %v1178_v20 = vmul.f32 0.7978846, %v1098_v6  ;;  %v862_v43 = vmul.f32 0.044715, %v2492_v1 }
 0x220   :  { %v2498_v29 = vpop.f32.mrb[10].mxu0  ;;  %v2500_v26 = vpop.f32.mrb[10].mxu1  ;;  %v1099_v19 = vadd.f32 %v1019_v14, %v2463_v50  ;;  %v1021_v11 = vmul.f32 %v941_v59, %v2466_v25  ;;  %v940_v21 = vmul.f32 %v860_v57, %v2486_v24  ;;  %v2510_v0 = vadd.f32 %v485_v5, %v2408_v13 }
 0x221   :  { %v2504_v10 = vpop.f32.mrb[11].mxu0  ;;  %v2512_v58 = vpop.f32.mrb[11].mxu1  ;;  %v775_v9 = vmul.f32 0.5, %v2433_v55  ;;  %1696 = vtanh.f32 %v1178_v20  ;;  %v942_v8 = vmul.f32 %v862_v43, %v2492_v1  ;;  %v2517_v2 = vadd.f32 %v670_v49, %v2410_v7 }
 0x222   :  { %v1179_v31 = vmul.f32 0.7978846, %v1099_v19  ;;  %v1101_v16 = vadd.f32 %v1021_v11, %v2466_v25  ;;  %v1020_v33 = vmul.f32 %v940_v21, %v2486_v24  ;;  %v863_v36 = vmul.f32 0.044715, %v2510_v0 }
 0x223   :  { %v1683_v27 = vpop.eup %1682  ;;  %v1022_v55 = vmul.f32 %v942_v8, %v2492_v1  ;;  %v2529_v37 = vadd.f32 %v2459_v35, %v2412_v42  ;;  %v777_v53 = vmul.f32 0.5, %v2436_v56  ;;  %v865_v11 = vmul.f32 0.044715, %v2517_v2 }
 0x224   :  { %v1685_v28 = vpop.eup %1684  ;;  %v1331_v3 = vadd.f32 1.0, %v1683_v27  ;;  %v2521_v32 = vpop.f32.mrb[12].mxu0  ;;  %1698 = vtanh.f32 %v1179_v31  ;;  %v1181_v46 = vmul.f32 0.7978846, %v1101_v16  ;;  %v1100_v47 = vadd.f32 %v1020_v33, %v2486_v24 }
 0x225   :  { %v2523_v17 = vpop.f32.mrb[12].mxu1  ;;  %v1687_v5 = vpop.eup %1686  ;;  %v1333_v34 = vadd.f32 1.0, %v1685_v28  ;;  %v1102_v51 = vadd.f32 %v1022_v55, %v2492_v1  ;;  %v864_v8 = vmul.f32 0.044715, %v2529_v37  ;;  %v2565_v28 = vadd.f32 %v2468_v30, %v2414_v4 }
 0x226   :  { %v2531_v49 = vpop.f32.mrb[13].mxu0  ;;  %v2533_v38 = vpop.f32.mrb[13].mxu1  ;;  %v1411_v60 = vmul.f32 %v1331_v3, %v771_v40  ;;  %v1332_v12 = vadd.f32 1.0, %v1687_v5  ;;  %1700 = vtanh.f32 %v1181_v46  ;;  %v943_v40 = vmul.f32 %v863_v36, %v2510_v0 }
 0x227   :  { %v1689_v39 = vpop.eup %1688  ;;  %v1413_v44 = vmul.f32 %v1333_v34, %v773_v18  ;;  %v1180_v57 = vmul.f32 0.7978846, %v1100_v47  ;;  %v1182_v20 = vmul.f32 0.7978846, %v1102_v51  ;;  %v945_v34 = vmul.f32 %v865_v11, %v2517_v2 }
 0x228   :  { %v1334_v41 = vadd.f32 1.0, %v1689_v39  ;;  %v1691_v45 = vpop.eup %1690  ;;  %1491 = vst [vmem:[%s3492_s5] sm:$0xff] %v1411_v60  ;;  %v1412_v35 = vmul.f32 %v1332_v12, %v772_v15  ;;  %v2542_v23 = vpop.f32.mrb[14].mxu0  ;;  %v776_v15 = vmul.f32 0.5, %v2440_v62  ;;  %v1023_v19 = vmul.f32 %v943_v40, %v2510_v0 }
 0x229   :  { %v2544_v6 = vpop.f32.mrb[14].mxu1  ;;  %v1693_v18 = vpop.eup %1692  ;;  %1493 = vst [vmem:[%s3492_s5 + $0x10] sm:$0xff] %v1413_v44  ;;  %v1335_v59 = vadd.f32 1.0, %v1691_v45  ;;  %1702 = vtanh.f32 %v1180_v57  ;;  %v944_v30 = vmul.f32 %v864_v8, %v2529_v37  ;;  %v866_v55 = vmul.f32 0.044715, %v2565_v28 }
 0x22a   :  { %v1414_v14 = vmul.f32 %v1334_v41, %v774_v63  ;;  %v2549_v43 = vpop.f32.mrb[15].mxu0  ;;  %1492 = vst [vmem:[%s3492_s5 + $0x8] sm:$0xff] %v1412_v35  ;;  %v1337_v56 = vadd.f32 1.0, %v1693_v18  ;;  %v2557_v21 = vpop.f32.mrb[15].mxu1  ;;  %1704 = vtanh.f32 %v1182_v20  ;;  %v1103_v31 = vadd.f32 %v1023_v19, %v2510_v0 }
 0x22b   :  { %v1695_v27 = vpop.eup %1694  ;;  %v1415_v63 = vmul.f32 %v1335_v59, %v775_v9  ;;  %v778_v9 = vmul.f32 0.5, %v2448_v22  ;;  %v2588_v22 = vadd.f32 %v2474_v61, %v2408_v13  ;;  %v1025_v44 = vmul.f32 %v945_v34, %v2517_v2 }
 0x22c   :  { %1494 = vst [vmem:[%s3492_s5 + $0x18] sm:$0xff] %v1414_v14  ;;  %v1417_v62 = vmul.f32 %v1337_v56, %v777_v53  ;;  %v1336_v3 = vadd.f32 1.0, %v1695_v27  ;;  %v2568_v16 = vpop.f32.mrb[16].mxu0  ;;  %v2570_v33 = vpop.f32.mrb[16].mxu1  ;;  %v1183_v46 = vmul.f32 0.7978846, %v1103_v31  ;;  %v1024_v41 = vmul.f32 %v944_v30, %v2529_v37 }
 0x22d   :  { %v1697_v5 = vpop.eup %1696  ;;  %1495 = vst [vmem:[%s3492_s5 + $0x20] sm:$0xff] %v1415_v63  ;;  %v2579_v36 = vpop.f32.mrb[17].mxu0  ;;  %v946_v47 = vmul.f32 %v866_v55, %v2565_v28  ;;  %v2595_v51 = vadd.f32 %v2479_v48, %v2410_v7  ;;  %v779_v53 = vmul.f32 0.5, %v2463_v50  ;;  %v867_v61 = vmul.f32 0.044715, %v2588_v22 }
 0x22e   :  { %v2581_v39 = vpop.f32.mrb[17].mxu1  ;;  %1497 = vst [vmem:[%s3492_s5 + $0x30] sm:$0xff] %v1417_v62  ;;  %v1416_v60 = vmul.f32 %v1336_v3, %v776_v15  ;;  %v1338_v12 = vadd.f32 1.0, %v1697_v5  ;;  %v1699_v45 = vpop.eup %1698  ;;  %1706 = vtanh.f32 %v1183_v46  ;;  %v1105_v59 = vadd.f32 %v1025_v44, %v2517_v2 }
 0x22f   :  { %v1339_v14 = vadd.f32 1.0, %v1699_v45  ;;  %v1104_v48 = vadd.f32 %v1024_v41, %v2529_v37  ;;  %v1026_v57 = vmul.f32 %v946_v47, %v2565_v28  ;;  %v781_v50 = vmul.f32 0.5, %v2466_v25 }
 0x230   :  { %1496 = vst [vmem:[%s3492_s5 + $0x28] sm:$0xff] %v1416_v60  ;;  %v1418_v35 = vmul.f32 %v1338_v12, %v778_v9  ;;  %v2602_v40 = vpop.f32.mrb[18].mxu0  ;;  %v2604_v18 = vpop.f32.mrb[18].mxu1  ;;  %v947_v19 = vmul.f32 %v867_v61, %v2588_v22  ;;  %v869_v11 = vmul.f32 0.044715, %v2595_v51  ;;  %v2621_v27 = vadd.f32 %v2481_v52, %v2412_v42 }
 0x231   :  { %v2609_v20 = vpop.f32.mrb[19].mxu0  ;;  %v2611_v56 = vpop.f32.mrb[19].mxu1  ;;  %v1419_v63 = vmul.f32 %v1339_v14, %v779_v53  ;;  %v1185_v62 = vmul.f32 0.7978846, %v1105_v59  ;;  %v1184_v3 = vmul.f32 0.7978846, %v1104_v48  ;;  %v1106_v5 = vadd.f32 %v1026_v57, %v2565_v28 }
 0x232   :  { %v1701_v15 = vpop.eup %1700  ;;  %1498 = vst [vmem:[%s3492_s5 + $0x38] sm:$0xff] %v1418_v35  ;;  %v780_v31 = vmul.f32 0.5, %v2486_v24  ;;  %v1027_v9 = vmul.f32 %v947_v19, %v2588_v22  ;;  %v949_v25 = vmul.f32 %v869_v11, %v2595_v51  ;;  %v868_v60 = vmul.f32 0.044715, %v2621_v27 }
 0x233   :  { %v1341_v8 = vadd.f32 1.0, %v1701_v15  ;;  %v1703_v55 = vpop.eup %1702  ;;  %1499 = vst [vmem:[%s3492_s5 + $0x40] sm:$0xff] %v1419_v63  ;;  %1708 = vtanh.f32 %v1185_v62  ;;  %v2637_v24 = vadd.f32 %v2488_v54, %v2414_v4  ;;  %v1186_v47 = vmul.f32 0.7978846, %v1106_v5 }
 0x234   :  { %v2627_v34 = vpop.f32.mrb[20].mxu0  ;;  %v2629_v30 = vpop.f32.mrb[20].mxu1  ;;  %v1340_v41 = vadd.f32 1.0, %v1703_v55  ;;  %1710 = vtanh.f32 %v1184_v3  ;;  %v1107_v45 = vadd.f32 %v1027_v9, %v2588_v22  ;;  %v782_v35 = vmul.f32 0.5, %v2492_v1 }
 0x235   :  { %v1421_v52 = vmul.f32 %v1341_v8, %v781_v50  ;;  %v2639_v12 = vpop.f32.mrb[21].mxu0  ;;  %v2641_v46 = vpop.f32.mrb[21].mxu1  ;;  %v1029_v54 = vmul.f32 %v949_v25, %v2595_v51  ;;  %v948_v61 = vmul.f32 %v868_v60, %v2621_v27  ;;  %1712 = vtanh.f32 %v1186_v47 }
 0x236   :  { %v1705_v44 = vpop.eup %1704  ;;  %v1420_v14 = vmul.f32 %v1340_v41, %v780_v31  ;;  %v1187_v59 = vmul.f32 0.7978846, %v1107_v45  ;;  %v870_v48 = vmul.f32 0.044715, %v2637_v24  ;;  %v2659_v1 = vadd.f32 %v2498_v29, %v2408_v13 }
 0x237   :  { %1501 = vst [vmem:[%s3492_s5 + $0x50] sm:$0xff] %v1421_v52  ;;  %v1342_v53 = vadd.f32 1.0, %v1705_v44  ;;  %v1109_v19 = vadd.f32 %v1029_v54, %v2595_v51  ;;  %v1028_v11 = vmul.f32 %v948_v61, %v2621_v27  ;;  %v2671_v31 = vadd.f32 %v2500_v26, %v2410_v7 }
 0x238   :  { %v2651_v57 = vpop.f32.mrb[22].mxu0  ;;  %v2653_v15 = vpop.f32.mrb[22].mxu1  ;;  %1500 = vst [vmem:[%s3492_s5 + $0x48] sm:$0xff] %v1420_v14  ;;  %1714 = vtanh.f32 %v1187_v59  ;;  %v950_v3 = vmul.f32 %v870_v48, %v2637_v24  ;;  %v2675_v29 = vadd.f32 %v2504_v10, %v2412_v42  ;;  %v783_v5 = vmul.f32 0.5, %v2510_v0 }
 0x239   :  { %v1422_v50 = vmul.f32 %v1342_v53, %v782_v35  ;;  %v2661_v63 = vpop.f32.mrb[23].mxu0  ;;  %v2663_v8 = vpop.f32.mrb[23].mxu1  ;;  %v1189_v25 = vmul.f32 0.7978846, %v1109_v19  ;;  %v1108_v55 = vadd.f32 %v1028_v11, %v2621_v27  ;;  %v785_v52 = vmul.f32 0.5, %v2517_v2 }
 0x23a   :  { %v1707_v62 = vpop.eup %1706  ;;  %v1030_v60 = vmul.f32 %v950_v3, %v2637_v24  ;;  %v871_v26 = vmul.f32 0.044715, %v2659_v1  ;;  %v873_v44 = vmul.f32 0.044715, %v2671_v31  ;;  %v784_v47 = vmul.f32 0.5, %v2529_v37 }
 0x23b   :  { %1502 = vst [vmem:[%s3492_s5 + $0x58] sm:$0xff] %v1422_v50  ;;  %v1343_v9 = vadd.f32 1.0, %v1707_v62  ;;  %1716 = vtanh.f32 %v1189_v25  ;;  %v1188_v45 = vmul.f32 0.7978846, %v1108_v55  ;;  %v872_v61 = vmul.f32 0.044715, %v2675_v29 }
 0x23c   :  { %v2686_v10 = vpop.f32.mrb[24].mxu0  ;;  %v2689_v0 = vpop.f32.mrb[24].mxu1  ;;  %v1110_v53 = vadd.f32 %v1030_v60, %v2637_v24  ;;  %v951_v2 = vmul.f32 %v871_v26, %v2659_v1  ;;  %v953_v54 = vmul.f32 %v873_v44, %v2671_v31  ;;  %v786_v37 = vmul.f32 0.5, %v2565_v28 }
 0x23d   :  { %v1423_v41 = vmul.f32 %v1343_v9, %v783_v5  ;;  %v2691_v35 = vpop.f32.mrb[25].mxu0  ;;  %v2697_v14 = vpop.f32.mrb[25].mxu1  ;;  %1718 = vtanh.f32 %v1188_v45  ;;  %v2705_v48 = vadd.f32 %v2512_v58, %v2414_v4  ;;  %v2709_v50 = vadd.f32 %v2521_v32, %v2408_v13 }
 0x23e   :  { %v1709_v59 = vpop.eup %1708  ;;  %v1190_v62 = vmul.f32 0.7978846, %v1110_v53  ;;  %v1031_v3 = vmul.f32 %v951_v2, %v2659_v1  ;;  %v1033_v5 = vmul.f32 %v953_v54, %v2671_v31  ;;  %v952_v55 = vmul.f32 %v872_v61, %v2675_v29 }
 0x23f   :  { %1503 = vst [vmem:[%s3492_s5 + $0x60] sm:$0xff] %v1423_v41  ;;  %v1711_v19 = vpop.eup %1710  ;;  %v1345_v11 = vadd.f32 1.0, %v1709_v59  ;;  %v874_v58 = vmul.f32 0.044715, %v2705_v48  ;;  %v2721_v32 = vadd.f32 %v2523_v17, %v2410_v7  ;;  %v787_v17 = vmul.f32 0.5, %v2588_v22 }
 0x240   :  { %v2713_v9 = vpop.f32.mrb[26].mxu0  ;;  %v2715_v25 = vpop.f32.mrb[26].mxu1  ;;  %v1344_v28 = vadd.f32 1.0, %v1711_v19  ;;  %1720 = vtanh.f32 %v1190_v62  ;;  %v1111_v45 = vadd.f32 %v1031_v3, %v2659_v1  ;;  %v1113_v53 = vadd.f32 %v1033_v5, %v2671_v31 }
 0x241   :  { %v2723_v60 = vpop.f32.mrb[27].mxu0  ;;  %v2725_v26 = vpop.f32.mrb[27].mxu1  ;;  %v1425_v41 = vmul.f32 %v1345_v11, %v785_v52  ;;  %v1032_v61 = vmul.f32 %v952_v55, %v2675_v29  ;;  %v954_v59 = vmul.f32 %v874_v58, %v2705_v48  ;;  %v789_v52 = vmul.f32 0.5, %v2595_v51 }
 0x242   :  { %v1713_v44 = vpop.eup %1712  ;;  %v1424_v2 = vmul.f32 %v1344_v28, %v784_v47  ;;  %v1191_v11 = vmul.f32 0.7978846, %v1111_v45  ;;  %v1193_v62 = vmul.f32 0.7978846, %v1113_v53  ;;  %v875_v22 = vmul.f32 0.044715, %v2709_v50 }
 0x243   :  { %v1346_v54 = vadd.f32 1.0, %v1713_v44  ;;  %v1715_v19 = vpop.eup %1714  ;;  %1505 = vst [vmem:[%s3492_s5 + $0x70] sm:$0xff] %v1425_v41  ;;  %v1112_v5 = vadd.f32 %v1032_v61, %v2675_v29  ;;  %v1034_v28 = vmul.f32 %v954_v59, %v2705_v48  ;;  %v877_v51 = vmul.f32 0.044715, %v2721_v32 }
 0x244   :  { %1504 = vst [vmem:[%s3492_s5 + $0x68] sm:$0xff] %v1424_v2  ;;  %v1347_v3 = vadd.f32 1.0, %v1715_v19  ;;  %v2741_v55 = vpop.f32.mrb[28].mxu0  ;;  %v2743_v58 = vpop.f32.mrb[28].mxu1  ;;  %1722 = vtanh.f32 %v1191_v11  ;;  %v2749_v44 = vadd.f32 %v2531_v49, %v2412_v42  ;;  %v788_v59 = vmul.f32 0.5, %v2621_v27 }
 0x245   :  { %v1426_v47 = vmul.f32 %v1346_v54, %v786_v37  ;;  %v2751_v41 = vpop.f32.mrb[29].mxu0  ;;  %v2753_v37 = vpop.f32.mrb[29].mxu1  ;;  %1724 = vtanh.f32 %v1193_v62  ;;  %v1192_v2 = vmul.f32 0.7978846, %v1112_v5  ;;  %v1114_v54 = vadd.f32 %v1034_v28, %v2705_v48 }
 0x246   :  { %3493 = vst [vmem:[#allocation2_spill] sm:$0xff] %v2751_v41  ;;  %3494 = vst [vmem:[#allocation3_spill] sm:$0xff] %v2753_v37  ;;  %v1717_v45 = vpop.eup %1716  ;;  %v1427_v53 = vmul.f32 %v1347_v3, %v787_v17  ;;  %v955_v49 = vmul.f32 %v875_v22, %v2709_v50  ;;  %v957_v19 = vmul.f32 %v877_v51, %v2721_v32  ;;  %v876_v62 = vmul.f32 0.044715, %v2749_v44 }
 0x247   :  { %1506 = vst [vmem:[%s3492_s5 + $0x78] sm:$0xff] %v1426_v47  ;;  %v1349_v61 = vadd.f32 1.0, %v1717_v45  ;;  %v1719_v41 = vpop.eup %1718  ;;  %1726 = vtanh.f32 %v1192_v2  ;;  %v1194_v17 = vmul.f32 0.7978846, %v1114_v54  ;;  %v2772_v27 = vadd.f32 %v2533_v38, %v2414_v4 }
 0x248   :  { %v2762_v11 = vpop.f32.mrb[30].mxu0  ;;  %v2764_v37 = vpop.f32.mrb[30].mxu1  ;;  %1507 = vst [vmem:[%s3492_s5 + $0x80] sm:$0xff] %v1427_v53  ;;  %v1348_v28 = vadd.f32 1.0, %v1719_v41  ;;  %v1035_v22 = vmul.f32 %v955_v49, %v2709_v50  ;;  %v1037_v51 = vmul.f32 %v957_v19, %v2721_v32  ;;  %v790_v45 = vmul.f32 0.5, %v2637_v24 }
 0x249   :  { %v2774_v47 = vpop.f32.mrb[31].mxu0  ;;  %v2776_v3 = vpop.f32.mrb[31].mxu1  ;;  %v1429_v5 = vmul.f32 %v1349_v61, %v789_v52  ;;  %1728 = vtanh.f32 %v1194_v17  ;;  %v956_v53 = vmul.f32 %v876_v62, %v2749_v44  ;;  %v878_v2 = vmul.f32 0.044715, %v2772_v27 }
 0x24a   :  { %3495 = vst [vmem:[#allocation4_spill] sm:$0xff] %v2776_v3  ;;  %v1721_v54 = vpop.eup %1720  ;;  %v1428_v38 = vmul.f32 %v1348_v28, %v788_v59  ;;  %v1115_v52 = vadd.f32 %v1035_v22, %v2709_v50  ;;  %v1117_v41 = vadd.f32 %v1037_v51, %v2721_v32  ;;  %v2790_v61 = vadd.f32 %v2542_v23, %v2408_v13 }
 0x24b   :  { %1509 = vst [vmem:[%s3492_s5 + $0x90] sm:$0xff] %v1429_v5  ;;  %v1350_v19 = vadd.f32 1.0, %v1721_v54  ;;  %v1036_v17 = vmul.f32 %v956_v53, %v2749_v44  ;;  %v958_v62 = vmul.f32 %v878_v2, %v2772_v27  ;;  %v2800_v59 = vadd.f32 %v2544_v6, %v2410_v7 }
 0x24c   :  { %v2792_v24 = vpop.f32.mrb[32].mxu0  ;;  %v2794_v49 = vpop.f32.mrb[32].mxu1  ;;  %1508 = vst [vmem:[%s3492_s5 + $0x88] sm:$0xff] %v1428_v38  ;;  %v791_v23 = vmul.f32 0.5, %v2659_v1  ;;  %v1195_v22 = vmul.f32 0.7978846, %v1115_v52  ;;  %v2812_v53 = vadd.f32 %v2549_v43, %v2412_v42 }
 0x24d   :  { %3496 = vst [vmem:[#allocation5_spill] sm:$0xff] %v2792_v24  ;;  %3497 = vst [vmem:[#allocation6_spill] sm:$0xff] %v2794_v49  ;;  %v2802_v5 = vpop.f32.mrb[33].mxu0  ;;  %v2804_v28 = vpop.f32.mrb[33].mxu1  ;;  %v1197_v51 = vmul.f32 0.7978846, %v1117_v41  ;;  %v1430_v2 = vmul.f32 %v1350_v19, %v790_v45  ;;  %v1116_v6 = vadd.f32 %v1036_v17, %v2749_v44  ;;  %v1038_v54 = vmul.f32 %v958_v62, %v2772_v27 }
 0x24e   :  { %3498 = vst [vmem:[#allocation7_spill] sm:$0xff] %v2802_v5  ;;  %3499 = vst [vmem:[#allocation8_spill] sm:$0xff] %v2804_v28  ;;  %v879_v5 = vmul.f32 0.044715, %v2790_v61  ;;  %v1723_v28 = vpop.eup %1722  ;;  %v793_v49 = vmul.f32 0.5, %v2671_v31  ;;  %v792_v38 = vmul.f32 0.5, %v2675_v29  ;;  %1730 = vtanh.f32 %v1195_v22 }
 0x24f   :  { %v881_v1 = vmul.f32 0.044715, %v2800_v59  ;;  %v1725_v43 = vpop.eup %1724  ;;  %1510 = vst [vmem:[%s3492_s5 + $0x98] sm:$0xff] %v1430_v2  ;;  %v1351_v45 = vadd.f32 1.0, %v1723_v28  ;;  %1732 = vtanh.f32 %v1197_v51  ;;  %v1196_v19 = vmul.f32 0.7978846, %v1116_v6 }
 0x250   :  { %v2820_v52 = vpop.f32.mrb[34].mxu0  ;;  %v2822_v41 = vpop.f32.mrb[34].mxu1  ;;  %v1118_v17 = vadd.f32 %v1038_v54, %v2772_v27  ;;  %v1353_v62 = vadd.f32 1.0, %v1725_v43  ;;  %v959_v22 = vmul.f32 %v879_v5, %v2790_v61  ;;  %v2837_v28 = vadd.f32 %v2557_v21, %v2414_v4 }
 0x251   :  { %3500 = vst [vmem:[#allocation9_spill] sm:$0xff] %v2820_v52  ;;  %3501 = vst [vmem:[#allocation10_spill] sm:$0xff] %v2822_v41  ;;  %v2828_v31 = vpop.f32.mrb[35].mxu0  ;;  %v2830_v29 = vpop.f32.mrb[35].mxu1  ;;  %v961_v52 = vmul.f32 %v881_v1, %v2800_v59  ;;  %v880_v41 = vmul.f32 0.044715, %v2812_v53  ;;  %v1431_v3 = vmul.f32 %v1351_v45, %v791_v23  ;;  %1734 = vtanh.f32 %v1196_v19 }
 0x252   :  { %3502 = vst [vmem:[#allocation11_spill] sm:$0xff] %v2830_v29  ;;  %v1727_v24 = vpop.eup %1726  ;;  %v1198_v2 = vmul.f32 0.7978846, %v1118_v17  ;;  %v1433_v51 = vmul.f32 %v1353_v62, %v793_v49  ;;  %v1039_v54 = vmul.f32 %v959_v22, %v2790_v61  ;;  %v794_v23 = vmul.f32 0.5, %v2705_v48 }
 0x253   :  { %v1352_v6 = vadd.f32 1.0, %v1727_v24  ;;  %v1041_v43 = vmul.f32 %v961_v52, %v2800_v59  ;;  %v1729_v1 = vpop.eup %1728  ;;  %1511 = vst [vmem:[%s3492_s5 + $0xa0] sm:$0xff] %v1431_v3  ;;  %v960_v21 = vmul.f32 %v880_v41, %v2812_v53  ;;  %v882_v24 = vmul.f32 0.044715, %v2837_v28 }
 0x254   :  { %v2841_v29 = vpop.f32.mrb[36].mxu0  ;;  %v2843_v5 = vpop.f32.mrb[36].mxu1  ;;  %1736 = vtanh.f32 %v1198_v2  ;;  %1513 = vst [vmem:[%s3492_s5 + $0xb0] sm:$0xff] %v1433_v51  ;;  %v1354_v19 = vadd.f32 1.0, %v1729_v1  ;;  %v1119_v17 = vadd.f32 %v1039_v54, %v2790_v61  ;;  %v2864_v62 = vadd.f32 %v2568_v16, %v2408_v13 }
 0x255   :  { %v2851_v49 = vpop.f32.mrb[37].mxu0  ;;  %v2853_v45 = vpop.f32.mrb[37].mxu1  ;;  %v1432_v52 = vmul.f32 %v1352_v6, %v792_v38  ;;  %v1121_v3 = vadd.f32 %v1041_v43, %v2800_v59  ;;  %v1040_v48 = vmul.f32 %v960_v21, %v2812_v53  ;;  %v962_v41 = vmul.f32 %v882_v24, %v2837_v28 }
 0x256   :  { %v2868_v22 = vadd.f32 %v2570_v33, %v2410_v7  ;;  %v1434_v38 = vmul.f32 %v1354_v19, %v794_v23  ;;  %v1199_v2 = vmul.f32 0.7978846, %v1119_v17  ;;  %v2875_v6 = vadd.f32 %v2579_v36, %v2412_v42 }
 0x257   :  { %1512 = vst [vmem:[%s3492_s5 + $0xa8] sm:$0xff] %v1432_v52  ;;  %v1201_v51 = vmul.f32 0.7978846, %v1121_v3  ;;  %v795_v16 = vmul.f32 0.5, %v2709_v50  ;;  %v1120_v33 = vadd.f32 %v1040_v48, %v2812_v53  ;;  %v1042_v1 = vmul.f32 %v962_v41, %v2837_v28 }
 0x258   :  { %v2877_v54 = vpop.f32.mrb[38].mxu0  ;;  %v2879_v43 = vpop.f32.mrb[38].mxu1  ;;  %v883_v21 = vmul.f32 0.044715, %v2864_v62  ;;  %1514 = vst [vmem:[%s3492_s5 + $0xb8] sm:$0xff] %v1434_v38  ;;  %v797_v36 = vmul.f32 0.5, %v2721_v32  ;;  %1738 = vtanh.f32 %v1199_v2  ;;  %v2901_v2 = vadd.f32 %v2581_v39, %v2414_v4 }
 0x259   :  { %3503 = vst [vmem:[#allocation12_spill] sm:$0xff] %v2877_v54  ;;  %3504 = vst [vmem:[#allocation13_spill] sm:$0xff] %v2879_v43  ;;  %v2885_v24 = vpop.f32.mrb[39].mxu0  ;;  %v2887_v23 = vpop.f32.mrb[39].mxu1  ;;  %v796_v19 = vmul.f32 0.5, %v2749_v44  ;;  %1740 = vtanh.f32 %v1201_v51  ;;  %v1122_v41 = vadd.f32 %v1042_v1, %v2837_v28 }
 0x25a   :  { %3505 = vst [vmem:[#allocation14_spill] sm:$0xff] %v2885_v24  ;;  %3506 = vst [vmem:[#allocation15_spill] sm:$0xff] %v2887_v23  ;;  %v1731_v52 = vpop.eup %1730  ;;  %v885_v50 = vmul.f32 0.044715, %v2868_v22  ;;  %v1200_v48 = vmul.f32 0.7978846, %v1120_v33  ;;  %v963_v23 = vmul.f32 %v883_v21, %v2864_v62 }
 0x25b   :  { %v1733_v17 = vpop.eup %1732  ;;  %v1355_v3 = vadd.f32 1.0, %v1731_v52  ;;  %v884_v38 = vmul.f32 0.044715, %v2875_v6  ;;  %v1202_v44 = vmul.f32 0.7978846, %v1122_v41  ;;  %v798_v21 = vmul.f32 0.5, %v2772_v27 }
 0x25c   :  { %v1357_v24 = vadd.f32 1.0, %v1733_v17  ;;  %v965_v43 = vmul.f32 %v885_v50, %v2868_v22  ;;  %v1735_v54 = vpop.eup %1734  ;;  %1742 = vtanh.f32 %v1200_v48  ;;  %v1043_v33 = vmul.f32 %v963_v23, %v2864_v62 }
 0x25d   :  { %v1435_v32 = vmul.f32 %v1355_v3, %v795_v16  ;;  %v1356_v51 = vadd.f32 1.0, %v1735_v54  ;;  %1744 = vtanh.f32 %v1202_v44  ;;  %v964_v16 = vmul.f32 %v884_v38, %v2875_v6 }
 0x25e   :  { %v1437_v52 = vmul.f32 %v1357_v24, %v797_v36  ;;  %v1045_v1 = vmul.f32 %v965_v43, %v2868_v22  ;;  %v1737_v17 = vpop.eup %1736  ;;  %v886_v50 = vmul.f32 0.044715, %v2901_v2  ;;  %v1123_v43 = vadd.f32 %v1043_v33, %v2864_v62 }
 0x25f   :  { %1515 = vst [vmem:[%s3492_s5 + $0xc0] sm:$0xff] %v1435_v32  ;;  %v1436_v39 = vmul.f32 %v1356_v51, %v796_v19  ;;  %v1358_v54 = vadd.f32 1.0, %v1737_v17  ;;  %v1044_v23 = vmul.f32 %v964_v16, %v2875_v6  ;;  %v2920_v27 = vadd.f32 %v2602_v40, %v2408_v13 }
 0x260   :  { %1517 = vst [vmem:[%s3492_s5 + $0xd0] sm:$0xff] %v1437_v52  ;;  %v1125_v24 = vadd.f32 %v1045_v1, %v2868_v22  ;;  %v966_v36 = vmul.f32 %v886_v50, %v2901_v2  ;;  %v2924_v3 = vadd.f32 %v2604_v18, %v2410_v7  ;;  %v1203_v48 = vmul.f32 0.7978846, %v1123_v43 }
 0x261   :  { %1516 = vst [vmem:[%s3492_s5 + $0xc8] sm:$0xff] %v1436_v39  ;;  %v1438_v19 = vmul.f32 %v1358_v54, %v798_v21  ;;  %v2931_v38 = vadd.f32 %v2609_v20, %v2412_v42  ;;  %v799_v32 = vmul.f32 0.5, %v2790_v61  ;;  %v1124_v40 = vadd.f32 %v1044_v23, %v2875_v6 }
 0x262   :  { %v1205_v41 = vmul.f32 0.7978846, %v1125_v24  ;;  %v1046_v44 = vmul.f32 %v966_v36, %v2901_v2  ;;  %v887_v18 = vmul.f32 0.044715, %v2920_v27  ;;  %v1739_v52 = vpop.eup %1738  ;;  %v801_v51 = vmul.f32 0.5, %v2800_v59 }
 0x263   :  { %1518 = vst [vmem:[%s3492_s5 + $0xd8] sm:$0xff] %v1438_v19  ;;  %v800_v33 = vmul.f32 0.5, %v2812_v53  ;;  %1746 = vtanh.f32 %v1203_v48  ;;  %v889_v20 = vmul.f32 0.044715, %v2924_v3  ;;  %v1741_v1 = vpop.eup %1740  ;;  %v1359_v61 = vadd.f32 1.0, %v1739_v52 }
 0x264   :  { %1748 = vtanh.f32 %v1205_v41  ;;  %v1204_v17 = vmul.f32 0.7978846, %v1124_v40  ;;  %v1126_v21 = vadd.f32 %v1046_v44, %v2901_v2  ;;  %v1361_v16 = vadd.f32 1.0, %v1741_v1 }
 0x265   :  { %v967_v50 = vmul.f32 %v887_v18, %v2920_v27  ;;  %v969_v39 = vmul.f32 %v889_v20, %v2924_v3  ;;  %v888_v54 = vmul.f32 0.044715, %v2931_v38  ;;  %v1439_v59 = vmul.f32 %v1359_v61, %v799_v32 }
 0x266   :  { %v1743_v43 = vpop.eup %1742  ;;  %1750 = vtanh.f32 %v1204_v17  ;;  %v1206_v53 = vmul.f32 0.7978846, %v1126_v21  ;;  %v2949_v24 = vadd.f32 %v2611_v56, %v2414_v4  ;;  %v1441_v23 = vmul.f32 %v1361_v16, %v801_v51 }
 0x267   :  { %v1360_v36 = vadd.f32 1.0, %v1743_v43  ;;  %v1047_v19 = vmul.f32 %v967_v50, %v2920_v27  ;;  %v1049_v48 = vmul.f32 %v969_v39, %v2924_v3  ;;  %v1745_v41 = vpop.eup %1744  ;;  %1519 = vst [vmem:[%s3492_s5 + $0xe0] sm:$0xff] %v1439_v59  ;;  %v802_v40 = vmul.f32 0.5, %v2837_v28 }
 0x268   :  { %1752 = vtanh.f32 %v1206_v53  ;;  %v968_v32 = vmul.f32 %v888_v54, %v2931_v38  ;;  %v890_v44 = vmul.f32 0.044715, %v2949_v24  ;;  %1521 = vst [vmem:[%s3492_s5 + $0xf0] sm:$0xff] %v1441_v23  ;;  %v1362_v18 = vadd.f32 1.0, %v1745_v41 }
 0x269   :  { %v1440_v56 = vmul.f32 %v1360_v36, %v800_v33  ;;  %v1127_v52 = vadd.f32 %v1047_v19, %v2920_v27  ;;  %v1129_v51 = vadd.f32 %v1049_v48, %v2924_v3  ;;  %v2968_v28 = vadd.f32 %v2627_v34, %v2408_v13 }
 0x26a   :  { %v1048_v20 = vmul.f32 %v968_v32, %v2931_v38  ;;  %v970_v1 = vmul.f32 %v890_v44, %v2949_v24  ;;  %v2972_v61 = vadd.f32 %v2629_v30, %v2410_v7  ;;  %v1442_v33 = vmul.f32 %v1362_v18, %v802_v40 }
 0x26b   :  { %1520 = vst [vmem:[%s3492_s5 + $0xe8] sm:$0xff] %v1440_v56  ;;  %v1207_v17 = vmul.f32 0.7978846, %v1127_v52  ;;  %v1209_v21 = vmul.f32 0.7978846, %v1129_v51  ;;  %v2979_v16 = vadd.f32 %v2639_v12, %v2412_v42  ;;  %v803_v50 = vmul.f32 0.5, %v2864_v62 }
 0x26c   :  { %v1128_v34 = vadd.f32 %v1048_v20, %v2931_v38  ;;  %v1050_v39 = vmul.f32 %v970_v1, %v2949_v24  ;;  %v891_v30 = vmul.f32 0.044715, %v2968_v28  ;;  %1522 = vst [vmem:[%s3492_s5 + $0xf8] sm:$0xff] %v1442_v33  ;;  %v805_v43 = vmul.f32 0.5, %v2868_v22 }
 0x26d   :  { %v1747_v54 = vpop.eup %1746  ;;  %v804_v59 = vmul.f32 0.5, %v2875_v6  ;;  %1754 = vtanh.f32 %v1207_v17  ;;  %v893_v12 = vmul.f32 0.044715, %v2972_v61  ;;  %v892_v40 = vmul.f32 0.044715, %v2979_v16 }
 0x26e   :  { %v1749_v53 = vpop.eup %1748  ;;  %v1363_v62 = vadd.f32 1.0, %v1747_v54  ;;  %1756 = vtanh.f32 %v1209_v21  ;;  %v1208_v23 = vmul.f32 0.7978846, %v1128_v34  ;;  %v1130_v36 = vadd.f32 %v1050_v39, %v2949_v24 }
 0x26f   :  { %v1365_v19 = vadd.f32 1.0, %v1749_v53  ;;  %v971_v48 = vmul.f32 %v891_v30, %v2968_v28  ;;  %v973_v41 = vmul.f32 %v893_v12, %v2972_v61  ;;  %v2997_v44 = vadd.f32 %v2641_v46, %v2414_v4 }
 0x270   :  { %v1751_v32 = vpop.eup %1750  ;;  %v1443_v22 = vmul.f32 %v1363_v62, %v803_v50  ;;  %1758 = vtanh.f32 %v1208_v23  ;;  %v1210_v6 = vmul.f32 0.7978846, %v1130_v36  ;;  %v806_v1 = vmul.f32 0.5, %v2901_v2 }
 0x271   :  { %v1445_v56 = vmul.f32 %v1365_v19, %v805_v43  ;;  %v1364_v18 = vadd.f32 1.0, %v1751_v32  ;;  %v1051_v52 = vmul.f32 %v971_v48, %v2968_v28  ;;  %v1053_v51 = vmul.f32 %v973_v41, %v2972_v61 }
 0x272   :  { %v1753_v20 = vpop.eup %1752  ;;  %1523 = vst [vmem:[%s3492_s5 + $0x100] sm:$0xff] %v1443_v22  ;;  %1760 = vtanh.f32 %v1210_v6  ;;  %v972_v33 = vmul.f32 %v892_v40, %v2979_v16  ;;  %v894_v17 = vmul.f32 0.044715, %v2997_v44  ;;  %v3016_v2 = vadd.f32 %v2651_v57, %v2408_v13 }
 0x273   :  { %1525 = vst [vmem:[%s3492_s5 + $0x110] sm:$0xff] %v1445_v56  ;;  %v1444_v46 = vmul.f32 %v1364_v18, %v804_v59  ;;  %v1366_v21 = vadd.f32 1.0, %v1753_v20  ;;  %v1131_v50 = vadd.f32 %v1051_v52, %v2968_v28  ;;  %v1133_v34 = vadd.f32 %v1053_v51, %v2972_v61 }
 0x274   :  { %v1052_v39 = vmul.f32 %v972_v33, %v2979_v16  ;;  %v974_v30 = vmul.f32 %v894_v17, %v2997_v44  ;;  %v3020_v54 = vadd.f32 %v2653_v15, %v2410_v7  ;;  %v3027_v53 = vadd.f32 %v2661_v63, %v2412_v42 }
 0x275   :  { %1524 = vst [vmem:[%s3492_s5 + $0x108] sm:$0xff] %v1444_v46  ;;  %v1446_v43 = vmul.f32 %v1366_v21, %v806_v1  ;;  %v1211_v59 = vmul.f32 0.7978846, %v1131_v50  ;;  %v1213_v12 = vmul.f32 0.7978846, %v1133_v34  ;;  %v807_v62 = vmul.f32 0.5, %v2920_v27 }
 0x276   :  { %v1132_v57 = vadd.f32 %v1052_v39, %v2979_v16  ;;  %v1054_v23 = vmul.f32 %v974_v30, %v2997_v44  ;;  %v895_v15 = vmul.f32 0.044715, %v3016_v2  ;;  %v809_v19 = vmul.f32 0.5, %v2924_v3 }
 0x277   :  { %v1755_v36 = vpop.eup %1754  ;;  %1526 = vst [vmem:[%s3492_s5 + $0x118] sm:$0xff] %v1446_v43  ;;  %v808_v48 = vmul.f32 0.5, %v2931_v38  ;;  %1762 = vtanh.f32 %v1211_v59  ;;  %v897_v63 = vmul.f32 0.044715, %v3020_v54  ;;  %v896_v18 = vmul.f32 0.044715, %v3027_v53 }
 0x278   :  { %v1757_v41 = vpop.eup %1756  ;;  %v1367_v27 = vadd.f32 1.0, %v1755_v36  ;;  %1764 = vtanh.f32 %v1213_v12  ;;  %v1212_v40 = vmul.f32 0.7978846, %v1132_v57  ;;  %v1134_v32 = vadd.f32 %v1054_v23, %v2997_v44 }
 0x279   :  { %v1369_v22 = vadd.f32 1.0, %v1757_v41  ;;  %v975_v6 = vmul.f32 %v895_v15, %v3016_v2  ;;  %v977_v56 = vmul.f32 %v897_v63, %v3020_v54  ;;  %v3045_v51 = vadd.f32 %v2663_v8, %v2414_v4 }
 0x27a   :  { %v1759_v52 = vpop.eup %1758  ;;  %v1447_v3 = vmul.f32 %v1367_v27, %v807_v62  ;;  %1766 = vtanh.f32 %v1212_v40  ;;  %v1214_v38 = vmul.f32 0.7978846, %v1134_v32  ;;  %v810_v21 = vmul.f32 0.5, %v2949_v24 }
 0x27b   :  { %v1449_v20 = vmul.f32 %v1369_v22, %v809_v19  ;;  %v1368_v1 = vadd.f32 1.0, %v1759_v52  ;;  %v1055_v33 = vmul.f32 %v975_v6, %v3016_v2  ;;  %v1057_v17 = vmul.f32 %v977_v56, %v3020_v54 }
 0x27c   :  { %v1761_v46 = vpop.eup %1760  ;;  %1527 = vst [vmem:[%s3492_s5 + $0x120] sm:$0xff] %v1447_v3  ;;  %1768 = vtanh.f32 %v1214_v38  ;;  %v976_v50 = vmul.f32 %v896_v18, %v3027_v53  ;;  %v898_v34 = vmul.f32 0.044715, %v3045_v51  ;;  %v3064_v24 = vadd.f32 %v2686_v10, %v2408_v13 }
 0x27d   :  { %1529 = vst [vmem:[%s3492_s5 + $0x130] sm:$0xff] %v1449_v20  ;;  %v1448_v8 = vmul.f32 %v1368_v1, %v808_v48  ;;  %v1370_v39 = vadd.f32 1.0, %v1761_v46  ;;  %v1135_v30 = vadd.f32 %v1055_v33, %v3016_v2  ;;  %v1137_v43 = vadd.f32 %v1057_v17, %v3020_v54 }
 0x27e   :  { %v1056_v59 = vmul.f32 %v976_v50, %v3027_v53  ;;  %v978_v12 = vmul.f32 %v898_v34, %v3045_v51  ;;  %v3068_v62 = vadd.f32 %v2689_v0, %v2410_v7  ;;  %v3075_v36 = vadd.f32 %v2691_v35, %v2412_v42 }
 0x27f   :  { %1528 = vst [vmem:[%s3492_s5 + $0x128] sm:$0xff] %v1448_v8  ;;  %v1450_v57 = vmul.f32 %v1370_v39, %v810_v21  ;;  %v1215_v23 = vmul.f32 0.7978846, %v1135_v30  ;;  %v1217_v15 = vmul.f32 0.7978846, %v1137_v43  ;;  %v811_v19 = vmul.f32 0.5, %v2968_v28 }
 0x280   :  { %v1136_v10 = vadd.f32 %v1056_v59, %v3027_v53  ;;  %v1058_v48 = vmul.f32 %v978_v12, %v3045_v51  ;;  %v899_v0 = vmul.f32 0.044715, %v3064_v24  ;;  %v813_v41 = vmul.f32 0.5, %v2972_v61 }
 0x281   :  { %v1763_v63 = vpop.eup %1762  ;;  %1530 = vst [vmem:[%s3492_s5 + $0x138] sm:$0xff] %v1450_v57  ;;  %v812_v27 = vmul.f32 0.5, %v2979_v16  ;;  %1770 = vtanh.f32 %v1215_v23  ;;  %v901_v35 = vmul.f32 0.044715, %v3068_v62  ;;  %v900_v52 = vmul.f32 0.044715, %v3075_v36 }
 0x282   :  { %v1765_v40 = vpop.eup %1764  ;;  %v1371_v28 = vadd.f32 1.0, %v1763_v63  ;;  %1772 = vtanh.f32 %v1217_v15  ;;  %v1216_v32 = vmul.f32 0.7978846, %v1136_v10  ;;  %v1138_v22 = vadd.f32 %v1058_v48, %v3045_v51 }
 0x283   :  { %v1373_v6 = vadd.f32 1.0, %v1765_v40  ;;  %v979_v56 = vmul.f32 %v899_v0, %v3064_v24  ;;  %v981_v18 = vmul.f32 %v901_v35, %v3068_v62  ;;  %v3093_v38 = vadd.f32 %v2697_v14, %v2414_v4 }
 0x284   :  { %v1767_v3 = vpop.eup %1766  ;;  %v1451_v61 = vmul.f32 %v1371_v28, %v811_v19  ;;  %1774 = vtanh.f32 %v1216_v32  ;;  %v1218_v16 = vmul.f32 0.7978846, %v1138_v22  ;;  %v814_v21 = vmul.f32 0.5, %v2997_v44 }
 0x285   :  { %v1453_v20 = vmul.f32 %v1373_v6, %v813_v41  ;;  %v1372_v1 = vadd.f32 1.0, %v1767_v3  ;;  %v1059_v33 = vmul.f32 %v979_v56, %v3064_v24  ;;  %v1061_v17 = vmul.f32 %v981_v18, %v3068_v62 }
 0x286   :  { %v1769_v46 = vpop.eup %1768  ;;  %1531 = vst [vmem:[%s3492_s5 + $0x140] sm:$0xff] %v1451_v61  ;;  %1776 = vtanh.f32 %v1218_v16  ;;  %v980_v50 = vmul.f32 %v900_v52, %v3075_v36  ;;  %v902_v34 = vmul.f32 0.044715, %v3093_v38  ;;  %v3112_v44 = vadd.f32 %v2713_v9, %v2408_v13 }
 0x287   :  { %1533 = vst [vmem:[%s3492_s5 + $0x150] sm:$0xff] %v1453_v20  ;;  %v1452_v14 = vmul.f32 %v1372_v1, %v812_v27  ;;  %v1374_v8 = vadd.f32 1.0, %v1769_v46  ;;  %v1139_v39 = vadd.f32 %v1059_v33, %v3064_v24  ;;  %v1141_v30 = vadd.f32 %v1061_v17, %v3068_v62 }
 0x288   :  { %v1060_v43 = vmul.f32 %v980_v50, %v3075_v36  ;;  %v982_v59 = vmul.f32 %v902_v34, %v3093_v38  ;;  %v3116_v12 = vadd.f32 %v2715_v25, %v2410_v7  ;;  %v3123_v19 = vadd.f32 %v2723_v60, %v2412_v42 }
 0x289   :  { %1532 = vst [vmem:[%s3492_s5 + $0x148] sm:$0xff] %v1452_v14  ;;  %v1454_v57 = vmul.f32 %v1374_v8, %v814_v21  ;;  %v1219_v23 = vmul.f32 0.7978846, %v1139_v39  ;;  %v1221_v15 = vmul.f32 0.7978846, %v1141_v30  ;;  %v815_v10 = vmul.f32 0.5, %v3016_v2 }
 0x28a   :  { %v1140_v9 = vadd.f32 %v1060_v43, %v3075_v36  ;;  %v1062_v48 = vmul.f32 %v982_v59, %v3093_v38  ;;  %v903_v25 = vmul.f32 0.044715, %v3112_v44  ;;  %v817_v63 = vmul.f32 0.5, %v3020_v54  ;;  %v3507_v59 = vld [vmem:[#allocation2_spill] sm:$0xff] }
 0x28b   :  { %v1771_v0 = vpop.eup %1770  ;;  %1534 = vst [vmem:[%s3492_s5 + $0x158] sm:$0xff] %v1454_v57  ;;  %v816_v41 = vmul.f32 0.5, %v3027_v53  ;;  %1778 = vtanh.f32 %v1219_v23  ;;  %v905_v60 = vmul.f32 0.044715, %v3116_v12  ;;  %v904_v6 = vmul.f32 0.044715, %v3123_v19 }
 0x28c   :  { %v1773_v27 = vpop.eup %1772  ;;  %v1375_v2 = vadd.f32 1.0, %v1771_v0  ;;  %1780 = vtanh.f32 %v1221_v15  ;;  %v1220_v35 = vmul.f32 0.7978846, %v1140_v9  ;;  %v1142_v40 = vadd.f32 %v1062_v48, %v3093_v38 }
 0x28d   :  { %v1377_v28 = vadd.f32 1.0, %v1773_v27  ;;  %v983_v32 = vmul.f32 %v903_v25, %v3112_v44  ;;  %v985_v22 = vmul.f32 %v905_v60, %v3116_v12  ;;  %v3141_v18 = vadd.f32 %v2725_v26, %v2414_v4 }
 0x28e   :  { %v1775_v56 = vpop.eup %1774  ;;  %v1455_v54 = vmul.f32 %v1375_v2, %v815_v10  ;;  %1782 = vtanh.f32 %v1220_v35  ;;  %v1222_v53 = vmul.f32 0.7978846, %v1142_v40  ;;  %v818_v1 = vmul.f32 0.5, %v3045_v51 }
 0x28f   :  { %v1457_v52 = vmul.f32 %v1377_v28, %v817_v63  ;;  %v1376_v3 = vadd.f32 1.0, %v1775_v56  ;;  %v1063_v61 = vmul.f32 %v983_v32, %v3112_v44  ;;  %v1065_v16 = vmul.f32 %v985_v22, %v3116_v12  ;;  %v3508_v28 = vld [vmem:[#allocation3_spill] sm:$0xff] }
 0x290   :  { %v1777_v20 = vpop.eup %1776  ;;  %1535 = vst [vmem:[%s3492_s5 + $0x160] sm:$0xff] %v1455_v54  ;;  %1784 = vtanh.f32 %v1222_v53  ;;  %v984_v33 = vmul.f32 %v904_v6, %v3123_v19  ;;  %v906_v17 = vmul.f32 0.044715, %v3141_v18  ;;  %v3160_v51 = vadd.f32 %v2741_v55, %v2408_v13 }
 0x291   :  { %1537 = vst [vmem:[%s3492_s5 + $0x170] sm:$0xff] %v1457_v52  ;;  %v1456_v26 = vmul.f32 %v1376_v3, %v816_v41  ;;  %v1378_v46 = vadd.f32 1.0, %v1777_v20  ;;  %v1143_v21 = vadd.f32 %v1063_v61, %v3112_v44  ;;  %v1145_v50 = vadd.f32 %v1065_v16, %v3116_v12 }
 0x292   :  { %v1064_v34 = vmul.f32 %v984_v33, %v3123_v19  ;;  %v986_v14 = vmul.f32 %v906_v17, %v3141_v18  ;;  %v3164_v8 = vadd.f32 %v2743_v58, %v2410_v7  ;;  %v3171_v57 = vadd.f32 %v3507_v59, %v2412_v42 }
 0x293   :  { %1536 = vst [vmem:[%s3492_s5 + $0x168] sm:$0xff] %v1456_v26  ;;  %v1458_v39 = vmul.f32 %v1378_v46, %v818_v1  ;;  %v1223_v30 = vmul.f32 0.7978846, %v1143_v21  ;;  %v1225_v43 = vmul.f32 0.7978846, %v1145_v50  ;;  %v819_v23 = vmul.f32 0.5, %v3064_v24 }
 0x294   :  { %v1144_v55 = vadd.f32 %v1064_v34, %v3123_v19  ;;  %v1066_v15 = vmul.f32 %v986_v14, %v3141_v18  ;;  %v907_v58 = vmul.f32 0.044715, %v3160_v51  ;;  %v821_v9 = vmul.f32 0.5, %v3068_v62 }
 0x295   :  { %v1779_v10 = vpop.eup %1778  ;;  %1538 = vst [vmem:[%s3492_s5 + $0x178] sm:$0xff] %v1458_v39  ;;  %v820_v48 = vmul.f32 0.5, %v3075_v36  ;;  %1786 = vtanh.f32 %v1223_v30  ;;  %v909_v25 = vmul.f32 0.044715, %v3164_v8  ;;  %v908_v35 = vmul.f32 0.044715, %v3171_v57 }
 0x296   :  { %v1781_v0 = vpop.eup %1780  ;;  %v1379_v24 = vadd.f32 1.0, %v1779_v10  ;;  %1788 = vtanh.f32 %v1225_v43  ;;  %v1224_v63 = vmul.f32 0.7978846, %v1144_v55  ;;  %v1146_v41 = vadd.f32 %v1066_v15, %v3141_v18 }
 0x297   :  { %v1381_v60 = vadd.f32 1.0, %v1781_v0  ;;  %v987_v27 = vmul.f32 %v907_v58, %v3160_v51  ;;  %v989_v2 = vmul.f32 %v909_v25, %v3164_v8  ;;  %v3189_v32 = vadd.f32 %v3508_v28, %v2414_v4 }
 0x298   :  { %v1783_v40 = vpop.eup %1782  ;;  %v1459_v62 = vmul.f32 %v1379_v24, %v819_v23  ;;  %1790 = vtanh.f32 %v1224_v63  ;;  %v1226_v36 = vmul.f32 0.7978846, %v1146_v41  ;;  %v822_v52 = vmul.f32 0.5, %v3093_v38  ;;  %v3509_v24 = vld [vmem:[#allocation4_spill] sm:$0xff] }
 0x299   :  { %v1461_v22 = vmul.f32 %v1381_v60, %v821_v9  ;;  %v1380_v6 = vadd.f32 1.0, %v1783_v40  ;;  %v1067_v56 = vmul.f32 %v987_v27, %v3160_v51  ;;  %v1069_v54 = vmul.f32 %v989_v2, %v3164_v8 }
 0x29a   :  { %v1785_v53 = vpop.eup %1784  ;;  %1539 = vst [vmem:[%s3492_s5 + $0x180] sm:$0xff] %v1459_v62  ;;  %1792 = vtanh.f32 %v1226_v36  ;;  %v988_v3 = vmul.f32 %v908_v35, %v3171_v57  ;;  %v910_v61 = vmul.f32 0.044715, %v3189_v32  ;;  %v3208_v38 = vadd.f32 %v2762_v11, %v2408_v13 }
 0x29b   :  { %1541 = vst [vmem:[%s3492_s5 + $0x190] sm:$0xff] %v1461_v22  ;;  %v1460_v16 = vmul.f32 %v1380_v6, %v820_v48  ;;  %v1382_v20 = vadd.f32 1.0, %v1785_v53  ;;  %v1147_v1 = vadd.f32 %v1067_v56, %v3160_v51  ;;  %v1149_v33 = vadd.f32 %v1069_v54, %v3164_v8 }
 0x29c   :  { %v1068_v17 = vmul.f32 %v988_v3, %v3171_v57  ;;  %v990_v26 = vmul.f32 %v910_v61, %v3189_v32  ;;  %v3212_v46 = vadd.f32 %v2764_v37, %v2410_v7  ;;  %v3219_v14 = vadd.f32 %v2774_v47, %v2412_v42  ;;  %v3511_v3 = vld [vmem:[#allocation6_spill] sm:$0xff] }
 0x29d   :  { %1540 = vst [vmem:[%s3492_s5 + $0x188] sm:$0xff] %v1460_v16  ;;  %v1462_v21 = vmul.f32 %v1382_v20, %v822_v52  ;;  %v1227_v50 = vmul.f32 0.7978846, %v1147_v1  ;;  %v1229_v34 = vmul.f32 0.7978846, %v1149_v33  ;;  %v823_v39 = vmul.f32 0.5, %v3112_v44 }
 0x29e   :  { %v1148_v11 = vadd.f32 %v1068_v17, %v3171_v57  ;;  %v1070_v30 = vmul.f32 %v990_v26, %v3189_v32  ;;  %v911_v37 = vmul.f32 0.044715, %v3208_v38  ;;  %v825_v59 = vmul.f32 0.5, %v3116_v12  ;;  %v3512_v33 = vld [vmem:[#allocation7_spill] sm:$0xff] }
 0x29f   :  { %v1787_v43 = vpop.eup %1786  ;;  %1542 = vst [vmem:[%s3492_s5 + $0x198] sm:$0xff] %v1462_v21  ;;  %v824_v23 = vmul.f32 0.5, %v3123_v19  ;;  %1794 = vtanh.f32 %v1227_v50  ;;  %v913_v47 = vmul.f32 0.044715, %v3212_v46  ;;  %v912_v25 = vmul.f32 0.044715, %v3219_v14 }
 0x2a0   :  { %v1789_v55 = vpop.eup %1788  ;;  %v1383_v44 = vadd.f32 1.0, %v1787_v43  ;;  %1796 = vtanh.f32 %v1229_v34  ;;  %v1228_v15 = vmul.f32 0.7978846, %v1148_v11  ;;  %v1150_v58 = vadd.f32 %v1070_v30, %v3189_v32 }
 0x2a1   :  { %v1385_v10 = vadd.f32 1.0, %v1789_v55  ;;  %v991_v9 = vmul.f32 %v911_v37, %v3208_v38  ;;  %v993_v48 = vmul.f32 %v913_v47, %v3212_v46  ;;  %v3237_v63 = vadd.f32 %v3509_v24, %v2414_v4 }
 0x2a2   :  { %v1791_v0 = vpop.eup %1790  ;;  %v1463_v12 = vmul.f32 %v1383_v44, %v823_v39  ;;  %1798 = vtanh.f32 %v1228_v15  ;;  %v1230_v19 = vmul.f32 0.7978846, %v1150_v58  ;;  %v826_v40 = vmul.f32 0.5, %v3141_v18  ;;  %v3510_v18 = vld [vmem:[#allocation5_spill] sm:$0xff] }
 0x2a3   :  { %v1465_v41 = vmul.f32 %v1385_v10, %v825_v59  ;;  %v1384_v60 = vadd.f32 1.0, %v1791_v0  ;;  %v1071_v27 = vmul.f32 %v991_v9, %v3208_v38  ;;  %v1073_v2 = vmul.f32 %v993_v48, %v3212_v46  ;;  %v3513_v10 = vld [vmem:[#allocation8_spill] sm:$0xff] }
 0x2a4   :  { %v1793_v35 = vpop.eup %1792  ;;  %1543 = vst [vmem:[%s3492_s5 + $0x1a0] sm:$0xff] %v1463_v12  ;;  %1800 = vtanh.f32 %v1230_v19  ;;  %v992_v62 = vmul.f32 %v912_v25, %v3219_v14  ;;  %v914_v36 = vmul.f32 0.044715, %v3237_v63  ;;  %v3256_v52 = vadd.f32 %v3510_v18, %v2408_v13 }
 0x2a5   :  { %1545 = vst [vmem:[%s3492_s5 + $0x1b0] sm:$0xff] %v1465_v41  ;;  %v1464_v28 = vmul.f32 %v1384_v60, %v824_v23  ;;  %v1386_v22 = vadd.f32 1.0, %v1793_v35  ;;  %v1151_v6 = vadd.f32 %v1071_v27, %v3208_v38  ;;  %v1153_v56 = vadd.f32 %v1073_v2, %v3212_v46 }
 0x2a6   :  { %v1072_v54 = vmul.f32 %v992_v62, %v3219_v14  ;;  %v994_v53 = vmul.f32 %v914_v36, %v3237_v63  ;;  %v3260_v61 = vadd.f32 %v3511_v3, %v2410_v7  ;;  %v3267_v17 = vadd.f32 %v3512_v33, %v2412_v42 }
 0x2a7   :  { %1544 = vst [vmem:[%s3492_s5 + $0x1a8] sm:$0xff] %v1464_v28  ;;  %v1466_v16 = vmul.f32 %v1386_v22, %v826_v40  ;;  %v1231_v20 = vmul.f32 0.7978846, %v1151_v6  ;;  %v1233_v1 = vmul.f32 0.7978846, %v1153_v56  ;;  %v827_v26 = vmul.f32 0.5, %v3160_v51 }
 0x2a8   :  { %v1152_v21 = vadd.f32 %v1072_v54, %v3219_v14  ;;  %v1074_v50 = vmul.f32 %v994_v53, %v3237_v63  ;;  %v915_v34 = vmul.f32 0.044715, %v3256_v52  ;;  %v829_v11 = vmul.f32 0.5, %v3164_v8  ;;  %v3515_v22 = vld [vmem:[#allocation10_spill] sm:$0xff] }
 0x2a9   :  { %v1795_v39 = vpop.eup %1794  ;;  %1546 = vst [vmem:[%s3492_s5 + $0x1b8] sm:$0xff] %v1466_v16  ;;  %v828_v30 = vmul.f32 0.5, %v3171_v57  ;;  %1802 = vtanh.f32 %v1231_v20  ;;  %v917_v37 = vmul.f32 0.044715, %v3260_v61  ;;  %v916_v15 = vmul.f32 0.044715, %v3267_v17 }
 0x2aa   :  { %v1797_v43 = vpop.eup %1796  ;;  %v1387_v51 = vadd.f32 1.0, %v1795_v39  ;;  %1804 = vtanh.f32 %v1233_v1  ;;  %v1232_v59 = vmul.f32 0.7978846, %v1152_v21  ;;  %v1154_v23 = vadd.f32 %v1074_v50, %v3237_v63 }
 0x2ab   :  { %v1389_v47 = vadd.f32 1.0, %v1797_v43  ;;  %v995_v55 = vmul.f32 %v915_v34, %v3256_v52  ;;  %v997_v44 = vmul.f32 %v917_v37, %v3260_v61  ;;  %v3285_v9 = vadd.f32 %v3513_v10, %v2414_v4 }
 0x2ac   :  { %v1799_v58 = vpop.eup %1798  ;;  %v1467_v8 = vmul.f32 %v1387_v51, %v827_v26  ;;  %1806 = vtanh.f32 %v1232_v59  ;;  %v1234_v57 = vmul.f32 0.7978846, %v1154_v23  ;;  %v830_v24 = vmul.f32 0.5, %v3189_v32  ;;  %v3514_v32 = vld [vmem:[#allocation9_spill] sm:$0xff]  ;;  %v3516_v59 = vld [vmem:[#allocation11_spill] sm:$0xff] }
 0x2ad   :  { %v1469_v48 = vmul.f32 %v1389_v47, %v829_v11  ;;  %v1388_v25 = vadd.f32 1.0, %v1799_v58  ;;  %v1075_v0 = vmul.f32 %v995_v55, %v3256_v52  ;;  %v1077_v12 = vmul.f32 %v997_v44, %v3260_v61 }
 0x2ae   :  { %v1801_v19 = vpop.eup %1800  ;;  %1547 = vst [vmem:[%s3492_s5 + $0x1c0] sm:$0xff] %v1467_v8  ;;  %1808 = vtanh.f32 %v1234_v57  ;;  %v996_v41 = vmul.f32 %v916_v15, %v3267_v17  ;;  %v918_v60 = vmul.f32 0.044715, %v3285_v9  ;;  %v3304_v28 = vadd.f32 %v3514_v32, %v2408_v13 }
 0x2af   :  { %1549 = vst [vmem:[%s3492_s5 + $0x1d0] sm:$0xff] %v1469_v48  ;;  %v1468_v27 = vmul.f32 %v1388_v25, %v828_v30  ;;  %v1390_v2 = vadd.f32 1.0, %v1801_v19  ;;  %v1155_v35 = vadd.f32 %v1075_v0, %v3256_v52  ;;  %v1157_v40 = vadd.f32 %v1077_v12, %v3260_v61 }
 0x2b0   :  { %v1076_v62 = vmul.f32 %v996_v41, %v3267_v17  ;;  %v998_v36 = vmul.f32 %v918_v60, %v3285_v9  ;;  %v3308_v6 = vadd.f32 %v3515_v22, %v2410_v7  ;;  %v3315_v18 = vadd.f32 %v2828_v31, %v2412_v42 }
 0x2b1   :  { %1548 = vst [vmem:[%s3492_s5 + $0x1c8] sm:$0xff] %v1468_v27  ;;  %v1470_v56 = vmul.f32 %v1390_v2, %v830_v24  ;;  %v1235_v54 = vmul.f32 0.7978846, %v1155_v35  ;;  %v1237_v53 = vmul.f32 0.7978846, %v1157_v40  ;;  %v831_v3 = vmul.f32 0.5, %v3208_v38 }
 0x2b2   :  { %v1156_v16 = vadd.f32 %v1076_v62, %v3267_v17  ;;  %v1078_v20 = vmul.f32 %v998_v36, %v3285_v9  ;;  %v919_v1 = vmul.f32 0.044715, %v3304_v28  ;;  %v833_v26 = vmul.f32 0.5, %v3212_v46 }
 0x2b3   :  { %v1803_v33 = vpop.eup %1802  ;;  %1550 = vst [vmem:[%s3492_s5 + $0x1d8] sm:$0xff] %v1470_v56  ;;  %v832_v21 = vmul.f32 0.5, %v3219_v14  ;;  %1810 = vtanh.f32 %v1235_v54  ;;  %v921_v31 = vmul.f32 0.044715, %v3308_v6  ;;  %v920_v43 = vmul.f32 0.044715, %v3315_v18 }
 0x2b4   :  { %v1805_v50 = vpop.eup %1804  ;;  %v1391_v38 = vadd.f32 1.0, %v1803_v33  ;;  %1812 = vtanh.f32 %v1237_v53  ;;  %v1236_v34 = vmul.f32 0.7978846, %v1156_v16  ;;  %v1158_v39 = vadd.f32 %v1078_v20, %v3285_v9 }
 0x2b5   :  { %v1393_v11 = vadd.f32 1.0, %v1805_v50  ;;  %v999_v30 = vmul.f32 %v919_v1, %v3304_v28  ;;  %v1001_v37 = vmul.f32 %v921_v31, %v3308_v6  ;;  %v3333_v23 = vadd.f32 %v3516_v59, %v2414_v4 }
 0x2b6   :  { %v1807_v51 = vpop.eup %1806  ;;  %v1471_v46 = vmul.f32 %v1391_v38, %v831_v3  ;;  %1814 = vtanh.f32 %v1236_v34  ;;  %v1238_v14 = vmul.f32 0.7978846, %v1158_v39  ;;  %v834_v8 = vmul.f32 0.5, %v3237_v63 }
 0x2b7   :  { %v1473_v47 = vmul.f32 %v1393_v11, %v833_v26  ;;  %v1392_v55 = vadd.f32 1.0, %v1807_v51  ;;  %v1079_v44 = vmul.f32 %v999_v30, %v3304_v28  ;;  %v1081_v15 = vmul.f32 %v1001_v37, %v3308_v6 }
 0x2b8   :  { %v1809_v58 = vpop.eup %1808  ;;  %1551 = vst [vmem:[%s3492_s5 + $0x1e0] sm:$0xff] %v1471_v46  ;;  %1816 = vtanh.f32 %v1238_v14  ;;  %v1000_v57 = vmul.f32 %v920_v43, %v3315_v18  ;;  %v922_v10 = vmul.f32 0.044715, %v3333_v23  ;;  %v3352_v63 = vadd.f32 %v2841_v29, %v2408_v13 }
 0x2b9   :  { %1553 = vst [vmem:[%s3492_s5 + $0x1f0] sm:$0xff] %v1473_v47  ;;  %v1472_v48 = vmul.f32 %v1392_v55, %v832_v21  ;;  %v1394_v25 = vadd.f32 1.0, %v1809_v58  ;;  %v1159_v0 = vadd.f32 %v1079_v44, %v3304_v28  ;;  %v1161_v12 = vadd.f32 %v1081_v15, %v3308_v6  ;;  %v3518_v47 = vld [vmem:[#allocation13_spill] sm:$0xff] }
 0x2ba   :  { %v1080_v19 = vmul.f32 %v1000_v57, %v3315_v18  ;;  %v1002_v24 = vmul.f32 %v922_v10, %v3333_v23  ;;  %v3356_v41 = vadd.f32 %v2843_v5, %v2410_v7  ;;  %v3363_v35 = vadd.f32 %v2851_v49, %v2412_v42 }
 0x2bb   :  { %1552 = vst [vmem:[%s3492_s5 + $0x1e8] sm:$0xff] %v1472_v48  ;;  %v1474_v60 = vmul.f32 %v1394_v25, %v834_v8  ;;  %v1239_v27 = vmul.f32 0.7978846, %v1159_v0  ;;  %v1241_v2 = vmul.f32 0.7978846, %v1161_v12  ;;  %v835_v40 = vmul.f32 0.5, %v3256_v52 }
 0x2bc   :  { %v1160_v29 = vadd.f32 %v1080_v19, %v3315_v18  ;;  %v1082_v62 = vmul.f32 %v1002_v24, %v3333_v23  ;;  %v923_v5 = vmul.f32 0.044715, %v3352_v63  ;;  %v837_v32 = vmul.f32 0.5, %v3260_v61  ;;  %v3519_v8 = vld [vmem:[#allocation14_spill] sm:$0xff] }
 0x2bd   :  { %v1811_v36 = vpop.eup %1810  ;;  %1554 = vst [vmem:[%s3492_s5 + $0x1f8] sm:$0xff] %v1474_v60  ;;  %v836_v22 = vmul.f32 0.5, %v3267_v17  ;;  %1818 = vtanh.f32 %v1239_v27  ;;  %v925_v49 = vmul.f32 0.044715, %v3356_v41  ;;  %v924_v1 = vmul.f32 0.044715, %v3363_v35 }
 0x2be   :  { %v1813_v56 = vpop.eup %1812  ;;  %v1395_v52 = vadd.f32 1.0, %v1811_v36  ;;  %1820 = vtanh.f32 %v1241_v2  ;;  %v1240_v54 = vmul.f32 0.7978846, %v1160_v29  ;;  %v1162_v53 = vadd.f32 %v1082_v62, %v3333_v23 }
 0x2bf   :  { %v1397_v3 = vadd.f32 1.0, %v1813_v56  ;;  %v1003_v16 = vmul.f32 %v923_v5, %v3352_v63  ;;  %v1005_v20 = vmul.f32 %v925_v49, %v3356_v41  ;;  %v3381_v26 = vadd.f32 %v2853_v45, %v2414_v4  ;;  %v3520_v5 = vld [vmem:[#allocation15_spill] sm:$0xff] }
 0x2c0   :  { %v1815_v33 = vpop.eup %1814  ;;  %v1475_v61 = vmul.f32 %v1395_v52, %v835_v40  ;;  %1822 = vtanh.f32 %v1240_v54  ;;  %v1242_v17 = vmul.f32 0.7978846, %v1162_v53  ;;  %v838_v39 = vmul.f32 0.5, %v3285_v9  ;;  %v3517_v9 = vld [vmem:[#allocation12_spill] sm:$0xff] }
 0x2c1   :  { %v1477_v21 = vmul.f32 %v1397_v3, %v837_v32  ;;  %v1396_v31 = vadd.f32 1.0, %v1815_v33  ;;  %v1083_v50 = vmul.f32 %v1003_v16, %v3352_v63  ;;  %v1085_v38 = vmul.f32 %v1005_v20, %v3356_v41 }
 0x2c2   :  { %v1817_v34 = vpop.eup %1816  ;;  %1555 = vst [vmem:[%s3492_s5 + $0x200] sm:$0xff] %v1475_v61  ;;  %1824 = vtanh.f32 %v1242_v17  ;;  %v1004_v11 = vmul.f32 %v924_v1, %v3363_v35  ;;  %v926_v30 = vmul.f32 0.044715, %v3381_v26  ;;  %v3400_v59 = vadd.f32 %v3517_v9, %v2408_v13 }
 0x2c3   :  { %1557 = vst [vmem:[%s3492_s5 + $0x210] sm:$0xff] %v1477_v21  ;;  %v1476_v45 = vmul.f32 %v1396_v31, %v836_v22  ;;  %v1398_v37 = vadd.f32 1.0, %v1817_v34  ;;  %v1163_v43 = vadd.f32 %v1083_v50, %v3352_v63  ;;  %v1165_v51 = vadd.f32 %v1085_v38, %v3356_v41 }
 0x2c4   :  { %v1084_v46 = vmul.f32 %v1004_v11, %v3363_v35  ;;  %v1006_v14 = vmul.f32 %v926_v30, %v3381_v26  ;;  %v3404_v55 = vadd.f32 %v3518_v47, %v2410_v7  ;;  %v3411_v57 = vadd.f32 %v3519_v8, %v2412_v42 }
 0x2c5   :  { %1556 = vst [vmem:[%s3492_s5 + $0x208] sm:$0xff] %v1476_v45  ;;  %v1478_v44 = vmul.f32 %v1398_v37, %v838_v39  ;;  %v1243_v15 = vmul.f32 0.7978846, %v1163_v43  ;;  %v1245_v58 = vmul.f32 0.7978846, %v1165_v51  ;;  %v839_v10 = vmul.f32 0.5, %v3304_v28 }
 0x2c6   :  { %v1164_v13 = vadd.f32 %v1084_v46, %v3363_v35  ;;  %v1086_v48 = vmul.f32 %v1006_v14, %v3381_v26  ;;  %v927_v7 = vmul.f32 0.044715, %v3400_v59  ;;  %v841_v0 = vmul.f32 0.5, %v3308_v6 }
 0x2c7   :  { %v1819_v25 = vpop.eup %1818  ;;  %1558 = vst [vmem:[%s3492_s5 + $0x218] sm:$0xff] %v1478_v44  ;;  %v840_v12 = vmul.f32 0.5, %v3315_v18  ;;  %1826 = vtanh.f32 %v1243_v15  ;;  %v929_v42 = vmul.f32 0.044715, %v3404_v55  ;;  %v928_v29 = vmul.f32 0.044715, %v3411_v57 }
 0x2c8   :  { %v1821_v19 = vpop.eup %1820  ;;  %v1399_v28 = vadd.f32 1.0, %v1819_v25  ;;  %1828 = vtanh.f32 %v1245_v58  ;;  %v1244_v24 = vmul.f32 0.7978846, %v1164_v13  ;;  %v1166_v60 = vadd.f32 %v1086_v48, %v3381_v26 }
 0x2c9   :  { %v1401_v27 = vadd.f32 1.0, %v1821_v19  ;;  %v1007_v2 = vmul.f32 %v927_v7, %v3400_v59  ;;  %v1009_v40 = vmul.f32 %v929_v42, %v3404_v55  ;;  %v3429_v36 = vadd.f32 %v3520_v5, %v2414_v4 }
 0x2ca   :  { %v1823_v62 = vpop.eup %1822  ;;  %v1479_v6 = vmul.f32 %v1399_v28, %v839_v10  ;;  %1830 = vtanh.f32 %v1244_v24  ;;  %v1246_v18 = vmul.f32 0.7978846, %v1166_v60  ;;  %v842_v54 = vmul.f32 0.5, %v3333_v23 }
 0x2cb   :  { %v1481_v32 = vmul.f32 %v1401_v27, %v841_v0  ;;  %v1400_v22 = vadd.f32 1.0, %v1823_v62  ;;  %v1087_v49 = vmul.f32 %v1007_v2, %v3400_v59  ;;  %v1089_v56 = vmul.f32 %v1009_v40, %v3404_v55 }
 0x2cc   :  { %v1825_v52 = vpop.eup %1824  ;;  %1559 = vst [vmem:[%s3492_s5 + $0x220] sm:$0xff] %v1479_v6  ;;  %1832 = vtanh.f32 %v1246_v18  ;;  %v1008_v53 = vmul.f32 %v928_v29, %v3411_v57  ;;  %v930_v3 = vmul.f32 0.044715, %v3429_v36  ;;  %v843_v34 = vmul.f32 0.5, %v3352_v63 }
 0x2cd   :  { %1561 = vst [vmem:[%s3492_s5 + $0x230] sm:$0xff] %v1481_v32  ;;  %v1480_v4 = vmul.f32 %v1400_v22, %v840_v12  ;;  %v1402_v16 = vadd.f32 1.0, %v1825_v52  ;;  %v1167_v20 = vadd.f32 %v1087_v49, %v3400_v59  ;;  %v1169_v1 = vadd.f32 %v1089_v56, %v3404_v55 }
 0x2ce   :  { %v1088_v33 = vmul.f32 %v1008_v53, %v3411_v57  ;;  %v1010_v61 = vmul.f32 %v930_v3, %v3429_v36  ;;  %v845_v37 = vmul.f32 0.5, %v3356_v41  ;;  %v844_v47 = vmul.f32 0.5, %v3363_v35 }
 0x2cf   :  { %1560 = vst [vmem:[%s3492_s5 + $0x228] sm:$0xff] %v1480_v4  ;;  %v1482_v23 = vmul.f32 %v1402_v16, %v842_v54  ;;  %v1247_v17 = vmul.f32 0.7978846, %v1167_v20  ;;  %v1249_v21 = vmul.f32 0.7978846, %v1169_v1  ;;  %v846_v41 = vmul.f32 0.5, %v3381_v26 }
 0x2d0   :  { %v1168_v31 = vadd.f32 %v1088_v33, %v3411_v57  ;;  %v1090_v50 = vmul.f32 %v1010_v61, %v3429_v36  ;;  %v847_v13 = vmul.f32 0.5, %v3400_v59  ;;  %v849_v7 = vmul.f32 0.5, %v3404_v55 }
 0x2d1   :  { %v1827_v38 = vpop.eup %1826  ;;  %1562 = vst [vmem:[%s3492_s5 + $0x238] sm:$0xff] %v1482_v23  ;;  %1834 = vtanh.f32 %v1247_v17  ;;  %v848_v42 = vmul.f32 0.5, %v3411_v57  ;;  %v850_v24 = vmul.f32 0.5, %v3429_v36 }
 0x2d2   :  { %v1829_v39 = vpop.eup %1828  ;;  %v1403_v11 = vadd.f32 1.0, %v1827_v38  ;;  %1836 = vtanh.f32 %v1249_v21  ;;  %v1248_v30 = vmul.f32 0.7978846, %v1168_v31  ;;  %v1170_v45 = vadd.f32 %v1090_v50, %v3429_v36 }
 0x2d3   :  { %v1405_v43 = vadd.f32 1.0, %v1829_v39 }
 0x2d4   :  { %v1831_v51 = vpop.eup %1830  ;;  %v1483_v46 = vmul.f32 %v1403_v11, %v843_v34  ;;  %1838 = vtanh.f32 %v1248_v30  ;;  %v1250_v14 = vmul.f32 0.7978846, %v1170_v45 }
 0x2d5   :  { %v1485_v9 = vmul.f32 %v1405_v43, %v845_v37  ;;  %v1404_v44 = vadd.f32 1.0, %v1831_v51 }
 0x2d6   :  { %v1833_v15 = vpop.eup %1832  ;;  %1563 = vst [vmem:[%s3492_s5 + $0x240] sm:$0xff] %v1483_v46  ;;  %1840 = vtanh.f32 %v1250_v14 }
 0x2d7   :  { %1565 = vst [vmem:[%s3492_s5 + $0x250] sm:$0xff] %v1485_v9  ;;  %v1484_v63 = vmul.f32 %v1404_v44, %v844_v47  ;;  %v1406_v58 = vadd.f32 1.0, %v1833_v15 }
 0x2d9   :  { %1564 = vst [vmem:[%s3492_s5 + $0x248] sm:$0xff] %v1484_v63  ;;  %v1486_v35 = vmul.f32 %v1406_v58, %v846_v41 }
 0x2db   :  { %v1835_v8 = vpop.eup %1834  ;;  %1566 = vst [vmem:[%s3492_s5 + $0x258] sm:$0xff] %v1486_v35 }
 0x2dc   :  { %v1837_v10 = vpop.eup %1836  ;;  %v1407_v48 = vadd.f32 1.0, %v1835_v8 }
 0x2dd   :  { %v1409_v25 = vadd.f32 1.0, %v1837_v10 }
 0x2de   :  { %v1839_v0 = vpop.eup %1838  ;;  %v1487_v26 = vmul.f32 %v1407_v48, %v847_v13 }
 0x2df   :  { %v1489_v12 = vmul.f32 %v1409_v25, %v849_v7  ;;  %v1408_v19 = vadd.f32 1.0, %v1839_v0 }
 0x2e0   :  { %v1841_v28 = vpop.eup %1840  ;;  %1567 = vst [vmem:[%s3492_s5 + $0x260] sm:$0xff] %v1487_v26 }
 0x2e1   :  { %1569 = vst [vmem:[%s3492_s5 + $0x270] sm:$0xff] %v1489_v12  ;;  %v1488_v59 = vmul.f32 %v1408_v19, %v848_v42  ;;  %v1410_v55 = vadd.f32 1.0, %v1841_v28 }
 0x2e3   :  { %1568 = vst [vmem:[%s3492_s5 + $0x268] sm:$0xff] %v1488_v59  ;;  %v1490_v60 = vmul.f32 %v1410_v55, %v850_v24 }
 0x2e5   :  { %1570 = vst [vmem:[%s3492_s5 + $0x278] sm:$0xff] %v1490_v60 }

</bundles_post_ra>
